<compile_context>
chip_gen: v6e
topology: v6e:2x2x1
jax: 0.10.0
libtpu: 0.0.40
codegen_flags: <defaults>
</compile_context>

<pallas_src>
import functools

import jax
import jax.numpy as jnp
from jax import lax
from jax.experimental import pallas as pl
from jax.experimental.pallas import tpu as pltpu

HIDDEN_SIZE = 128
INPUT_SIZE = 160
NUM_LAYERS = 3
OUT_SIZE = 10
OUT_PAD = 128     # lane-dense padded classifier width
BATCH_PAD = 8     # sublane granularity


def fused_rnn_kernel(x_ref,
                     w_ih0_ref, w_hh0_ref, b0_ref,
                     w_l1_ref, b1_ref,
                     w_l2_hbm_ref, b2_ref,
                     w_out_ref, b_out_ref,
                     out_ref,
                     gx_scr, w_l2_vmem, w_l2_sem,
                     *, T, Bp, H):
    """3-layer LSTM wavefront + linear head, everything VMEM-resident.

    x_ref:      (T*Bp, INPUT_SIZE) bf16, time-major, batch padded to Bp rows.
    w_ih0:      (INPUT_SIZE, 4H) bf16    w_hh0: (H, 4H) bf16
    w_l1:       (2H, 4H) bf16 stacked [W_ih1 ; W_hh1]
    w_l2_hbm:   (2H, 4H) bf16 stacked [W_ih2 ; W_hh2], left in HBM (pl.ANY)
    b*:         (1, 4H) f32 combined b_ih + b_hh, gate order [i, f, g, o]
    w_out:      (H, OUT_PAD) bf16    b_out: (1, OUT_PAD) f32
    out_ref:    (Bp, OUT_PAD) f32
    gx_scr:     (T*Bp, 4H) f32 precomputed layer-0 input projection
    w_l2_vmem:  (2H, 4H) bf16 landing buffer for the manual layer-2 weight DMA
    """
    bf16 = jnp.bfloat16

    # Kick off the layer-2 weight DMA first so it overlaps with the big
    # layer-0 projection matmul and the first two wavefront macro-steps.
    w_l2_copy = pltpu.make_async_copy(w_l2_hbm_ref, w_l2_vmem, w_l2_sem)
    w_l2_copy.start()

    # Layer-0 non-recurrent projection for all T timesteps in one MXU matmul
    # (M = T*Bp = 64 instead of Bp = 8 per serial step); bias folded in here.
    gx_scr[...] = (
        jnp.dot(x_ref[...], w_ih0_ref[...], preferred_element_type=jnp.float32)
        + b0_ref[...])

    def lstm_cell(gates, c_prev):
        i_g = jax.nn.sigmoid(gates[:, 0 * H:1 * H])
        f_g = jax.nn.sigmoid(gates[:, 1 * H:2 * H])
        g_g = jnp.tanh(gates[:, 2 * H:3 * H])
        o_g = jax.nn.sigmoid(gates[:, 3 * H:4 * H])
        c_new = f_g * c_prev + i_g * g_g
        h_new = o_g * jnp.tanh(c_new)
        return h_new, c_new

    zero = jnp.zeros((Bp, H), jnp.float32)
    h0, c0 = zero, zero
    h1, c1 = zero, zero
    h2, c2 = zero, zero

    # Wavefront: macro-step s computes layer0@t=s, layer1@t=s-1, layer2@t=s-2.
    # Each layer reads the *previous* macro-step value of the layer above it
    # (commits happen only at the end of the macro-step), so the three
    # per-step matmuls / gate blocks are independent and their MXU + EUP
    # latencies overlap.  All h/c state stays in vregs (fully unrolled loop).
    for s in range(T + 2):
        t0, t1, t2 = s, s - 1, s - 2
        upd = {}

        if 0 <= t0 < T:                                   # ---- layer 0 ----
            gx_t = gx_scr[t0 * Bp:(t0 + 1) * Bp, :]
            if t0 == 0:
                gates0 = gx_t                             # h0 == 0: peel matmul
            else:
                gates0 = gx_t + jnp.dot(
                    h0.astype(bf16), w_hh0_ref[...],
                    preferred_element_type=jnp.float32)
            upd["l0"] = lstm_cell(gates0, c0)

        if 0 <= t1 < T:                                   # ---- layer 1 ----
            if t1 == 0:                                   # h1 == 0: W_ih half only
                gates1 = jnp.dot(
                    h0.astype(bf16), w_l1_ref[:H, :],
                    preferred_element_type=jnp.float32) + b1_ref[...]
            else:                                         # fused K = 2H matmul
                hin1 = jnp.concatenate([h0, h1], axis=1).astype(bf16)
                gates1 = jnp.dot(
                    hin1, w_l1_ref[...],
                    preferred_element_type=jnp.float32) + b1_ref[...]
            upd["l1"] = lstm_cell(gates1, c1)

        if 0 <= t2 < T:                                   # ---- layer 2 ----
            if t2 == 0:
                w_l2_copy.wait()                          # weights needed now
                gates2 = jnp.dot(
                    h1.astype(bf16), w_l2_vmem[:H, :],
                    preferred_element_type=jnp.float32) + b2_ref[...]
            else:
                hin2 = jnp.concatenate([h1, h2], axis=1).astype(bf16)
                gates2 = jnp.dot(
                    hin2, w_l2_vmem[...],
                    preferred_element_type=jnp.float32) + b2_ref[...]
            upd["l2"] = lstm_cell(gates2, c2)

        # Commit only after every active layer has read its inputs.
        if "l0" in upd:
            h0, c0 = upd["l0"]
        if "l1" in upd:
            h1, c1 = upd["l1"]
        if "l2" in upd:
            h2, c2 = upd["l2"]

    # Classifier on the last layer-2 hidden state; lane-dense padded output.
    out_ref[...] = (
        jnp.dot(h2.astype(bf16), w_out_ref[...],
                preferred_element_type=jnp.float32)
        + b_out_ref[...])


def _full_spec(shape):
    return pl.BlockSpec(shape, lambda: (0,) * len(shape))


@jax.jit
def rnn_forward(params, x):
    """x: (B, T, INPUT_SIZE) batch-first, as in the PyTorch module."""
    B, T, D = x.shape
    Bp, H = BATCH_PAD, HIDDEN_SIZE
    assert B <= Bp

    x_tbd = jnp.transpose(x, (1, 0, 2)).astype(jnp.float32)     # (T, B, D)
    x_pad = jnp.pad(x_tbd, ((0, 0), (0, Bp - B), (0, 0)))       # (T, Bp, D)
    x_flat = x_pad.reshape(T * Bp, D).astype(jnp.bfloat16)      # (T*Bp, D)

    l0, l1, l2 = params["layers"]
    w_ih0 = l0["w_ih_t"].astype(jnp.bfloat16)                   # (D, 4H)
    w_hh0 = l0["w_hh_t"].astype(jnp.bfloat16)                   # (H, 4H)
    b0 = l0["bias"]
    w_l1 = jnp.concatenate([l1["w_ih_t"], l1["w_hh_t"]],
                           axis=0).astype(jnp.bfloat16)         # (2H, 4H)
    b1 = l1["bias"]
    w_l2 = jnp.concatenate([l2["w_ih_t"], l2["w_hh_t"]],
                           axis=0).astype(jnp.bfloat16)         # (2H, 4H)
    b2 = l2["bias"]
    w_out_pad = jnp.pad(params["w_out_t"],
                        ((0, 0), (0, OUT_PAD - OUT_SIZE))).astype(jnp.bfloat16)
    b_out_pad = jnp.pad(params["b_out"], ((0, 0), (0, OUT_PAD - OUT_SIZE)))

    out_pad = pl.pallas_call(
        functools.partial(fused_rnn_kernel, T=T, Bp=Bp, H=H),
        out_shape=jax.ShapeDtypeStruct((Bp, OUT_PAD), jnp.float32),
        in_specs=[
            _full_spec((T * Bp, D)),
            _full_spec((INPUT_SIZE, 4 * H)),
            _full_spec((H, 4 * H)),
            _full_spec((1, 4 * H)),
            _full_spec((2 * H, 4 * H)),
            _full_spec((1, 4 * H)),
            pl.BlockSpec(memory_space=pl.ANY),   # layer-2 weights stay in HBM
            _full_spec((1, 4 * H)),
            _full_spec((H, OUT_PAD)),
            _full_spec((1, OUT_PAD)),
        ],
        out_specs=_full_spec((Bp, OUT_PAD)),
        scratch_shapes=[
            pltpu.VMEM((T * Bp, 4 * H), jnp.float32),    # gx_scr
            pltpu.VMEM((2 * H, 4 * H), jnp.bfloat16),    # w_l2 landing buffer
            pltpu.SemaphoreType.DMA,                     # w_l2 DMA semaphore
        ],
    )(x_flat,
      w_ih0, w_hh0, b0,
      w_l1, b1,
      w_l2, b2,
      w_out_pad, b_out_pad)

    return out_pad[:B, :OUT_SIZE]                               # (B, 10)


def init_params(key):
    """Deterministic init matching PyTorch LSTM/Linear parameter shapes."""
    params = {"layers": []}
    k = 1.0 / jnp.sqrt(HIDDEN_SIZE)
    keys = jax.random.split(key, NUM_LAYERS * 4 + 2)
    idx = 0
    for layer in range(NUM_LAYERS):
        d_in = INPUT_SIZE if layer == 0 else HIDDEN_SIZE
        w_ih = jax.random.uniform(keys[idx], (4 * HIDDEN_SIZE, d_in),
                                  minval=-k, maxval=k, dtype=jnp.float32); idx += 1
        w_hh = jax.random.uniform(keys[idx], (4 * HIDDEN_SIZE, HIDDEN_SIZE),
                                  minval=-k, maxval=k, dtype=jnp.float32); idx += 1
        b_ih = jax.random.uniform(keys[idx], (4 * HIDDEN_SIZE,),
                                  minval=-k, maxval=k, dtype=jnp.float32); idx += 1
        b_hh = jax.random.uniform(keys[idx], (4 * HIDDEN_SIZE,),
                                  minval=-k, maxval=k, dtype=jnp.float32); idx += 1
        params["layers"].append({
            "w_ih_t": w_ih.T,                   # (d_in, 4H)
            "w_hh_t": w_hh.T,                   # (H, 4H)
            "bias": (b_ih + b_hh)[None, :],     # (1, 4H) combined bias
        })
    ko = 1.0 / jnp.sqrt(HIDDEN_SIZE)
    w_out = jax.random.uniform(keys[idx], (OUT_SIZE, HIDDEN_SIZE),
                               minval=-ko, maxval=ko, dtype=jnp.float32); idx += 1
    b_out = jax.random.uniform(keys[idx], (OUT_SIZE,),
                               minval=-ko, maxval=ko, dtype=jnp.float32)
    params["w_out_t"] = w_out.T                 # (H, 10)
    params["b_out"] = b_out[None, :]            # (1, 10)
    return params


def rnn_forward_ref(params, x):
    """Pure-JAX f32 reference (matches the PyTorch module semantics)."""
    x_tbd = jnp.transpose(x, (1, 0, 2)).astype(jnp.float32)
    H = HIDDEN_SIZE
    for layer in params["layers"]:
        T, B, _ = x_tbd.shape
        h = jnp.zeros((B, H), jnp.float32)
        c = jnp.zeros((B, H), jnp.float32)

        def step(carry, xt, layer=layer):
            h, c = carry
            g = xt @ layer["w_ih_t"] + h @ layer["w_hh_t"] + layer["bias"]
            i = jax.nn.sigmoid(g[:, :H])
            f = jax.nn.sigmoid(g[:, H:2 * H])
            gg = jnp.tanh(g[:, 2 * H:3 * H])
            o = jax.nn.sigmoid(g[:, 3 * H:4 * H])
            c = f * c + i * gg
            h = o * jnp.tanh(c)
            return (h, c), h

        (_, _), ys = jax.lax.scan(step, (h, c), x_tbd)
        x_tbd = ys
    return x_tbd[-1] @ params["w_out_t"] + params["b_out"]


def rnn_forward_ref_bf16(params, x):
    """Reference with the same bf16 matmul-operand casts the kernel uses."""
    H = HIDDEN_SIZE
    seq = jnp.transpose(x, (1, 0, 2)).astype(jnp.float32)       # (T, B, D)
    T, B, _ = seq.shape
    for layer in params["layers"]:
        w_ih = layer["w_ih_t"].astype(jnp.bfloat16)
        w_hh = layer["w_hh_t"].astype(jnp.bfloat16)
        b = layer["bias"]
        h = jnp.zeros((B, H), jnp.float32)
        c = jnp.zeros((B, H), jnp.float32)
        outs = []
        for t in range(T):
            xt = seq[t].astype(jnp.bfloat16)
            g = (jnp.dot(xt, w_ih, preferred_element_type=jnp.float32)
                 + jnp.dot(h.astype(jnp.bfloat16), w_hh,
                           preferred_element_type=jnp.float32)
                 + b)
            i = jax.nn.sigmoid(g[:, :H])
            f = jax.nn.sigmoid(g[:, H:2 * H])
            gg = jnp.tanh(g[:, 2 * H:3 * H])
            o = jax.nn.sigmoid(g[:, 3 * H:4 * H])
            c = f * c + i * gg
            h = o * jnp.tanh(c)
            outs.append(h)
        seq = jnp.stack(outs, axis=0)
    return (jnp.dot(seq[-1].astype(jnp.bfloat16),
                    params["w_out_t"].astype(jnp.bfloat16),
                    preferred_element_type=jnp.float32)
            + params["b_out"])


if __name__ == "__main__":
    key = jax.random.PRNGKey(0)
    kp, kx = jax.random.split(key)
    params = init_params(kp)

    B, T = 2, 8
    x = jax.random.normal(kx, (B, T, INPUT_SIZE), dtype=jnp.float32)

    out = rnn_forward(params, x)
    out = jax.block_until_ready(out)
    assert out.shape == (B, OUT_SIZE), out.shape

    # Tight check against a reference with matching bf16 matmul casts.
    ref_bf16 = rnn_forward_ref_bf16(params, x)
    assert jnp.allclose(out, ref_bf16, atol=2e-3, rtol=2e-3), (
        float(jnp.max(jnp.abs(out - ref_bf16))))

    # Loose sanity check against the pure-f32 reference (bf16 rounding only).
    ref_f32 = rnn_forward_ref(params, x)
    assert jnp.allclose(out, ref_f32, atol=1e-1), (
        float(jnp.max(jnp.abs(out - ref_f32))))

    print("KERNEL_OK")
</pallas_src>

<mosaic_0001>
module attributes {stable_mosaic.version = 11 : i64} {
  func.func @fused_rnn_kernel(%arg0: memref<64x160xbf16, #tpu.memory_space<vmem>>, %arg1: memref<160x512xbf16, #tpu.memory_space<vmem>>, %arg2: memref<128x512xbf16, #tpu.memory_space<vmem>>, %arg3: memref<1x512xf32, #tpu.memory_space<vmem>>, %arg4: memref<256x512xbf16, #tpu.memory_space<vmem>>, %arg5: memref<1x512xf32, #tpu.memory_space<vmem>>, %arg6: memref<256x512xbf16, #tpu.memory_space<any>>, %arg7: memref<1x512xf32, #tpu.memory_space<vmem>>, %arg8: memref<128x128xbf16, #tpu.memory_space<vmem>>, %arg9: memref<1x128xf32, #tpu.memory_space<vmem>>, %arg10: memref<8x128xf32, #tpu.memory_space<vmem>>, %arg11: memref<64x512xf32, #tpu.memory_space<vmem>>, %arg12: memref<256x512xbf16, #tpu.memory_space<vmem>>, %arg13: memref<!tpu.dma_semaphore, #tpu.memory_space<semaphore_mem>>) attributes {dimension_semantics = [], scalar_prefetch = 0 : i64, scratch_operands = 3 : i64, tpu.core_type = #tpu.core_type<tc>} {
    tpu.enqueue_dma source(%arg6 : memref<256x512xbf16, #tpu.memory_space<any>>) target(%arg12 : memref<256x512xbf16, #tpu.memory_space<vmem>>) target_semaphore(%arg13 : memref<!tpu.dma_semaphore, #tpu.memory_space<semaphore_mem>>)
    %c0 = arith.constant 0 : index
    %c0_0 = arith.constant 0 : index
    %0 = vector.load %arg0[%c0, %c0_0] : memref<64x160xbf16, #tpu.memory_space<vmem>>, vector<64x160xbf16>
    %c0_1 = arith.constant 0 : index
    %c0_2 = arith.constant 0 : index
    %1 = vector.load %arg1[%c0_1, %c0_2] : memref<160x512xbf16, #tpu.memory_space<vmem>>, vector<160x512xbf16>
    %cst = arith.constant dense<0.000000e+00> : vector<64x512xf32>
    %2 = tpu.matmul %0, %1, %cst {dimension_numbers = #tpu.dot_dimension_numbers<[1], [0], [0], [1], [0, 0, 1, 1], [], []>} : vector<64x160xbf16>, vector<160x512xbf16>, vector<64x512xf32> -> vector<64x512xf32>
    %c0_3 = arith.constant 0 : index
    %c0_4 = arith.constant 0 : index
    %3 = vector.load %arg3[%c0_3, %c0_4] : memref<1x512xf32, #tpu.memory_space<vmem>>, vector<1x512xf32>
    %4 = vector.broadcast %3 : vector<1x512xf32> to vector<64x512xf32>
    %5 = arith.addf %2, %4 : vector<64x512xf32>
    %c0_5 = arith.constant 0 : index
    %c0_6 = arith.constant 0 : index
    %6 = vector.load %arg11[%c0_5, %c0_6] : memref<64x512xf32, #tpu.memory_space<vmem>>, vector<64x512xf32>
    tpu.vector_store %arg11[%c0_5, %c0_6], %5 {strides = array<i32>} : memref<64x512xf32, #tpu.memory_space<vmem>>, vector<64x512xf32>,
    %cst_7 = arith.constant 0.000000e+00 : f32
    %7 = vector.broadcast %cst_7 : f32 to vector<8x128xf32>
    %c0_8 = arith.constant 0 : index
    %c0_9 = arith.constant 0 : index
    %8 = vector.load %arg11[%c0_8, %c0_9] : memref<64x512xf32, #tpu.memory_space<vmem>>, vector<8x512xf32>
    %9 = vector.extract_strided_slice %8 {offsets = [0, 0], sizes = [8, 128], strides = [1, 1]} : vector<8x512xf32> to vector<8x128xf32>
    %10 = arith.negf %9 : vector<8x128xf32>
    %11 = math.exp %10 : vector<8x128xf32>
    %cst_10 = arith.constant 1.000000e+00 : f32
    %12 = vector.broadcast %cst_10 : f32 to vector<8x128xf32>
    %13 = arith.addf %12, %11 : vector<8x128xf32>
    %14 = arith.divf %12, %13 : vector<8x128xf32>
    %15 = vector.extract_strided_slice %8 {offsets = [0, 128], sizes = [8, 128], strides = [1, 1]} : vector<8x512xf32> to vector<8x128xf32>
    %16 = arith.negf %15 : vector<8x128xf32>
    %17 = math.exp %16 : vector<8x128xf32>
    %cst_11 = arith.constant 1.000000e+00 : f32
    %18 = vector.broadcast %cst_11 : f32 to vector<8x128xf32>
    %19 = arith.addf %18, %17 : vector<8x128xf32>
    %20 = arith.divf %18, %19 : vector<8x128xf32>
    %21 = vector.extract_strided_slice %8 {offsets = [0, 256], sizes = [8, 128], strides = [1, 1]} : vector<8x512xf32> to vector<8x128xf32>
    %22 = math.tanh %21 : vector<8x128xf32>
    %23 = vector.extract_strided_slice %8 {offsets = [0, 384], sizes = [8, 128], strides = [1, 1]} : vector<8x512xf32> to vector<8x128xf32>
    %24 = arith.negf %23 : vector<8x128xf32>
    %25 = math.exp %24 : vector<8x128xf32>
    %cst_12 = arith.constant 1.000000e+00 : f32
    %26 = vector.broadcast %cst_12 : f32 to vector<8x128xf32>
    %27 = arith.addf %26, %25 : vector<8x128xf32>
    %28 = arith.divf %26, %27 : vector<8x128xf32>
    %29 = arith.mulf %20, %7 : vector<8x128xf32>
    %30 = arith.mulf %14, %22 : vector<8x128xf32>
    %31 = arith.addf %29, %30 : vector<8x128xf32>
    %32 = math.tanh %31 : vector<8x128xf32>
    %33 = arith.mulf %28, %32 : vector<8x128xf32>
    %c8 = arith.constant 8 : index
    %c0_13 = arith.constant 0 : index
    %34 = vector.load %arg11[%c8, %c0_13] : memref<64x512xf32, #tpu.memory_space<vmem>>, vector<8x512xf32>
    %35 = arith.truncf %33 : vector<8x128xf32> to vector<8x128xbf16>
    %c0_14 = arith.constant 0 : index
    %c0_15 = arith.constant 0 : index
    %36 = vector.load %arg2[%c0_14, %c0_15] : memref<128x512xbf16, #tpu.memory_space<vmem>>, vector<128x512xbf16>
    %cst_16 = arith.constant dense<0.000000e+00> : vector<8x512xf32>
    %37 = tpu.matmul %35, %36, %cst_16 {dimension_numbers = #tpu.dot_dimension_numbers<[1], [0], [0], [1], [0, 0, 1, 1], [], []>} : vector<8x128xbf16>, vector<128x512xbf16>, vector<8x512xf32> -> vector<8x512xf32>
    %38 = arith.addf %34, %37 : vector<8x512xf32>
    %39 = vector.extract_strided_slice %38 {offsets = [0, 0], sizes = [8, 128], strides = [1, 1]} : vector<8x512xf32> to vector<8x128xf32>
    %40 = arith.negf %39 : vector<8x128xf32>
    %41 = math.exp %40 : vector<8x128xf32>
    %cst_17 = arith.constant 1.000000e+00 : f32
    %42 = vector.broadcast %cst_17 : f32 to vector<8x128xf32>
    %43 = arith.addf %42, %41 : vector<8x128xf32>
    %44 = arith.divf %42, %43 : vector<8x128xf32>
    %45 = vector.extract_strided_slice %38 {offsets = [0, 128], sizes = [8, 128], strides = [1, 1]} : vector<8x512xf32> to vector<8x128xf32>
    %46 = arith.negf %45 : vector<8x128xf32>
    %47 = math.exp %46 : vector<8x128xf32>
    %cst_18 = arith.constant 1.000000e+00 : f32
    %48 = vector.broadcast %cst_18 : f32 to vector<8x128xf32>
    %49 = arith.addf %48, %47 : vector<8x128xf32>
    %50 = arith.divf %48, %49 : vector<8x128xf32>
    %51 = vector.extract_strided_slice %38 {offsets = [0, 256], sizes = [8, 128], strides = [1, 1]} : vector<8x512xf32> to vector<8x128xf32>
    %52 = math.tanh %51 : vector<8x128xf32>
    %53 = vector.extract_strided_slice %38 {offsets = [0, 384], sizes = [8, 128], strides = [1, 1]} : vector<8x512xf32> to vector<8x128xf32>
    %54 = arith.negf %53 : vector<8x128xf32>
    %55 = math.exp %54 : vector<8x128xf32>
    %cst_19 = arith.constant 1.000000e+00 : f32
    %56 = vector.broadcast %cst_19 : f32 to vector<8x128xf32>
    %57 = arith.addf %56, %55 : vector<8x128xf32>
    %58 = arith.divf %56, %57 : vector<8x128xf32>
    %59 = arith.mulf %50, %31 : vector<8x128xf32>
    %60 = arith.mulf %44, %52 : vector<8x128xf32>
    %61 = arith.addf %59, %60 : vector<8x128xf32>
    %62 = math.tanh %61 : vector<8x128xf32>
    %63 = arith.mulf %58, %62 : vector<8x128xf32>
    %64 = arith.truncf %33 : vector<8x128xf32> to vector<8x128xbf16>
    %c0_20 = arith.constant 0 : index
    %c0_21 = arith.constant 0 : index
    %65 = vector.load %arg4[%c0_20, %c0_21] : memref<256x512xbf16, #tpu.memory_space<vmem>>, vector<128x512xbf16>
    %cst_22 = arith.constant dense<0.000000e+00> : vector<8x512xf32>
    %66 = tpu.matmul %64, %65, %cst_22 {dimension_numbers = #tpu.dot_dimension_numbers<[1], [0], [0], [1], [0, 0, 1, 1], [], []>} : vector<8x128xbf16>, vector<128x512xbf16>, vector<8x512xf32> -> vector<8x512xf32>
    %c0_23 = arith.constant 0 : index
    %c0_24 = arith.constant 0 : index
    %67 = vector.load %arg5[%c0_23, %c0_24] : memref<1x512xf32, #tpu.memory_space<vmem>>, vector<1x512xf32>
    %68 = vector.broadcast %67 : vector<1x512xf32> to vector<8x512xf32>
    %69 = arith.addf %66, %68 : vector<8x512xf32>
    %70 = vector.extract_strided_slice %69 {offsets = [0, 0], sizes = [8, 128], strides = [1, 1]} : vector<8x512xf32> to vector<8x128xf32>
    %71 = arith.negf %70 : vector<8x128xf32>
    %72 = math.exp %71 : vector<8x128xf32>
    %cst_25 = arith.constant 1.000000e+00 : f32
    %73 = vector.broadcast %cst_25 : f32 to vector<8x128xf32>
    %74 = arith.addf %73, %72 : vector<8x128xf32>
    %75 = arith.divf %73, %74 : vector<8x128xf32>
    %76 = vector.extract_strided_slice %69 {offsets = [0, 128], sizes = [8, 128], strides = [1, 1]} : vector<8x512xf32> to vector<8x128xf32>
    %77 = arith.negf %76 : vector<8x128xf32>
    %78 = math.exp %77 : vector<8x128xf32>
    %cst_26 = arith.constant 1.000000e+00 : f32
    %79 = vector.broadcast %cst_26 : f32 to vector<8x128xf32>
    %80 = arith.addf %79, %78 : vector<8x128xf32>
    %81 = arith.divf %79, %80 : vector<8x128xf32>
    %82 = vector.extract_strided_slice %69 {offsets = [0, 256], sizes = [8, 128], strides = [1, 1]} : vector<8x512xf32> to vector<8x128xf32>
    %83 = math.tanh %82 : vector<8x128xf32>
    %84 = vector.extract_strided_slice %69 {offsets = [0, 384], sizes = [8, 128], strides = [1, 1]} : vector<8x512xf32> to vector<8x128xf32>
    %85 = arith.negf %84 : vector<8x128xf32>
    %86 = math.exp %85 : vector<8x128xf32>
    %cst_27 = arith.constant 1.000000e+00 : f32
    %87 = vector.broadcast %cst_27 : f32 to vector<8x128xf32>
    %88 = arith.addf %87, %86 : vector<8x128xf32>
    %89 = arith.divf %87, %88 : vector<8x128xf32>
    %90 = arith.mulf %81, %7 : vector<8x128xf32>
    %91 = arith.mulf %75, %83 : vector<8x128xf32>
    %92 = arith.addf %90, %91 : vector<8x128xf32>
    %93 = math.tanh %92 : vector<8x128xf32>
    %94 = arith.mulf %89, %93 : vector<8x128xf32>
    %c16 = arith.constant 16 : index
    %c0_28 = arith.constant 0 : index
    %95 = vector.load %arg11[%c16, %c0_28] : memref<64x512xf32, #tpu.memory_space<vmem>>, vector<8x512xf32>
    %96 = arith.truncf %63 : vector<8x128xf32> to vector<8x128xbf16>
    %c0_29 = arith.constant 0 : index
    %c0_30 = arith.constant 0 : index
    %97 = vector.load %arg2[%c0_29, %c0_30] : memref<128x512xbf16, #tpu.memory_space<vmem>>, vector<128x512xbf16>
    %cst_31 = arith.constant dense<0.000000e+00> : vector<8x512xf32>
    %98 = tpu.matmul %96, %97, %cst_31 {dimension_numbers = #tpu.dot_dimension_numbers<[1], [0], [0], [1], [0, 0, 1, 1], [], []>} : vector<8x128xbf16>, vector<128x512xbf16>, vector<8x512xf32> -> vector<8x512xf32>
    %99 = arith.addf %95, %98 : vector<8x512xf32>
    %100 = vector.extract_strided_slice %99 {offsets = [0, 0], sizes = [8, 128], strides = [1, 1]} : vector<8x512xf32> to vector<8x128xf32>
    %101 = arith.negf %100 : vector<8x128xf32>
    %102 = math.exp %101 : vector<8x128xf32>
    %cst_32 = arith.constant 1.000000e+00 : f32
    %103 = vector.broadcast %cst_32 : f32 to vector<8x128xf32>
    %104 = arith.addf %103, %102 : vector<8x128xf32>
    %105 = arith.divf %103, %104 : vector<8x128xf32>
    %106 = vector.extract_strided_slice %99 {offsets = [0, 128], sizes = [8, 128], strides = [1, 1]} : vector<8x512xf32> to vector<8x128xf32>
    %107 = arith.negf %106 : vector<8x128xf32>
    %108 = math.exp %107 : vector<8x128xf32>
    %cst_33 = arith.constant 1.000000e+00 : f32
    %109 = vector.broadcast %cst_33 : f32 to vector<8x128xf32>
    %110 = arith.addf %109, %108 : vector<8x128xf32>
    %111 = arith.divf %109, %110 : vector<8x128xf32>
    %112 = vector.extract_strided_slice %99 {offsets = [0, 256], sizes = [8, 128], strides = [1, 1]} : vector<8x512xf32> to vector<8x128xf32>
    %113 = math.tanh %112 : vector<8x128xf32>
    %114 = vector.extract_strided_slice %99 {offsets = [0, 384], sizes = [8, 128], strides = [1, 1]} : vector<8x512xf32> to vector<8x128xf32>
    %115 = arith.negf %114 : vector<8x128xf32>
    %116 = math.exp %115 : vector<8x128xf32>
    %cst_34 = arith.constant 1.000000e+00 : f32
    %117 = vector.broadcast %cst_34 : f32 to vector<8x128xf32>
    %118 = arith.addf %117, %116 : vector<8x128xf32>
    %119 = arith.divf %117, %118 : vector<8x128xf32>
    %120 = arith.mulf %111, %61 : vector<8x128xf32>
    %121 = arith.mulf %105, %113 : vector<8x128xf32>
    %122 = arith.addf %120, %121 : vector<8x128xf32>
    %123 = math.tanh %122 : vector<8x128xf32>
    %124 = arith.mulf %119, %123 : vector<8x128xf32>
    %125 = tpu.concatenate %63, %94 in 1 : vector<8x128xf32>, vector<8x128xf32> -> vector<8x256xf32>
    %126 = arith.truncf %125 : vector<8x256xf32> to vector<8x256xbf16>
    %c0_35 = arith.constant 0 : index
    %c0_36 = arith.constant 0 : index
    %127 = vector.load %arg4[%c0_35, %c0_36] : memref<256x512xbf16, #tpu.memory_space<vmem>>, vector<256x512xbf16>
    %cst_37 = arith.constant dense<0.000000e+00> : vector<8x512xf32>
    %128 = tpu.matmul %126, %127, %cst_37 {dimension_numbers = #tpu.dot_dimension_numbers<[1], [0], [0], [1], [0, 0, 1, 1], [], []>} : vector<8x256xbf16>, vector<256x512xbf16>, vector<8x512xf32> -> vector<8x512xf32>
    %c0_38 = arith.constant 0 : index
    %c0_39 = arith.constant 0 : index
    %129 = vector.load %arg5[%c0_38, %c0_39] : memref<1x512xf32, #tpu.memory_space<vmem>>, vector<1x512xf32>
    %130 = vector.broadcast %129 : vector<1x512xf32> to vector<8x512xf32>
    %131 = arith.addf %128, %130 : vector<8x512xf32>
    %132 = vector.extract_strided_slice %131 {offsets = [0, 0], sizes = [8, 128], strides = [1, 1]} : vector<8x512xf32> to vector<8x128xf32>
    %133 = arith.negf %132 : vector<8x128xf32>
    %134 = math.exp %133 : vector<8x128xf32>
    %cst_40 = arith.constant 1.000000e+00 : f32
    %135 = vector.broadcast %cst_40 : f32 to vector<8x128xf32>
    %136 = arith.addf %135, %134 : vector<8x128xf32>
    %137 = arith.divf %135, %136 : vector<8x128xf32>
    %138 = vector.extract_strided_slice %131 {offsets = [0, 128], sizes = [8, 128], strides = [1, 1]} : vector<8x512xf32> to vector<8x128xf32>
    %139 = arith.negf %138 : vector<8x128xf32>
    %140 = math.exp %139 : vector<8x128xf32>
    %cst_41 = arith.constant 1.000000e+00 : f32
    %141 = vector.broadcast %cst_41 : f32 to vector<8x128xf32>
    %142 = arith.addf %141, %140 : vector<8x128xf32>
    %143 = arith.divf %141, %142 : vector<8x128xf32>
    %144 = vector.extract_strided_slice %131 {offsets = [0, 256], sizes = [8, 128], strides = [1, 1]} : vector<8x512xf32> to vector<8x128xf32>
    %145 = math.tanh %144 : vector<8x128xf32>
    %146 = vector.extract_strided_slice %131 {offsets = [0, 384], sizes = [8, 128], strides = [1, 1]} : vector<8x512xf32> to vector<8x128xf32>
    %147 = arith.negf %146 : vector<8x128xf32>
    %148 = math.exp %147 : vector<8x128xf32>
    %cst_42 = arith.constant 1.000000e+00 : f32
    %149 = vector.broadcast %cst_42 : f32 to vector<8x128xf32>
    %150 = arith.addf %149, %148 : vector<8x128xf32>
    %151 = arith.divf %149, %150 : vector<8x128xf32>
    %152 = arith.mulf %143, %92 : vector<8x128xf32>
    %153 = arith.mulf %137, %145 : vector<8x128xf32>
    %154 = arith.addf %152, %153 : vector<8x128xf32>
    %155 = math.tanh %154 : vector<8x128xf32>
    %156 = arith.mulf %151, %155 : vector<8x128xf32>
    tpu.wait_dma2 semaphore(%arg13 : memref<!tpu.dma_semaphore, #tpu.memory_space<semaphore_mem>>) src(%arg6 : memref<256x512xbf16, #tpu.memory_space<any>>) dst(%arg12 : memref<256x512xbf16, #tpu.memory_space<vmem>>)
    %157 = arith.truncf %94 : vector<8x128xf32> to vector<8x128xbf16>
    %c0_43 = arith.constant 0 : index
    %c0_44 = arith.constant 0 : index
    %158 = vector.load %arg12[%c0_43, %c0_44] : memref<256x512xbf16, #tpu.memory_space<vmem>>, vector<128x512xbf16>
    %cst_45 = arith.constant dense<0.000000e+00> : vector<8x512xf32>
    %159 = tpu.matmul %157, %158, %cst_45 {dimension_numbers = #tpu.dot_dimension_numbers<[1], [0], [0], [1], [0, 0, 1, 1], [], []>} : vector<8x128xbf16>, vector<128x512xbf16>, vector<8x512xf32> -> vector<8x512xf32>
    %c0_46 = arith.constant 0 : index
    %c0_47 = arith.constant 0 : index
    %160 = vector.load %arg7[%c0_46, %c0_47] : memref<1x512xf32, #tpu.memory_space<vmem>>, vector<1x512xf32>
    %161 = vector.broadcast %160 : vector<1x512xf32> to vector<8x512xf32>
    %162 = arith.addf %159, %161 : vector<8x512xf32>
    %163 = vector.extract_strided_slice %162 {offsets = [0, 0], sizes = [8, 128], strides = [1, 1]} : vector<8x512xf32> to vector<8x128xf32>
    %164 = arith.negf %163 : vector<8x128xf32>
    %165 = math.exp %164 : vector<8x128xf32>
    %cst_48 = arith.constant 1.000000e+00 : f32
    %166 = vector.broadcast %cst_48 : f32 to vector<8x128xf32>
    %167 = arith.addf %166, %165 : vector<8x128xf32>
    %168 = arith.divf %166, %167 : vector<8x128xf32>
    %169 = vector.extract_strided_slice %162 {offsets = [0, 128], sizes = [8, 128], strides = [1, 1]} : vector<8x512xf32> to vector<8x128xf32>
    %170 = arith.negf %169 : vector<8x128xf32>
    %171 = math.exp %170 : vector<8x128xf32>
    %cst_49 = arith.constant 1.000000e+00 : f32
    %172 = vector.broadcast %cst_49 : f32 to vector<8x128xf32>
    %173 = arith.addf %172, %171 : vector<8x128xf32>
    %174 = arith.divf %172, %173 : vector<8x128xf32>
    %175 = vector.extract_strided_slice %162 {offsets = [0, 256], sizes = [8, 128], strides = [1, 1]} : vector<8x512xf32> to vector<8x128xf32>
    %176 = math.tanh %175 : vector<8x128xf32>
    %177 = vector.extract_strided_slice %162 {offsets = [0, 384], sizes = [8, 128], strides = [1, 1]} : vector<8x512xf32> to vector<8x128xf32>
    %178 = arith.negf %177 : vector<8x128xf32>
    %179 = math.exp %178 : vector<8x128xf32>
    %cst_50 = arith.constant 1.000000e+00 : f32
    %180 = vector.broadcast %cst_50 : f32 to vector<8x128xf32>
    %181 = arith.addf %180, %179 : vector<8x128xf32>
    %182 = arith.divf %180, %181 : vector<8x128xf32>
    %183 = arith.mulf %174, %7 : vector<8x128xf32>
    %184 = arith.mulf %168, %176 : vector<8x128xf32>
    %185 = arith.addf %183, %184 : vector<8x128xf32>
    %186 = math.tanh %185 : vector<8x128xf32>
    %187 = arith.mulf %182, %186 : vector<8x128xf32>
    %c24 = arith.constant 24 : index
    %c0_51 = arith.constant 0 : index
    %188 = vector.load %arg11[%c24, %c0_51] : memref<64x512xf32, #tpu.memory_space<vmem>>, vector<8x512xf32>
    %189 = arith.truncf %124 : vector<8x128xf32> to vector<8x128xbf16>
    %c0_52 = arith.constant 0 : index
    %c0_53 = arith.constant 0 : index
    %190 = vector.load %arg2[%c0_52, %c0_53] : memref<128x512xbf16, #tpu.memory_space<vmem>>, vector<128x512xbf16>
    %cst_54 = arith.constant dense<0.000000e+00> : vector<8x512xf32>
    %191 = tpu.matmul %189, %190, %cst_54 {dimension_numbers = #tpu.dot_dimension_numbers<[1], [0], [0], [1], [0, 0, 1, 1], [], []>} : vector<8x128xbf16>, vector<128x512xbf16>, vector<8x512xf32> -> vector<8x512xf32>
    %192 = arith.addf %188, %191 : vector<8x512xf32>
    %193 = vector.extract_strided_slice %192 {offsets = [0, 0], sizes = [8, 128], strides = [1, 1]} : vector<8x512xf32> to vector<8x128xf32>
    %194 = arith.negf %193 : vector<8x128xf32>
    %195 = math.exp %194 : vector<8x128xf32>
    %cst_55 = arith.constant 1.000000e+00 : f32
    %196 = vector.broadcast %cst_55 : f32 to vector<8x128xf32>
    %197 = arith.addf %196, %195 : vector<8x128xf32>
    %198 = arith.divf %196, %197 : vector<8x128xf32>
    %199 = vector.extract_strided_slice %192 {offsets = [0, 128], sizes = [8, 128], strides = [1, 1]} : vector<8x512xf32> to vector<8x128xf32>
    %200 = arith.negf %199 : vector<8x128xf32>
    %201 = math.exp %200 : vector<8x128xf32>
    %cst_56 = arith.constant 1.000000e+00 : f32
    %202 = vector.broadcast %cst_56 : f32 to vector<8x128xf32>
    %203 = arith.addf %202, %201 : vector<8x128xf32>
    %204 = arith.divf %202, %203 : vector<8x128xf32>
    %205 = vector.extract_strided_slice %192 {offsets = [0, 256], sizes = [8, 128], strides = [1, 1]} : vector<8x512xf32> to vector<8x128xf32>
    %206 = math.tanh %205 : vector<8x128xf32>
    %207 = vector.extract_strided_slice %192 {offsets = [0, 384], sizes = [8, 128], strides = [1, 1]} : vector<8x512xf32> to vector<8x128xf32>
    %208 = arith.negf %207 : vector<8x128xf32>
    %209 = math.exp %208 : vector<8x128xf32>
    %cst_57 = arith.constant 1.000000e+00 : f32
    %210 = vector.broadcast %cst_57 : f32 to vector<8x128xf32>
    %211 = arith.addf %210, %209 : vector<8x128xf32>
    %212 = arith.divf %210, %211 : vector<8x128xf32>
    %213 = arith.mulf %204, %122 : vector<8x128xf32>
    %214 = arith.mulf %198, %206 : vector<8x128xf32>
    %215 = arith.addf %213, %214 : vector<8x128xf32>
    %216 = math.tanh %215 : vector<8x128xf32>
    %217 = arith.mulf %212, %216 : vector<8x128xf32>
    %218 = tpu.concatenate %124, %156 in 1 : vector<8x128xf32>, vector<8x128xf32> -> vector<8x256xf32>
    %219 = arith.truncf %218 : vector<8x256xf32> to vector<8x256xbf16>
    %c0_58 = arith.constant 0 : index
    %c0_59 = arith.constant 0 : index
    %220 = vector.load %arg4[%c0_58, %c0_59] : memref<256x512xbf16, #tpu.memory_space<vmem>>, vector<256x512xbf16>
    %cst_60 = arith.constant dense<0.000000e+00> : vector<8x512xf32>
    %221 = tpu.matmul %219, %220, %cst_60 {dimension_numbers = #tpu.dot_dimension_numbers<[1], [0], [0], [1], [0, 0, 1, 1], [], []>} : vector<8x256xbf16>, vector<256x512xbf16>, vector<8x512xf32> -> vector<8x512xf32>
    %c0_61 = arith.constant 0 : index
    %c0_62 = arith.constant 0 : index
    %222 = vector.load %arg5[%c0_61, %c0_62] : memref<1x512xf32, #tpu.memory_space<vmem>>, vector<1x512xf32>
    %223 = vector.broadcast %222 : vector<1x512xf32> to vector<8x512xf32>
    %224 = arith.addf %221, %223 : vector<8x512xf32>
    %225 = vector.extract_strided_slice %224 {offsets = [0, 0], sizes = [8, 128], strides = [1, 1]} : vector<8x512xf32> to vector<8x128xf32>
    %226 = arith.negf %225 : vector<8x128xf32>
    %227 = math.exp %226 : vector<8x128xf32>
    %cst_63 = arith.constant 1.000000e+00 : f32
    %228 = vector.broadcast %cst_63 : f32 to vector<8x128xf32>
    %229 = arith.addf %228, %227 : vector<8x128xf32>
    %230 = arith.divf %228, %229 : vector<8x128xf32>
    %231 = vector.extract_strided_slice %224 {offsets = [0, 128], sizes = [8, 128], strides = [1, 1]} : vector<8x512xf32> to vector<8x128xf32>
    %232 = arith.negf %231 : vector<8x128xf32>
    %233 = math.exp %232 : vector<8x128xf32>
    %cst_64 = arith.constant 1.000000e+00 : f32
    %234 = vector.broadcast %cst_64 : f32 to vector<8x128xf32>
    %235 = arith.addf %234, %233 : vector<8x128xf32>
    %236 = arith.divf %234, %235 : vector<8x128xf32>
    %237 = vector.extract_strided_slice %224 {offsets = [0, 256], sizes = [8, 128], strides = [1, 1]} : vector<8x512xf32> to vector<8x128xf32>
    %238 = math.tanh %237 : vector<8x128xf32>
    %239 = vector.extract_strided_slice %224 {offsets = [0, 384], sizes = [8, 128], strides = [1, 1]} : vector<8x512xf32> to vector<8x128xf32>
    %240 = arith.negf %239 : vector<8x128xf32>
    %241 = math.exp %240 : vector<8x128xf32>
    %cst_65 = arith.constant 1.000000e+00 : f32
    %242 = vector.broadcast %cst_65 : f32 to vector<8x128xf32>
    %243 = arith.addf %242, %241 : vector<8x128xf32>
    %244 = arith.divf %242, %243 : vector<8x128xf32>
    %245 = arith.mulf %236, %154 : vector<8x128xf32>
    %246 = arith.mulf %230, %238 : vector<8x128xf32>
    %247 = arith.addf %245, %246 : vector<8x128xf32>
    %248 = math.tanh %247 : vector<8x128xf32>
    %249 = arith.mulf %244, %248 : vector<8x128xf32>
    %250 = tpu.concatenate %156, %187 in 1 : vector<8x128xf32>, vector<8x128xf32> -> vector<8x256xf32>
    %251 = arith.truncf %250 : vector<8x256xf32> to vector<8x256xbf16>
    %c0_66 = arith.constant 0 : index
    %c0_67 = arith.constant 0 : index
    %252 = vector.load %arg12[%c0_66, %c0_67] : memref<256x512xbf16, #tpu.memory_space<vmem>>, vector<256x512xbf16>
    %cst_68 = arith.constant dense<0.000000e+00> : vector<8x512xf32>
    %253 = tpu.matmul %251, %252, %cst_68 {dimension_numbers = #tpu.dot_dimension_numbers<[1], [0], [0], [1], [0, 0, 1, 1], [], []>} : vector<8x256xbf16>, vector<256x512xbf16>, vector<8x512xf32> -> vector<8x512xf32>
    %c0_69 = arith.constant 0 : index
    %c0_70 = arith.constant 0 : index
    %254 = vector.load %arg7[%c0_69, %c0_70] : memref<1x512xf32, #tpu.memory_space<vmem>>, vector<1x512xf32>
    %255 = vector.broadcast %254 : vector<1x512xf32> to vector<8x512xf32>
    %256 = arith.addf %253, %255 : vector<8x512xf32>
    %257 = vector.extract_strided_slice %256 {offsets = [0, 0], sizes = [8, 128], strides = [1, 1]} : vector<8x512xf32> to vector<8x128xf32>
    %258 = arith.negf %257 : vector<8x128xf32>
    %259 = math.exp %258 : vector<8x128xf32>
    %cst_71 = arith.constant 1.000000e+00 : f32
    %260 = vector.broadcast %cst_71 : f32 to vector<8x128xf32>
    %261 = arith.addf %260, %259 : vector<8x128xf32>
    %262 = arith.divf %260, %261 : vector<8x128xf32>
    %263 = vector.extract_strided_slice %256 {offsets = [0, 128], sizes = [8, 128], strides = [1, 1]} : vector<8x512xf32> to vector<8x128xf32>
    %264 = arith.negf %263 : vector<8x128xf32>
    %265 = math.exp %264 : vector<8x128xf32>
    %cst_72 = arith.constant 1.000000e+00 : f32
    %266 = vector.broadcast %cst_72 : f32 to vector<8x128xf32>
    %267 = arith.addf %266, %265 : vector<8x128xf32>
    %268 = arith.divf %266, %267 : vector<8x128xf32>
    %269 = vector.extract_strided_slice %256 {offsets = [0, 256], sizes = [8, 128], strides = [1, 1]} : vector<8x512xf32> to vector<8x128xf32>
    %270 = math.tanh %269 : vector<8x128xf32>
    %271 = vector.extract_strided_slice %256 {offsets = [0, 384], sizes = [8, 128], strides = [1, 1]} : vector<8x512xf32> to vector<8x128xf32>
    %272 = arith.negf %271 : vector<8x128xf32>
    %273 = math.exp %272 : vector<8x128xf32>
    %cst_73 = arith.constant 1.000000e+00 : f32
    %274 = vector.broadcast %cst_73 : f32 to vector<8x128xf32>
    %275 = arith.addf %274, %273 : vector<8x128xf32>
    %276 = arith.divf %274, %275 : vector<8x128xf32>
    %277 = arith.mulf %268, %185 : vector<8x128xf32>
    %278 = arith.mulf %262, %270 : vector<8x128xf32>
    %279 = arith.addf %277, %278 : vector<8x128xf32>
    %280 = math.tanh %279 : vector<8x128xf32>
    %281 = arith.mulf %276, %280 : vector<8x128xf32>
    %c32 = arith.constant 32 : index
    %c0_74 = arith.constant 0 : index
    %282 = vector.load %arg11[%c32, %c0_74] : memref<64x512xf32, #tpu.memory_space<vmem>>, vector<8x512xf32>
    %283 = arith.truncf %217 : vector<8x128xf32> to vector<8x128xbf16>
    %c0_75 = arith.constant 0 : index
    %c0_76 = arith.constant 0 : index
    %284 = vector.load %arg2[%c0_75, %c0_76] : memref<128x512xbf16, #tpu.memory_space<vmem>>, vector<128x512xbf16>
    %cst_77 = arith.constant dense<0.000000e+00> : vector<8x512xf32>
    %285 = tpu.matmul %283, %284, %cst_77 {dimension_numbers = #tpu.dot_dimension_numbers<[1], [0], [0], [1], [0, 0, 1, 1], [], []>} : vector<8x128xbf16>, vector<128x512xbf16>, vector<8x512xf32> -> vector<8x512xf32>
    %286 = arith.addf %282, %285 : vector<8x512xf32>
    %287 = vector.extract_strided_slice %286 {offsets = [0, 0], sizes = [8, 128], strides = [1, 1]} : vector<8x512xf32> to vector<8x128xf32>
    %288 = arith.negf %287 : vector<8x128xf32>
    %289 = math.exp %288 : vector<8x128xf32>
    %cst_78 = arith.constant 1.000000e+00 : f32
    %290 = vector.broadcast %cst_78 : f32 to vector<8x128xf32>
    %291 = arith.addf %290, %289 : vector<8x128xf32>
    %292 = arith.divf %290, %291 : vector<8x128xf32>
    %293 = vector.extract_strided_slice %286 {offsets = [0, 128], sizes = [8, 128], strides = [1, 1]} : vector<8x512xf32> to vector<8x128xf32>
    %294 = arith.negf %293 : vector<8x128xf32>
    %295 = math.exp %294 : vector<8x128xf32>
    %cst_79 = arith.constant 1.000000e+00 : f32
    %296 = vector.broadcast %cst_79 : f32 to vector<8x128xf32>
    %297 = arith.addf %296, %295 : vector<8x128xf32>
    %298 = arith.divf %296, %297 : vector<8x128xf32>
    %299 = vector.extract_strided_slice %286 {offsets = [0, 256], sizes = [8, 128], strides = [1, 1]} : vector<8x512xf32> to vector<8x128xf32>
    %300 = math.tanh %299 : vector<8x128xf32>
    %301 = vector.extract_strided_slice %286 {offsets = [0, 384], sizes = [8, 128], strides = [1, 1]} : vector<8x512xf32> to vector<8x128xf32>
    %302 = arith.negf %301 : vector<8x128xf32>
    %303 = math.exp %302 : vector<8x128xf32>
    %cst_80 = arith.constant 1.000000e+00 : f32
    %304 = vector.broadcast %cst_80 : f32 to vector<8x128xf32>
    %305 = arith.addf %304, %303 : vector<8x128xf32>
    %306 = arith.divf %304, %305 : vector<8x128xf32>
    %307 = arith.mulf %298, %215 : vector<8x128xf32>
    %308 = arith.mulf %292, %300 : vector<8x128xf32>
    %309 = arith.addf %307, %308 : vector<8x128xf32>
    %310 = math.tanh %309 : vector<8x128xf32>
    %311 = arith.mulf %306, %310 : vector<8x128xf32>
    %312 = tpu.concatenate %217, %249 in 1 : vector<8x128xf32>, vector<8x128xf32> -> vector<8x256xf32>
    %313 = arith.truncf %312 : vector<8x256xf32> to vector<8x256xbf16>
    %c0_81 = arith.constant 0 : index
    %c0_82 = arith.constant 0 : index
    %314 = vector.load %arg4[%c0_81, %c0_82] : memref<256x512xbf16, #tpu.memory_space<vmem>>, vector<256x512xbf16>
    %cst_83 = arith.constant dense<0.000000e+00> : vector<8x512xf32>
    %315 = tpu.matmul %313, %314, %cst_83 {dimension_numbers = #tpu.dot_dimension_numbers<[1], [0], [0], [1], [0, 0, 1, 1], [], []>} : vector<8x256xbf16>, vector<256x512xbf16>, vector<8x512xf32> -> vector<8x512xf32>
    %c0_84 = arith.constant 0 : index
    %c0_85 = arith.constant 0 : index
    %316 = vector.load %arg5[%c0_84, %c0_85] : memref<1x512xf32, #tpu.memory_space<vmem>>, vector<1x512xf32>
    %317 = vector.broadcast %316 : vector<1x512xf32> to vector<8x512xf32>
    %318 = arith.addf %315, %317 : vector<8x512xf32>
    %319 = vector.extract_strided_slice %318 {offsets = [0, 0], sizes = [8, 128], strides = [1, 1]} : vector<8x512xf32> to vector<8x128xf32>
    %320 = arith.negf %319 : vector<8x128xf32>
    %321 = math.exp %320 : vector<8x128xf32>
    %cst_86 = arith.constant 1.000000e+00 : f32
    %322 = vector.broadcast %cst_86 : f32 to vector<8x128xf32>
    %323 = arith.addf %322, %321 : vector<8x128xf32>
    %324 = arith.divf %322, %323 : vector<8x128xf32>
    %325 = vector.extract_strided_slice %318 {offsets = [0, 128], sizes = [8, 128], strides = [1, 1]} : vector<8x512xf32> to vector<8x128xf32>
    %326 = arith.negf %325 : vector<8x128xf32>
    %327 = math.exp %326 : vector<8x128xf32>
    %cst_87 = arith.constant 1.000000e+00 : f32
    %328 = vector.broadcast %cst_87 : f32 to vector<8x128xf32>
    %329 = arith.addf %328, %327 : vector<8x128xf32>
    %330 = arith.divf %328, %329 : vector<8x128xf32>
    %331 = vector.extract_strided_slice %318 {offsets = [0, 256], sizes = [8, 128], strides = [1, 1]} : vector<8x512xf32> to vector<8x128xf32>
    %332 = math.tanh %331 : vector<8x128xf32>
    %333 = vector.extract_strided_slice %318 {offsets = [0, 384], sizes = [8, 128], strides = [1, 1]} : vector<8x512xf32> to vector<8x128xf32>
    %334 = arith.negf %333 : vector<8x128xf32>
    %335 = math.exp %334 : vector<8x128xf32>
    %cst_88 = arith.constant 1.000000e+00 : f32
    %336 = vector.broadcast %cst_88 : f32 to vector<8x128xf32>
    %337 = arith.addf %336, %335 : vector<8x128xf32>
    %338 = arith.divf %336, %337 : vector<8x128xf32>
    %339 = arith.mulf %330, %247 : vector<8x128xf32>
    %340 = arith.mulf %324, %332 : vector<8x128xf32>
    %341 = arith.addf %339, %340 : vector<8x128xf32>
    %342 = math.tanh %341 : vector<8x128xf32>
    %343 = arith.mulf %338, %342 : vector<8x128xf32>
    %344 = tpu.concatenate %249, %281 in 1 : vector<8x128xf32>, vector<8x128xf32> -> vector<8x256xf32>
    %345 = arith.truncf %344 : vector<8x256xf32> to vector<8x256xbf16>
    %c0_89 = arith.constant 0 : index
    %c0_90 = arith.constant 0 : index
    %346 = vector.load %arg12[%c0_89, %c0_90] : memref<256x512xbf16, #tpu.memory_space<vmem>>, vector<256x512xbf16>
    %cst_91 = arith.constant dense<0.000000e+00> : vector<8x512xf32>
    %347 = tpu.matmul %345, %346, %cst_91 {dimension_numbers = #tpu.dot_dimension_numbers<[1], [0], [0], [1], [0, 0, 1, 1], [], []>} : vector<8x256xbf16>, vector<256x512xbf16>, vector<8x512xf32> -> vector<8x512xf32>
    %c0_92 = arith.constant 0 : index
    %c0_93 = arith.constant 0 : index
    %348 = vector.load %arg7[%c0_92, %c0_93] : memref<1x512xf32, #tpu.memory_space<vmem>>, vector<1x512xf32>
    %349 = vector.broadcast %348 : vector<1x512xf32> to vector<8x512xf32>
    %350 = arith.addf %347, %349 : vector<8x512xf32>
    %351 = vector.extract_strided_slice %350 {offsets = [0, 0], sizes = [8, 128], strides = [1, 1]} : vector<8x512xf32> to vector<8x128xf32>
    %352 = arith.negf %351 : vector<8x128xf32>
    %353 = math.exp %352 : vector<8x128xf32>
    %cst_94 = arith.constant 1.000000e+00 : f32
    %354 = vector.broadcast %cst_94 : f32 to vector<8x128xf32>
    %355 = arith.addf %354, %353 : vector<8x128xf32>
    %356 = arith.divf %354, %355 : vector<8x128xf32>
    %357 = vector.extract_strided_slice %350 {offsets = [0, 128], sizes = [8, 128], strides = [1, 1]} : vector<8x512xf32> to vector<8x128xf32>
    %358 = arith.negf %357 : vector<8x128xf32>
    %359 = math.exp %358 : vector<8x128xf32>
    %cst_95 = arith.constant 1.000000e+00 : f32
    %360 = vector.broadcast %cst_95 : f32 to vector<8x128xf32>
    %361 = arith.addf %360, %359 : vector<8x128xf32>
    %362 = arith.divf %360, %361 : vector<8x128xf32>
    %363 = vector.extract_strided_slice %350 {offsets = [0, 256], sizes = [8, 128], strides = [1, 1]} : vector<8x512xf32> to vector<8x128xf32>
    %364 = math.tanh %363 : vector<8x128xf32>
    %365 = vector.extract_strided_slice %350 {offsets = [0, 384], sizes = [8, 128], strides = [1, 1]} : vector<8x512xf32> to vector<8x128xf32>
    %366 = arith.negf %365 : vector<8x128xf32>
    %367 = math.exp %366 : vector<8x128xf32>
    %cst_96 = arith.constant 1.000000e+00 : f32
    %368 = vector.broadcast %cst_96 : f32 to vector<8x128xf32>
    %369 = arith.addf %368, %367 : vector<8x128xf32>
    %370 = arith.divf %368, %369 : vector<8x128xf32>
    %371 = arith.mulf %362, %279 : vector<8x128xf32>
    %372 = arith.mulf %356, %364 : vector<8x128xf32>
    %373 = arith.addf %371, %372 : vector<8x128xf32>
    %374 = math.tanh %373 : vector<8x128xf32>
    %375 = arith.mulf %370, %374 : vector<8x128xf32>
    %c40 = arith.constant 40 : index
    %c0_97 = arith.constant 0 : index
    %376 = vector.load %arg11[%c40, %c0_97] : memref<64x512xf32, #tpu.memory_space<vmem>>, vector<8x512xf32>
    %377 = arith.truncf %311 : vector<8x128xf32> to vector<8x128xbf16>
    %c0_98 = arith.constant 0 : index
    %c0_99 = arith.constant 0 : index
    %378 = vector.load %arg2[%c0_98, %c0_99] : memref<128x512xbf16, #tpu.memory_space<vmem>>, vector<128x512xbf16>
    %cst_100 = arith.constant dense<0.000000e+00> : vector<8x512xf32>
    %379 = tpu.matmul %377, %378, %cst_100 {dimension_numbers = #tpu.dot_dimension_numbers<[1], [0], [0], [1], [0, 0, 1, 1], [], []>} : vector<8x128xbf16>, vector<128x512xbf16>, vector<8x512xf32> -> vector<8x512xf32>
    %380 = arith.addf %376, %379 : vector<8x512xf32>
    %381 = vector.extract_strided_slice %380 {offsets = [0, 0], sizes = [8, 128], strides = [1, 1]} : vector<8x512xf32> to vector<8x128xf32>
    %382 = arith.negf %381 : vector<8x128xf32>
    %383 = math.exp %382 : vector<8x128xf32>
    %cst_101 = arith.constant 1.000000e+00 : f32
    %384 = vector.broadcast %cst_101 : f32 to vector<8x128xf32>
    %385 = arith.addf %384, %383 : vector<8x128xf32>
    %386 = arith.divf %384, %385 : vector<8x128xf32>
    %387 = vector.extract_strided_slice %380 {offsets = [0, 128], sizes = [8, 128], strides = [1, 1]} : vector<8x512xf32> to vector<8x128xf32>
    %388 = arith.negf %387 : vector<8x128xf32>
    %389 = math.exp %388 : vector<8x128xf32>
    %cst_102 = arith.constant 1.000000e+00 : f32
    %390 = vector.broadcast %cst_102 : f32 to vector<8x128xf32>
    %391 = arith.addf %390, %389 : vector<8x128xf32>
    %392 = arith.divf %390, %391 : vector<8x128xf32>
    %393 = vector.extract_strided_slice %380 {offsets = [0, 256], sizes = [8, 128], strides = [1, 1]} : vector<8x512xf32> to vector<8x128xf32>
    %394 = math.tanh %393 : vector<8x128xf32>
    %395 = vector.extract_strided_slice %380 {offsets = [0, 384], sizes = [8, 128], strides = [1, 1]} : vector<8x512xf32> to vector<8x128xf32>
    %396 = arith.negf %395 : vector<8x128xf32>
    %397 = math.exp %396 : vector<8x128xf32>
    %cst_103 = arith.constant 1.000000e+00 : f32
    %398 = vector.broadcast %cst_103 : f32 to vector<8x128xf32>
    %399 = arith.addf %398, %397 : vector<8x128xf32>
    %400 = arith.divf %398, %399 : vector<8x128xf32>
    %401 = arith.mulf %392, %309 : vector<8x128xf32>
    %402 = arith.mulf %386, %394 : vector<8x128xf32>
    %403 = arith.addf %401, %402 : vector<8x128xf32>
    %404 = math.tanh %403 : vector<8x128xf32>
    %405 = arith.mulf %400, %404 : vector<8x128xf32>
    %406 = tpu.concatenate %311, %343 in 1 : vector<8x128xf32>, vector<8x128xf32> -> vector<8x256xf32>
    %407 = arith.truncf %406 : vector<8x256xf32> to vector<8x256xbf16>
    %c0_104 = arith.constant 0 : index
    %c0_105 = arith.constant 0 : index
    %408 = vector.load %arg4[%c0_104, %c0_105] : memref<256x512xbf16, #tpu.memory_space<vmem>>, vector<256x512xbf16>
    %cst_106 = arith.constant dense<0.000000e+00> : vector<8x512xf32>
    %409 = tpu.matmul %407, %408, %cst_106 {dimension_numbers = #tpu.dot_dimension_numbers<[1], [0], [0], [1], [0, 0, 1, 1], [], []>} : vector<8x256xbf16>, vector<256x512xbf16>, vector<8x512xf32> -> vector<8x512xf32>
    %c0_107 = arith.constant 0 : index
    %c0_108 = arith.constant 0 : index
    %410 = vector.load %arg5[%c0_107, %c0_108] : memref<1x512xf32, #tpu.memory_space<vmem>>, vector<1x512xf32>
    %411 = vector.broadcast %410 : vector<1x512xf32> to vector<8x512xf32>
    %412 = arith.addf %409, %411 : vector<8x512xf32>
    %413 = vector.extract_strided_slice %412 {offsets = [0, 0], sizes = [8, 128], strides = [1, 1]} : vector<8x512xf32> to vector<8x128xf32>
    %414 = arith.negf %413 : vector<8x128xf32>
    %415 = math.exp %414 : vector<8x128xf32>
    %cst_109 = arith.constant 1.000000e+00 : f32
    %416 = vector.broadcast %cst_109 : f32 to vector<8x128xf32>
    %417 = arith.addf %416, %415 : vector<8x128xf32>
    %418 = arith.divf %416, %417 : vector<8x128xf32>
    %419 = vector.extract_strided_slice %412 {offsets = [0, 128], sizes = [8, 128], strides = [1, 1]} : vector<8x512xf32> to vector<8x128xf32>
    %420 = arith.negf %419 : vector<8x128xf32>
    %421 = math.exp %420 : vector<8x128xf32>
    %cst_110 = arith.constant 1.000000e+00 : f32
    %422 = vector.broadcast %cst_110 : f32 to vector<8x128xf32>
    %423 = arith.addf %422, %421 : vector<8x128xf32>
    %424 = arith.divf %422, %423 : vector<8x128xf32>
    %425 = vector.extract_strided_slice %412 {offsets = [0, 256], sizes = [8, 128], strides = [1, 1]} : vector<8x512xf32> to vector<8x128xf32>
    %426 = math.tanh %425 : vector<8x128xf32>
    %427 = vector.extract_strided_slice %412 {offsets = [0, 384], sizes = [8, 128], strides = [1, 1]} : vector<8x512xf32> to vector<8x128xf32>
    %428 = arith.negf %427 : vector<8x128xf32>
    %429 = math.exp %428 : vector<8x128xf32>
    %cst_111 = arith.constant 1.000000e+00 : f32
    %430 = vector.broadcast %cst_111 : f32 to vector<8x128xf32>
    %431 = arith.addf %430, %429 : vector<8x128xf32>
    %432 = arith.divf %430, %431 : vector<8x128xf32>
    %433 = arith.mulf %424, %341 : vector<8x128xf32>
    %434 = arith.mulf %418, %426 : vector<8x128xf32>
    %435 = arith.addf %433, %434 : vector<8x128xf32>
    %436 = math.tanh %435 : vector<8x128xf32>
    %437 = arith.mulf %432, %436 : vector<8x128xf32>
    %438 = tpu.concatenate %343, %375 in 1 : vector<8x128xf32>, vector<8x128xf32> -> vector<8x256xf32>
    %439 = arith.truncf %438 : vector<8x256xf32> to vector<8x256xbf16>
    %c0_112 = arith.constant 0 : index
    %c0_113 = arith.constant 0 : index
    %440 = vector.load %arg12[%c0_112, %c0_113] : memref<256x512xbf16, #tpu.memory_space<vmem>>, vector<256x512xbf16>
    %cst_114 = arith.constant dense<0.000000e+00> : vector<8x512xf32>
    %441 = tpu.matmul %439, %440, %cst_114 {dimension_numbers = #tpu.dot_dimension_numbers<[1], [0], [0], [1], [0, 0, 1, 1], [], []>} : vector<8x256xbf16>, vector<256x512xbf16>, vector<8x512xf32> -> vector<8x512xf32>
    %c0_115 = arith.constant 0 : index
    %c0_116 = arith.constant 0 : index
    %442 = vector.load %arg7[%c0_115, %c0_116] : memref<1x512xf32, #tpu.memory_space<vmem>>, vector<1x512xf32>
    %443 = vector.broadcast %442 : vector<1x512xf32> to vector<8x512xf32>
    %444 = arith.addf %441, %443 : vector<8x512xf32>
    %445 = vector.extract_strided_slice %444 {offsets = [0, 0], sizes = [8, 128], strides = [1, 1]} : vector<8x512xf32> to vector<8x128xf32>
    %446 = arith.negf %445 : vector<8x128xf32>
    %447 = math.exp %446 : vector<8x128xf32>
    %cst_117 = arith.constant 1.000000e+00 : f32
    %448 = vector.broadcast %cst_117 : f32 to vector<8x128xf32>
    %449 = arith.addf %448, %447 : vector<8x128xf32>
    %450 = arith.divf %448, %449 : vector<8x128xf32>
    %451 = vector.extract_strided_slice %444 {offsets = [0, 128], sizes = [8, 128], strides = [1, 1]} : vector<8x512xf32> to vector<8x128xf32>
    %452 = arith.negf %451 : vector<8x128xf32>
    %453 = math.exp %452 : vector<8x128xf32>
    %cst_118 = arith.constant 1.000000e+00 : f32
    %454 = vector.broadcast %cst_118 : f32 to vector<8x128xf32>
    %455 = arith.addf %454, %453 : vector<8x128xf32>
    %456 = arith.divf %454, %455 : vector<8x128xf32>
    %457 = vector.extract_strided_slice %444 {offsets = [0, 256], sizes = [8, 128], strides = [1, 1]} : vector<8x512xf32> to vector<8x128xf32>
    %458 = math.tanh %457 : vector<8x128xf32>
    %459 = vector.extract_strided_slice %444 {offsets = [0, 384], sizes = [8, 128], strides = [1, 1]} : vector<8x512xf32> to vector<8x128xf32>
    %460 = arith.negf %459 : vector<8x128xf32>
    %461 = math.exp %460 : vector<8x128xf32>
    %cst_119 = arith.constant 1.000000e+00 : f32
    %462 = vector.broadcast %cst_119 : f32 to vector<8x128xf32>
    %463 = arith.addf %462, %461 : vector<8x128xf32>
    %464 = arith.divf %462, %463 : vector<8x128xf32>
    %465 = arith.mulf %456, %373 : vector<8x128xf32>
    %466 = arith.mulf %450, %458 : vector<8x128xf32>
    %467 = arith.addf %465, %466 : vector<8x128xf32>
    %468 = math.tanh %467 : vector<8x128xf32>
    %469 = arith.mulf %464, %468 : vector<8x128xf32>
    %c48 = arith.constant 48 : index
    %c0_120 = arith.constant 0 : index
    %470 = vector.load %arg11[%c48, %c0_120] : memref<64x512xf32, #tpu.memory_space<vmem>>, vector<8x512xf32>
    %471 = arith.truncf %405 : vector<8x128xf32> to vector<8x128xbf16>
    %c0_121 = arith.constant 0 : index
    %c0_122 = arith.constant 0 : index
    %472 = vector.load %arg2[%c0_121, %c0_122] : memref<128x512xbf16, #tpu.memory_space<vmem>>, vector<128x512xbf16>
    %cst_123 = arith.constant dense<0.000000e+00> : vector<8x512xf32>
    %473 = tpu.matmul %471, %472, %cst_123 {dimension_numbers = #tpu.dot_dimension_numbers<[1], [0], [0], [1], [0, 0, 1, 1], [], []>} : vector<8x128xbf16>, vector<128x512xbf16>, vector<8x512xf32> -> vector<8x512xf32>
    %474 = arith.addf %470, %473 : vector<8x512xf32>
    %475 = vector.extract_strided_slice %474 {offsets = [0, 0], sizes = [8, 128], strides = [1, 1]} : vector<8x512xf32> to vector<8x128xf32>
    %476 = arith.negf %475 : vector<8x128xf32>
    %477 = math.exp %476 : vector<8x128xf32>
    %cst_124 = arith.constant 1.000000e+00 : f32
    %478 = vector.broadcast %cst_124 : f32 to vector<8x128xf32>
    %479 = arith.addf %478, %477 : vector<8x128xf32>
    %480 = arith.divf %478, %479 : vector<8x128xf32>
    %481 = vector.extract_strided_slice %474 {offsets = [0, 128], sizes = [8, 128], strides = [1, 1]} : vector<8x512xf32> to vector<8x128xf32>
    %482 = arith.negf %481 : vector<8x128xf32>
    %483 = math.exp %482 : vector<8x128xf32>
    %cst_125 = arith.constant 1.000000e+00 : f32
    %484 = vector.broadcast %cst_125 : f32 to vector<8x128xf32>
    %485 = arith.addf %484, %483 : vector<8x128xf32>
    %486 = arith.divf %484, %485 : vector<8x128xf32>
    %487 = vector.extract_strided_slice %474 {offsets = [0, 256], sizes = [8, 128], strides = [1, 1]} : vector<8x512xf32> to vector<8x128xf32>
    %488 = math.tanh %487 : vector<8x128xf32>
    %489 = vector.extract_strided_slice %474 {offsets = [0, 384], sizes = [8, 128], strides = [1, 1]} : vector<8x512xf32> to vector<8x128xf32>
    %490 = arith.negf %489 : vector<8x128xf32>
    %491 = math.exp %490 : vector<8x128xf32>
    %cst_126 = arith.constant 1.000000e+00 : f32
    %492 = vector.broadcast %cst_126 : f32 to vector<8x128xf32>
    %493 = arith.addf %492, %491 : vector<8x128xf32>
    %494 = arith.divf %492, %493 : vector<8x128xf32>
    %495 = arith.mulf %486, %403 : vector<8x128xf32>
    %496 = arith.mulf %480, %488 : vector<8x128xf32>
    %497 = arith.addf %495, %496 : vector<8x128xf32>
    %498 = math.tanh %497 : vector<8x128xf32>
    %499 = arith.mulf %494, %498 : vector<8x128xf32>
    %500 = tpu.concatenate %405, %437 in 1 : vector<8x128xf32>, vector<8x128xf32> -> vector<8x256xf32>
    %501 = arith.truncf %500 : vector<8x256xf32> to vector<8x256xbf16>
    %c0_127 = arith.constant 0 : index
    %c0_128 = arith.constant 0 : index
    %502 = vector.load %arg4[%c0_127, %c0_128] : memref<256x512xbf16, #tpu.memory_space<vmem>>, vector<256x512xbf16>
    %cst_129 = arith.constant dense<0.000000e+00> : vector<8x512xf32>
    %503 = tpu.matmul %501, %502, %cst_129 {dimension_numbers = #tpu.dot_dimension_numbers<[1], [0], [0], [1], [0, 0, 1, 1], [], []>} : vector<8x256xbf16>, vector<256x512xbf16>, vector<8x512xf32> -> vector<8x512xf32>
    %c0_130 = arith.constant 0 : index
    %c0_131 = arith.constant 0 : index
    %504 = vector.load %arg5[%c0_130, %c0_131] : memref<1x512xf32, #tpu.memory_space<vmem>>, vector<1x512xf32>
    %505 = vector.broadcast %504 : vector<1x512xf32> to vector<8x512xf32>
    %506 = arith.addf %503, %505 : vector<8x512xf32>
    %507 = vector.extract_strided_slice %506 {offsets = [0, 0], sizes = [8, 128], strides = [1, 1]} : vector<8x512xf32> to vector<8x128xf32>
    %508 = arith.negf %507 : vector<8x128xf32>
    %509 = math.exp %508 : vector<8x128xf32>
    %cst_132 = arith.constant 1.000000e+00 : f32
    %510 = vector.broadcast %cst_132 : f32 to vector<8x128xf32>
    %511 = arith.addf %510, %509 : vector<8x128xf32>
    %512 = arith.divf %510, %511 : vector<8x128xf32>
    %513 = vector.extract_strided_slice %506 {offsets = [0, 128], sizes = [8, 128], strides = [1, 1]} : vector<8x512xf32> to vector<8x128xf32>
    %514 = arith.negf %513 : vector<8x128xf32>
    %515 = math.exp %514 : vector<8x128xf32>
    %cst_133 = arith.constant 1.000000e+00 : f32
    %516 = vector.broadcast %cst_133 : f32 to vector<8x128xf32>
    %517 = arith.addf %516, %515 : vector<8x128xf32>
    %518 = arith.divf %516, %517 : vector<8x128xf32>
    %519 = vector.extract_strided_slice %506 {offsets = [0, 256], sizes = [8, 128], strides = [1, 1]} : vector<8x512xf32> to vector<8x128xf32>
    %520 = math.tanh %519 : vector<8x128xf32>
    %521 = vector.extract_strided_slice %506 {offsets = [0, 384], sizes = [8, 128], strides = [1, 1]} : vector<8x512xf32> to vector<8x128xf32>
    %522 = arith.negf %521 : vector<8x128xf32>
    %523 = math.exp %522 : vector<8x128xf32>
    %cst_134 = arith.constant 1.000000e+00 : f32
    %524 = vector.broadcast %cst_134 : f32 to vector<8x128xf32>
    %525 = arith.addf %524, %523 : vector<8x128xf32>
    %526 = arith.divf %524, %525 : vector<8x128xf32>
    %527 = arith.mulf %518, %435 : vector<8x128xf32>
    %528 = arith.mulf %512, %520 : vector<8x128xf32>
    %529 = arith.addf %527, %528 : vector<8x128xf32>
    %530 = math.tanh %529 : vector<8x128xf32>
    %531 = arith.mulf %526, %530 : vector<8x128xf32>
    %532 = tpu.concatenate %437, %469 in 1 : vector<8x128xf32>, vector<8x128xf32> -> vector<8x256xf32>
    %533 = arith.truncf %532 : vector<8x256xf32> to vector<8x256xbf16>
    %c0_135 = arith.constant 0 : index
    %c0_136 = arith.constant 0 : index
    %534 = vector.load %arg12[%c0_135, %c0_136] : memref<256x512xbf16, #tpu.memory_space<vmem>>, vector<256x512xbf16>
    %cst_137 = arith.constant dense<0.000000e+00> : vector<8x512xf32>
    %535 = tpu.matmul %533, %534, %cst_137 {dimension_numbers = #tpu.dot_dimension_numbers<[1], [0], [0], [1], [0, 0, 1, 1], [], []>} : vector<8x256xbf16>, vector<256x512xbf16>, vector<8x512xf32> -> vector<8x512xf32>
    %c0_138 = arith.constant 0 : index
    %c0_139 = arith.constant 0 : index
    %536 = vector.load %arg7[%c0_138, %c0_139] : memref<1x512xf32, #tpu.memory_space<vmem>>, vector<1x512xf32>
    %537 = vector.broadcast %536 : vector<1x512xf32> to vector<8x512xf32>
    %538 = arith.addf %535, %537 : vector<8x512xf32>
    %539 = vector.extract_strided_slice %538 {offsets = [0, 0], sizes = [8, 128], strides = [1, 1]} : vector<8x512xf32> to vector<8x128xf32>
    %540 = arith.negf %539 : vector<8x128xf32>
    %541 = math.exp %540 : vector<8x128xf32>
    %cst_140 = arith.constant 1.000000e+00 : f32
    %542 = vector.broadcast %cst_140 : f32 to vector<8x128xf32>
    %543 = arith.addf %542, %541 : vector<8x128xf32>
    %544 = arith.divf %542, %543 : vector<8x128xf32>
    %545 = vector.extract_strided_slice %538 {offsets = [0, 128], sizes = [8, 128], strides = [1, 1]} : vector<8x512xf32> to vector<8x128xf32>
    %546 = arith.negf %545 : vector<8x128xf32>
    %547 = math.exp %546 : vector<8x128xf32>
    %cst_141 = arith.constant 1.000000e+00 : f32
    %548 = vector.broadcast %cst_141 : f32 to vector<8x128xf32>
    %549 = arith.addf %548, %547 : vector<8x128xf32>
    %550 = arith.divf %548, %549 : vector<8x128xf32>
    %551 = vector.extract_strided_slice %538 {offsets = [0, 256], sizes = [8, 128], strides = [1, 1]} : vector<8x512xf32> to vector<8x128xf32>
    %552 = math.tanh %551 : vector<8x128xf32>
    %553 = vector.extract_strided_slice %538 {offsets = [0, 384], sizes = [8, 128], strides = [1, 1]} : vector<8x512xf32> to vector<8x128xf32>
    %554 = arith.negf %553 : vector<8x128xf32>
    %555 = math.exp %554 : vector<8x128xf32>
    %cst_142 = arith.constant 1.000000e+00 : f32
    %556 = vector.broadcast %cst_142 : f32 to vector<8x128xf32>
    %557 = arith.addf %556, %555 : vector<8x128xf32>
    %558 = arith.divf %556, %557 : vector<8x128xf32>
    %559 = arith.mulf %550, %467 : vector<8x128xf32>
    %560 = arith.mulf %544, %552 : vector<8x128xf32>
    %561 = arith.addf %559, %560 : vector<8x128xf32>
    %562 = math.tanh %561 : vector<8x128xf32>
    %563 = arith.mulf %558, %562 : vector<8x128xf32>
    %c56 = arith.constant 56 : index
    %c0_143 = arith.constant 0 : index
    %564 = vector.load %arg11[%c56, %c0_143] : memref<64x512xf32, #tpu.memory_space<vmem>>, vector<8x512xf32>
    %565 = arith.truncf %499 : vector<8x128xf32> to vector<8x128xbf16>
    %c0_144 = arith.constant 0 : index
    %c0_145 = arith.constant 0 : index
    %566 = vector.load %arg2[%c0_144, %c0_145] : memref<128x512xbf16, #tpu.memory_space<vmem>>, vector<128x512xbf16>
    %cst_146 = arith.constant dense<0.000000e+00> : vector<8x512xf32>
    %567 = tpu.matmul %565, %566, %cst_146 {dimension_numbers = #tpu.dot_dimension_numbers<[1], [0], [0], [1], [0, 0, 1, 1], [], []>} : vector<8x128xbf16>, vector<128x512xbf16>, vector<8x512xf32> -> vector<8x512xf32>
    %568 = arith.addf %564, %567 : vector<8x512xf32>
    %569 = vector.extract_strided_slice %568 {offsets = [0, 0], sizes = [8, 128], strides = [1, 1]} : vector<8x512xf32> to vector<8x128xf32>
    %570 = arith.negf %569 : vector<8x128xf32>
    %571 = math.exp %570 : vector<8x128xf32>
    %cst_147 = arith.constant 1.000000e+00 : f32
    %572 = vector.broadcast %cst_147 : f32 to vector<8x128xf32>
    %573 = arith.addf %572, %571 : vector<8x128xf32>
    %574 = arith.divf %572, %573 : vector<8x128xf32>
    %575 = vector.extract_strided_slice %568 {offsets = [0, 128], sizes = [8, 128], strides = [1, 1]} : vector<8x512xf32> to vector<8x128xf32>
    %576 = arith.negf %575 : vector<8x128xf32>
    %577 = math.exp %576 : vector<8x128xf32>
    %cst_148 = arith.constant 1.000000e+00 : f32
    %578 = vector.broadcast %cst_148 : f32 to vector<8x128xf32>
    %579 = arith.addf %578, %577 : vector<8x128xf32>
    %580 = arith.divf %578, %579 : vector<8x128xf32>
    %581 = vector.extract_strided_slice %568 {offsets = [0, 256], sizes = [8, 128], strides = [1, 1]} : vector<8x512xf32> to vector<8x128xf32>
    %582 = math.tanh %581 : vector<8x128xf32>
    %583 = vector.extract_strided_slice %568 {offsets = [0, 384], sizes = [8, 128], strides = [1, 1]} : vector<8x512xf32> to vector<8x128xf32>
    %584 = arith.negf %583 : vector<8x128xf32>
    %585 = math.exp %584 : vector<8x128xf32>
    %cst_149 = arith.constant 1.000000e+00 : f32
    %586 = vector.broadcast %cst_149 : f32 to vector<8x128xf32>
    %587 = arith.addf %586, %585 : vector<8x128xf32>
    %588 = arith.divf %586, %587 : vector<8x128xf32>
    %589 = arith.mulf %580, %497 : vector<8x128xf32>
    %590 = arith.mulf %574, %582 : vector<8x128xf32>
    %591 = arith.addf %589, %590 : vector<8x128xf32>
    %592 = math.tanh %591 : vector<8x128xf32>
    %593 = arith.mulf %588, %592 : vector<8x128xf32>
    %594 = tpu.concatenate %499, %531 in 1 : vector<8x128xf32>, vector<8x128xf32> -> vector<8x256xf32>
    %595 = arith.truncf %594 : vector<8x256xf32> to vector<8x256xbf16>
    %c0_150 = arith.constant 0 : index
    %c0_151 = arith.constant 0 : index
    %596 = vector.load %arg4[%c0_150, %c0_151] : memref<256x512xbf16, #tpu.memory_space<vmem>>, vector<256x512xbf16>
    %cst_152 = arith.constant dense<0.000000e+00> : vector<8x512xf32>
    %597 = tpu.matmul %595, %596, %cst_152 {dimension_numbers = #tpu.dot_dimension_numbers<[1], [0], [0], [1], [0, 0, 1, 1], [], []>} : vector<8x256xbf16>, vector<256x512xbf16>, vector<8x512xf32> -> vector<8x512xf32>
    %c0_153 = arith.constant 0 : index
    %c0_154 = arith.constant 0 : index
    %598 = vector.load %arg5[%c0_153, %c0_154] : memref<1x512xf32, #tpu.memory_space<vmem>>, vector<1x512xf32>
    %599 = vector.broadcast %598 : vector<1x512xf32> to vector<8x512xf32>
    %600 = arith.addf %597, %599 : vector<8x512xf32>
    %601 = vector.extract_strided_slice %600 {offsets = [0, 0], sizes = [8, 128], strides = [1, 1]} : vector<8x512xf32> to vector<8x128xf32>
    %602 = arith.negf %601 : vector<8x128xf32>
    %603 = math.exp %602 : vector<8x128xf32>
    %cst_155 = arith.constant 1.000000e+00 : f32
    %604 = vector.broadcast %cst_155 : f32 to vector<8x128xf32>
    %605 = arith.addf %604, %603 : vector<8x128xf32>
    %606 = arith.divf %604, %605 : vector<8x128xf32>
    %607 = vector.extract_strided_slice %600 {offsets = [0, 128], sizes = [8, 128], strides = [1, 1]} : vector<8x512xf32> to vector<8x128xf32>
    %608 = arith.negf %607 : vector<8x128xf32>
    %609 = math.exp %608 : vector<8x128xf32>
    %cst_156 = arith.constant 1.000000e+00 : f32
    %610 = vector.broadcast %cst_156 : f32 to vector<8x128xf32>
    %611 = arith.addf %610, %609 : vector<8x128xf32>
    %612 = arith.divf %610, %611 : vector<8x128xf32>
    %613 = vector.extract_strided_slice %600 {offsets = [0, 256], sizes = [8, 128], strides = [1, 1]} : vector<8x512xf32> to vector<8x128xf32>
    %614 = math.tanh %613 : vector<8x128xf32>
    %615 = vector.extract_strided_slice %600 {offsets = [0, 384], sizes = [8, 128], strides = [1, 1]} : vector<8x512xf32> to vector<8x128xf32>
    %616 = arith.negf %615 : vector<8x128xf32>
    %617 = math.exp %616 : vector<8x128xf32>
    %cst_157 = arith.constant 1.000000e+00 : f32
    %618 = vector.broadcast %cst_157 : f32 to vector<8x128xf32>
    %619 = arith.addf %618, %617 : vector<8x128xf32>
    %620 = arith.divf %618, %619 : vector<8x128xf32>
    %621 = arith.mulf %612, %529 : vector<8x128xf32>
    %622 = arith.mulf %606, %614 : vector<8x128xf32>
    %623 = arith.addf %621, %622 : vector<8x128xf32>
    %624 = math.tanh %623 : vector<8x128xf32>
    %625 = arith.mulf %620, %624 : vector<8x128xf32>
    %626 = tpu.concatenate %531, %563 in 1 : vector<8x128xf32>, vector<8x128xf32> -> vector<8x256xf32>
    %627 = arith.truncf %626 : vector<8x256xf32> to vector<8x256xbf16>
    %c0_158 = arith.constant 0 : index
    %c0_159 = arith.constant 0 : index
    %628 = vector.load %arg12[%c0_158, %c0_159] : memref<256x512xbf16, #tpu.memory_space<vmem>>, vector<256x512xbf16>
    %cst_160 = arith.constant dense<0.000000e+00> : vector<8x512xf32>
    %629 = tpu.matmul %627, %628, %cst_160 {dimension_numbers = #tpu.dot_dimension_numbers<[1], [0], [0], [1], [0, 0, 1, 1], [], []>} : vector<8x256xbf16>, vector<256x512xbf16>, vector<8x512xf32> -> vector<8x512xf32>
    %c0_161 = arith.constant 0 : index
    %c0_162 = arith.constant 0 : index
    %630 = vector.load %arg7[%c0_161, %c0_162] : memref<1x512xf32, #tpu.memory_space<vmem>>, vector<1x512xf32>
    %631 = vector.broadcast %630 : vector<1x512xf32> to vector<8x512xf32>
    %632 = arith.addf %629, %631 : vector<8x512xf32>
    %633 = vector.extract_strided_slice %632 {offsets = [0, 0], sizes = [8, 128], strides = [1, 1]} : vector<8x512xf32> to vector<8x128xf32>
    %634 = arith.negf %633 : vector<8x128xf32>
    %635 = math.exp %634 : vector<8x128xf32>
    %cst_163 = arith.constant 1.000000e+00 : f32
    %636 = vector.broadcast %cst_163 : f32 to vector<8x128xf32>
    %637 = arith.addf %636, %635 : vector<8x128xf32>
    %638 = arith.divf %636, %637 : vector<8x128xf32>
    %639 = vector.extract_strided_slice %632 {offsets = [0, 128], sizes = [8, 128], strides = [1, 1]} : vector<8x512xf32> to vector<8x128xf32>
    %640 = arith.negf %639 : vector<8x128xf32>
    %641 = math.exp %640 : vector<8x128xf32>
    %cst_164 = arith.constant 1.000000e+00 : f32
    %642 = vector.broadcast %cst_164 : f32 to vector<8x128xf32>
    %643 = arith.addf %642, %641 : vector<8x128xf32>
    %644 = arith.divf %642, %643 : vector<8x128xf32>
    %645 = vector.extract_strided_slice %632 {offsets = [0, 256], sizes = [8, 128], strides = [1, 1]} : vector<8x512xf32> to vector<8x128xf32>
    %646 = math.tanh %645 : vector<8x128xf32>
    %647 = vector.extract_strided_slice %632 {offsets = [0, 384], sizes = [8, 128], strides = [1, 1]} : vector<8x512xf32> to vector<8x128xf32>
    %648 = arith.negf %647 : vector<8x128xf32>
    %649 = math.exp %648 : vector<8x128xf32>
    %cst_165 = arith.constant 1.000000e+00 : f32
    %650 = vector.broadcast %cst_165 : f32 to vector<8x128xf32>
    %651 = arith.addf %650, %649 : vector<8x128xf32>
    %652 = arith.divf %650, %651 : vector<8x128xf32>
    %653 = arith.mulf %644, %561 : vector<8x128xf32>
    %654 = arith.mulf %638, %646 : vector<8x128xf32>
    %655 = arith.addf %653, %654 : vector<8x128xf32>
    %656 = math.tanh %655 : vector<8x128xf32>
    %657 = arith.mulf %652, %656 : vector<8x128xf32>
    %658 = tpu.concatenate %593, %625 in 1 : vector<8x128xf32>, vector<8x128xf32> -> vector<8x256xf32>
    %659 = arith.truncf %658 : vector<8x256xf32> to vector<8x256xbf16>
    %c0_166 = arith.constant 0 : index
    %c0_167 = arith.constant 0 : index
    %660 = vector.load %arg4[%c0_166, %c0_167] : memref<256x512xbf16, #tpu.memory_space<vmem>>, vector<256x512xbf16>
    %cst_168 = arith.constant dense<0.000000e+00> : vector<8x512xf32>
    %661 = tpu.matmul %659, %660, %cst_168 {dimension_numbers = #tpu.dot_dimension_numbers<[1], [0], [0], [1], [0, 0, 1, 1], [], []>} : vector<8x256xbf16>, vector<256x512xbf16>, vector<8x512xf32> -> vector<8x512xf32>
    %c0_169 = arith.constant 0 : index
    %c0_170 = arith.constant 0 : index
    %662 = vector.load %arg5[%c0_169, %c0_170] : memref<1x512xf32, #tpu.memory_space<vmem>>, vector<1x512xf32>
    %663 = vector.broadcast %662 : vector<1x512xf32> to vector<8x512xf32>
    %664 = arith.addf %661, %663 : vector<8x512xf32>
    %665 = vector.extract_strided_slice %664 {offsets = [0, 0], sizes = [8, 128], strides = [1, 1]} : vector<8x512xf32> to vector<8x128xf32>
    %666 = arith.negf %665 : vector<8x128xf32>
    %667 = math.exp %666 : vector<8x128xf32>
    %cst_171 = arith.constant 1.000000e+00 : f32
    %668 = vector.broadcast %cst_171 : f32 to vector<8x128xf32>
    %669 = arith.addf %668, %667 : vector<8x128xf32>
    %670 = arith.divf %668, %669 : vector<8x128xf32>
    %671 = vector.extract_strided_slice %664 {offsets = [0, 128], sizes = [8, 128], strides = [1, 1]} : vector<8x512xf32> to vector<8x128xf32>
    %672 = arith.negf %671 : vector<8x128xf32>
    %673 = math.exp %672 : vector<8x128xf32>
    %cst_172 = arith.constant 1.000000e+00 : f32
    %674 = vector.broadcast %cst_172 : f32 to vector<8x128xf32>
    %675 = arith.addf %674, %673 : vector<8x128xf32>
    %676 = arith.divf %674, %675 : vector<8x128xf32>
    %677 = vector.extract_strided_slice %664 {offsets = [0, 256], sizes = [8, 128], strides = [1, 1]} : vector<8x512xf32> to vector<8x128xf32>
    %678 = math.tanh %677 : vector<8x128xf32>
    %679 = vector.extract_strided_slice %664 {offsets = [0, 384], sizes = [8, 128], strides = [1, 1]} : vector<8x512xf32> to vector<8x128xf32>
    %680 = arith.negf %679 : vector<8x128xf32>
    %681 = math.exp %680 : vector<8x128xf32>
    %cst_173 = arith.constant 1.000000e+00 : f32
    %682 = vector.broadcast %cst_173 : f32 to vector<8x128xf32>
    %683 = arith.addf %682, %681 : vector<8x128xf32>
    %684 = arith.divf %682, %683 : vector<8x128xf32>
    %685 = arith.mulf %676, %623 : vector<8x128xf32>
    %686 = arith.mulf %670, %678 : vector<8x128xf32>
    %687 = arith.addf %685, %686 : vector<8x128xf32>
    %688 = math.tanh %687 : vector<8x128xf32>
    %689 = arith.mulf %684, %688 : vector<8x128xf32>
    %690 = tpu.concatenate %625, %657 in 1 : vector<8x128xf32>, vector<8x128xf32> -> vector<8x256xf32>
    %691 = arith.truncf %690 : vector<8x256xf32> to vector<8x256xbf16>
    %c0_174 = arith.constant 0 : index
    %c0_175 = arith.constant 0 : index
    %692 = vector.load %arg12[%c0_174, %c0_175] : memref<256x512xbf16, #tpu.memory_space<vmem>>, vector<256x512xbf16>
    %cst_176 = arith.constant dense<0.000000e+00> : vector<8x512xf32>
    %693 = tpu.matmul %691, %692, %cst_176 {dimension_numbers = #tpu.dot_dimension_numbers<[1], [0], [0], [1], [0, 0, 1, 1], [], []>} : vector<8x256xbf16>, vector<256x512xbf16>, vector<8x512xf32> -> vector<8x512xf32>
    %c0_177 = arith.constant 0 : index
    %c0_178 = arith.constant 0 : index
    %694 = vector.load %arg7[%c0_177, %c0_178] : memref<1x512xf32, #tpu.memory_space<vmem>>, vector<1x512xf32>
    %695 = vector.broadcast %694 : vector<1x512xf32> to vector<8x512xf32>
    %696 = arith.addf %693, %695 : vector<8x512xf32>
    %697 = vector.extract_strided_slice %696 {offsets = [0, 0], sizes = [8, 128], strides = [1, 1]} : vector<8x512xf32> to vector<8x128xf32>
    %698 = arith.negf %697 : vector<8x128xf32>
    %699 = math.exp %698 : vector<8x128xf32>
    %cst_179 = arith.constant 1.000000e+00 : f32
    %700 = vector.broadcast %cst_179 : f32 to vector<8x128xf32>
    %701 = arith.addf %700, %699 : vector<8x128xf32>
    %702 = arith.divf %700, %701 : vector<8x128xf32>
    %703 = vector.extract_strided_slice %696 {offsets = [0, 128], sizes = [8, 128], strides = [1, 1]} : vector<8x512xf32> to vector<8x128xf32>
    %704 = arith.negf %703 : vector<8x128xf32>
    %705 = math.exp %704 : vector<8x128xf32>
    %cst_180 = arith.constant 1.000000e+00 : f32
    %706 = vector.broadcast %cst_180 : f32 to vector<8x128xf32>
    %707 = arith.addf %706, %705 : vector<8x128xf32>
    %708 = arith.divf %706, %707 : vector<8x128xf32>
    %709 = vector.extract_strided_slice %696 {offsets = [0, 256], sizes = [8, 128], strides = [1, 1]} : vector<8x512xf32> to vector<8x128xf32>
    %710 = math.tanh %709 : vector<8x128xf32>
    %711 = vector.extract_strided_slice %696 {offsets = [0, 384], sizes = [8, 128], strides = [1, 1]} : vector<8x512xf32> to vector<8x128xf32>
    %712 = arith.negf %711 : vector<8x128xf32>
    %713 = math.exp %712 : vector<8x128xf32>
    %cst_181 = arith.constant 1.000000e+00 : f32
    %714 = vector.broadcast %cst_181 : f32 to vector<8x128xf32>
    %715 = arith.addf %714, %713 : vector<8x128xf32>
    %716 = arith.divf %714, %715 : vector<8x128xf32>
    %717 = arith.mulf %708, %655 : vector<8x128xf32>
    %718 = arith.mulf %702, %710 : vector<8x128xf32>
    %719 = arith.addf %717, %718 : vector<8x128xf32>
    %720 = math.tanh %719 : vector<8x128xf32>
    %721 = arith.mulf %716, %720 : vector<8x128xf32>
    %722 = tpu.concatenate %689, %721 in 1 : vector<8x128xf32>, vector<8x128xf32> -> vector<8x256xf32>
    %723 = arith.truncf %722 : vector<8x256xf32> to vector<8x256xbf16>
    %c0_182 = arith.constant 0 : index
    %c0_183 = arith.constant 0 : index
    %724 = vector.load %arg12[%c0_182, %c0_183] : memref<256x512xbf16, #tpu.memory_space<vmem>>, vector<256x512xbf16>
    %cst_184 = arith.constant dense<0.000000e+00> : vector<8x512xf32>
    %725 = tpu.matmul %723, %724, %cst_184 {dimension_numbers = #tpu.dot_dimension_numbers<[1], [0], [0], [1], [0, 0, 1, 1], [], []>} : vector<8x256xbf16>, vector<256x512xbf16>, vector<8x512xf32> -> vector<8x512xf32>
    %c0_185 = arith.constant 0 : index
    %c0_186 = arith.constant 0 : index
    %726 = vector.load %arg7[%c0_185, %c0_186] : memref<1x512xf32, #tpu.memory_space<vmem>>, vector<1x512xf32>
    %727 = vector.broadcast %726 : vector<1x512xf32> to vector<8x512xf32>
    %728 = arith.addf %725, %727 : vector<8x512xf32>
    %729 = vector.extract_strided_slice %728 {offsets = [0, 0], sizes = [8, 128], strides = [1, 1]} : vector<8x512xf32> to vector<8x128xf32>
    %730 = arith.negf %729 : vector<8x128xf32>
    %731 = math.exp %730 : vector<8x128xf32>
    %cst_187 = arith.constant 1.000000e+00 : f32
    %732 = vector.broadcast %cst_187 : f32 to vector<8x128xf32>
    %733 = arith.addf %732, %731 : vector<8x128xf32>
    %734 = arith.divf %732, %733 : vector<8x128xf32>
    %735 = vector.extract_strided_slice %728 {offsets = [0, 128], sizes = [8, 128], strides = [1, 1]} : vector<8x512xf32> to vector<8x128xf32>
    %736 = arith.negf %735 : vector<8x128xf32>
    %737 = math.exp %736 : vector<8x128xf32>
    %cst_188 = arith.constant 1.000000e+00 : f32
    %738 = vector.broadcast %cst_188 : f32 to vector<8x128xf32>
    %739 = arith.addf %738, %737 : vector<8x128xf32>
    %740 = arith.divf %738, %739 : vector<8x128xf32>
    %741 = vector.extract_strided_slice %728 {offsets = [0, 256], sizes = [8, 128], strides = [1, 1]} : vector<8x512xf32> to vector<8x128xf32>
    %742 = math.tanh %741 : vector<8x128xf32>
    %743 = vector.extract_strided_slice %728 {offsets = [0, 384], sizes = [8, 128], strides = [1, 1]} : vector<8x512xf32> to vector<8x128xf32>
    %744 = arith.negf %743 : vector<8x128xf32>
    %745 = math.exp %744 : vector<8x128xf32>
    %cst_189 = arith.constant 1.000000e+00 : f32
    %746 = vector.broadcast %cst_189 : f32 to vector<8x128xf32>
    %747 = arith.addf %746, %745 : vector<8x128xf32>
    %748 = arith.divf %746, %747 : vector<8x128xf32>
    %749 = arith.mulf %740, %719 : vector<8x128xf32>
    %750 = arith.mulf %734, %742 : vector<8x128xf32>
    %751 = arith.addf %749, %750 : vector<8x128xf32>
    %752 = math.tanh %751 : vector<8x128xf32>
    %753 = arith.mulf %748, %752 : vector<8x128xf32>
    %754 = arith.truncf %753 : vector<8x128xf32> to vector<8x128xbf16>
    %c0_190 = arith.constant 0 : index
    %c0_191 = arith.constant 0 : index
    %755 = vector.load %arg8[%c0_190, %c0_191] : memref<128x128xbf16, #tpu.memory_space<vmem>>, vector<128x128xbf16>
    %cst_192 = arith.constant dense<0.000000e+00> : vector<8x128xf32>
    %756 = tpu.matmul %754, %755, %cst_192 {dimension_numbers = #tpu.dot_dimension_numbers<[1], [0], [0], [1], [0, 0, 1, 1], [], []>} : vector<8x128xbf16>, vector<128x128xbf16>, vector<8x128xf32> -> vector<8x128xf32>
    %c0_193 = arith.constant 0 : index
    %c0_194 = arith.constant 0 : index
    %757 = vector.load %arg9[%c0_193, %c0_194] : memref<1x128xf32, #tpu.memory_space<vmem>>, vector<1x128xf32>
    %758 = vector.broadcast %757 : vector<1x128xf32> to vector<8x128xf32>
    %759 = arith.addf %756, %758 : vector<8x128xf32>
    %c0_195 = arith.constant 0 : index
    %c0_196 = arith.constant 0 : index
    %760 = vector.load %arg10[%c0_195, %c0_196] : memref<8x128xf32, #tpu.memory_space<vmem>>, vector<8x128xf32>
    tpu.vector_store %arg10[%c0_195, %c0_196], %759 {strides = array<i32>} : memref<8x128xf32, #tpu.memory_space<vmem>>, vector<8x128xf32>,
    return
  }
}

</mosaic_0001>

<bundles_post_ra>
// kernel: rnn_forward.1
= control target key start
LH: loop header
LB: loop body
LE: loop exit
PB: predicated region body
PF: predicated region fallthrough
CT: control target
= control target key end

     0   :  { %s10976_s0 = inlined_call_operand.vmem [shape: bf16[64,160], index: 0, kind: input, shape index: {}]   ;;  %s10977_s1 = inlined_call_operand.vmem [shape: bf16[160,512], index: 1, kind: input, shape index: {}]   ;;  %s10978_s2 = inlined_call_operand.vmem [shape: bf16[128,512], index: 2, kind: input, shape index: {}]   ;;  %s10979_s3 = inlined_call_operand.vmem [shape: f32[1,512], index: 3, kind: input, shape index: {}]   ;;  %s10980_s4 = inlined_call_operand.vmem [shape: bf16[256,512], index: 4, kind: input, shape index: {}]   ;;  %s10981_s5 = inlined_call_operand.vmem [shape: f32[1,512], index: 5, kind: input, shape index: {}]   ;;  %s10982_s6 = inlined_call_operand.vmem [shape: bf16[256,512], index: 6, kind: input, shape index: {}]   ;;  %s10983_s7 = inlined_call_operand.vmem [shape: f32[1,512], index: 7, kind: input, shape index: {}]   ;;  %s10984_s8 = inlined_call_operand.vmem [shape: bf16[128,128], index: 8, kind: input, shape index: {}]   ;;  %s10985_s9 = inlined_call_operand.vmem [shape: f32[1,128], index: 9, kind: input, shape index: {}]   ;;  %s10986_s10 = inlined_call_operand.vmem [shape: f32[8,128], index: 10, kind: output, shape index: {}]  }
   0x1   :  { %v6863_v0 = vld [vmem:[%s10982_s6] sm:$0xff]  ;;  %v6868_v1 = vld [vmem:[%s10982_s6 + $0x8] sm:$0xff]  ;;  %v6873_v2 = vld [vmem:[%s10982_s6 + $0x10] sm:$0xff] }
   0x2   :  { %11413 = vst [vmem:[#allocation7_spill] sm:$0xff] %v6863_v0  ;;  %11414 = vst [vmem:[#allocation8_spill] sm:$0xff] %v6868_v1  ;;  %v6878_v3 = vld [vmem:[%s10982_s6 + $0x18] sm:$0xff]  ;;  %v6883_v4 = vld [vmem:[%s10982_s6 + $0x20] sm:$0xff] }
   0x3   :  { %11415 = vst [vmem:[#allocation9_spill] sm:$0xff] %v6873_v2  ;;  %11416 = vst [vmem:[#allocation10_spill] sm:$0xff] %v6878_v3  ;;  %v6888_v5 = vld [vmem:[%s10982_s6 + $0x28] sm:$0xff]  ;;  %v6893_v6 = vld [vmem:[%s10982_s6 + $0x30] sm:$0xff] }
   0x4   :  { %11417 = vst [vmem:[#allocation11_spill] sm:$0xff] %v6883_v4  ;;  %11418 = vst [vmem:[#allocation12_spill] sm:$0xff] %v6888_v5  ;;  %v6898_v7 = vld [vmem:[%s10982_s6 + $0x38] sm:$0xff]  ;;  %v6903_v8 = vld [vmem:[%s10982_s6 + $0x40] sm:$0xff] }
   0x5   :  { %11419 = vst [vmem:[#allocation13_spill] sm:$0xff] %v6893_v6  ;;  %11420 = vst [vmem:[#allocation14_spill] sm:$0xff] %v6898_v7  ;;  %v6908_v9 = vld [vmem:[%s10982_s6 + $0x48] sm:$0xff]  ;;  %v6913_v10 = vld [vmem:[%s10982_s6 + $0x50] sm:$0xff] }
   0x6   :  { %11421 = vst [vmem:[#allocation15_spill] sm:$0xff] %v6903_v8  ;;  %11422 = vst [vmem:[#allocation16_spill] sm:$0xff] %v6908_v9  ;;  %v6918_v11 = vld [vmem:[%s10982_s6 + $0x58] sm:$0xff]  ;;  %v6923_v12 = vld [vmem:[%s10982_s6 + $0x60] sm:$0xff] }
   0x7   :  { %11423 = vst [vmem:[#allocation17_spill] sm:$0xff] %v6913_v10  ;;  %11424 = vst [vmem:[#allocation18_spill] sm:$0xff] %v6918_v11  ;;  %v6928_v13 = vld [vmem:[%s10982_s6 + $0x68] sm:$0xff]  ;;  %v6933_v14 = vld [vmem:[%s10982_s6 + $0x70] sm:$0xff] }
   0x8   :  { %11425 = vst [vmem:[#allocation19_spill] sm:$0xff] %v6923_v12  ;;  %11426 = vst [vmem:[#allocation20_spill] sm:$0xff] %v6928_v13  ;;  %v6938_v15 = vld [vmem:[%s10982_s6 + $0x78] sm:$0xff]  ;;  %v6943_v16 = vld [vmem:[%s10982_s6 + $0x80] sm:$0xff] }
   0x9   :  { %11427 = vst [vmem:[#allocation21_spill] sm:$0xff] %v6933_v14  ;;  %11428 = vst [vmem:[#allocation22_spill] sm:$0xff] %v6938_v15  ;;  %v6948_v17 = vld [vmem:[%s10982_s6 + $0x88] sm:$0xff]  ;;  %v6953_v18 = vld [vmem:[%s10982_s6 + $0x90] sm:$0xff] }
   0xa   :  { %11429 = vst [vmem:[#allocation23_spill] sm:$0xff] %v6943_v16  ;;  %11430 = vst [vmem:[#allocation24_spill] sm:$0xff] %v6948_v17  ;;  %v6958_v19 = vld [vmem:[%s10982_s6 + $0x98] sm:$0xff]  ;;  %v6963_v20 = vld [vmem:[%s10982_s6 + $0xa0] sm:$0xff] }
   0xb   :  { %11431 = vst [vmem:[#allocation25_spill] sm:$0xff] %v6953_v18  ;;  %11432 = vst [vmem:[#allocation26_spill] sm:$0xff] %v6958_v19  ;;  %v6968_v21 = vld [vmem:[%s10982_s6 + $0xa8] sm:$0xff]  ;;  %v6973_v22 = vld [vmem:[%s10982_s6 + $0xb0] sm:$0xff] }
   0xc   :  { %11433 = vst [vmem:[#allocation27_spill] sm:$0xff] %v6963_v20  ;;  %11434 = vst [vmem:[#allocation28_spill] sm:$0xff] %v6968_v21  ;;  %v6978_v23 = vld [vmem:[%s10982_s6 + $0xb8] sm:$0xff]  ;;  %v6983_v24 = vld [vmem:[%s10982_s6 + $0xc0] sm:$0xff] }
   0xd   :  { %11435 = vst [vmem:[#allocation29_spill] sm:$0xff] %v6973_v22  ;;  %11436 = vst [vmem:[#allocation30_spill] sm:$0xff] %v6978_v23  ;;  %v6988_v25 = vld [vmem:[%s10982_s6 + $0xc8] sm:$0xff]  ;;  %v6993_v26 = vld [vmem:[%s10982_s6 + $0xd0] sm:$0xff] }
   0xe   :  { %11437 = vst [vmem:[#allocation31_spill] sm:$0xff] %v6983_v24  ;;  %11438 = vst [vmem:[#allocation32_spill] sm:$0xff] %v6988_v25  ;;  %v6998_v27 = vld [vmem:[%s10982_s6 + $0xd8] sm:$0xff]  ;;  %v7003_v28 = vld [vmem:[%s10982_s6 + $0xe0] sm:$0xff] }
   0xf   :  { %11439 = vst [vmem:[#allocation33_spill] sm:$0xff] %v6993_v26  ;;  %11440 = vst [vmem:[#allocation34_spill] sm:$0xff] %v6998_v27  ;;  %v7008_v29 = vld [vmem:[%s10982_s6 + $0xe8] sm:$0xff]  ;;  %v7013_v30 = vld [vmem:[%s10982_s6 + $0xf0] sm:$0xff] }
  0x10   :  { %11441 = vst [vmem:[#allocation35_spill] sm:$0xff] %v7003_v28  ;;  %11442 = vst [vmem:[#allocation36_spill] sm:$0xff] %v7008_v29  ;;  %v7018_v31 = vld [vmem:[%s10982_s6 + $0xf8] sm:$0xff]  ;;  %v7023_v32 = vld [vmem:[%s10982_s6 + $0x100] sm:$0xff] }
  0x11   :  { %11443 = vst [vmem:[#allocation37_spill] sm:$0xff] %v7013_v30  ;;  %11444 = vst [vmem:[#allocation38_spill] sm:$0xff] %v7018_v31  ;;  %v7028_v33 = vld [vmem:[%s10982_s6 + $0x108] sm:$0xff]  ;;  %v7033_v34 = vld [vmem:[%s10982_s6 + $0x110] sm:$0xff] }
  0x12   :  { %11445 = vst [vmem:[#allocation39_spill] sm:$0xff] %v7023_v32  ;;  %11446 = vst [vmem:[#allocation40_spill] sm:$0xff] %v7028_v33  ;;  %v7038_v35 = vld [vmem:[%s10982_s6 + $0x118] sm:$0xff]  ;;  %v7043_v36 = vld [vmem:[%s10982_s6 + $0x120] sm:$0xff] }
  0x13   :  { %11447 = vst [vmem:[#allocation41_spill] sm:$0xff] %v7033_v34  ;;  %11448 = vst [vmem:[#allocation42_spill] sm:$0xff] %v7038_v35  ;;  %v7048_v37 = vld [vmem:[%s10982_s6 + $0x128] sm:$0xff]  ;;  %v7053_v38 = vld [vmem:[%s10982_s6 + $0x130] sm:$0xff] }
  0x14   :  { %11449 = vst [vmem:[#allocation43_spill] sm:$0xff] %v7043_v36  ;;  %11450 = vst [vmem:[#allocation44_spill] sm:$0xff] %v7048_v37  ;;  %v7058_v39 = vld [vmem:[%s10982_s6 + $0x138] sm:$0xff]  ;;  %v7063_v40 = vld [vmem:[%s10982_s6 + $0x140] sm:$0xff] }
  0x15   :  { %11451 = vst [vmem:[#allocation45_spill] sm:$0xff] %v7053_v38  ;;  %11452 = vst [vmem:[#allocation46_spill] sm:$0xff] %v7058_v39  ;;  %v7068_v41 = vld [vmem:[%s10982_s6 + $0x148] sm:$0xff]  ;;  %v7073_v42 = vld [vmem:[%s10982_s6 + $0x150] sm:$0xff] }
  0x16   :  { %11453 = vst [vmem:[#allocation47_spill] sm:$0xff] %v7063_v40  ;;  %11454 = vst [vmem:[#allocation48_spill] sm:$0xff] %v7068_v41  ;;  %v7078_v43 = vld [vmem:[%s10982_s6 + $0x158] sm:$0xff]  ;;  %v7083_v44 = vld [vmem:[%s10982_s6 + $0x160] sm:$0xff] }
  0x17   :  { %11455 = vst [vmem:[#allocation49_spill] sm:$0xff] %v7073_v42  ;;  %11456 = vst [vmem:[#allocation50_spill] sm:$0xff] %v7078_v43  ;;  %v7088_v45 = vld [vmem:[%s10982_s6 + $0x168] sm:$0xff]  ;;  %v7093_v46 = vld [vmem:[%s10982_s6 + $0x170] sm:$0xff] }
  0x18   :  { %11457 = vst [vmem:[#allocation51_spill] sm:$0xff] %v7083_v44  ;;  %11458 = vst [vmem:[#allocation52_spill] sm:$0xff] %v7088_v45  ;;  %v7098_v47 = vld [vmem:[%s10982_s6 + $0x178] sm:$0xff]  ;;  %v7103_v48 = vld [vmem:[%s10982_s6 + $0x180] sm:$0xff] }
  0x19   :  { %11459 = vst [vmem:[#allocation53_spill] sm:$0xff] %v7093_v46  ;;  %11460 = vst [vmem:[#allocation54_spill] sm:$0xff] %v7098_v47  ;;  %v7108_v49 = vld [vmem:[%s10982_s6 + $0x188] sm:$0xff]  ;;  %v7113_v50 = vld [vmem:[%s10982_s6 + $0x190] sm:$0xff] }
  0x1a   :  { %11461 = vst [vmem:[#allocation55_spill] sm:$0xff] %v7103_v48  ;;  %11462 = vst [vmem:[#allocation56_spill] sm:$0xff] %v7108_v49  ;;  %v7118_v51 = vld [vmem:[%s10982_s6 + $0x198] sm:$0xff]  ;;  %v7123_v52 = vld [vmem:[%s10982_s6 + $0x1a0] sm:$0xff] }
  0x1b   :  { %11463 = vst [vmem:[#allocation57_spill] sm:$0xff] %v7113_v50  ;;  %11464 = vst [vmem:[#allocation58_spill] sm:$0xff] %v7118_v51  ;;  %v7128_v53 = vld [vmem:[%s10982_s6 + $0x1a8] sm:$0xff]  ;;  %v7133_v54 = vld [vmem:[%s10982_s6 + $0x1b0] sm:$0xff] }
  0x1c   :  { %11465 = vst [vmem:[#allocation59_spill] sm:$0xff] %v7123_v52  ;;  %11466 = vst [vmem:[#allocation60_spill] sm:$0xff] %v7128_v53  ;;  %v7138_v55 = vld [vmem:[%s10982_s6 + $0x1b8] sm:$0xff]  ;;  %v7143_v56 = vld [vmem:[%s10982_s6 + $0x1c0] sm:$0xff] }
  0x1d   :  { %11467 = vst [vmem:[#allocation61_spill] sm:$0xff] %v7133_v54  ;;  %11468 = vst [vmem:[#allocation62_spill] sm:$0xff] %v7138_v55  ;;  %v7148_v57 = vld [vmem:[%s10982_s6 + $0x1c8] sm:$0xff]  ;;  %v7153_v58 = vld [vmem:[%s10982_s6 + $0x1d0] sm:$0xff] }
  0x1e   :  { %11469 = vst [vmem:[#allocation63_spill] sm:$0xff] %v7143_v56  ;;  %11470 = vst [vmem:[#allocation64_spill] sm:$0xff] %v7148_v57  ;;  %v7158_v59 = vld [vmem:[%s10982_s6 + $0x1d8] sm:$0xff]  ;;  %v7163_v60 = vld [vmem:[%s10982_s6 + $0x1e0] sm:$0xff] }
  0x1f   :  { %11471 = vst [vmem:[#allocation65_spill] sm:$0xff] %v7153_v58  ;;  %11472 = vst [vmem:[#allocation66_spill] sm:$0xff] %v7158_v59  ;;  %v7168_v61 = vld [vmem:[%s10982_s6 + $0x1e8] sm:$0xff]  ;;  %v7173_v62 = vld [vmem:[%s10982_s6 + $0x1f0] sm:$0xff] }
  0x20   :  { %11473 = vst [vmem:[#allocation67_spill] sm:$0xff] %v7163_v60  ;;  %11474 = vst [vmem:[#allocation68_spill] sm:$0xff] %v7168_v61  ;;  %v7178_v63 = vld [vmem:[%s10982_s6 + $0x1f8] sm:$0xff] }
  0x21   :  { %11475 = vst [vmem:[#allocation69_spill] sm:$0xff] %v7173_v62  ;;  %11476 = vst [vmem:[#allocation70_spill] sm:$0xff] %v7178_v63 }
  0x22   :  { %202 = vsyncadd [#allocation4], 8192  ;;  %v5856_v33 = vld [vmem:[%s10977_s1 + $0xe4] ss:$16 sps:$4 sm:$0xff]   ;;  %v5858_v35 = vld [vmem:[%s10977_s1 + $0xe0] ss:$16 sps:$4 sm:$0xff]   ;;  %v253_v0 = vlaneseq }
  0x23   :  { %v5859_v32 = vld [vmem:[%s10977_s1 + $0xc4] ss:$16 sps:$4 sm:$0xff]   ;;  %522 = vmatprep.subr.bf16.mxu0 %v5856_v33  ;;  %v5861_v34 = vld [vmem:[%s10977_s1 + $0xc0] ss:$16 sps:$4 sm:$0xff]   ;;  %v5867_v39 = vld [vmem:[%s10977_s1 + $0xec] ss:$16 sps:$4 sm:$0xff]  }
  0x24   :  { %523 = vmatpush1.bf16.msra.mxu0 %v5858_v35  ;;  %v5862_v37 = vld [vmem:[%s10977_s1 + $0xa4] ss:$16 sps:$4 sm:$0xff]   ;;  %v5870_v36 = vld [vmem:[%s10977_s1 + $0xe8] ss:$16 sps:$4 sm:$0xff]   ;;  %v5864_v33 = vld [vmem:[%s10977_s1 + $0xa0] ss:$16 sps:$4 sm:$0xff]   ;;  %595 = vmatprep.subr.bf16.mxu1 %v5867_v39 }
  0x25   :  { %524 = vmatprep.subr.bf16.mxu0 %v5859_v32  ;;  %v5873_v32 = vld [vmem:[%s10977_s1 + $0xcc] ss:$16 sps:$4 sm:$0xff]   ;;  %v5865_v35 = vld [vmem:[%s10977_s1 + $0x84] ss:$16 sps:$4 sm:$0xff]   ;;  %596 = vmatpush1.bf16.msra.mxu1 %v5870_v36  ;;  %v5876_v38 = vld [vmem:[%s10977_s1 + $0xc8] ss:$16 sps:$4 sm:$0xff]  }
  0x26   :  { %597 = vmatprep.subr.bf16.mxu1 %v5873_v32  ;;  %v5879_v39 = vld [vmem:[%s10977_s1 + $0xac] ss:$16 sps:$4 sm:$0xff]   ;;  %v5882_v36 = vld [vmem:[%s10977_s1 + $0xa8] ss:$16 sps:$4 sm:$0xff]   ;;  %v5887_v41 = vld [vmem:[%s10977_s1 + $0x20] ss:$16 sps:$4 sm:$0xff]  }
  0x27   :  { %v5885_v32 = vld [vmem:[%s10977_s1 + $0x8c] ss:$16 sps:$4 sm:$0xff]   ;;  %vm509_vm0 = vcmask 261120   ;;  %v5899_v43 = vld [vmem:[%s10977_s1 + $0x120] ss:$16 sps:$4 sm:$0xff]   ;;  %v11021_v62 = vmov 0  }
  0x28   :  { %525 = vmatpush1.bf16.msra.mxu0 %v5861_v34  ;;  %v5869_v34 = vld [vmem:[%s10977_s1 + $0x80] ss:$16 sps:$4 sm:$0xff]   ;;  %v5913_v40 = vld [vmem:[%s10977_s1 + $0x12c] ss:$16 sps:$4 sm:$0xff]   ;;  %v7382_v42 = vld [vmem:[%s10978_s2 + $0xa8] ss:$16 sps:$4 sm:$0xff]  }
  0x29   :  { %526 = vmatprep.subr.bf16.mxu0 %v5862_v37  ;;  %v5871_v37 = vld [vmem:[%s10977_s1 + $0x64] ss:$16 sps:$4 sm:$0xff]   ;;  %598 = vmatpush1.bf16.msra.mxu1 %v5876_v38  ;;  %v5888_v38 = vld [vmem:[%s10977_s1 + $0x88] ss:$16 sps:$4 sm:$0xff]   ;;  %v7403_v46 = vld [vmem:[%s10978_s2 + $0x8c] ss:$16 sps:$4 sm:$0xff]  }
  0x2a   :  { %599 = vmatprep.subr.bf16.mxu1 %v5879_v39  ;;  %v5891_v39 = vld [vmem:[%s10977_s1 + $0x6c] ss:$16 sps:$4 sm:$0xff]   ;;  %v5942_v47 = vld [vmem:[%s10976_s0 + $0x20] ss:$8 sps:$4 sm:$0xff]   ;;  %v7398_v44 = vld [vmem:[%s10978_s2 + $0x84] ss:$16 sps:$4 sm:$0xff]  }
  0x2b   :  { %v5940_v45 = vld [vmem:[%s10976_s0 + $0x24] ss:$8 sps:$4 sm:$0xff]   ;;  %v7409_v49 = vld [vmem:[%s10978_s2 + $0x80] ss:$16 sps:$4 sm:$0xff]   ;;  %v7414_v51 = vld [vmem:[%s10978_s2 + $0x88] ss:$16 sps:$4 sm:$0xff]  }
  0x2c   :  { %527 = vmatpush1.bf16.msra.mxu0 %v5864_v33  ;;  %v5875_v33 = vld [vmem:[%s10977_s1 + $0x60] ss:$16 sps:$4 sm:$0xff]   ;;  %v7428_v48 = vld [vmem:[%s10978_s2 + $0x6c] ss:$16 sps:$4 sm:$0xff]   ;;  %v7438_v50 = vld [vmem:[%s10978_s2 + $0x68] ss:$16 sps:$4 sm:$0xff]  }
  0x2d   :  { %528 = vmatprep.subr.bf16.mxu0 %v5865_v35  ;;  %v5877_v35 = vld [vmem:[%s10977_s1 + $0x44] ss:$16 sps:$4 sm:$0xff]   ;;  %600 = vmatpush1.bf16.msra.mxu1 %v5882_v36  ;;  %v5894_v36 = vld [vmem:[%s10977_s1 + $0x68] ss:$16 sps:$4 sm:$0xff]   ;;  %v7458_v54 = vld [vmem:[%s10978_s2 + $0x40] ss:$16 sps:$4 sm:$0xff]  }
  0x2e   :  { %601 = vmatprep.subr.bf16.mxu1 %v5885_v32  ;;  %v5897_v32 = vld [vmem:[%s10977_s1 + $0x4c] ss:$16 sps:$4 sm:$0xff]   ;;  %v5957_v55 = vld [vmem:[%s10976_s0 + $0x30] ss:$8 sps:$4 sm:$0xff]   ;;  %v7451_v52 = vld [vmem:[%s10978_s2 + $0x44] ss:$16 sps:$4 sm:$0xff]  }
  0x2f   :  { %v5955_v53 = vld [vmem:[%s10976_s0 + $0x34] ss:$8 sps:$4 sm:$0xff]   ;;  %v7463_v57 = vld [vmem:[%s10978_s2 + $0x48] ss:$16 sps:$4 sm:$0xff]   ;;  %v7489_v61 = vld [vmem:[%s10978_s2 + $0x20] ss:$16 sps:$4 sm:$0xff]  }
  0x30   :  { %529 = vmatpush1.bf16.msra.mxu0 %v5869_v34  ;;  %v5881_v34 = vld [vmem:[%s10977_s1 + $0x40] ss:$16 sps:$4 sm:$0xff]   ;;  %v7468_v59 = vld [vmem:[%s10978_s2 + $0x4c] ss:$16 sps:$4 sm:$0xff]   ;;  %v7475_v56 = vld [vmem:[%s10978_s2 + $0x24] ss:$16 sps:$4 sm:$0xff]  }
  0x31   :  { %530 = vmatprep.subr.bf16.mxu0 %v5871_v37  ;;  %v5883_v37 = vld [vmem:[%s10977_s1 + $0x24] ss:$16 sps:$4 sm:$0xff]   ;;  %602 = vmatpush1.bf16.msra.mxu1 %v5888_v38  ;;  %v5900_v38 = vld [vmem:[%s10977_s1 + $0x48] ss:$16 sps:$4 sm:$0xff]   ;;  %v7480_v58 = vld [vmem:[%s10978_s2 + $0x2c] ss:$16 sps:$4 sm:$0xff]  }
  0x32   :  { %603 = vmatprep.subr.bf16.mxu1 %v5891_v39  ;;  %v5893_v39 = vld [vmem:[%s10977_s1] ss:$16 sps:$4 sm:$0xff]   ;;  %v7494_v63 = vld [vmem:[%s10978_s2 + $0x28] ss:$16 sps:$4 sm:$0xff]   ;;  %v7506_v60 = vld [vmem:[%s10978_s2 + $0xc] ss:$16 sps:$4 sm:$0xff]  }
  0x33   :  { %v7515_v1 = vld [vmem:[%s10978_s2] ss:$16 sps:$4 sm:$0xff]   ;;  %v7520_v3 = vld [vmem:[%s10978_s2 + $0x8] ss:$16 sps:$4 sm:$0xff]   ;;  %v254_v2 = vshrl.u32 %v253_v0, 7 }
  0x34   :  { %531 = vmatpush1.bf16.msra.mxu0 %v5875_v33  ;;  %v5909_v33 = vld [vmem:[%s10976_s0 + $0x4] ss:$8 sps:$4 sm:$0xff]   ;;  %v251_v7 = vld [vmem:[%s10979_s3] sm:$0xf]  ;;  %v7676_v28 = vld [vmem:[%s10980_s4 + $0x68] ss:$16 sps:$4 sm:$0xff]  }
  0x35   :  { %532 = vmatprep.subr.bf16.mxu0 %v5877_v35  ;;  %v5889_v35 = vld [vmem:[%s10977_s1 + $0x4] ss:$16 sps:$4 sm:$0xff]   ;;  %604 = vmatpush1.bf16.msra.mxu1 %v5894_v36  ;;  %v5906_v36 = vld [vmem:[%s10977_s1 + $0x28] ss:$16 sps:$4 sm:$0xff]   ;;  %v7538_v5 = vsub.s32 0, %v254_v2  ;;  %v7543_v4 = vsub.s32 1, %v254_v2 }
  0x36   :  { %605 = vmatprep.subr.bf16.mxu1 %v5897_v32  ;;  %5414 = vmatprep.mubr.msk.bf16.mxu0 %vm509_vm0, %v5909_v33  ;;  %v5910_v32 = vld [vmem:[%s10977_s1 + $0xc] ss:$16 sps:$4 sm:$0xff]   ;;  %v7553_v15 = vsub.s32 3, %v254_v2  ;;  %v7555_v14 = vsub.s32 2, %v254_v2  ;;  %v7659_v31 = vld [vmem:[%s10980_s4 + $0x64] ss:$16 sps:$4 sm:$0xff]  }
  0x37   :  { %5418 = vmatprep.mubr.msk.bf16.mxu1 %vm509_vm0, %v5909_v33  ;;  %v5901_v33 = vld [vmem:[%s10977_s1 + $0x104] ss:$16 sps:$4 sm:$0xff]   ;;  %v7546_v6 = vrot.slane %v251_v7, %v7538_v5  ;;  %v7549_v9 = vrot.slane %v251_v7, %v7543_v4  ;;  %11481 = vst [vmem:[#allocation74_spill] sm:$0xff] %v7659_v31  ;;  %v7664_v24 = vld [vmem:[%s10980_s4 + $0x6c] ss:$16 sps:$4 sm:$0xff]   ;;  %11484 = vst [vmem:[#allocation77_spill] sm:$0xff] %v7676_v28 }
  0x38   :  { %533 = vmatpush1.bf16.msra.mxu0 %v5881_v34  ;;  %v5903_v34 = vld [vmem:[%s10977_s1 + $0x2c] ss:$16 sps:$4 sm:$0xff]   ;;  %v7558_v19 = vrot.slane %v251_v7, %v7553_v15  ;;  %v7561_v16 = vrot.slane %v251_v7, %v7555_v14  ;;  %11482 = vst [vmem:[#allocation75_spill] sm:$0xff] %v7664_v24  ;;  %v7671_v26 = vld [vmem:[%s10980_s4 + $0x60] ss:$16 sps:$4 sm:$0xff]  }
  0x39   :  { %534 = vmatprep.subr.bf16.mxu0 %v5883_v37  ;;  %v5895_v37 = vld [vmem:[%s10977_s1 + $0x124] ss:$16 sps:$4 sm:$0xff]   ;;  %606 = vmatpush1.bf16.msra.mxu1 %v5900_v38  ;;  %v5915_v38 = vld [vmem:[%s10977_s1 + $0x128] ss:$16 sps:$4 sm:$0xff]   ;;  %11483 = vst [vmem:[#allocation76_spill] sm:$0xff] %v7671_v26 }
  0x3a   :  { %607 = vmatprep.subr.bf16.mxu1 %v5903_v34  ;;  %v5907_v34 = vld [vmem:[%s10976_s0] ss:$8 sps:$4 sm:$0xff]   ;;  %v7683_v30 = vld [vmem:[%s10980_s4 + $0x44] ss:$16 sps:$4 sm:$0xff]  }
  0x3b   :  { %11485 = vst [vmem:[#allocation78_spill] sm:$0xff] %v7683_v30 }
  0x3c   :  { %535 = vmatpush1.bf16.msra.mxu0 %v5887_v41  ;;  %v5912_v41 = vld [vmem:[%s10977_s1 + $0x8] ss:$16 sps:$4 sm:$0xff]  }
  0x3d   :  { %536 = vmatprep.subr.bf16.mxu0 %v5889_v35  ;;  %608 = vmatpush1.bf16.msra.mxu1 %v5906_v36  ;;  %v5905_v35 = vld [vmem:[%s10977_s1 + $0x100] ss:$16 sps:$4 sm:$0xff]   ;;  %v7316_v36 = vld [vmem:[%s10978_s2 + $0xec] ss:$16 sps:$4 sm:$0xff]  }
  0x3e   :  { %609 = vmatprep.subr.bf16.mxu1 %v5910_v32  ;;  %v7326_v32 = vld [vmem:[%s10978_s2 + $0xe8] ss:$16 sps:$4 sm:$0xff]  }
  0x40   :  { %537 = vmatpush1.bf16.msra.mxu0 %v5893_v39  ;;  %v5916_v39 = vld [vmem:[%s10977_s1 + $0x10c] ss:$16 sps:$4 sm:$0xff]  }
  0x41   :  { %550 = vmatprep.subr.bf16.mxu0 %v5895_v37  ;;  %610 = vmatpush1.bf16.msra.mxu1 %v5912_v41  ;;  %v5918_v37 = vld [vmem:[%s10977_s1 + $0x108] ss:$16 sps:$4 sm:$0xff]  }
  0x42   :  { %623 = vmatprep.subr.bf16.mxu1 %v5913_v40  ;;  %v7321_v40 = vld [vmem:[%s10978_s2 + $0xe0] ss:$16 sps:$4 sm:$0xff]  }
  0x43   :  { %v5927_v41 = vld [vmem:[%s10976_s0 + $0x10] ss:$8 sps:$4 sm:$0xff]  }
  0x44   :  { %551 = vmatpush2.bf16.msra.mxu0 %v5899_v43  ;;  %v7311_v43 = vld [vmem:[%s10978_s2 + $0xe4] ss:$16 sps:$4 sm:$0xff]  }
  0x45   :  { %552 = vmatprep.subr.bf16.mxu0 %v5901_v33  ;;  %624 = vmatpush2.bf16.msra.mxu1 %v5915_v38  ;;  %v5925_v33 = vld [vmem:[%s10976_s0 + $0x14] ss:$8 sps:$4 sm:$0xff]  }
  0x46   :  { %625 = vmatprep.subr.bf16.mxu1 %v5916_v39  ;;  %v7347_v38 = vld [vmem:[%s10978_s2 + $0xcc] ss:$16 sps:$4 sm:$0xff]   ;;  %v7353_v39 = vld [vmem:[%s10978_s2 + $0xc0] ss:$16 sps:$4 sm:$0xff]  }
  0x48   :  { %553 = vmatpush2.bf16.msra.mxu0 %v5905_v35  ;;  %v7342_v35 = vld [vmem:[%s10978_s2 + $0xc4] ss:$16 sps:$4 sm:$0xff]  }
  0x49   :  { %626 = vmatpush2.bf16.msra.mxu1 %v5918_v37  ;;  %925 = vmatprep.subr.bf16.mxu0 %v7311_v43  ;;  %v7367_v37 = vld [vmem:[%s10978_s2 + $0xa4] ss:$16 sps:$4 sm:$0xff]  }
  0x4a   :  { %966 = vmatprep.subr.bf16.mxu1 %v7316_v36 }
  0x4b   :  { %555 = vmatmul.mubr.bf16.vlgmr.msra.gmra.mxu0 %v5907_v34 }
  0x4c   :  { %628 = vmatmul.mubr.bf16.vlgmr.msra.gmra.mxu1 %v5907_v34  ;;  %926 = vmatpush1.bf16.msra.mxu0 %v7321_v40  ;;  %v7358_v34 = vld [vmem:[%s10978_s2 + $0xc8] ss:$16 sps:$4 sm:$0xff]  }
  0x4d   :  { %967 = vmatpush1.bf16.msra.mxu1 %v7326_v32  ;;  %5415 = vmatprep.mubr.msk.bf16.mxu0 %vm509_vm0, %v5925_v33 }
  0x4e   :  { %5419 = vmatprep.mubr.msk.bf16.mxu1 %vm509_vm0, %v5925_v33  ;;  %927 = vmatprep.subr.bf16.mxu0 %v7342_v35  ;;  %v7372_v33 = vld [vmem:[%s10978_s2 + $0xac] ss:$16 sps:$4 sm:$0xff]  }
  0x4f   :  { %968 = vmatprep.subr.bf16.mxu1 %v7347_v38 }
  0x50   :  { %928 = vmatpush1.bf16.msra.mxu0 %v7353_v39 }
  0x51   :  { %969 = vmatpush1.bf16.msra.mxu1 %v7358_v34  ;;  %929 = vmatprep.subr.bf16.mxu0 %v7367_v37 }
  0x52   :  { %970 = vmatprep.subr.bf16.mxu1 %v7372_v33 }
  0x53   :  { %565 = vmatmul.mubr.bf16.gmra.mxu0 %v5927_v41 }
  0x54   :  { %638 = vmatmul.mubr.bf16.gmra.mxu1 %v5927_v41  ;;  %v7377_v41 = vld [vmem:[%s10978_s2 + $0xa0] ss:$16 sps:$4 sm:$0xff]   ;;  %5416 = vmatprep.mubr.msk.bf16.mxu0 %vm509_vm0, %v5940_v45 }
  0x55   :  { %930 = vmatpush1.bf16.msra.mxu0 %v7377_v41  ;;  %971 = vmatpush1.bf16.msra.mxu1 %v7382_v42 }
  0x56   :  { %5420 = vmatprep.mubr.msk.bf16.mxu1 %vm509_vm0, %v5940_v45  ;;  %931 = vmatprep.subr.bf16.mxu0 %v7398_v44  ;;  %v7423_v45 = vld [vmem:[%s10978_s2 + $0x64] ss:$16 sps:$4 sm:$0xff]  }
  0x57   :  { %972 = vmatprep.subr.bf16.mxu1 %v7403_v46 }
  0x59   :  { %932 = vmatpush1.bf16.msra.mxu0 %v7409_v49  ;;  %973 = vmatpush1.bf16.msra.mxu1 %v7414_v51 }
  0x5a   :  { %933 = vmatprep.subr.bf16.mxu0 %v7423_v45  ;;  %974 = vmatprep.subr.bf16.mxu1 %v7428_v48 }
  0x5b   :  { %575 = vmatmul.mubr.bf16.gmra.mxu0 %v5942_v47 }
  0x5c   :  { %648 = vmatmul.mubr.bf16.gmra.mxu1 %v5942_v47  ;;  %v7433_v47 = vld [vmem:[%s10978_s2 + $0x60] ss:$16 sps:$4 sm:$0xff]   ;;  %5417 = vmatprep.mubr.msk.bf16.mxu0 %vm509_vm0, %v5955_v53 }
  0x5d   :  { %934 = vmatpush1.bf16.msra.mxu0 %v7433_v47  ;;  %975 = vmatpush1.bf16.msra.mxu1 %v7438_v50 }
  0x5e   :  { %935 = vmatprep.subr.bf16.mxu0 %v7451_v52  ;;  %976 = vmatprep.subr.bf16.mxu1 %v7468_v59 }
  0x5f   :  { %5421 = vmatprep.mubr.msk.bf16.mxu1 %vm509_vm0, %v5955_v53  ;;  %v7501_v53 = vld [vmem:[%s10978_s2 + $0x4] ss:$16 sps:$4 sm:$0xff]  }
  0x61   :  { %936 = vmatpush1.bf16.msra.mxu0 %v7458_v54  ;;  %977 = vmatpush1.bf16.msra.mxu1 %v7463_v57 }
  0x62   :  { %937 = vmatprep.subr.bf16.mxu0 %v7475_v56  ;;  %978 = vmatprep.subr.bf16.mxu1 %v7480_v58 }
  0x63   :  { %585 = vmatmul.mubr.bf16.gmra.mxu0 %v5957_v55 }
  0x64   :  { %658 = vmatmul.mubr.bf16.gmra.mxu1 %v5957_v55  ;;  %957 = vmatprep.mubr.bf16.mxu0 %v11021_v62  ;;  %v7527_v55 = vld [vmem:[%s10980_s4 + $0xe4] ss:$16 sps:$4 sm:$0xff]  }
  0x65   :  { %998 = vmatprep.mubr.bf16.mxu1 %v11021_v62  ;;  %938 = vmatpush1.bf16.msra.mxu0 %v7489_v61  ;;  %v7532_v62 = vld [vmem:[%s10980_s4 + $0xec] ss:$16 sps:$4 sm:$0xff]  }
  0x66   :  { %979 = vmatpush1.bf16.msra.mxu1 %v7494_v63  ;;  %939 = vmatprep.subr.bf16.mxu0 %v7501_v53 }
  0x67   :  { %980 = vmatprep.subr.bf16.mxu1 %v7506_v60 }
  0x69   :  { %940 = vmatpush1.bf16.msra.mxu0 %v7515_v1 }
  0x6a   :  { %981 = vmatpush1.bf16.msra.mxu1 %v7520_v3  ;;  %1249 = vmatprep.subr.bf16.mxu0 %v7527_v55 }
  0x6b   :  { %1290 = vmatprep.subr.bf16.mxu1 %v7532_v62 }
 0x10b   :  { %v556_v11 = vpop.f32.mrf.mxu0 }
 0x10c   :  { %v557_v8 = vadd.f32 %v556_v11, %v7546_v6  ;;  %v629_v17 = vpop.f32.mrf.mxu1 }
 0x10d   :  { %v558_v10 = vpop.f32.mrf.mxu0 }
 0x10e   :  { %v5422_v13 = vmul.f32 -1.442695, %v557_v8  ;;  %v559_v0 = vadd.f32 %v558_v10, %v7549_v9  ;;  %v631_v18 = vpop.f32.mrf.mxu1  ;;  %v630_v8 = vadd.f32 %v629_v17, %v7561_v16 }
 0x10f   :  { %v632_v11 = vadd.f32 %v631_v18, %v7558_v19 }
 0x110   :  { %6072 = vpow2.f32 %v5422_v13  ;;  %v5423_v12 = vmul.f32 -1.442695, %v559_v0 }
 0x111   :  { %v5424_v10 = vmul.f32 -1.442695, %v632_v11  ;;  %v7576_v11 = vld [vmem:[%s10980_s4 + $0xe8] ss:$16 sps:$4 sm:$0xff]  }
 0x112   :  { %6074 = vpow2.f32 %v5423_v12 }
 0x113   :  { %6076 = vtanh.f32 %v630_v8  ;;  %v7602_v8 = vld [vmem:[%s10980_s4 + $0xc8] ss:$16 sps:$4 sm:$0xff]  }
 0x114   :  { %6078 = vpow2.f32 %v5424_v10  ;;  %v7609_v10 = vld [vmem:[%s10980_s4 + $0xa4] ss:$16 sps:$4 sm:$0xff]  }
 0x11d   :  { %v6073_v21 = vpop.eup %6072 }
 0x11e   :  { %v707_v23 = vadd.f32 1.0, %v6073_v21 }
 0x11f   :  { %v6075_v13 = vpop.eup %6074 }
 0x120   :  { %6080 = vrcp.f32 %v707_v23  ;;  %v713_v2 = vadd.f32 1.0, %v6075_v13  ;;  %v6077_v12 = vpop.eup %6076  ;;  %v7571_v23 = vld [vmem:[%s10980_s4 + $0xe0] ss:$16 sps:$4 sm:$0xff]   ;;  %v7614_v13 = vld [vmem:[%s10980_s4 + $0xac] ss:$16 sps:$4 sm:$0xff]  }
 0x121   :  { %v6079_v0 = vpop.eup %6078 }
 0x122   :  { %6082 = vrcp.f32 %v713_v2  ;;  %v720_v7 = vadd.f32 1.0, %v6079_v0  ;;  %v11477_v2 = vmov 0   ;;  %v7628_v0 = vld [vmem:[%s10980_s4 + $0xa8] ss:$16 sps:$4 sm:$0xff]  }
 0x124   :  { %6084 = vrcp.f32 %v720_v7  ;;  %v7635_v7 = vld [vmem:[%s10980_s4 + $0x84] ss:$16 sps:$4 sm:$0xff]  }
 0x12d   :  { %v6081_v20 = vpop.eup %6080 }
 0x12e   :  { %v724_v27 = vmul.f32 %v6081_v20, %v6077_v12  ;;  %v7583_v20 = vld [vmem:[%s10980_s4 + $0xc4] ss:$16 sps:$4 sm:$0xff]   ;;  %v7623_v12 = vld [vmem:[%s10980_s4 + $0xa0] ss:$16 sps:$4 sm:$0xff]  }
 0x12f   :  { %v6083_v22 = vpop.eup %6082 }
 0x130   :  { %v723_v25 = vmul.f32 0.0, %v6083_v22 }
 0x131   :  { %v6085_v17 = vpop.eup %6084 }
 0x132   :  { %v7565_v29 = vadd.f32 %v724_v27, %v723_v25  ;;  %v7588_v25 = vld [vmem:[%s10980_s4 + $0xcc] ss:$16 sps:$4 sm:$0xff]   ;;  %v7597_v27 = vld [vmem:[%s10980_s4 + $0xc0] ss:$16 sps:$4 sm:$0xff]  }
 0x134   :  { %6086 = vtanh.f32 %v7565_v29 }
 0x141   :  { %v6087_v18 = vpop.eup %6086 }
 0x142   :  { %v727_v21 = vmul.f32 %v6087_v18, %v6085_v17  ;;  %v7640_v17 = vld [vmem:[%s10980_s4 + $0x8c] ss:$16 sps:$4 sm:$0xff]   ;;  %v7647_v18 = vld [vmem:[%s10980_s4 + $0x80] ss:$16 sps:$4 sm:$0xff]  }
 0x143   :  { %11478 = vst [vmem:[#allocation71_spill] sm:$0xff] %v7640_v17  ;;  %11479 = vst [vmem:[#allocation72_spill] sm:$0xff] %v7647_v18 }
 0x144   :  { %v7578_v22 = vpack.c.bf16 %v727_v21, %v727_v21  ;;  %v7652_v21 = vld [vmem:[%s10980_s4 + $0x88] ss:$16 sps:$4 sm:$0xff]  }
 0x145   :  { %11480 = vst [vmem:[#allocation73_spill] sm:$0xff] %v7652_v21 }
 0x146   :  { %958 = vmatmul.mubr.bf16.vlgmr.msra.gmra.mxu0 %v7578_v22  ;;  %999 = vmatmul.mubr.bf16.vlgmr.msra.gmra.mxu1 %v7578_v22 }
 0x147   :  { %1250 = vmatpush1.bf16.msra.mxu0 %v7571_v23  ;;  %1291 = vmatpush1.bf16.msra.mxu1 %v7576_v11 }
 0x148   :  { %1251 = vmatprep.subr.bf16.mxu0 %v7583_v20  ;;  %1292 = vmatprep.subr.bf16.mxu1 %v7588_v25 }
 0x149   :  { %1281 = vmatprep.mubr.bf16.mxu0 %v11477_v2  ;;  %1322 = vmatprep.mubr.bf16.mxu1 %v11477_v2 }
 0x14b   :  { %1252 = vmatpush1.bf16.msra.mxu0 %v7597_v27  ;;  %1293 = vmatpush1.bf16.msra.mxu1 %v7602_v8 }
 0x14c   :  { %1253 = vmatprep.subr.bf16.mxu0 %v7609_v10  ;;  %1294 = vmatprep.subr.bf16.mxu1 %v7614_v13 }
 0x14f   :  { %1254 = vmatpush1.bf16.msra.mxu0 %v7623_v12  ;;  %1295 = vmatpush1.bf16.msra.mxu1 %v7628_v0 }
 0x150   :  { %1255 = vmatprep.subr.bf16.mxu0 %v7635_v7  ;;  %1296 = vmatprep.subr.bf16.mxu1 %v7640_v17  ;;  %v7754_v17 = vpop.f32.mrf.mxu1 }
 0x153   :  { %1256 = vmatpush1.bf16.msra.mxu0 %v7647_v18  ;;  %1297 = vmatpush1.bf16.msra.mxu1 %v7652_v21  ;;  %v7688_v21 = vld [vmem:[%s10980_s4 + $0x4c] ss:$16 sps:$4 sm:$0xff]   ;;  %v7752_v18 = vpop.f32.mrf.mxu0 }
 0x154   :  { %1257 = vmatprep.subr.bf16.mxu0 %v7659_v31  ;;  %1298 = vmatprep.subr.bf16.mxu1 %v7664_v24  ;;  %11486 = vst [vmem:[#allocation79_spill] sm:$0xff] %v7688_v21  ;;  %v7695_v31 = vld [vmem:[%s10980_s4 + $0x40] ss:$16 sps:$4 sm:$0xff]   ;;  %v7700_v24 = vld [vmem:[%s10980_s4 + $0x48] ss:$16 sps:$4 sm:$0xff]  }
 0x155   :  { %11487 = vst [vmem:[#allocation80_spill] sm:$0xff] %v7695_v31  ;;  %11488 = vst [vmem:[#allocation81_spill] sm:$0xff] %v7700_v24 }
 0x157   :  { %1258 = vmatpush1.bf16.msra.mxu0 %v7671_v26  ;;  %1299 = vmatpush1.bf16.msra.mxu1 %v7676_v28  ;;  %v7707_v26 = vld [vmem:[%s10980_s4 + $0x24] ss:$16 sps:$4 sm:$0xff]   ;;  %v7712_v28 = vld [vmem:[%s10980_s4 + $0x2c] ss:$16 sps:$4 sm:$0xff]  }
 0x158   :  { %1259 = vmatprep.subr.bf16.mxu0 %v7683_v30  ;;  %1300 = vmatprep.subr.bf16.mxu1 %v7688_v21  ;;  %11489 = vst [vmem:[#allocation82_spill] sm:$0xff] %v7707_v26  ;;  %11490 = vst [vmem:[#allocation83_spill] sm:$0xff] %v7712_v28  ;;  %v7719_v30 = vld [vmem:[%s10980_s4 + $0x20] ss:$16 sps:$4 sm:$0xff]   ;;  %v7724_v21 = vld [vmem:[%s10980_s4 + $0x28] ss:$16 sps:$4 sm:$0xff]  }
 0x159   :  { %11491 = vst [vmem:[#allocation84_spill] sm:$0xff] %v7719_v30  ;;  %11492 = vst [vmem:[#allocation85_spill] sm:$0xff] %v7724_v21 }
 0x15b   :  { %1260 = vmatpush1.bf16.msra.mxu0 %v7695_v31  ;;  %1301 = vmatpush1.bf16.msra.mxu1 %v7700_v24  ;;  %v7731_v31 = vld [vmem:[%s10980_s4 + $0x4] ss:$16 sps:$4 sm:$0xff]   ;;  %v7736_v24 = vld [vmem:[%s10980_s4 + $0xc] ss:$16 sps:$4 sm:$0xff]  }
 0x15c   :  { %1261 = vmatprep.subr.bf16.mxu0 %v7707_v26  ;;  %1302 = vmatprep.subr.bf16.mxu1 %v7712_v28  ;;  %11493 = vst [vmem:[#allocation86_spill] sm:$0xff] %v7736_v24  ;;  %v7743_v26 = vld [vmem:[%s10980_s4] ss:$16 sps:$4 sm:$0xff]   ;;  %v7748_v28 = vld [vmem:[%s10980_s4 + $0x8] ss:$16 sps:$4 sm:$0xff]  }
 0x15d   :  { %11494 = vst [vmem:[#allocation87_spill] sm:$0xff] %v7743_v26 }
 0x15f   :  { %1262 = vmatpush1.bf16.msra.mxu0 %v7719_v30  ;;  %1303 = vmatpush1.bf16.msra.mxu1 %v7724_v21  ;;  %v7760_v21 = vpop.f32.mrf.mxu0  ;;  %v7762_v30 = vpop.f32.mrf.mxu1 }
 0x160   :  { %1263 = vmatprep.subr.bf16.mxu0 %v7731_v31  ;;  %1304 = vmatprep.subr.bf16.mxu1 %v7736_v24 }
 0x161   :  { %v7768_v24 = vpop.f32.mrf.mxu0 }
 0x163   :  { %1264 = vmatpush1.bf16.msra.mxu0 %v7743_v26  ;;  %1305 = vmatpush1.bf16.msra.mxu1 %v7748_v28  ;;  %v7770_v26 = vpop.f32.mrf.mxu1 }
 0x164   :  { %1360 = vmatprep.subr.bf16.mxu0 %v7311_v43  ;;  %1401 = vmatprep.subr.bf16.mxu1 %v7316_v36  ;;  %v7776_v43 = vpop.f32.mrf.mxu0 }
 0x165   :  { %v7778_v36 = vpop.f32.mrf.mxu1 }
 0x166   :  { %1282 = vmatmul.mubr.bf16.vlgmr.msra.gmra.mxu0 %v7578_v22  ;;  %1323 = vmatmul.mubr.bf16.vlgmr.msra.gmra.mxu1 %v7578_v22  ;;  %11495 = vst [vmem:[#allocation88_spill] sm:$0xff] %v7778_v36 }
 0x167   :  { %1361 = vmatpush1.bf16.msra.mxu0 %v7321_v40  ;;  %1402 = vmatpush1.bf16.msra.mxu1 %v7326_v32  ;;  %v570_v40 = vpop.f32.mrf.mxu0  ;;  %v643_v32 = vpop.f32.mrf.mxu1 }
 0x168   :  { %1362 = vmatprep.subr.bf16.mxu0 %v7342_v35  ;;  %1403 = vmatprep.subr.bf16.mxu1 %v7347_v38  ;;  %v7785_v35 = vadd.f32 %v570_v40, %v7546_v6  ;;  %v7788_v38 = vadd.f32 %v643_v32, %v7561_v16 }
 0x169   :  { %1392 = vmatprep.mubr.bf16.mxu0 %v11477_v2  ;;  %1433 = vmatprep.mubr.bf16.mxu1 %v11477_v2  ;;  %v572_v22 = vpop.f32.mrf.mxu0  ;;  %v645_v2 = vpop.f32.mrf.mxu1 }
 0x16a   :  { %v7791_v36 = vadd.f32 %v572_v22, %v7549_v9 }
 0x16b   :  { %1363 = vmatpush1.bf16.msra.mxu0 %v7353_v39  ;;  %1404 = vmatpush1.bf16.msra.mxu1 %v7358_v34  ;;  %v7794_v39 = vadd.f32 %v645_v2, %v7558_v19  ;;  %v576_v34 = vpop.f32.mrf.mxu0 }
 0x16c   :  { %1364 = vmatprep.subr.bf16.mxu0 %v7367_v37  ;;  %1405 = vmatprep.subr.bf16.mxu1 %v7372_v33  ;;  %v649_v37 = vpop.f32.mrf.mxu1  ;;  %v7801_v33 = vadd.f32 %v576_v34, %v7546_v6 }
 0x16d   :  { %v7804_v40 = vadd.f32 %v649_v37, %v7561_v16  ;;  %v578_v32 = vpop.f32.mrf.mxu0 }
 0x16e   :  { %11496 = vst [vmem:[#allocation89_spill] sm:$0xff] %v7801_v33  ;;  %v651_v22 = vpop.f32.mrf.mxu1  ;;  %v7807_v2 = vadd.f32 %v578_v32, %v7549_v9 }
 0x16f   :  { %1365 = vmatpush1.bf16.msra.mxu0 %v7377_v41  ;;  %1406 = vmatpush1.bf16.msra.mxu1 %v7382_v42  ;;  %11497 = vst [vmem:[#allocation90_spill] sm:$0xff] %v7804_v40  ;;  %v7810_v41 = vadd.f32 %v651_v22, %v7558_v19  ;;  %v580_v42 = vpop.f32.mrf.mxu0 }
 0x170   :  { %1366 = vmatprep.subr.bf16.mxu0 %v7398_v44  ;;  %1407 = vmatprep.subr.bf16.mxu1 %v7403_v46  ;;  %11498 = vst [vmem:[#allocation91_spill] sm:$0xff] %v7807_v2  ;;  %v653_v44 = vpop.f32.mrf.mxu1  ;;  %v7817_v46 = vadd.f32 %v580_v42, %v7546_v6 }
 0x171   :  { %11499 = vst [vmem:[#allocation92_spill] sm:$0xff] %v7810_v41  ;;  %v7820_v34 = vadd.f32 %v653_v44, %v7561_v16  ;;  %v582_v37 = vpop.f32.mrf.mxu0 }
 0x172   :  { %11500 = vst [vmem:[#allocation93_spill] sm:$0xff] %v7817_v46  ;;  %v655_v32 = vpop.f32.mrf.mxu1  ;;  %v7823_v22 = vadd.f32 %v582_v37, %v7549_v9 }
 0x173   :  { %1367 = vmatpush1.bf16.msra.mxu0 %v7409_v49  ;;  %1408 = vmatpush1.bf16.msra.mxu1 %v7414_v51  ;;  %11501 = vst [vmem:[#allocation94_spill] sm:$0xff] %v7820_v34  ;;  %v7826_v49 = vadd.f32 %v655_v32, %v7558_v19  ;;  %v586_v51 = vpop.f32.mrf.mxu0 }
 0x174   :  { %1368 = vmatprep.subr.bf16.mxu0 %v7423_v45  ;;  %1409 = vmatprep.subr.bf16.mxu1 %v7428_v48  ;;  %11502 = vst [vmem:[#allocation95_spill] sm:$0xff] %v7823_v22  ;;  %v7833_v48 = vadd.f32 %v586_v51, %v7546_v6 }
 0x175   :  { %11503 = vst [vmem:[#allocation96_spill] sm:$0xff] %v7826_v49  ;;  %v588_v45 = vpop.f32.mrf.mxu0 }
 0x176   :  { %11504 = vst [vmem:[#allocation97_spill] sm:$0xff] %v7833_v48  ;;  %v7836_v42 = vadd.f32 %v588_v45, %v7549_v9 }
 0x177   :  { %1369 = vmatpush1.bf16.msra.mxu0 %v7433_v47  ;;  %1410 = vmatpush1.bf16.msra.mxu1 %v7438_v50  ;;  %v590_v44 = vpop.f32.mrf.mxu0  ;;  %v659_v47 = vpop.f32.mrf.mxu1 }
 0x178   :  { %1370 = vmatprep.subr.bf16.mxu0 %v7451_v52  ;;  %1411 = vmatprep.subr.bf16.mxu1 %v7468_v59  ;;  %11505 = vst [vmem:[#allocation98_spill] sm:$0xff] %v7836_v42  ;;  %v7843_v50 = vadd.f32 %v590_v44, %v7546_v6  ;;  %v7846_v52 = vadd.f32 %v659_v47, %v7561_v16 }
 0x179   :  { %v592_v59 = vpop.f32.mrf.mxu0  ;;  %v661_v37 = vpop.f32.mrf.mxu1 }
 0x17a   :  { %11506 = vst [vmem:[#allocation99_spill] sm:$0xff] %v7843_v50  ;;  %11507 = vst [vmem:[#allocation100_spill] sm:$0xff] %v7846_v52  ;;  %v7849_v32 = vadd.f32 %v592_v59, %v7549_v9 }
 0x17b   :  { %1371 = vmatpush1.bf16.msra.mxu0 %v7458_v54  ;;  %1412 = vmatpush1.bf16.msra.mxu1 %v7463_v57  ;;  %v7852_v54 = vadd.f32 %v661_v37, %v7558_v19 }
 0x17c   :  { %1372 = vmatprep.subr.bf16.mxu0 %v7475_v56  ;;  %1413 = vmatprep.subr.bf16.mxu1 %v7480_v58  ;;  %11508 = vst [vmem:[#allocation101_spill] sm:$0xff] %v7849_v32  ;;  %v663_v56 = vpop.f32.mrf.mxu1 }
 0x17d   :  { %11509 = vst [vmem:[#allocation102_spill] sm:$0xff] %v7852_v54  ;;  %v7859_v57 = vadd.f32 %v663_v56, %v7561_v16 }
 0x17e   :  { %v665_v58 = vpop.f32.mrf.mxu1 }
 0x17f   :  { %1373 = vmatpush1.bf16.msra.mxu0 %v7489_v61  ;;  %1414 = vmatpush1.bf16.msra.mxu1 %v7494_v63  ;;  %11510 = vst [vmem:[#allocation103_spill] sm:$0xff] %v7859_v57  ;;  %v7862_v51 = vadd.f32 %v665_v58, %v7558_v19  ;;  %v561_v61 = vadd.f32 %v7752_v18, %v7546_v6 }
 0x180   :  { %1374 = vmatprep.subr.bf16.mxu0 %v7501_v53  ;;  %1415 = vmatprep.subr.bf16.mxu1 %v7506_v60  ;;  %v563_v53 = vadd.f32 %v7760_v21, %v7549_v9  ;;  %v634_v57 = vadd.f32 %v7754_v17, %v7561_v16 }
 0x181   :  { %11511 = vst [vmem:[#allocation104_spill] sm:$0xff] %v7862_v51 }
 0x183   :  { %1375 = vmatpush1.bf16.msra.mxu0 %v7515_v1  ;;  %1416 = vmatpush1.bf16.msra.mxu1 %v7520_v3 }
 0x184   :  { %1855 = vmatprep.subr.bf16.mxu0 %v7527_v55  ;;  %1896 = vmatprep.subr.bf16.mxu1 %v7532_v62  ;;  %v636_v62 = vadd.f32 %v7762_v30, %v7558_v19 }
 0x206   :  { %v959_v63 = vpop.f32.mrf.mxu0  ;;  %v1000_v60 = vpop.f32.mrf.mxu1 }
 0x207   :  { %v1007_v45 = vadd.f32 %v959_v63, %v561_v61  ;;  %v1009_v63 = vadd.f32 %v1000_v60, %v634_v57 }
 0x208   :  { %v961_v44 = vpop.f32.mrf.mxu0  ;;  %v1002_v47 = vpop.f32.mrf.mxu1 }
 0x209   :  { %v5457_v59 = vmul.f32 -1.442695, %v1007_v45  ;;  %v1008_v37 = vadd.f32 %v961_v44, %v563_v53  ;;  %v1010_v18 = vadd.f32 %v1002_v47, %v636_v62  ;;  %v1067_v44 = vld [vmem:[%s10981_s5] sm:$0xf] }
 0x20a   :  { %v963_v1 = vpop.f32.mrf.mxu0  ;;  %v1004_v56 = vpop.f32.mrf.mxu1  ;;  %v7880_v30 = vrot.slane %v1067_v44, %v7538_v5  ;;  %v7883_v47 = vrot.slane %v1067_v44, %v7543_v4 }
 0x20b   :  { %6088 = vpow2.f32 %v5457_v59  ;;  %v5458_v3 = vmul.f32 -1.442695, %v1008_v37  ;;  %v5459_v21 = vmul.f32 -1.442695, %v1010_v18 }
 0x20c   :  { %v964_v55 = vpop.f32.mrf.mxu0  ;;  %v1005_v58 = vpop.f32.mrf.mxu1 }
 0x20d   :  { %6090 = vpow2.f32 %v5458_v3 }
 0x20e   :  { %6092 = vpow2.f32 %v5459_v21 }
 0x218   :  { %v6089_v61 = vpop.eup %6088 }
 0x219   :  { %v1014_v51 = vadd.f32 1.0, %v6089_v61 }
 0x21a   :  { %v6091_v45 = vpop.eup %6090 }
 0x21b   :  { %6094 = vrcp.f32 %v1014_v51  ;;  %v1020_v53 = vadd.f32 1.0, %v6091_v45  ;;  %v6093_v57 = vpop.eup %6092 }
 0x21c   :  { %6096 = vtanh.f32 %v1009_v63  ;;  %v1027_v62 = vadd.f32 1.0, %v6093_v57 }
 0x21d   :  { %6098 = vrcp.f32 %v1020_v53 }
 0x226   :  { %v1283_v17 = vpop.f32.mrf.mxu0  ;;  %v1324_v59 = vpop.f32.mrf.mxu1 }
 0x227   :  { %v1284_v60 = vadd.f32 %v1283_v17, %v7880_v30  ;;  %v7891_v17 = vrot.slane %v1067_v44, %v7553_v15 }
 0x228   :  { %v6095_v37 = vpop.eup %6094  ;;  %v1285_v51 = vpop.f32.mrf.mxu0 }
 0x229   :  { %v1326_v1 = vpop.f32.mrf.mxu1  ;;  %v6097_v56 = vpop.eup %6096  ;;  %v5492_v3 = vmul.f32 -1.442695, %v1284_v60  ;;  %v1286_v55 = vadd.f32 %v1285_v51, %v7883_v47  ;;  %v7896_v60 = vrot.slane %v1067_v44, %v7555_v14 }
 0x22a   :  { %v6099_v58 = vpop.eup %6098  ;;  %v1287_v18 = vpop.f32.mrf.mxu0  ;;  %v1031_v61 = vmul.f32 %v6097_v56, %v6095_v37  ;;  %v1327_v57 = vadd.f32 %v1326_v1, %v7891_v17 }
 0x22b   :  { %v1328_v21 = vpop.f32.mrf.mxu1  ;;  %v1030_v63 = vmul.f32 %v6099_v58, %v7565_v29  ;;  %6100 = vpow2.f32 %v5492_v3  ;;  %v5493_v45 = vmul.f32 -1.442695, %v1286_v55  ;;  %v1325_v51 = vadd.f32 %v1324_v59, %v7896_v60 }
 0x22c   :  { %v1288_v53 = vpop.f32.mrf.mxu0  ;;  %v5494_v37 = vmul.f32 -1.442695, %v1327_v57  ;;  %v11523_v57 = vld [vmem:[#allocation82_spill] sm:$0xff] }
 0x22d   :  { %v1329_v32 = vpop.f32.mrf.mxu1  ;;  %v7888_v50 = vadd.f32 %v1031_v61, %v1030_v63  ;;  %6102 = vpow2.f32 %v5493_v45  ;;  %v11520_v63 = vld [vmem:[#allocation79_spill] sm:$0xff]  ;;  %v11521_v45 = vld [vmem:[#allocation80_spill] sm:$0xff]  ;;  %v11522_v53 = vld [vmem:[#allocation81_spill] sm:$0xff] }
 0x22e   :  { %6104 = vrcp.f32 %v1027_v62 }
 0x22f   :  { %6106 = vtanh.f32 %v7888_v50 }
 0x230   :  { %6108 = vpow2.f32 %v5494_v37  ;;  %v11524_v37 = vld [vmem:[#allocation83_spill] sm:$0xff] }
 0x238   :  { %v6101_v29 = vpop.eup %6100 }
 0x239   :  { %v1334_v56 = vadd.f32 1.0, %v6101_v29  ;;  %v11525_v29 = vld [vmem:[#allocation84_spill] sm:$0xff] }
 0x23a   :  { %v6103_v32 = vpop.eup %6102 }
 0x23b   :  { %v6105_v3 = vpop.eup %6104  ;;  %6110 = vrcp.f32 %v1334_v56  ;;  %v1340_v55 = vadd.f32 1.0, %v6103_v32  ;;  %v11527_v32 = vld [vmem:[#allocation86_spill] sm:$0xff] }
 0x23c   :  { %v6107_v58 = vpop.eup %6106  ;;  %6112 = vtanh.f32 %v1325_v51  ;;  %v11526_v51 = vld [vmem:[#allocation85_spill] sm:$0xff] }
 0x23d   :  { %6114 = vrcp.f32 %v1340_v55  ;;  %v1034_v62 = vmul.f32 %v6107_v58, %v6105_v3  ;;  %v6109_v44 = vpop.eup %6108  ;;  %v6026_v3 = vld [vmem:[%s10980_s4 + $0x1e4] ss:$16 sps:$4 sm:$0xff]   ;;  %v6029_v55 = vld [vmem:[%s10980_s4 + $0x1ec] ss:$16 sps:$4 sm:$0xff]  }
 0x23e   :  { %v1347_v61 = vadd.f32 1.0, %v6109_v44  ;;  %v11528_v44 = vld [vmem:[#allocation87_spill] sm:$0xff] }
 0x23f   :  { %v7899_v18 = vpack.c.bf16 %v1034_v62, %v1034_v62 }
 0x240   :  { %6116 = vrcp.f32 %v1347_v61  ;;  %v6030_v61 = vld [vmem:[%s10980_s4 + $0x1c0] ss:$16 sps:$4 sm:$0xff]  }
 0x241   :  { %1393 = vmatmul.mubr.bf16.vlgmr.msra.gmra.mxu0 %v7899_v18  ;;  %1434 = vmatmul.mubr.bf16.vlgmr.msra.gmra.mxu1 %v7899_v18 }
 0x242   :  { %1856 = vmatpush1.bf16.msra.mxu0 %v7571_v23  ;;  %1897 = vmatpush1.bf16.msra.mxu1 %v7576_v11 }
 0x243   :  { %1857 = vmatprep.subr.bf16.mxu0 %v7583_v20  ;;  %1898 = vmatprep.subr.bf16.mxu1 %v7588_v25  ;;  %v11512_v20 = vld [vmem:[#allocation71_spill] sm:$0xff] }
 0x246   :  { %1858 = vmatpush1.bf16.msra.mxu0 %v7597_v27  ;;  %1899 = vmatpush1.bf16.msra.mxu1 %v7602_v8  ;;  %v11513_v27 = vld [vmem:[#allocation72_spill] sm:$0xff]  ;;  %v11514_v8 = vld [vmem:[#allocation73_spill] sm:$0xff] }
 0x247   :  { %1859 = vmatprep.subr.bf16.mxu0 %v7609_v10  ;;  %1900 = vmatprep.subr.bf16.mxu1 %v7614_v13  ;;  %v11515_v10 = vld [vmem:[#allocation74_spill] sm:$0xff]  ;;  %v11516_v13 = vld [vmem:[#allocation75_spill] sm:$0xff] }
 0x248   :  { %v6111_v59 = vpop.eup %6110 }
 0x249   :  { %v6113_v1 = vpop.eup %6112 }
 0x24a   :  { %v6115_v21 = vpop.eup %6114  ;;  %1860 = vmatpush1.bf16.msra.mxu0 %v7623_v12  ;;  %1901 = vmatpush1.bf16.msra.mxu1 %v7628_v0  ;;  %v1351_v11 = vmul.f32 %v6113_v1, %v6111_v59  ;;  %v11517_v12 = vld [vmem:[#allocation76_spill] sm:$0xff]  ;;  %v11518_v0 = vld [vmem:[#allocation77_spill] sm:$0xff] }
 0x24b   :  { %v1350_v23 = vmul.f32 0.0, %v6115_v21  ;;  %1861 = vmatprep.subr.bf16.mxu0 %v7635_v7  ;;  %1902 = vmatprep.subr.bf16.mxu1 %v11512_v20  ;;  %v11519_v7 = vld [vmem:[#allocation78_spill] sm:$0xff]  ;;  %v6032_v21 = vld [vmem:[%s10980_s4 + $0x1c4] ss:$16 sps:$4 sm:$0xff]  }
 0x24c   :  { %v6027_v59 = vld [vmem:[%s10980_s4 + $0x1e8] ss:$16 sps:$4 sm:$0xff]   ;;  %v6041_v20 = vld [vmem:[%s10980_s4 + $0x1ac] ss:$16 sps:$4 sm:$0xff]  }
 0x24d   :  { %v7915_v25 = vadd.f32 %v1351_v11, %v1350_v23  ;;  %v6117_v56 = vpop.eup %6116  ;;  %v6033_v23 = vld [vmem:[%s10980_s4 + $0x1c8] ss:$16 sps:$4 sm:$0xff]   ;;  %v6038_v11 = vld [vmem:[%s10980_s4 + $0x1a4] ss:$16 sps:$4 sm:$0xff]  }
 0x24e   :  { %1862 = vmatpush1.bf16.msra.mxu0 %v11513_v27  ;;  %1903 = vmatpush1.bf16.msra.mxu1 %v11514_v8  ;;  %v6036_v27 = vld [vmem:[%s10980_s4 + $0x1a0] ss:$16 sps:$4 sm:$0xff]   ;;  %v6039_v8 = vld [vmem:[%s10980_s4 + $0x1a8] ss:$16 sps:$4 sm:$0xff]  }
 0x24f   :  { %6118 = vtanh.f32 %v7915_v25  ;;  %1863 = vmatprep.subr.bf16.mxu0 %v11515_v10  ;;  %1904 = vmatprep.subr.bf16.mxu1 %v11516_v13  ;;  %v6044_v10 = vld [vmem:[%s10980_s4 + $0x184] ss:$16 sps:$4 sm:$0xff]   ;;  %v6047_v13 = vld [vmem:[%s10980_s4 + $0x18c] ss:$16 sps:$4 sm:$0xff]  }
 0x252   :  { %1864 = vmatpush1.bf16.msra.mxu0 %v11517_v12  ;;  %1905 = vmatpush1.bf16.msra.mxu1 %v11518_v0  ;;  %v6042_v12 = vld [vmem:[%s10980_s4 + $0x180] ss:$16 sps:$4 sm:$0xff]   ;;  %v6045_v0 = vld [vmem:[%s10980_s4 + $0x188] ss:$16 sps:$4 sm:$0xff]  }
 0x253   :  { %1865 = vmatprep.subr.bf16.mxu0 %v11519_v7  ;;  %1906 = vmatprep.subr.bf16.mxu1 %v11520_v63  ;;  %v6050_v7 = vld [vmem:[%s10980_s4 + $0x164] ss:$16 sps:$4 sm:$0xff]   ;;  %v6053_v63 = vld [vmem:[%s10980_s4 + $0x16c] ss:$16 sps:$4 sm:$0xff]  }
 0x256   :  { %1866 = vmatpush1.bf16.msra.mxu0 %v11521_v45  ;;  %1907 = vmatpush1.bf16.msra.mxu1 %v11522_v53  ;;  %v6048_v45 = vld [vmem:[%s10980_s4 + $0x160] ss:$16 sps:$4 sm:$0xff]   ;;  %v6051_v53 = vld [vmem:[%s10980_s4 + $0x168] ss:$16 sps:$4 sm:$0xff]  }
 0x257   :  { %1867 = vmatprep.subr.bf16.mxu0 %v11523_v57  ;;  %1908 = vmatprep.subr.bf16.mxu1 %v11524_v37  ;;  %v6056_v57 = vld [vmem:[%s10980_s4 + $0x144] ss:$16 sps:$4 sm:$0xff]   ;;  %v6059_v37 = vld [vmem:[%s10980_s4 + $0x14c] ss:$16 sps:$4 sm:$0xff]  }
 0x25a   :  { %1868 = vmatpush1.bf16.msra.mxu0 %v11525_v29  ;;  %1909 = vmatpush1.bf16.msra.mxu1 %v11526_v51  ;;  %v6054_v29 = vld [vmem:[%s10980_s4 + $0x140] ss:$16 sps:$4 sm:$0xff]   ;;  %v6057_v51 = vld [vmem:[%s10980_s4 + $0x148] ss:$16 sps:$4 sm:$0xff]  }
 0x25b   :  { %1869 = vmatprep.subr.bf16.mxu0 %v7731_v31  ;;  %1910 = vmatprep.subr.bf16.mxu1 %v11527_v32  ;;  %v6024_v31 = vld [vmem:[%s10980_s4 + $0x1e0] ss:$16 sps:$4 sm:$0xff]   ;;  %v6065_v32 = vld [vmem:[%s10980_s4 + $0x12c] ss:$16 sps:$4 sm:$0xff]  }
 0x25c   :  { %v6119_v58 = vpop.eup %6118 }
 0x25d   :  { %v1354_v62 = vmul.f32 %v6119_v58, %v6117_v56  ;;  %v6062_v56 = vld [vmem:[%s10980_s4 + $0x124] ss:$16 sps:$4 sm:$0xff]  }
 0x25e   :  { %1870 = vmatpush1.bf16.msra.mxu0 %v11528_v44  ;;  %1911 = vmatpush1.bf16.msra.mxu1 %v7748_v28  ;;  %v6035_v28 = vld [vmem:[%s10980_s4 + $0x1cc] ss:$16 sps:$4 sm:$0xff]   ;;  %v6068_v58 = vld [vmem:[%s10980_s4 + $0x104] ss:$16 sps:$4 sm:$0xff]   ;;  %v6066_v44 = vld [vmem:[%s10980_s4 + $0x100] ss:$16 sps:$4 sm:$0xff]  }
 0x25f   :  { %1871 = vmatprep.subr.bf16.mxu0 %v6026_v3  ;;  %v7948_v1 = vpack.c.bf16 %v1354_v62, %v1354_v62  ;;  %1912 = vmatprep.subr.bf16.mxu1 %v6029_v55  ;;  %v6060_v3 = vld [vmem:[%s10980_s4 + $0x120] ss:$16 sps:$4 sm:$0xff]   ;;  %v6063_v55 = vld [vmem:[%s10980_s4 + $0x128] ss:$16 sps:$4 sm:$0xff]   ;;  %v6071_v62 = vld [vmem:[%s10980_s4 + $0x10c] ss:$16 sps:$4 sm:$0xff]  }
 0x261   :  { %1887 = vmatprep.mubr.bf16.mxu0 %v7948_v1  ;;  %1928 = vmatprep.mubr.bf16.mxu1 %v7948_v1 }
 0x262   :  { %1872 = vmatpush2.bf16.msra.mxu0 %v6024_v31  ;;  %1913 = vmatpush2.bf16.msra.mxu1 %v6027_v59  ;;  %v6069_v31 = vld [vmem:[%s10980_s4 + $0x108] ss:$16 sps:$4 sm:$0xff]   ;;  %v567_v59 = vadd.f32 %v7768_v24, %v7546_v6 }
 0x263   :  { %1873 = vmatprep.subr.bf16.mxu0 %v6032_v21  ;;  %1914 = vmatprep.subr.bf16.mxu1 %v6035_v28  ;;  %v640_v21 = vadd.f32 %v7770_v26, %v7561_v16 }
 0x266   :  { %1874 = vmatpush2.bf16.msra.mxu0 %v6030_v61  ;;  %1915 = vmatpush2.bf16.msra.mxu1 %v6033_v23  ;;  %v569_v23 = vadd.f32 %v7776_v43, %v7549_v9 }
 0x267   :  { %1875 = vmatprep.subr.bf16.mxu0 %v6038_v11  ;;  %1916 = vmatprep.subr.bf16.mxu1 %v6041_v20  ;;  %v11529_v11 = vld [vmem:[#allocation88_spill] sm:$0xff] }
 0x268   :  { %v642_v20 = vadd.f32 %v11529_v11, %v7558_v19 }
 0x26a   :  { %1876 = vmatpush2.bf16.msra.mxu0 %v6036_v27  ;;  %1917 = vmatpush2.bf16.msra.mxu1 %v6039_v8 }
 0x26b   :  { %1877 = vmatprep.subr.bf16.mxu0 %v6044_v10  ;;  %1918 = vmatprep.subr.bf16.mxu1 %v6047_v13 }
 0x26e   :  { %1878 = vmatpush2.bf16.msra.mxu0 %v6042_v12  ;;  %1919 = vmatpush2.bf16.msra.mxu1 %v6045_v0 }
 0x26f   :  { %1879 = vmatprep.subr.bf16.mxu0 %v6050_v7  ;;  %1920 = vmatprep.subr.bf16.mxu1 %v6053_v63 }
 0x272   :  { %1880 = vmatpush2.bf16.msra.mxu0 %v6048_v45  ;;  %1921 = vmatpush2.bf16.msra.mxu1 %v6051_v53 }
 0x273   :  { %1881 = vmatprep.subr.bf16.mxu0 %v6056_v57  ;;  %1922 = vmatprep.subr.bf16.mxu1 %v6059_v37 }
 0x276   :  { %1882 = vmatpush2.bf16.msra.mxu0 %v6054_v29  ;;  %1923 = vmatpush2.bf16.msra.mxu1 %v6057_v51 }
 0x277   :  { %1883 = vmatprep.subr.bf16.mxu0 %v6062_v56  ;;  %1924 = vmatprep.subr.bf16.mxu1 %v6065_v32 }
 0x27a   :  { %1884 = vmatpush2.bf16.msra.mxu0 %v6060_v3  ;;  %1925 = vmatpush2.bf16.msra.mxu1 %v6063_v55 }
 0x27b   :  { %1885 = vmatprep.subr.bf16.mxu0 %v6068_v58  ;;  %1926 = vmatprep.subr.bf16.mxu1 %v6071_v62 }
 0x27e   :  { %1886 = vmatpush2.bf16.msra.mxu0 %v6066_v44  ;;  %1927 = vmatpush2.bf16.msra.mxu1 %v6069_v31 }
 0x281   :  { %1888 = vmatmul.mubr.bf16.vlgmr.msra.gmra.mxu0 %v7899_v18  ;;  %1929 = vmatmul.mubr.bf16.vlgmr.msra.gmra.mxu1 %v7899_v18 }
 0x301   :  { %v1394_v28 = vpop.f32.mrf.mxu0  ;;  %v1435_v61 = vpop.f32.mrf.mxu1 }
 0x302   :  { %v1442_v27 = vadd.f32 %v1394_v28, %v567_v59  ;;  %v1444_v8 = vadd.f32 %v1435_v61, %v640_v21 }
 0x303   :  { %v1396_v10 = vpop.f32.mrf.mxu0  ;;  %v1437_v13 = vpop.f32.mrf.mxu1 }
 0x304   :  { %v5495_v12 = vmul.f32 -1.442695, %v1442_v27  ;;  %v1443_v18 = vadd.f32 %v1396_v10, %v569_v23  ;;  %v1445_v0 = vadd.f32 %v1437_v13, %v642_v20 }
 0x305   :  { %v1398_v7 = vpop.f32.mrf.mxu0  ;;  %v1439_v6 = vpop.f32.mrf.mxu1 }
 0x306   :  { %6120 = vpow2.f32 %v5495_v12  ;;  %v5496_v24 = vmul.f32 -1.442695, %v1443_v18  ;;  %v5497_v63 = vmul.f32 -1.442695, %v1445_v0 }
 0x307   :  { %v1399_v16 = vpop.f32.mrf.mxu0  ;;  %v1440_v26 = vpop.f32.mrf.mxu1 }
 0x308   :  { %6122 = vpow2.f32 %v5496_v24 }
 0x309   :  { %6124 = vtanh.f32 %v1444_v8 }
 0x30a   :  { %6126 = vpow2.f32 %v5497_v63 }
 0x313   :  { %v6121_v45 = vpop.eup %6120 }
 0x314   :  { %v1449_v9 = vadd.f32 1.0, %v6121_v45 }
 0x315   :  { %v6123_v43 = vpop.eup %6122 }
 0x316   :  { %6128 = vrcp.f32 %v1449_v9  ;;  %v1455_v19 = vadd.f32 1.0, %v6123_v43  ;;  %v6125_v53 = vpop.eup %6124 }
 0x317   :  { %v6127_v57 = vpop.eup %6126 }
 0x318   :  { %6130 = vrcp.f32 %v1455_v19  ;;  %v1462_v56 = vadd.f32 1.0, %v6127_v57  ;;  %v11531_v19 = vld [vmem:[#allocation37_spill] sm:$0xff] }
 0x31a   :  { %6132 = vrcp.f32 %v1462_v56 }
 0x323   :  { %v6129_v37 = vpop.eup %6128 }
 0x324   :  { %v1466_v29 = vmul.f32 %v6129_v37, %v6125_v53  ;;  %v11532_v53 = vld [vmem:[#allocation35_spill] sm:$0xff] }
 0x325   :  { %v6131_v51 = vpop.eup %6130  ;;  %v8064_v57 = vcombine.high %v11532_v53, %v11531_v19  ;;  %v8068_v37 = vcombine.low %v11532_v53, %v11531_v19 }
 0x326   :  { %v1465_v32 = vmul.f32 %v6131_v51, %v7888_v50  ;;  %v11534_v51 = vld [vmem:[#allocation31_spill] sm:$0xff] }
 0x327   :  { %v6133_v55 = vpop.eup %6132 }
 0x328   :  { %v8047_v3 = vadd.f32 %v1466_v29, %v1465_v32  ;;  %v11533_v29 = vld [vmem:[#allocation33_spill] sm:$0xff] }
 0x32a   :  { %6134 = vtanh.f32 %v8047_v3 }
 0x337   :  { %v6135_v58 = vpop.eup %6134 }
 0x338   :  { %v8050_v62 = vmul.f32 %v6135_v58, %v6133_v55 }
 0x341   :  { %v1889_v44 = vpop.f32.mrf.mxu0  ;;  %v1930_v31 = vpop.f32.mrf.mxu1 }
 0x342   :  { %v1890_v59 = vadd.f32 %v1889_v44, %v7880_v30  ;;  %v1931_v18 = vadd.f32 %v1930_v31, %v7896_v60 }
 0x343   :  { %v1891_v21 = vpop.f32.mrf.mxu0  ;;  %v1932_v28 = vpop.f32.mrf.mxu1 }
 0x344   :  { %v5562_v61 = vmul.f32 -1.442695, %v1890_v59  ;;  %v1892_v23 = vadd.f32 %v1891_v21, %v7883_v47  ;;  %v1933_v10 = vadd.f32 %v1932_v28, %v7891_v17 }
 0x345   :  { %v1893_v11 = vpop.f32.mrf.mxu0  ;;  %v1934_v50 = vpop.f32.mrf.mxu1 }
 0x346   :  { %6136 = vpow2.f32 %v5562_v61  ;;  %v5563_v20 = vmul.f32 -1.442695, %v1892_v23  ;;  %v5564_v13 = vmul.f32 -1.442695, %v1933_v10 }
 0x347   :  { %v1894_v27 = vpop.f32.mrf.mxu0  ;;  %v1935_v8 = vpop.f32.mrf.mxu1 }
 0x348   :  { %6138 = vpow2.f32 %v5563_v20 }
 0x349   :  { %6140 = vpow2.f32 %v5564_v13 }
 0x353   :  { %v6137_v12 = vpop.eup %6136 }
 0x354   :  { %v1940_v0 = vadd.f32 1.0, %v6137_v12 }
 0x355   :  { %v6139_v30 = vpop.eup %6138 }
 0x356   :  { %6142 = vrcp.f32 %v1940_v0  ;;  %v1946_v7 = vadd.f32 1.0, %v6139_v30  ;;  %v6141_v47 = vpop.eup %6140 }
 0x357   :  { %6144 = vtanh.f32 %v1931_v18  ;;  %v1953_v26 = vadd.f32 1.0, %v6141_v47 }
 0x358   :  { %6146 = vrcp.f32 %v1946_v7 }
 0x359   :  { %6148 = vrcp.f32 %v1953_v26 }
 0x363   :  { %v6143_v6 = vpop.eup %6142 }
 0x364   :  { %v6145_v24 = vpop.eup %6144 }
 0x365   :  { %v6147_v16 = vpop.eup %6146  ;;  %v1957_v63 = vmul.f32 %v6145_v24, %v6143_v6 }
 0x366   :  { %v1956_v45 = vmul.f32 %v6147_v16, %v7915_v25  ;;  %v6149_v60 = vpop.eup %6148  ;;  %v8072_v25 = vcombine.high %v11534_v51, %v11533_v29 }
 0x368   :  { %v8057_v17 = vadd.f32 %v1957_v63, %v1956_v45 }
 0x36a   :  { %11530 = vst [vmem:[#allocation71_spill] sm:$0xff] %v8057_v17  ;;  %6150 = vtanh.f32 %v8057_v17 }
 0x377   :  { %v6151_v9 = vpop.eup %6150 }
 0x378   :  { %v8060_v43 = vmul.f32 %v6151_v9, %v6149_v60 }
 0x379   :  { %6800 = dma.done.wait [#allocation4], 8192 }
 0x37a   :  { %6801 = vsyncadd [#allocation4], 4294959104  ;;  %v11535_v56 = vmov 0   ;;  %v11536_v32 = vld [vmem:[#allocation38_spill] sm:$0xff]  ;;  %v11537_v55 = vld [vmem:[#allocation36_spill] sm:$0xff]  ;;  %2179 = vmatprep.subr.bf16.mxu0 %v8064_v57  ;;  %v8092_v28 = vcombine.low %v11534_v51, %v11533_v29  ;;  %vm6804_vm1 = vmmov 0  }
 0x37b   :  { %2211 = vmatprep.mubr.bf16.mxu0 %v11535_v56  ;;  %v8077_v58 = vcombine.high %v11537_v55, %v11536_v32  ;;  %2252 = vmatprep.mubr.bf16.mxu1 %v11535_v56  ;;  %v8083_v44 = vcombine.low %v11537_v55, %v11536_v32  ;;  %v11538_v31 = vld [vmem:[#allocation34_spill] sm:$0xff]  ;;  %v11539_v59 = vld [vmem:[#allocation32_spill] sm:$0xff]  ;;  %v11540_v61 = vld [vmem:[#allocation29_spill] sm:$0xff] }
 0x37c   :  { %v8087_v21 = vcombine.high %v11539_v59, %v11538_v31  ;;  %2180 = vmatpush1.bf16.msra.mxu0 %v8068_v37  ;;  %v11541_v23 = vld [vmem:[#allocation27_spill] sm:$0xff]  ;;  %v8103_v50 = vcombine.low %v11539_v59, %v11538_v31  ;;  %v11542_v20 = vld [vmem:[#allocation30_spill] sm:$0xff]  ;;  %v11543_v27 = vld [vmem:[#allocation28_spill] sm:$0xff] }
 0x37d   :  { %2220 = vmatprep.subr.bf16.mxu1 %v8077_v58  ;;  %2181 = vmatprep.subr.bf16.mxu0 %v8072_v25  ;;  %v8098_v11 = vcombine.high %v11541_v23, %v11540_v61  ;;  %v8108_v8 = vcombine.high %v11543_v27, %v11542_v20  ;;  %v8113_v10 = vcombine.low %v11541_v23, %v11540_v61  ;;  %v11544_v13 = vld [vmem:[#allocation25_spill] sm:$0xff]  ;;  %v11545_v12 = vld [vmem:[#allocation23_spill] sm:$0xff]  ;;  %v11546_v30 = vld [vmem:[#allocation26_spill] sm:$0xff] }
 0x37e   :  { %2221 = vmatpush1.bf16.msra.mxu1 %v8083_v44  ;;  %v8118_v18 = vcombine.high %v11545_v12, %v11544_v13  ;;  %v8123_v0 = vcombine.low %v11543_v27, %v11542_v20  ;;  %v11547_v7 = vld [vmem:[#allocation24_spill] sm:$0xff]  ;;  %v8133_v6 = vcombine.low %v11545_v12, %v11544_v13  ;;  %v11548_v24 = vld [vmem:[#allocation21_spill] sm:$0xff]  ;;  %v11549_v16 = vld [vmem:[#allocation19_spill] sm:$0xff] }
 0x37f   :  { %2222 = vmatprep.subr.bf16.mxu1 %v8087_v21  ;;  %v8128_v47 = vcombine.high %v11547_v7, %v11546_v30  ;;  %v8138_v26 = vcombine.high %v11549_v16, %v11548_v24  ;;  %v8143_v63 = vcombine.low %v11547_v7, %v11546_v30  ;;  %v11551_v45 = vld [vmem:[#allocation22_spill] sm:$0xff]  ;;  %v11552_v60 = vld [vmem:[#allocation20_spill] sm:$0xff]  ;;  %v8153_v19 = vcombine.low %v11549_v16, %v11548_v24  ;;  %v11555_v53 = vld [vmem:[#allocation17_spill] sm:$0xff] }
 0x380   :  { %2182 = vmatpush1.bf16.msra.mxu0 %v8092_v28  ;;  %v8148_v9 = vcombine.high %v11552_v60, %v11551_v45  ;;  %v11556_v29 = vld [vmem:[#allocation15_spill] sm:$0xff]  ;;  %v8163_v32 = vcombine.low %v11552_v60, %v11551_v45  ;;  %v11559_v55 = vld [vmem:[#allocation18_spill] sm:$0xff]  ;;  %v11560_v31 = vld [vmem:[#allocation16_spill] sm:$0xff] }
 0x381   :  { %2183 = vmatprep.subr.bf16.mxu0 %v8098_v11  ;;  %11550 = vst [vmem:[#allocation72_spill] sm:$0xff] %v8138_v26  ;;  %11554 = vst [vmem:[#allocation74_spill] sm:$0xff] %v8153_v19  ;;  %v8158_v51 = vcombine.high %v11556_v29, %v11555_v53  ;;  %v8168_v59 = vcombine.high %v11560_v31, %v11559_v55  ;;  %v8173_v61 = vcombine.low %v11556_v29, %v11555_v53  ;;  %v11563_v23 = vld [vmem:[#allocation13_spill] sm:$0xff]  ;;  %v11564_v20 = vld [vmem:[#allocation11_spill] sm:$0xff] }
 0x382   :  { %2223 = vmatpush1.bf16.msra.mxu1 %v8103_v50  ;;  %11553 = vst [vmem:[#allocation73_spill] sm:$0xff] %v8148_v9  ;;  %11558 = vst [vmem:[#allocation76_spill] sm:$0xff] %v8163_v32  ;;  %v8178_v27 = vcombine.high %v11564_v20, %v11563_v23  ;;  %v8183_v13 = vcombine.low %v11560_v31, %v11559_v55  ;;  %v11567_v12 = vld [vmem:[#allocation14_spill] sm:$0xff]  ;;  %v11568_v30 = vld [vmem:[#allocation12_spill] sm:$0xff]  ;;  %v8193_v24 = vcombine.low %v11564_v20, %v11563_v23 }
 0x383   :  { %2224 = vmatprep.subr.bf16.mxu1 %v8108_v8  ;;  %11557 = vst [vmem:[#allocation75_spill] sm:$0xff] %v8158_v51  ;;  %11561 = vst [vmem:[#allocation77_spill] sm:$0xff] %v8168_v59  ;;  %v8188_v7 = vcombine.high %v11568_v30, %v11567_v12  ;;  %v11571_v16 = vld [vmem:[#allocation9_spill] sm:$0xff]  ;;  %v11572_v45 = vld [vmem:[#allocation7_spill] sm:$0xff]  ;;  %v8203_v53 = vcombine.low %v11568_v30, %v11567_v12 }
 0x384   :  { %2184 = vmatpush1.bf16.msra.mxu0 %v8113_v10  ;;  %11562 = vst [vmem:[#allocation78_spill] sm:$0xff] %v8173_v61  ;;  %11565 = vst [vmem:[#allocation79_spill] sm:$0xff] %v8178_v27  ;;  %v8198_v60 = vcombine.high %v11572_v45, %v11571_v16  ;;  %v11575_v29 = vld [vmem:[#allocation10_spill] sm:$0xff]  ;;  %v11576_v55 = vld [vmem:[#allocation8_spill] sm:$0xff]  ;;  %v8213_v23 = vcombine.low %v11572_v45, %v11571_v16 }
 0x385   :  { %2185 = vmatprep.subr.bf16.mxu0 %v8118_v18  ;;  %11566 = vst [vmem:[#allocation80_spill] sm:$0xff] %v8183_v13  ;;  %11569 = vst [vmem:[#allocation81_spill] sm:$0xff] %v8188_v7  ;;  %v8208_v31 = vcombine.high %v11576_v55, %v11575_v29  ;;  %v8219_v20 = vld [vmem:[%s10978_s2 + $0xe4] ss:$16 sps:$4 sm:$0xff]   ;;  %v8224_v12 = vcombine.low %v11576_v55, %v11575_v29  ;;  %v8230_v30 = vld [vmem:[%s10978_s2 + $0xec] ss:$16 sps:$4 sm:$0xff]  }
 0x386   :  { %2225 = vmatpush1.bf16.msra.mxu1 %v8123_v0  ;;  %11570 = vst [vmem:[#allocation82_spill] sm:$0xff] %v8193_v24  ;;  %11573 = vst [vmem:[#allocation83_spill] sm:$0xff] %v8198_v60  ;;  %v8235_v16 = vld [vmem:[%s10978_s2 + $0xe0] ss:$16 sps:$4 sm:$0xff]   ;;  %v8241_v45 = vld [vmem:[%s10978_s2 + $0xc4] ss:$16 sps:$4 sm:$0xff]  }
 0x387   :  { %2226 = vmatprep.subr.bf16.mxu1 %v8128_v47  ;;  %11574 = vst [vmem:[#allocation84_spill] sm:$0xff] %v8203_v53  ;;  %11577 = vst [vmem:[#allocation85_spill] sm:$0xff] %v8208_v31  ;;  %v8248_v29 = vld [vmem:[%s10978_s2 + $0xe8] ss:$16 sps:$4 sm:$0xff]   ;;  %v8254_v55 = vld [vmem:[%s10978_s2 + $0xcc] ss:$16 sps:$4 sm:$0xff]  }
 0x388   :  { %2186 = vmatpush1.bf16.msra.mxu0 %v8133_v6  ;;  %11578 = vst [vmem:[#allocation86_spill] sm:$0xff] %v8213_v23  ;;  %11579 = vst [vmem:[#allocation87_spill] sm:$0xff] %v8224_v12  ;;  %v8260_v52 = vld [vmem:[%s10978_s2 + $0xc0] ss:$16 sps:$4 sm:$0xff]   ;;  %v8266_v54 = vld [vmem:[%s10978_s2 + $0xa4] ss:$16 sps:$4 sm:$0xff]  }
 0x389   :  { %2187 = vmatprep.subr.bf16.mxu0 %v8138_v26  ;;  %v8274_v42 = vld [vmem:[%s10978_s2 + $0xc8] ss:$16 sps:$4 sm:$0xff]   ;;  %v8280_v48 = vld [vmem:[%s10978_s2 + $0xac] ss:$16 sps:$4 sm:$0xff]   ;;  %v8293_v34 = vld [vmem:[%s10978_s2 + $0x84] ss:$16 sps:$4 sm:$0xff]  }
 0x38a   :  { %2227 = vmatpush1.bf16.msra.mxu1 %v8143_v63  ;;  %11580 = vst [vmem:[#allocation88_spill] sm:$0xff] %v8293_v34  ;;  %v8300_v49 = vld [vmem:[%s10978_s2 + $0xa8] ss:$16 sps:$4 sm:$0xff]   ;;  %v8306_v22 = vld [vmem:[%s10978_s2 + $0x8c] ss:$16 sps:$4 sm:$0xff]  }
 0x38b   :  { %2228 = vmatprep.subr.bf16.mxu1 %v8148_v9  ;;  %11581 = vst [vmem:[#allocation37_spill] sm:$0xff] %v8300_v49  ;;  %11582 = vst [vmem:[#allocation35_spill] sm:$0xff] %v8306_v22  ;;  %v8311_v46 = vld [vmem:[%s10978_s2 + $0x80] ss:$16 sps:$4 sm:$0xff]   ;;  %v8317_v40 = vld [vmem:[%s10978_s2 + $0x64] ss:$16 sps:$4 sm:$0xff]  }
 0x38c   :  { %2188 = vmatpush1.bf16.msra.mxu0 %v8153_v19  ;;  %11583 = vst [vmem:[#allocation33_spill] sm:$0xff] %v8311_v46  ;;  %11584 = vst [vmem:[#allocation31_spill] sm:$0xff] %v8317_v40  ;;  %v8324_v41 = vld [vmem:[%s10978_s2 + $0x88] ss:$16 sps:$4 sm:$0xff]   ;;  %v8330_v2 = vld [vmem:[%s10978_s2 + $0x6c] ss:$16 sps:$4 sm:$0xff]  }
 0x38d   :  { %2189 = vmatprep.subr.bf16.mxu0 %v8158_v51  ;;  %11585 = vst [vmem:[#allocation38_spill] sm:$0xff] %v8324_v41  ;;  %11586 = vst [vmem:[#allocation36_spill] sm:$0xff] %v8330_v2  ;;  %v8335_v33 = vld [vmem:[%s10978_s2 + $0x60] ss:$16 sps:$4 sm:$0xff]   ;;  %v8341_v17 = vld [vmem:[%s10978_s2 + $0x44] ss:$16 sps:$4 sm:$0xff]  }
 0x38e   :  { %2229 = vmatpush1.bf16.msra.mxu1 %v8163_v32  ;;  %11587 = vst [vmem:[#allocation34_spill] sm:$0xff] %v8335_v33  ;;  %11588 = vst [vmem:[#allocation32_spill] sm:$0xff] %v8341_v17 }
 0x38f   :  { %2230 = vmatprep.subr.bf16.mxu1 %v8168_v59 }
 0x390   :  { %2190 = vmatpush1.bf16.msra.mxu0 %v8173_v61 }
 0x391   :  { %2191 = vmatprep.subr.bf16.mxu0 %v8178_v27 }
 0x392   :  { %2231 = vmatpush1.bf16.msra.mxu1 %v8183_v13 }
 0x393   :  { %2232 = vmatprep.subr.bf16.mxu1 %v8188_v7 }
 0x394   :  { %2192 = vmatpush1.bf16.msra.mxu0 %v8193_v24 }
 0x395   :  { %2193 = vmatprep.subr.bf16.mxu0 %v8198_v60 }
 0x396   :  { %2233 = vmatpush1.bf16.msra.mxu1 %v8203_v53 }
 0x397   :  { %2234 = vmatprep.subr.bf16.mxu1 %v8208_v31 }
 0x398   :  { %2194 = vmatpush1.bf16.msra.mxu0 %v8213_v23 }
 0x399   :  { %2482 = vmatprep.subr.bf16.mxu0 %v8219_v20 }
 0x39a   :  { %2235 = vmatpush1.bf16.msra.mxu1 %v8224_v12 }
 0x39b   :  { %2523 = vmatprep.subr.bf16.mxu1 %v8230_v30  ;;  %2212 = vmatmul.mubr.bf16.vlgmr.msra.gmra.mxu0 %v7948_v1 }
 0x39c   :  { %2483 = vmatpush1.bf16.msra.mxu0 %v8235_v16  ;;  %2514 = vmatprep.mubr.bf16.mxu0 %v11535_v56 }
 0x39d   :  { %2253 = vmatmul.mubr.bf16.vlgmr.msra.gmra.mxu1 %v7948_v1  ;;  %2484 = vmatprep.subr.bf16.mxu0 %v8241_v45  ;;  %v8286_v1 = vld [vmem:[%s10978_s2 + $0xa0] ss:$16 sps:$4 sm:$0xff]  }
 0x39e   :  { %2524 = vmatpush1.bf16.msra.mxu1 %v8248_v29  ;;  %2555 = vmatprep.mubr.bf16.mxu1 %v11535_v56 }
 0x39f   :  { %2525 = vmatprep.subr.bf16.mxu1 %v8254_v55 }
 0x3a0   :  { %2485 = vmatpush1.bf16.msra.mxu0 %v8260_v52 }
 0x3a1   :  { %2486 = vmatprep.subr.bf16.mxu0 %v8266_v54 }
 0x3a2   :  { %2526 = vmatpush1.bf16.msra.mxu1 %v8274_v42 }
 0x3a3   :  { %2527 = vmatprep.subr.bf16.mxu1 %v8280_v48 }
 0x3a4   :  { %2487 = vmatpush1.bf16.msra.mxu0 %v8286_v1 }
 0x3a5   :  { %2488 = vmatprep.subr.bf16.mxu0 %v8293_v34  ;;  %v8359_v34 = vld [vmem:[%s10978_s2 + $0x40] ss:$16 sps:$4 sm:$0xff]  }
 0x3a6   :  { %2528 = vmatpush1.bf16.msra.mxu1 %v8300_v49  ;;  %11591 = vst [vmem:[#allocation30_spill] sm:$0xff] %v8359_v34  ;;  %v8514_v49 = vld [vmem:[%s10980_s4 + $0x80] ss:$16 sps:$4 sm:$0xff]  }
 0x3a7   :  { %2529 = vmatprep.subr.bf16.mxu1 %v8306_v22  ;;  %v8348_v22 = vld [vmem:[%s10978_s2 + $0x68] ss:$16 sps:$4 sm:$0xff]   ;;  %11613 = vst [vmem:[#allocation105_spill] sm:$0xff] %v8514_v49 }
 0x3a8   :  { %2489 = vmatpush1.bf16.msra.mxu0 %v8311_v46  ;;  %11589 = vst [vmem:[#allocation29_spill] sm:$0xff] %v8348_v22  ;;  %v8354_v46 = vld [vmem:[%s10978_s2 + $0x4c] ss:$16 sps:$4 sm:$0xff]  }
 0x3a9   :  { %2490 = vmatprep.subr.bf16.mxu0 %v8317_v40  ;;  %11590 = vst [vmem:[#allocation27_spill] sm:$0xff] %v8354_v46  ;;  %v8365_v40 = vld [vmem:[%s10978_s2 + $0x24] ss:$16 sps:$4 sm:$0xff]  }
 0x3aa   :  { %2530 = vmatpush1.bf16.msra.mxu1 %v8324_v41  ;;  %11592 = vst [vmem:[#allocation28_spill] sm:$0xff] %v8365_v40  ;;  %v8383_v41 = vld [vmem:[%s10978_s2 + $0x20] ss:$16 sps:$4 sm:$0xff]  }
 0x3ab   :  { %2531 = vmatprep.subr.bf16.mxu1 %v8330_v2  ;;  %v8372_v2 = vld [vmem:[%s10978_s2 + $0x48] ss:$16 sps:$4 sm:$0xff]   ;;  %11595 = vst [vmem:[#allocation26_spill] sm:$0xff] %v8383_v41 }
 0x3ac   :  { %2491 = vmatpush1.bf16.msra.mxu0 %v8335_v33  ;;  %11593 = vst [vmem:[#allocation25_spill] sm:$0xff] %v8372_v2  ;;  %v8378_v33 = vld [vmem:[%s10978_s2 + $0x2c] ss:$16 sps:$4 sm:$0xff]  }
 0x3ad   :  { %2492 = vmatprep.subr.bf16.mxu0 %v8341_v17  ;;  %11594 = vst [vmem:[#allocation23_spill] sm:$0xff] %v8378_v33  ;;  %v8389_v17 = vld [vmem:[%s10978_s2 + $0x4] ss:$16 sps:$4 sm:$0xff]  }
 0x3ae   :  { %2532 = vmatpush1.bf16.msra.mxu1 %v8348_v22  ;;  %11596 = vst [vmem:[#allocation24_spill] sm:$0xff] %v8389_v17  ;;  %v8407_v22 = vld [vmem:[%s10978_s2] ss:$16 sps:$4 sm:$0xff]  }
 0x3af   :  { %2533 = vmatprep.subr.bf16.mxu1 %v8354_v46  ;;  %v8396_v46 = vld [vmem:[%s10978_s2 + $0x28] ss:$16 sps:$4 sm:$0xff]   ;;  %11599 = vst [vmem:[#allocation22_spill] sm:$0xff] %v8407_v22 }
 0x3b0   :  { %2493 = vmatpush1.bf16.msra.mxu0 %v8359_v34  ;;  %11597 = vst [vmem:[#allocation21_spill] sm:$0xff] %v8396_v46  ;;  %v8402_v34 = vld [vmem:[%s10978_s2 + $0xc] ss:$16 sps:$4 sm:$0xff]  }
 0x3b1   :  { %2494 = vmatprep.subr.bf16.mxu0 %v8365_v40  ;;  %11598 = vst [vmem:[#allocation19_spill] sm:$0xff] %v8402_v34  ;;  %v8413_v40 = vld [vmem:[%s10980_s4 + $0xe4] ss:$16 sps:$4 sm:$0xff]  }
 0x3b2   :  { %2534 = vmatpush1.bf16.msra.mxu1 %v8372_v2  ;;  %11600 = vst [vmem:[#allocation20_spill] sm:$0xff] %v8413_v40  ;;  %v8430_v2 = vpack.c.bf16 %v8050_v62, %v8050_v62  ;;  %v8448_v62 = vld [vmem:[%s10980_s4 + $0xe8] ss:$16 sps:$4 sm:$0xff]  }
 0x3b3   :  { %2535 = vmatprep.subr.bf16.mxu1 %v8378_v33  ;;  %v8420_v33 = vld [vmem:[%s10978_s2 + $0x8] ss:$16 sps:$4 sm:$0xff]   ;;  %11605 = vst [vmem:[#allocation13_spill] sm:$0xff] %v8448_v62 }
 0x3b4   :  { %2495 = vmatpush1.bf16.msra.mxu0 %v8383_v41  ;;  %11601 = vst [vmem:[#allocation17_spill] sm:$0xff] %v8420_v33  ;;  %v8426_v41 = vld [vmem:[%s10980_s4 + $0xec] ss:$16 sps:$4 sm:$0xff]  }
 0x3b5   :  { %2496 = vmatprep.subr.bf16.mxu0 %v8389_v17  ;;  %11602 = vst [vmem:[#allocation15_spill] sm:$0xff] %v8426_v41  ;;  %v8435_v17 = vld [vmem:[%s10980_s4 + $0xe0] ss:$16 sps:$4 sm:$0xff]  }
 0x3b6   :  { %2536 = vmatpush1.bf16.msra.mxu1 %v8396_v46  ;;  %11603 = vst [vmem:[#allocation18_spill] sm:$0xff] %v8435_v17  ;;  %v8458_v46 = vpack.c.bf16 %v8060_v43, %v8060_v43  ;;  %v8478_v43 = vld [vmem:[%s10980_s4 + $0xc8] ss:$16 sps:$4 sm:$0xff]  }
 0x3b7   :  { %2537 = vmatprep.subr.bf16.mxu1 %v8402_v34  ;;  %v8441_v34 = vld [vmem:[%s10980_s4 + $0xc4] ss:$16 sps:$4 sm:$0xff]  }
 0x3b8   :  { %2497 = vmatpush1.bf16.msra.mxu0 %v8407_v22  ;;  %11604 = vst [vmem:[#allocation16_spill] sm:$0xff] %v8441_v34  ;;  %v8454_v22 = vld [vmem:[%s10980_s4 + $0xcc] ss:$16 sps:$4 sm:$0xff]  }
 0x3b9   :  { %2999 = vmatprep.subr.bf16.mxu0 %v8413_v40  ;;  %11606 = vst [vmem:[#allocation11_spill] sm:$0xff] %v8454_v22  ;;  %v8464_v40 = vld [vmem:[%s10980_s4 + $0xc0] ss:$16 sps:$4 sm:$0xff]  }
 0x3ba   :  { %2538 = vmatpush1.bf16.msra.mxu1 %v8420_v33  ;;  %11607 = vst [vmem:[#allocation14_spill] sm:$0xff] %v8464_v40  ;;  %v8489_v33 = vld [vmem:[%s10980_s4 + $0xac] ss:$16 sps:$4 sm:$0xff]  }
 0x3bb   :  { %3040 = vmatprep.subr.bf16.mxu1 %v8426_v41  ;;  %2515 = vmatmul.mubr.bf16.vlgmr.msra.gmra.mxu0 %v8430_v2  ;;  %v8470_v41 = vld [vmem:[%s10980_s4 + $0xa4] ss:$16 sps:$4 sm:$0xff]   ;;  %11609 = vst [vmem:[#allocation9_spill] sm:$0xff] %v8489_v33 }
 0x3bc   :  { %3000 = vmatpush1.bf16.msra.mxu0 %v8435_v17  ;;  %11608 = vst [vmem:[#allocation12_spill] sm:$0xff] %v8470_v41  ;;  %v8483_v17 = vld [vmem:[%s10980_s4 + $0xa0] ss:$16 sps:$4 sm:$0xff]   ;;  %3031 = vmatprep.mubr.bf16.mxu0 %v8458_v46 }
 0x3bd   :  { %2556 = vmatmul.mubr.bf16.vlgmr.msra.gmra.mxu1 %v8430_v2  ;;  %3001 = vmatprep.subr.bf16.mxu0 %v8441_v34  ;;  %v8495_v34 = vld [vmem:[%s10980_s4 + $0x84] ss:$16 sps:$4 sm:$0xff]  }
 0x3be   :  { %3041 = vmatpush1.bf16.msra.mxu1 %v8448_v62  ;;  %11610 = vst [vmem:[#allocation7_spill] sm:$0xff] %v8495_v34  ;;  %v8500_v62 = vld [vmem:[%s10980_s4 + $0xa8] ss:$16 sps:$4 sm:$0xff]   ;;  %3072 = vmatprep.mubr.bf16.mxu1 %v8458_v46 }
 0x3bf   :  { %3042 = vmatprep.subr.bf16.mxu1 %v8454_v22  ;;  %11611 = vst [vmem:[#allocation10_spill] sm:$0xff] %v8500_v62  ;;  %v8507_v22 = vld [vmem:[%s10980_s4 + $0x8c] ss:$16 sps:$4 sm:$0xff]  }
 0x3c0   :  { %3002 = vmatpush1.bf16.msra.mxu0 %v8464_v40  ;;  %11612 = vst [vmem:[#allocation8_spill] sm:$0xff] %v8507_v22  ;;  %v8520_v40 = vld [vmem:[%s10980_s4 + $0x64] ss:$16 sps:$4 sm:$0xff]  }
 0x3c1   :  { %3003 = vmatprep.subr.bf16.mxu0 %v8470_v41  ;;  %11614 = vst [vmem:[#allocation106_spill] sm:$0xff] %v8520_v40  ;;  %v8528_v41 = vld [vmem:[%s10980_s4 + $0x88] ss:$16 sps:$4 sm:$0xff]  }
 0x3c2   :  { %3043 = vmatpush1.bf16.msra.mxu1 %v8478_v43  ;;  %11615 = vst [vmem:[#allocation107_spill] sm:$0xff] %v8528_v41 }
 0x3c3   :  { %3044 = vmatprep.subr.bf16.mxu1 %v8489_v33  ;;  %v8534_v33 = vld [vmem:[%s10980_s4 + $0x6c] ss:$16 sps:$4 sm:$0xff]  }
 0x3c4   :  { %3004 = vmatpush1.bf16.msra.mxu0 %v8483_v17  ;;  %11616 = vst [vmem:[#allocation108_spill] sm:$0xff] %v8534_v33 }
 0x3c5   :  { %3005 = vmatprep.subr.bf16.mxu0 %v8495_v34  ;;  %v8540_v34 = vld [vmem:[%s10980_s4 + $0x60] ss:$16 sps:$4 sm:$0xff]  }
 0x3c6   :  { %3045 = vmatpush1.bf16.msra.mxu1 %v8500_v62  ;;  %11617 = vst [vmem:[#allocation109_spill] sm:$0xff] %v8540_v34  ;;  %v8546_v62 = vld [vmem:[%s10980_s4 + $0x44] ss:$16 sps:$4 sm:$0xff]  }
 0x3c7   :  { %3046 = vmatprep.subr.bf16.mxu1 %v8507_v22  ;;  %11618 = vst [vmem:[#allocation110_spill] sm:$0xff] %v8546_v62  ;;  %v8552_v22 = vld [vmem:[%s10980_s4 + $0x68] ss:$16 sps:$4 sm:$0xff]  }
 0x3c8   :  { %3006 = vmatpush1.bf16.msra.mxu0 %v8514_v49  ;;  %11619 = vst [vmem:[#allocation111_spill] sm:$0xff] %v8552_v22  ;;  %v8558_v49 = vld [vmem:[%s10980_s4 + $0x4c] ss:$16 sps:$4 sm:$0xff]  }
 0x3c9   :  { %3007 = vmatprep.subr.bf16.mxu0 %v8520_v40  ;;  %11620 = vst [vmem:[#allocation112_spill] sm:$0xff] %v8558_v49  ;;  %v8564_v40 = vld [vmem:[%s10980_s4 + $0x40] ss:$16 sps:$4 sm:$0xff]  }
 0x3ca   :  { %3047 = vmatpush1.bf16.msra.mxu1 %v8528_v41  ;;  %11621 = vst [vmem:[#allocation113_spill] sm:$0xff] %v8564_v40  ;;  %v8570_v41 = vld [vmem:[%s10980_s4 + $0x24] ss:$16 sps:$4 sm:$0xff]  }
 0x3cb   :  { %3048 = vmatprep.subr.bf16.mxu1 %v8534_v33  ;;  %11622 = vst [vmem:[#allocation114_spill] sm:$0xff] %v8570_v41  ;;  %v8576_v33 = vld [vmem:[%s10980_s4 + $0x48] ss:$16 sps:$4 sm:$0xff]  }
 0x3cc   :  { %3008 = vmatpush1.bf16.msra.mxu0 %v8540_v34  ;;  %11623 = vst [vmem:[#allocation115_spill] sm:$0xff] %v8576_v33  ;;  %v8582_v34 = vld [vmem:[%s10980_s4 + $0x2c] ss:$16 sps:$4 sm:$0xff]  }
 0x3cd   :  { %3009 = vmatprep.subr.bf16.mxu0 %v8546_v62  ;;  %11624 = vst [vmem:[#allocation116_spill] sm:$0xff] %v8582_v34  ;;  %v8588_v62 = vld [vmem:[%s10980_s4 + $0x20] ss:$16 sps:$4 sm:$0xff]  }
 0x3ce   :  { %3049 = vmatpush1.bf16.msra.mxu1 %v8552_v22  ;;  %11625 = vst [vmem:[#allocation117_spill] sm:$0xff] %v8588_v62  ;;  %v8594_v22 = vld [vmem:[%s10980_s4 + $0x4] ss:$16 sps:$4 sm:$0xff]  }
 0x3cf   :  { %3050 = vmatprep.subr.bf16.mxu1 %v8558_v49  ;;  %11626 = vst [vmem:[#allocation118_spill] sm:$0xff] %v8594_v22  ;;  %v8600_v49 = vld [vmem:[%s10980_s4 + $0x28] ss:$16 sps:$4 sm:$0xff]  }
 0x3d0   :  { %3010 = vmatpush1.bf16.msra.mxu0 %v8564_v40  ;;  %11627 = vst [vmem:[#allocation119_spill] sm:$0xff] %v8600_v49  ;;  %v8606_v40 = vld [vmem:[%s10980_s4 + $0xc] ss:$16 sps:$4 sm:$0xff]  }
 0x3d1   :  { %3011 = vmatprep.subr.bf16.mxu0 %v8570_v41  ;;  %11628 = vst [vmem:[#allocation120_spill] sm:$0xff] %v8606_v40  ;;  %v8612_v41 = vld [vmem:[%s10980_s4] ss:$16 sps:$4 sm:$0xff]  }
 0x3d2   :  { %3051 = vmatpush1.bf16.msra.mxu1 %v8576_v33  ;;  %11629 = vst [vmem:[#allocation121_spill] sm:$0xff] %v8612_v41  ;;  %v8618_v33 = vld [vmem:[%s10980_s4 + $0x1e4] ss:$16 sps:$4 sm:$0xff]  }
 0x3d3   :  { %3052 = vmatprep.subr.bf16.mxu1 %v8582_v34  ;;  %11630 = vst [vmem:[#allocation122_spill] sm:$0xff] %v8618_v33  ;;  %v8624_v34 = vld [vmem:[%s10980_s4 + $0x8] ss:$16 sps:$4 sm:$0xff]  }
 0x3d4   :  { %3012 = vmatpush1.bf16.msra.mxu0 %v8588_v62  ;;  %11631 = vst [vmem:[#allocation123_spill] sm:$0xff] %v8624_v34  ;;  %v8630_v62 = vld [vmem:[%s10980_s4 + $0x1ec] ss:$16 sps:$4 sm:$0xff]  }
 0x3d5   :  { %3013 = vmatprep.subr.bf16.mxu0 %v8594_v22  ;;  %11632 = vst [vmem:[#allocation124_spill] sm:$0xff] %v8630_v62  ;;  %v8636_v22 = vld [vmem:[%s10980_s4 + $0x1e0] ss:$16 sps:$4 sm:$0xff]  }
 0x3d6   :  { %3053 = vmatpush1.bf16.msra.mxu1 %v8600_v49  ;;  %11633 = vst [vmem:[#allocation125_spill] sm:$0xff] %v8636_v22  ;;  %v8642_v49 = vld [vmem:[%s10980_s4 + $0x1c4] ss:$16 sps:$4 sm:$0xff]  }
 0x3d7   :  { %3054 = vmatprep.subr.bf16.mxu1 %v8606_v40  ;;  %11634 = vst [vmem:[#allocation126_spill] sm:$0xff] %v8642_v49  ;;  %v8648_v40 = vld [vmem:[%s10980_s4 + $0x1e8] ss:$16 sps:$4 sm:$0xff]  }
 0x3d8   :  { %3014 = vmatpush1.bf16.msra.mxu0 %v8612_v41  ;;  %11635 = vst [vmem:[#allocation127_spill] sm:$0xff] %v8648_v40  ;;  %v8654_v41 = vld [vmem:[%s10980_s4 + $0x1cc] ss:$16 sps:$4 sm:$0xff]  }
 0x3d9   :  { %3015 = vmatprep.subr.bf16.mxu0 %v8618_v33  ;;  %11636 = vst [vmem:[#allocation128_spill] sm:$0xff] %v8654_v41  ;;  %v8660_v33 = vld [vmem:[%s10980_s4 + $0x1c0] ss:$16 sps:$4 sm:$0xff]  }
 0x3da   :  { %3055 = vmatpush1.bf16.msra.mxu1 %v8624_v34  ;;  %11637 = vst [vmem:[#allocation129_spill] sm:$0xff] %v8660_v33  ;;  %v8666_v34 = vld [vmem:[%s10980_s4 + $0x1a4] ss:$16 sps:$4 sm:$0xff]  }
 0x3db   :  { %3056 = vmatprep.subr.bf16.mxu1 %v8630_v62  ;;  %11638 = vst [vmem:[#allocation130_spill] sm:$0xff] %v8666_v34  ;;  %v8672_v62 = vld [vmem:[%s10980_s4 + $0x1c8] ss:$16 sps:$4 sm:$0xff]  }
 0x3dc   :  { %3016 = vmatpush2.bf16.msra.mxu0 %v8636_v22  ;;  %11639 = vst [vmem:[#allocation131_spill] sm:$0xff] %v8672_v62  ;;  %v8678_v22 = vld [vmem:[%s10980_s4 + $0x1ac] ss:$16 sps:$4 sm:$0xff]  }
 0x3dd   :  { %3017 = vmatprep.subr.bf16.mxu0 %v8642_v49  ;;  %11640 = vst [vmem:[#allocation132_spill] sm:$0xff] %v8678_v22  ;;  %v8684_v49 = vld [vmem:[%s10980_s4 + $0x1a0] ss:$16 sps:$4 sm:$0xff]  }
 0x3de   :  { %3057 = vmatpush2.bf16.msra.mxu1 %v8648_v40  ;;  %11641 = vst [vmem:[#allocation133_spill] sm:$0xff] %v8684_v49  ;;  %v8690_v40 = vld [vmem:[%s10980_s4 + $0x184] ss:$16 sps:$4 sm:$0xff]  }
 0x3df   :  { %3058 = vmatprep.subr.bf16.mxu1 %v8654_v41  ;;  %11642 = vst [vmem:[#allocation134_spill] sm:$0xff] %v8690_v40  ;;  %v8696_v41 = vld [vmem:[%s10980_s4 + $0x1a8] ss:$16 sps:$4 sm:$0xff]  }
 0x3e0   :  { %3018 = vmatpush2.bf16.msra.mxu0 %v8660_v33  ;;  %11643 = vst [vmem:[#allocation135_spill] sm:$0xff] %v8696_v41  ;;  %v8702_v33 = vld [vmem:[%s10980_s4 + $0x18c] ss:$16 sps:$4 sm:$0xff]  }
 0x3e1   :  { %3019 = vmatprep.subr.bf16.mxu0 %v8666_v34  ;;  %11644 = vst [vmem:[#allocation136_spill] sm:$0xff] %v8702_v33  ;;  %v8708_v34 = vld [vmem:[%s10980_s4 + $0x180] ss:$16 sps:$4 sm:$0xff]  }
 0x3e2   :  { %3059 = vmatpush2.bf16.msra.mxu1 %v8672_v62  ;;  %11645 = vst [vmem:[#allocation137_spill] sm:$0xff] %v8708_v34  ;;  %v8714_v62 = vld [vmem:[%s10980_s4 + $0x164] ss:$16 sps:$4 sm:$0xff]  }
 0x3e3   :  { %3060 = vmatprep.subr.bf16.mxu1 %v8678_v22  ;;  %11646 = vst [vmem:[#allocation138_spill] sm:$0xff] %v8714_v62  ;;  %v8720_v22 = vld [vmem:[%s10980_s4 + $0x188] ss:$16 sps:$4 sm:$0xff]  }
 0x3e4   :  { %3020 = vmatpush2.bf16.msra.mxu0 %v8684_v49  ;;  %11647 = vst [vmem:[#allocation139_spill] sm:$0xff] %v8720_v22  ;;  %v8726_v49 = vld [vmem:[%s10980_s4 + $0x16c] ss:$16 sps:$4 sm:$0xff]  }
 0x3e5   :  { %3021 = vmatprep.subr.bf16.mxu0 %v8690_v40  ;;  %11648 = vst [vmem:[#allocation140_spill] sm:$0xff] %v8726_v49  ;;  %v8732_v40 = vld [vmem:[%s10980_s4 + $0x160] ss:$16 sps:$4 sm:$0xff]  }
 0x3e6   :  { %3061 = vmatpush2.bf16.msra.mxu1 %v8696_v41  ;;  %11649 = vst [vmem:[#allocation141_spill] sm:$0xff] %v8732_v40  ;;  %v8738_v41 = vld [vmem:[%s10980_s4 + $0x144] ss:$16 sps:$4 sm:$0xff]  }
 0x3e7   :  { %3062 = vmatprep.subr.bf16.mxu1 %v8702_v33  ;;  %11650 = vst [vmem:[#allocation142_spill] sm:$0xff] %v8738_v41  ;;  %v8744_v33 = vld [vmem:[%s10980_s4 + $0x168] ss:$16 sps:$4 sm:$0xff]  }
 0x3e8   :  { %3022 = vmatpush2.bf16.msra.mxu0 %v8708_v34  ;;  %11651 = vst [vmem:[#allocation143_spill] sm:$0xff] %v8744_v33  ;;  %v8750_v34 = vld [vmem:[%s10980_s4 + $0x14c] ss:$16 sps:$4 sm:$0xff]  }
 0x3e9   :  { %3023 = vmatprep.subr.bf16.mxu0 %v8714_v62  ;;  %11652 = vst [vmem:[#allocation144_spill] sm:$0xff] %v8750_v34  ;;  %v8756_v62 = vld [vmem:[%s10980_s4 + $0x140] ss:$16 sps:$4 sm:$0xff]  }
 0x3ea   :  { %3063 = vmatpush2.bf16.msra.mxu1 %v8720_v22  ;;  %11653 = vst [vmem:[#allocation145_spill] sm:$0xff] %v8756_v62  ;;  %v8762_v22 = vld [vmem:[%s10980_s4 + $0x124] ss:$16 sps:$4 sm:$0xff]  }
 0x3eb   :  { %3064 = vmatprep.subr.bf16.mxu1 %v8726_v49  ;;  %11654 = vst [vmem:[#allocation146_spill] sm:$0xff] %v8762_v22  ;;  %v8768_v49 = vld [vmem:[%s10980_s4 + $0x148] ss:$16 sps:$4 sm:$0xff]  }
 0x3ec   :  { %3024 = vmatpush2.bf16.msra.mxu0 %v8732_v40  ;;  %v8774_v40 = vld [vmem:[%s10980_s4 + $0x12c] ss:$16 sps:$4 sm:$0xff]  }
 0x3ed   :  { %3025 = vmatprep.subr.bf16.mxu0 %v8738_v41  ;;  %11655 = vst [vmem:[#allocation147_spill] sm:$0xff] %v8774_v40  ;;  %v8780_v41 = vld [vmem:[%s10980_s4 + $0x120] ss:$16 sps:$4 sm:$0xff]  }
 0x3ee   :  { %3065 = vmatpush2.bf16.msra.mxu1 %v8744_v33  ;;  %v8786_v33 = vld [vmem:[%s10980_s4 + $0x104] ss:$16 sps:$4 sm:$0xff]  }
 0x3ef   :  { %3066 = vmatprep.subr.bf16.mxu1 %v8750_v34  ;;  %v8792_v34 = vld [vmem:[%s10980_s4 + $0x128] ss:$16 sps:$4 sm:$0xff]  }
 0x3f0   :  { %3026 = vmatpush2.bf16.msra.mxu0 %v8756_v62  ;;  %v8798_v62 = vld [vmem:[%s10980_s4 + $0x10c] ss:$16 sps:$4 sm:$0xff]  }
 0x3f1   :  { %3027 = vmatprep.subr.bf16.mxu0 %v8762_v22  ;;  %v8804_v22 = vld [vmem:[%s10980_s4 + $0x100] ss:$16 sps:$4 sm:$0xff]  }
 0x3f2   :  { %3067 = vmatpush2.bf16.msra.mxu1 %v8768_v49 }
 0x3f3   :  { %3068 = vmatprep.subr.bf16.mxu1 %v8774_v40  ;;  %v8811_v40 = vld [vmem:[%s10980_s4 + $0x108] ss:$16 sps:$4 sm:$0xff]  }
 0x3f4   :  { %3028 = vmatpush2.bf16.msra.mxu0 %v8780_v41 }
 0x3f5   :  { %3029 = vmatprep.subr.bf16.mxu0 %v8786_v33 }
 0x3f6   :  { %3069 = vmatpush2.bf16.msra.mxu1 %v8792_v34 }
 0x3f7   :  { %3070 = vmatprep.subr.bf16.mxu1 %v8798_v62 }
 0x3f8   :  { %3030 = vmatpush2.bf16.msra.mxu0 %v8804_v22 }
 0x3f9   :  { %3490 = vmatprep.subr.bf16.mxu0 %v8064_v57 }
 0x3fa   :  { %3071 = vmatpush2.bf16.msra.mxu1 %v8811_v40 }
 0x3fb   :  { %3531 = vmatprep.subr.bf16.mxu1 %v8077_v58  ;;  %3032 = vmatmul.mubr.bf16.vlgmr.msra.gmra.mxu0 %v8430_v2 }
 0x3fc   :  { %3491 = vmatpush1.bf16.msra.mxu0 %v8068_v37 }
 0x3fd   :  { %3073 = vmatmul.mubr.bf16.vlgmr.msra.gmra.mxu1 %v8430_v2  ;;  %3492 = vmatprep.subr.bf16.mxu0 %v8072_v25  ;;  %v11656_v2 = vld [vmem:[#allocation69_spill] sm:$0xff] }
 0x3fe   :  { %3532 = vmatpush1.bf16.msra.mxu1 %v8083_v44 }
 0x3ff   :  { %3533 = vmatprep.subr.bf16.mxu1 %v8087_v21 }
 0x400   :  { %3493 = vmatpush1.bf16.msra.mxu0 %v8092_v28 }
 0x401   :  { %3494 = vmatprep.subr.bf16.mxu0 %v8098_v11 }
 0x402   :  { %3534 = vmatpush1.bf16.msra.mxu1 %v8103_v50 }
 0x403   :  { %3535 = vmatprep.subr.bf16.mxu1 %v8108_v8 }
 0x404   :  { %3495 = vmatpush1.bf16.msra.mxu0 %v8113_v10 }
 0x405   :  { %3496 = vmatprep.subr.bf16.mxu0 %v8118_v18 }
 0x406   :  { %3536 = vmatpush1.bf16.msra.mxu1 %v8123_v0 }
 0x407   :  { %3537 = vmatprep.subr.bf16.mxu1 %v8128_v47 }
 0x408   :  { %3497 = vmatpush1.bf16.msra.mxu0 %v8133_v6 }
 0x409   :  { %3498 = vmatprep.subr.bf16.mxu0 %v8138_v26 }
 0x40a   :  { %3538 = vmatpush1.bf16.msra.mxu1 %v8143_v63 }
 0x40b   :  { %3539 = vmatprep.subr.bf16.mxu1 %v8148_v9 }
 0x40c   :  { %3499 = vmatpush1.bf16.msra.mxu0 %v8153_v19  ;;  %v11657_v19 = vld [vmem:[#allocation67_spill] sm:$0xff] }
 0x40d   :  { %3500 = vmatprep.subr.bf16.mxu0 %v8158_v51  ;;  %v8848_v9 = vcombine.high %v11657_v19, %v11656_v2 }
 0x40e   :  { %3540 = vmatpush1.bf16.msra.mxu1 %v8163_v32 }
 0x40f   :  { %3541 = vmatprep.subr.bf16.mxu1 %v8168_v59  ;;  %11658 = vst [vmem:[#allocation69_spill] sm:$0xff] %v8848_v9  ;;  %v11659_v59 = vld [vmem:[#allocation70_spill] sm:$0xff] }
 0x410   :  { %3501 = vmatpush1.bf16.msra.mxu0 %v8173_v61  ;;  %v11660_v61 = vld [vmem:[#allocation68_spill] sm:$0xff] }
 0x411   :  { %3502 = vmatprep.subr.bf16.mxu0 %v8178_v27  ;;  %v8854_v51 = vcombine.high %v11660_v61, %v11659_v59 }
 0x412   :  { %3542 = vmatpush1.bf16.msra.mxu1 %v8183_v13 }
 0x413   :  { %3543 = vmatprep.subr.bf16.mxu1 %v8188_v7  ;;  %11661 = vst [vmem:[#allocation67_spill] sm:$0xff] %v8854_v51  ;;  %v8859_v7 = vcombine.low %v11657_v19, %v11656_v2  ;;  %v11671_v2 = vld [vmem:[#allocation61_spill] sm:$0xff] }
 0x414   :  { %3503 = vmatpush1.bf16.msra.mxu0 %v8193_v24  ;;  %v11664_v24 = vld [vmem:[#allocation63_spill] sm:$0xff] }
 0x415   :  { %3504 = vmatprep.subr.bf16.mxu0 %v8198_v60  ;;  %11662 = vst [vmem:[#allocation70_spill] sm:$0xff] %v8859_v7  ;;  %v11663_v60 = vld [vmem:[#allocation65_spill] sm:$0xff] }
 0x416   :  { %3544 = vmatpush1.bf16.msra.mxu1 %v8203_v53  ;;  %v8864_v27 = vcombine.high %v11664_v24, %v11663_v60  ;;  %v11667_v53 = vld [vmem:[#allocation66_spill] sm:$0xff]  ;;  %v8879_v19 = vcombine.low %v11664_v24, %v11663_v60  ;;  %v11679_v60 = vld [vmem:[#allocation57_spill] sm:$0xff] }
 0x417   :  { %3545 = vmatprep.subr.bf16.mxu1 %v8208_v31  ;;  %v8869_v31 = vcombine.low %v11660_v61, %v11659_v59  ;;  %v11675_v61 = vld [vmem:[#allocation62_spill] sm:$0xff] }
 0x418   :  { %3505 = vmatpush1.bf16.msra.mxu0 %v8213_v23  ;;  %11665 = vst [vmem:[#allocation68_spill] sm:$0xff] %v8864_v27  ;;  %v11668_v23 = vld [vmem:[#allocation64_spill] sm:$0xff]  ;;  %11670 = vst [vmem:[#allocation66_spill] sm:$0xff] %v8879_v19 }
 0x419   :  { %3506 = vmatprep.subr.bf16.mxu0 %v8848_v9  ;;  %11666 = vst [vmem:[#allocation65_spill] sm:$0xff] %v8869_v31  ;;  %v8874_v13 = vcombine.high %v11668_v23, %v11667_v53  ;;  %v11672_v9 = vld [vmem:[#allocation59_spill] sm:$0xff]  ;;  %v8889_v59 = vcombine.low %v11668_v23, %v11667_v53  ;;  %v11683_v23 = vld [vmem:[#allocation58_spill] sm:$0xff] }
 0x41a   :  { %3546 = vmatpush1.bf16.msra.mxu1 %v8224_v12  ;;  %v8884_v12 = vcombine.high %v11672_v9, %v11671_v2  ;;  %v8899_v24 = vcombine.low %v11672_v9, %v11671_v2  ;;  %v11687_v2 = vld [vmem:[#allocation53_spill] sm:$0xff] }
 0x41b   :  { %3547 = vmatprep.subr.bf16.mxu1 %v8854_v51  ;;  %11669 = vst [vmem:[#allocation63_spill] sm:$0xff] %v8874_v13  ;;  %11674 = vst [vmem:[#allocation61_spill] sm:$0xff] %v8889_v59 }
 0x41c   :  { %3507 = vmatpush2.bf16.msra.mxu0 %v8859_v7  ;;  %11673 = vst [vmem:[#allocation64_spill] sm:$0xff] %v8884_v12  ;;  %v11676_v7 = vld [vmem:[#allocation60_spill] sm:$0xff]  ;;  %11678 = vst [vmem:[#allocation62_spill] sm:$0xff] %v8899_v24 }
 0x41d   :  { %3508 = vmatprep.subr.bf16.mxu0 %v8864_v27  ;;  %v8894_v51 = vcombine.high %v11676_v7, %v11675_v61  ;;  %v11680_v27 = vld [vmem:[#allocation55_spill] sm:$0xff]  ;;  %v8909_v53 = vcombine.low %v11676_v7, %v11675_v61  ;;  %v11691_v61 = vld [vmem:[#allocation54_spill] sm:$0xff] }
 0x41e   :  { %3548 = vmatpush2.bf16.msra.mxu1 %v8869_v31  ;;  %v8904_v31 = vcombine.high %v11680_v27, %v11679_v60  ;;  %v8919_v9 = vcombine.low %v11680_v27, %v11679_v60  ;;  %v11695_v60 = vld [vmem:[#allocation49_spill] sm:$0xff] }
 0x41f   :  { %3549 = vmatprep.subr.bf16.mxu1 %v8874_v13  ;;  %11677 = vst [vmem:[#allocation59_spill] sm:$0xff] %v8894_v51  ;;  %11682 = vst [vmem:[#allocation57_spill] sm:$0xff] %v8909_v53 }
 0x420   :  { %3509 = vmatpush2.bf16.msra.mxu0 %v8879_v19  ;;  %11681 = vst [vmem:[#allocation60_spill] sm:$0xff] %v8904_v31  ;;  %v11684_v19 = vld [vmem:[#allocation56_spill] sm:$0xff]  ;;  %11686 = vst [vmem:[#allocation58_spill] sm:$0xff] %v8919_v9 }
 0x421   :  { %3510 = vmatprep.subr.bf16.mxu0 %v8884_v12  ;;  %v8914_v13 = vcombine.high %v11684_v19, %v11683_v23  ;;  %v11688_v12 = vld [vmem:[#allocation51_spill] sm:$0xff]  ;;  %v8929_v7 = vcombine.low %v11684_v19, %v11683_v23  ;;  %v11699_v23 = vld [vmem:[#allocation50_spill] sm:$0xff] }
 0x422   :  { %3550 = vmatpush2.bf16.msra.mxu1 %v8889_v59  ;;  %v8924_v59 = vcombine.high %v11688_v12, %v11687_v2  ;;  %v8939_v27 = vcombine.low %v11688_v12, %v11687_v2  ;;  %v11703_v2 = vld [vmem:[#allocation45_spill] sm:$0xff] }
 0x423   :  { %3551 = vmatprep.subr.bf16.mxu1 %v8894_v51  ;;  %11685 = vst [vmem:[#allocation55_spill] sm:$0xff] %v8914_v13  ;;  %11690 = vst [vmem:[#allocation53_spill] sm:$0xff] %v8929_v7 }
 0x424   :  { %3511 = vmatpush2.bf16.msra.mxu0 %v8899_v24  ;;  %11689 = vst [vmem:[#allocation56_spill] sm:$0xff] %v8924_v59  ;;  %v11692_v24 = vld [vmem:[#allocation52_spill] sm:$0xff]  ;;  %11694 = vst [vmem:[#allocation54_spill] sm:$0xff] %v8939_v27 }
 0x425   :  { %3512 = vmatprep.subr.bf16.mxu0 %v8904_v31  ;;  %v8934_v51 = vcombine.high %v11692_v24, %v11691_v61  ;;  %v11696_v31 = vld [vmem:[#allocation47_spill] sm:$0xff]  ;;  %v8949_v19 = vcombine.low %v11692_v24, %v11691_v61  ;;  %v11707_v61 = vld [vmem:[#allocation46_spill] sm:$0xff] }
 0x426   :  { %3552 = vmatpush2.bf16.msra.mxu1 %v8909_v53  ;;  %v8944_v53 = vcombine.high %v11696_v31, %v11695_v60  ;;  %v8959_v12 = vcombine.low %v11696_v31, %v11695_v60  ;;  %v11711_v60 = vld [vmem:[#allocation41_spill] sm:$0xff] }
 0x427   :  { %3553 = vmatprep.subr.bf16.mxu1 %v8914_v13  ;;  %11693 = vst [vmem:[#allocation51_spill] sm:$0xff] %v8934_v51  ;;  %11698 = vst [vmem:[#allocation49_spill] sm:$0xff] %v8949_v19 }
 0x428   :  { %3513 = vmatpush2.bf16.msra.mxu0 %v8919_v9  ;;  %11697 = vst [vmem:[#allocation52_spill] sm:$0xff] %v8944_v53  ;;  %v11700_v9 = vld [vmem:[#allocation48_spill] sm:$0xff]  ;;  %11702 = vst [vmem:[#allocation50_spill] sm:$0xff] %v8959_v12 }
 0x429   :  { %3514 = vmatprep.subr.bf16.mxu0 %v8924_v59  ;;  %v8954_v13 = vcombine.high %v11700_v9, %v11699_v23  ;;  %v11704_v59 = vld [vmem:[#allocation43_spill] sm:$0xff]  ;;  %v8969_v24 = vcombine.low %v11700_v9, %v11699_v23  ;;  %v11715_v23 = vld [vmem:[#allocation42_spill] sm:$0xff] }
 0x42a   :  { %3554 = vmatpush2.bf16.msra.mxu1 %v8929_v7  ;;  %v8964_v7 = vcombine.high %v11704_v59, %v11703_v2  ;;  %v8979_v31 = vcombine.low %v11704_v59, %v11703_v2 }
 0x42b   :  { %3555 = vmatprep.subr.bf16.mxu1 %v8934_v51  ;;  %11701 = vst [vmem:[#allocation47_spill] sm:$0xff] %v8954_v13  ;;  %11706 = vst [vmem:[#allocation45_spill] sm:$0xff] %v8969_v24 }
 0x42c   :  { %3515 = vmatpush2.bf16.msra.mxu0 %v8939_v27  ;;  %11705 = vst [vmem:[#allocation48_spill] sm:$0xff] %v8964_v7  ;;  %v11708_v27 = vld [vmem:[#allocation44_spill] sm:$0xff]  ;;  %11710 = vst [vmem:[#allocation46_spill] sm:$0xff] %v8979_v31 }
 0x42d   :  { %3516 = vmatprep.subr.bf16.mxu0 %v8944_v53  ;;  %v8974_v51 = vcombine.high %v11708_v27, %v11707_v61  ;;  %v11712_v53 = vld [vmem:[#allocation39_spill] sm:$0xff]  ;;  %v8989_v9 = vcombine.low %v11708_v27, %v11707_v61 }
 0x42e   :  { %3556 = vmatpush2.bf16.msra.mxu1 %v8949_v19  ;;  %v8984_v19 = vcombine.high %v11712_v53, %v11711_v60  ;;  %v8999_v59 = vcombine.low %v11712_v53, %v11711_v60  ;;  %v1997_v53 = vld [vmem:[%s10983_s7] sm:$0xf] }
 0x42f   :  { %3557 = vmatprep.subr.bf16.mxu1 %v8954_v13  ;;  %11709 = vst [vmem:[#allocation43_spill] sm:$0xff] %v8974_v51  ;;  %11714 = vst [vmem:[#allocation41_spill] sm:$0xff] %v8989_v9  ;;  %v9016_v2 = vrot.slane %v1997_v53, %v7538_v5 }
 0x430   :  { %3517 = vmatpush2.bf16.msra.mxu0 %v8959_v12  ;;  %11713 = vst [vmem:[#allocation44_spill] sm:$0xff] %v8984_v19  ;;  %v11716_v12 = vld [vmem:[#allocation40_spill] sm:$0xff]  ;;  %11718 = vst [vmem:[#allocation42_spill] sm:$0xff] %v8999_v59 }
 0x431   :  { %3518 = vmatprep.subr.bf16.mxu0 %v8964_v7  ;;  %v8994_v13 = vcombine.high %v11716_v12, %v11715_v23  ;;  %v9005_v27 = vcombine.low %v11716_v12, %v11715_v23  ;;  %11720 = vst [vmem:[#allocation148_spill] sm:$0xff] %v9016_v2  ;;  %v9019_v12 = vrot.slane %v1997_v53, %v7543_v4 }
 0x432   :  { %3558 = vmatpush2.bf16.msra.mxu1 %v8969_v24  ;;  %v9024_v7 = vrot.slane %v1997_v53, %v7553_v15  ;;  %v9027_v24 = vrot.slane %v1997_v53, %v7555_v14 }
 0x433   :  { %3559 = vmatprep.subr.bf16.mxu1 %v8974_v51  ;;  %11717 = vst [vmem:[#allocation39_spill] sm:$0xff] %v8994_v13  ;;  %11719 = vst [vmem:[#allocation40_spill] sm:$0xff] %v9005_v27 }
 0x434   :  { %3519 = vmatpush2.bf16.msra.mxu0 %v8979_v31  ;;  %11721 = vst [vmem:[#allocation149_spill] sm:$0xff] %v9019_v12  ;;  %11722 = vst [vmem:[#allocation150_spill] sm:$0xff] %v9024_v7 }
 0x435   :  { %3520 = vmatprep.subr.bf16.mxu0 %v8984_v19  ;;  %11723 = vst [vmem:[#allocation151_spill] sm:$0xff] %v9027_v24 }
 0x436   :  { %3560 = vmatpush2.bf16.msra.mxu1 %v8989_v9 }
 0x437   :  { %3561 = vmatprep.subr.bf16.mxu1 %v8994_v13 }
 0x438   :  { %3521 = vmatpush2.bf16.msra.mxu0 %v8999_v59 }
 0x439   :  { %3601 = vmatprep.subr.bf16.mxu0 %v8219_v20 }
 0x43a   :  { %3562 = vmatpush2.bf16.msra.mxu1 %v9005_v27 }
 0x43b   :  { %3642 = vmatprep.subr.bf16.mxu1 %v8230_v30 }
 0x45b   :  { %v2213_v61 = vpop.f32.mrf.mxu0 }
 0x45c   :  { %v2214_v60 = vadd.f32 %v2213_v61, %v9016_v2 }
 0x45d   :  { %v2254_v23 = vpop.f32.mrf.mxu1  ;;  %v2215_v59 = vpop.f32.mrf.mxu0 }
 0x45e   :  { %v5597_v20 = vmul.f32 -1.442695, %v2214_v60  ;;  %v2216_v27 = vadd.f32 %v2215_v59, %v9019_v12  ;;  %v2255_v60 = vadd.f32 %v2254_v23, %v9027_v24 }
 0x45f   :  { %v2256_v13 = vpop.f32.mrf.mxu1  ;;  %v2217_v30 = vpop.f32.mrf.mxu0 }
 0x460   :  { %6304 = vpow2.f32 %v5597_v20  ;;  %v5598_v19 = vmul.f32 -1.442695, %v2216_v27  ;;  %v2257_v61 = vadd.f32 %v2256_v13, %v9024_v7 }
 0x461   :  { %v2258_v9 = vpop.f32.mrf.mxu1  ;;  %v2218_v31 = vpop.f32.mrf.mxu0 }
 0x462   :  { %6306 = vpow2.f32 %v5598_v19  ;;  %v5599_v2 = vmul.f32 -1.442695, %v2257_v61 }
 0x463   :  { %v2259_v51 = vpop.f32.mrf.mxu1  ;;  %6308 = vtanh.f32 %v2255_v60 }
 0x464   :  { %6310 = vpow2.f32 %v5599_v2 }
 0x46d   :  { %v6305_v59 = vpop.eup %6304 }
 0x46e   :  { %v2264_v12 = vadd.f32 1.0, %v6305_v59 }
 0x46f   :  { %v6307_v20 = vpop.eup %6306 }
 0x470   :  { %6312 = vrcp.f32 %v2264_v12  ;;  %v2270_v31 = vadd.f32 1.0, %v6307_v20  ;;  %v6309_v51 = vpop.eup %6308 }
 0x471   :  { %v6311_v9 = vpop.eup %6310 }
 0x472   :  { %6314 = vrcp.f32 %v2270_v31  ;;  %v2277_v59 = vadd.f32 1.0, %v6311_v9 }
 0x47b   :  { %v2516_v19 = vpop.f32.mrf.mxu0 }
 0x47c   :  { %v2564_v27 = vadd.f32 %v2516_v19, %v7785_v35 }
 0x47d   :  { %v2557_v53 = vpop.f32.mrf.mxu1  ;;  %v6313_v30 = vpop.eup %6312 }
 0x47e   :  { %v2518_v32 = vpop.f32.mrf.mxu0  ;;  %v5632_v13 = vmul.f32 -1.442695, %v2564_v27  ;;  %v2281_v2 = vmul.f32 %v6313_v30, %v6309_v51 }
 0x47f   :  { %v2565_v23 = vadd.f32 %v2518_v32, %v7791_v36  ;;  %v2559_v61 = vpop.f32.mrf.mxu1  ;;  %v6315_v24 = vpop.eup %6314  ;;  %v2566_v36 = vadd.f32 %v2557_v53, %v7788_v38 }
 0x480   :  { %v2520_v60 = vpop.f32.mrf.mxu0  ;;  %v2280_v7 = vmul.f32 0.0, %v6315_v24  ;;  %6316 = vpow2.f32 %v5632_v13  ;;  %v2567_v19 = vadd.f32 %v2559_v61, %v7794_v39  ;;  %v11725_v61 = vld [vmem:[#allocation88_spill] sm:$0xff] }
 0x481   :  { %v5633_v12 = vmul.f32 -1.442695, %v2565_v23  ;;  %v2561_v20 = vpop.f32.mrf.mxu1  ;;  %v11732_v60 = vld [vmem:[#allocation29_spill] sm:$0xff] }
 0x482   :  { %v2521_v31 = vpop.f32.mrf.mxu0  ;;  %v9033_v26 = vadd.f32 %v2281_v2, %v2280_v7  ;;  %v5634_v32 = vmul.f32 -1.442695, %v2567_v19  ;;  %v11733_v2 = vld [vmem:[#allocation32_spill] sm:$0xff]  ;;  %v11735_v20 = vld [vmem:[#allocation30_spill] sm:$0xff]  ;;  %v11738_v19 = vld [vmem:[#allocation23_spill] sm:$0xff] }
 0x483   :  { %6318 = vpow2.f32 %v5633_v12  ;;  %v2562_v35 = vpop.f32.mrf.mxu1  ;;  %v11734_v12 = vld [vmem:[#allocation27_spill] sm:$0xff]  ;;  %v11736_v31 = vld [vmem:[#allocation25_spill] sm:$0xff] }
 0x484   :  { %6320 = vrcp.f32 %v2277_v59  ;;  %v11726_v59 = vld [vmem:[#allocation35_spill] sm:$0xff]  ;;  %v11737_v35 = vld [vmem:[#allocation28_spill] sm:$0xff] }
 0x485   :  { %6322 = vtanh.f32 %v9033_v26 }
 0x486   :  { %6324 = vtanh.f32 %v2566_v36 }
 0x487   :  { %6326 = vpow2.f32 %v5634_v32  ;;  %v11739_v32 = vld [vmem:[#allocation26_spill] sm:$0xff] }
 0x48d   :  { %v6317_v9 = vpop.eup %6316 }
 0x48e   :  { %v2571_v24 = vadd.f32 1.0, %v6317_v9  ;;  %v11740_v9 = vld [vmem:[#allocation21_spill] sm:$0xff] }
 0x490   :  { %v6319_v51 = vpop.eup %6318  ;;  %6328 = vrcp.f32 %v2571_v24 }
 0x491   :  { %v6321_v27 = vpop.eup %6320  ;;  %v2577_v30 = vadd.f32 1.0, %v6319_v51  ;;  %v11741_v51 = vld [vmem:[#allocation24_spill] sm:$0xff] }
 0x492   :  { %v6323_v7 = vpop.eup %6322 }
 0x493   :  { %6330 = vrcp.f32 %v2577_v30  ;;  %v2284_v13 = vmul.f32 %v6323_v7, %v6321_v27  ;;  %v6325_v38 = vpop.eup %6324  ;;  %v11742_v27 = vld [vmem:[#allocation19_spill] sm:$0xff]  ;;  %v11743_v7 = vld [vmem:[#allocation22_spill] sm:$0xff] }
 0x494   :  { %v6327_v39 = vpop.eup %6326 }
 0x495   :  { %v3105_v23 = vpack.c.bf16 %v2284_v13, %v2284_v13 }
 0x497   :  { %3522 = vmatprep.mubr.bf16.mxu0 %v3105_v23  ;;  %3563 = vmatprep.mubr.bf16.mxu1 %v3105_v23  ;;  %v11744_v23 = vld [vmem:[#allocation17_spill] sm:$0xff] }
 0x498   :  { %3523 = vmatmul.mubr.bf16.vlgmr.msra.gmra.mxu0 %v8458_v46  ;;  %3564 = vmatmul.mubr.bf16.vlgmr.msra.gmra.mxu1 %v8458_v46 }
 0x499   :  { %3602 = vmatpush1.bf16.msra.mxu0 %v8235_v16  ;;  %3643 = vmatpush1.bf16.msra.mxu1 %v8248_v29  ;;  %v2584_v16 = vadd.f32 1.0, %v6327_v39  ;;  %v2657_v39 = vld [vmem:[%s10981_s5] sm:$0xf] }
 0x49a   :  { %3603 = vmatprep.subr.bf16.mxu0 %v8241_v45  ;;  %3644 = vmatprep.subr.bf16.mxu1 %v8254_v55  ;;  %v11724_v55 = vld [vmem:[#allocation37_spill] sm:$0xff] }
 0x49b   :  { %3633 = vmatprep.mubr.bf16.mxu0 %v11535_v56  ;;  %3674 = vmatprep.mubr.bf16.mxu1 %v11535_v56  ;;  %6332 = vrcp.f32 %v2584_v16  ;;  %v9087_v16 = vrot.slane %v2657_v39, %v7538_v5  ;;  %v11754_v5 = vld [vmem:[#allocation12_spill] sm:$0xff] }
 0x49d   :  { %3604 = vmatpush1.bf16.msra.mxu0 %v8260_v52  ;;  %3645 = vmatpush1.bf16.msra.mxu1 %v8274_v42  ;;  %v6329_v53 = vpop.eup %6328  ;;  %v11727_v42 = vld [vmem:[#allocation33_spill] sm:$0xff]  ;;  %11748 = vst [vmem:[#allocation37_spill] sm:$0xff] %v9087_v16 }
 0x49e   :  { %3605 = vmatprep.subr.bf16.mxu0 %v8266_v54  ;;  %3646 = vmatprep.subr.bf16.mxu1 %v8280_v48  ;;  %v2588_v46 = vmul.f32 %v6329_v53, %v6325_v38  ;;  %v11728_v48 = vld [vmem:[#allocation38_spill] sm:$0xff]  ;;  %v11729_v54 = vld [vmem:[#allocation31_spill] sm:$0xff]  ;;  %v11745_v38 = vld [vmem:[#allocation20_spill] sm:$0xff] }
 0x49f   :  { %v11746_v53 = vld [vmem:[#allocation15_spill] sm:$0xff] }
 0x4a0   :  { %v6331_v45 = vpop.eup %6330 }
 0x4a1   :  { %v2587_v29 = vmul.f32 %v6331_v45, %v8047_v3  ;;  %3606 = vmatpush1.bf16.msra.mxu0 %v8286_v1  ;;  %3647 = vmatpush1.bf16.msra.mxu1 %v11724_v55  ;;  %v11730_v3 = vld [vmem:[#allocation36_spill] sm:$0xff]  ;;  %v11731_v1 = vld [vmem:[#allocation34_spill] sm:$0xff]  ;;  %v11749_v45 = vld [vmem:[#allocation13_spill] sm:$0xff] }
 0x4a2   :  { %3607 = vmatprep.subr.bf16.mxu0 %v11725_v61  ;;  %3648 = vmatprep.subr.bf16.mxu1 %v11726_v59  ;;  %v11751_v55 = vld [vmem:[#allocation11_spill] sm:$0xff]  ;;  %v9093_v61 = vrot.slane %v2657_v39, %v7543_v4 }
 0x4a3   :  { %v9055_v52 = vadd.f32 %v2588_v46, %v2587_v29  ;;  %v11747_v46 = vld [vmem:[#allocation18_spill] sm:$0xff]  ;;  %v11750_v29 = vld [vmem:[#allocation16_spill] sm:$0xff] }
 0x4a4   :  { %11752 = vst [vmem:[#allocation88_spill] sm:$0xff] %v9093_v61 }
 0x4a5   :  { %6334 = vtanh.f32 %v9055_v52  ;;  %3608 = vmatpush1.bf16.msra.mxu0 %v11727_v42  ;;  %3649 = vmatpush1.bf16.msra.mxu1 %v11728_v48  ;;  %v11753_v48 = vld [vmem:[#allocation14_spill] sm:$0xff] }
 0x4a6   :  { %3609 = vmatprep.subr.bf16.mxu0 %v11729_v54  ;;  %3650 = vmatprep.subr.bf16.mxu1 %v11730_v3 }
 0x4a8   :  { %v6333_v36 = vpop.eup %6332 }
 0x4a9   :  { %3610 = vmatpush1.bf16.msra.mxu0 %v11731_v1  ;;  %3651 = vmatpush1.bf16.msra.mxu1 %v11732_v60  ;;  %v11755_v1 = vld [vmem:[#allocation9_spill] sm:$0xff] }
 0x4aa   :  { %3611 = vmatprep.subr.bf16.mxu0 %v11733_v2  ;;  %3652 = vmatprep.subr.bf16.mxu1 %v11734_v12 }
 0x4ad   :  { %3612 = vmatpush1.bf16.msra.mxu0 %v11735_v20  ;;  %3653 = vmatpush1.bf16.msra.mxu1 %v11736_v31  ;;  %v11756_v31 = vld [vmem:[#allocation10_spill] sm:$0xff] }
 0x4ae   :  { %3613 = vmatprep.subr.bf16.mxu0 %v11737_v35  ;;  %3654 = vmatprep.subr.bf16.mxu1 %v11738_v19  ;;  %v11757_v19 = vld [vmem:[#allocation7_spill] sm:$0xff] }
 0x4b1   :  { %3614 = vmatpush1.bf16.msra.mxu0 %v11739_v32  ;;  %3655 = vmatpush1.bf16.msra.mxu1 %v11740_v9  ;;  %v9106_v32 = vrot.slane %v2657_v39, %v7553_v15  ;;  %v11767_v15 = vld [vmem:[#allocation110_spill] sm:$0xff] }
 0x4b2   :  { %v6335_v24 = vpop.eup %6334  ;;  %3615 = vmatprep.subr.bf16.mxu0 %v11741_v51  ;;  %3656 = vmatprep.subr.bf16.mxu1 %v11742_v27  ;;  %v11761_v51 = vld [vmem:[#allocation107_spill] sm:$0xff]  ;;  %v11762_v27 = vld [vmem:[#allocation106_spill] sm:$0xff] }
 0x4b3   :  { %v2591_v30 = vmul.f32 %v6335_v24, %v6333_v36  ;;  %11759 = vst [vmem:[#allocation35_spill] sm:$0xff] %v9106_v32  ;;  %v11760_v24 = vld [vmem:[#allocation105_spill] sm:$0xff] }
 0x4b5   :  { %3616 = vmatpush1.bf16.msra.mxu0 %v11743_v7  ;;  %v9075_v13 = vpack.c.bf16 %v2591_v30, %v2591_v30  ;;  %3657 = vmatpush1.bf16.msra.mxu1 %v11744_v23  ;;  %v11764_v30 = vld [vmem:[#allocation108_spill] sm:$0xff]  ;;  %v11765_v23 = vld [vmem:[#allocation109_spill] sm:$0xff] }
 0x4b6   :  { %3712 = vmatprep.subr.bf16.mxu0 %v11745_v38  ;;  %3753 = vmatprep.subr.bf16.mxu1 %v11746_v53  ;;  %v11766_v38 = vld [vmem:[#allocation111_spill] sm:$0xff] }
 0x4b8   :  { %3634 = vmatmul.mubr.bf16.vlgmr.msra.gmra.mxu0 %v9075_v13  ;;  %3675 = vmatmul.mubr.bf16.vlgmr.msra.gmra.mxu1 %v9075_v13 }
 0x4b9   :  { %3713 = vmatpush1.bf16.msra.mxu0 %v11747_v46  ;;  %3754 = vmatpush1.bf16.msra.mxu1 %v11749_v45  ;;  %v11768_v46 = vld [vmem:[#allocation112_spill] sm:$0xff] }
 0x4ba   :  { %3714 = vmatprep.subr.bf16.mxu0 %v11750_v29  ;;  %3755 = vmatprep.subr.bf16.mxu1 %v11751_v55  ;;  %v11769_v29 = vld [vmem:[#allocation113_spill] sm:$0xff]  ;;  %v11770_v55 = vld [vmem:[#allocation115_spill] sm:$0xff] }
 0x4bb   :  { %v3033_v59 = vpop.f32.mrf.mxu0 }
 0x4bc   :  { %v3034_v42 = vadd.f32 %v3033_v59, %v9087_v16  ;;  %v11772_v59 = vld [vmem:[#allocation116_spill] sm:$0xff] }
 0x4bd   :  { %3715 = vmatpush1.bf16.msra.mxu0 %v11753_v48  ;;  %v3074_v54 = vpop.f32.mrf.mxu1  ;;  %3756 = vmatpush1.bf16.msra.mxu1 %v8478_v43  ;;  %v3035_v3 = vpop.f32.mrf.mxu0  ;;  %v11758_v43 = vld [vmem:[#allocation8_spill] sm:$0xff] }
 0x4be   :  { %3716 = vmatprep.subr.bf16.mxu0 %v11754_v5  ;;  %3757 = vmatprep.subr.bf16.mxu1 %v11755_v1  ;;  %v5699_v60 = vmul.f32 -1.442695, %v3034_v42  ;;  %v3036_v2 = vadd.f32 %v3035_v3, %v9093_v61  ;;  %v11773_v5 = vld [vmem:[#allocation117_spill] sm:$0xff]  ;;  %v11775_v1 = vld [vmem:[#allocation118_spill] sm:$0xff] }
 0x4bf   :  { %v3076_v12 = vpop.f32.mrf.mxu1  ;;  %v3037_v20 = vpop.f32.mrf.mxu0 }
 0x4c0   :  { %6336 = vpow2.f32 %v5699_v60  ;;  %v5700_v4 = vmul.f32 -1.442695, %v3036_v2  ;;  %v3077_v7 = vadd.f32 %v3076_v12, %v9106_v32  ;;  %v11776_v60 = vld [vmem:[#allocation120_spill] sm:$0xff]  ;;  %v11777_v2 = vld [vmem:[#allocation121_spill] sm:$0xff]  ;;  %v11778_v12 = vld [vmem:[#allocation123_spill] sm:$0xff] }
 0x4c1   :  { %3717 = vmatpush1.bf16.msra.mxu0 %v8483_v17  ;;  %3758 = vmatpush1.bf16.msra.mxu1 %v11756_v31  ;;  %v3078_v35 = vpop.f32.mrf.mxu1  ;;  %v3038_v36 = vpop.f32.mrf.mxu0  ;;  %v9112_v17 = vrot.slane %v2657_v39, %v7555_v14  ;;  %v11771_v39 = vld [vmem:[#allocation114_spill] sm:$0xff]  ;;  %v11781_v31 = vld [vmem:[#allocation125_spill] sm:$0xff] }
 0x4c2   :  { %3718 = vmatprep.subr.bf16.mxu0 %v11757_v19  ;;  %3759 = vmatprep.subr.bf16.mxu1 %v11758_v43  ;;  %6338 = vpow2.f32 %v5700_v4  ;;  %v5701_v45 = vmul.f32 -1.442695, %v3077_v7  ;;  %v11779_v20 = vld [vmem:[#allocation122_spill] sm:$0xff]  ;;  %v11780_v4 = vld [vmem:[#allocation124_spill] sm:$0xff]  ;;  %v11782_v35 = vld [vmem:[#allocation127_spill] sm:$0xff] }
 0x4c3   :  { %v3079_v9 = vpop.f32.mrf.mxu1  ;;  %11763 = vst [vmem:[#allocation33_spill] sm:$0xff] %v9112_v17  ;;  %v3075_v53 = vadd.f32 %v3074_v54, %v9112_v17  ;;  %v11774_v54 = vld [vmem:[#allocation119_spill] sm:$0xff]  ;;  %v11783_v19 = vld [vmem:[#allocation126_spill] sm:$0xff]  ;;  %v11784_v43 = vld [vmem:[#allocation128_spill] sm:$0xff] }
 0x4c4   :  { %v11788_v7 = vld [vmem:[#allocation132_spill] sm:$0xff] }
 0x4c5   :  { %3719 = vmatpush1.bf16.msra.mxu0 %v11760_v24  ;;  %3760 = vmatpush1.bf16.msra.mxu1 %v11761_v51  ;;  %6340 = vtanh.f32 %v3075_v53  ;;  %v11785_v24 = vld [vmem:[#allocation129_spill] sm:$0xff]  ;;  %v11786_v51 = vld [vmem:[#allocation131_spill] sm:$0xff] }
 0x4c6   :  { %3720 = vmatprep.subr.bf16.mxu0 %v11762_v27  ;;  %3761 = vmatprep.subr.bf16.mxu1 %v11764_v30  ;;  %6342 = vpow2.f32 %v5701_v45  ;;  %v11787_v30 = vld [vmem:[#allocation130_spill] sm:$0xff]  ;;  %v11789_v53 = vld [vmem:[#allocation71_spill] sm:$0xff]  ;;  %v11790_v45 = vld [vmem:[#allocation133_spill] sm:$0xff] }
 0x4c9   :  { %3721 = vmatpush1.bf16.msra.mxu0 %v11765_v23  ;;  %3762 = vmatpush1.bf16.msra.mxu1 %v11766_v38 }
 0x4ca   :  { %3722 = vmatprep.subr.bf16.mxu0 %v11767_v15  ;;  %3763 = vmatprep.subr.bf16.mxu1 %v11768_v46 }
 0x4cd   :  { %3723 = vmatpush1.bf16.msra.mxu0 %v11769_v29  ;;  %3764 = vmatpush1.bf16.msra.mxu1 %v11770_v55  ;;  %v6337_v14 = vpop.eup %6336  ;;  %v11791_v29 = vld [vmem:[#allocation135_spill] sm:$0xff]  ;;  %v11792_v55 = vld [vmem:[#allocation134_spill] sm:$0xff] }
 0x4ce   :  { %3724 = vmatprep.subr.bf16.mxu0 %v11771_v39  ;;  %3765 = vmatprep.subr.bf16.mxu1 %v11772_v59  ;;  %v3084_v42 = vadd.f32 1.0, %v6337_v14  ;;  %v11793_v14 = vld [vmem:[#allocation136_spill] sm:$0xff]  ;;  %v11794_v59 = vld [vmem:[#allocation137_spill] sm:$0xff] }
 0x4cf   :  { %v6339_v48 = vpop.eup %6338 }
 0x4d0   :  { %6344 = vrcp.f32 %v3084_v42  ;;  %v3090_v3 = vadd.f32 1.0, %v6339_v48  ;;  %v11795_v42 = vld [vmem:[#allocation139_spill] sm:$0xff]  ;;  %v11796_v48 = vld [vmem:[#allocation138_spill] sm:$0xff] }
 0x4d1   :  { %3725 = vmatpush1.bf16.msra.mxu0 %v11773_v5  ;;  %3766 = vmatpush1.bf16.msra.mxu1 %v11774_v54  ;;  %v11798_v5 = vld [vmem:[#allocation141_spill] sm:$0xff]  ;;  %v11799_v54 = vld [vmem:[#allocation143_spill] sm:$0xff] }
 0x4d2   :  { %3726 = vmatprep.subr.bf16.mxu0 %v11775_v1  ;;  %3767 = vmatprep.subr.bf16.mxu1 %v11776_v60  ;;  %6346 = vrcp.f32 %v3090_v3  ;;  %v6341_v36 = vpop.eup %6340  ;;  %v11797_v3 = vld [vmem:[#allocation140_spill] sm:$0xff]  ;;  %v11800_v1 = vld [vmem:[#allocation142_spill] sm:$0xff] }
 0x4d3   :  { %v6343_v9 = vpop.eup %6342  ;;  %v11801_v60 = vld [vmem:[#allocation144_spill] sm:$0xff] }
 0x4d4   :  { %v3097_v38 = vadd.f32 1.0, %v6343_v9  ;;  %v11815_v9 = vld [vmem:[#allocation82_spill] sm:$0xff] }
 0x4d5   :  { %3727 = vmatpush1.bf16.msra.mxu0 %v11777_v2  ;;  %3768 = vmatpush1.bf16.msra.mxu1 %v11778_v12  ;;  %v11802_v2 = vld [vmem:[#allocation145_spill] sm:$0xff]  ;;  %v11803_v12 = vld [vmem:[#allocation146_spill] sm:$0xff] }
 0x4d6   :  { %3728 = vmatprep.subr.bf16.mxu0 %v11779_v20  ;;  %3769 = vmatprep.subr.bf16.mxu1 %v11780_v4  ;;  %6348 = vrcp.f32 %v3097_v38  ;;  %v11804_v20 = vld [vmem:[#allocation147_spill] sm:$0xff] }
 0x4d7   :  { %v11822_v38 = vld [vmem:[#allocation67_spill] sm:$0xff] }
 0x4d9   :  { %3729 = vmatpush2.bf16.msra.mxu0 %v11781_v31  ;;  %3770 = vmatpush2.bf16.msra.mxu1 %v11782_v35 }
 0x4da   :  { %3730 = vmatprep.subr.bf16.mxu0 %v11783_v19  ;;  %3771 = vmatprep.subr.bf16.mxu1 %v11784_v43  ;;  %v11813_v43 = vld [vmem:[#allocation79_spill] sm:$0xff] }
 0x4dd   :  { %3731 = vmatpush2.bf16.msra.mxu0 %v11785_v24  ;;  %3772 = vmatpush2.bf16.msra.mxu1 %v11786_v51  ;;  %v6345_v27 = vpop.eup %6344  ;;  %v11816_v24 = vld [vmem:[#allocation84_spill] sm:$0xff]  ;;  %v11817_v51 = vld [vmem:[#allocation83_spill] sm:$0xff] }
 0x4de   :  { %3732 = vmatprep.subr.bf16.mxu0 %v11787_v30  ;;  %3773 = vmatprep.subr.bf16.mxu1 %v11788_v7  ;;  %v3101_v23 = vmul.f32 %v6345_v27, %v6341_v36  ;;  %v11814_v36 = vld [vmem:[#allocation81_spill] sm:$0xff]  ;;  %v11819_v30 = vld [vmem:[#allocation86_spill] sm:$0xff]  ;;  %v11820_v7 = vld [vmem:[#allocation87_spill] sm:$0xff] }
 0x4df   :  { %v6347_v15 = vpop.eup %6346  ;;  %v11818_v27 = vld [vmem:[#allocation85_spill] sm:$0xff] }
 0x4e0   :  { %v3100_v46 = vmul.f32 %v6347_v15, %v11789_v53  ;;  %v11823_v15 = vld [vmem:[#allocation70_spill] sm:$0xff]  ;;  %v11824_v53 = vld [vmem:[#allocation65_spill] sm:$0xff] }
 0x4e1   :  { %3733 = vmatpush2.bf16.msra.mxu0 %v11790_v45  ;;  %3774 = vmatpush2.bf16.msra.mxu1 %v11791_v29  ;;  %v11826_v45 = vld [vmem:[#allocation63_spill] sm:$0xff]  ;;  %v11827_v29 = vld [vmem:[#allocation66_spill] sm:$0xff] }
 0x4e2   :  { %3734 = vmatprep.subr.bf16.mxu0 %v11792_v55  ;;  %3775 = vmatprep.subr.bf16.mxu1 %v11793_v14  ;;  %v9146_v39 = vadd.f32 %v3101_v23, %v3100_v46  ;;  %v11821_v23 = vld [vmem:[#allocation69_spill] sm:$0xff]  ;;  %v11825_v46 = vld [vmem:[#allocation68_spill] sm:$0xff] }
 0x4e3   :  { %v6349_v4 = vpop.eup %6348  ;;  %v11828_v55 = vld [vmem:[#allocation61_spill] sm:$0xff]  ;;  %v11829_v14 = vld [vmem:[#allocation64_spill] sm:$0xff] }
 0x4e4   :  { %6350 = vtanh.f32 %v9146_v39 }
 0x4e5   :  { %3735 = vmatpush2.bf16.msra.mxu0 %v11794_v59  ;;  %3776 = vmatpush2.bf16.msra.mxu1 %v11795_v42  ;;  %v11830_v59 = vld [vmem:[#allocation59_spill] sm:$0xff]  ;;  %v11831_v42 = vld [vmem:[#allocation62_spill] sm:$0xff] }
 0x4e6   :  { %3736 = vmatprep.subr.bf16.mxu0 %v11796_v48  ;;  %3777 = vmatprep.subr.bf16.mxu1 %v11797_v3  ;;  %v11832_v48 = vld [vmem:[#allocation57_spill] sm:$0xff]  ;;  %v11833_v3 = vld [vmem:[#allocation60_spill] sm:$0xff] }
 0x4e9   :  { %3737 = vmatpush2.bf16.msra.mxu0 %v11798_v5  ;;  %3778 = vmatpush2.bf16.msra.mxu1 %v11799_v54  ;;  %v11834_v5 = vld [vmem:[#allocation55_spill] sm:$0xff]  ;;  %v11835_v54 = vld [vmem:[#allocation58_spill] sm:$0xff] }
 0x4ea   :  { %3738 = vmatprep.subr.bf16.mxu0 %v11800_v1  ;;  %3779 = vmatprep.subr.bf16.mxu1 %v11801_v60  ;;  %v11836_v1 = vld [vmem:[#allocation53_spill] sm:$0xff]  ;;  %v11837_v60 = vld [vmem:[#allocation56_spill] sm:$0xff] }
 0x4ed   :  { %3739 = vmatpush2.bf16.msra.mxu0 %v11802_v2  ;;  %3780 = vmatpush2.bf16.msra.mxu1 %v8768_v49  ;;  %v11810_v49 = vld [vmem:[#allocation77_spill] sm:$0xff]  ;;  %v11838_v2 = vld [vmem:[#allocation51_spill] sm:$0xff] }
 0x4ee   :  { %3740 = vmatprep.subr.bf16.mxu0 %v11803_v12  ;;  %3781 = vmatprep.subr.bf16.mxu1 %v11804_v20  ;;  %v11839_v12 = vld [vmem:[#allocation54_spill] sm:$0xff]  ;;  %v11840_v20 = vld [vmem:[#allocation49_spill] sm:$0xff] }
 0x4f1   :  { %3741 = vmatpush2.bf16.msra.mxu0 %v8780_v41  ;;  %3782 = vmatpush2.bf16.msra.mxu1 %v8792_v34  ;;  %v6351_v31 = vpop.eup %6350  ;;  %v11807_v41 = vld [vmem:[#allocation74_spill] sm:$0xff]  ;;  %v11808_v34 = vld [vmem:[#allocation76_spill] sm:$0xff] }
 0x4f2   :  { %3742 = vmatprep.subr.bf16.mxu0 %v8786_v33  ;;  %3783 = vmatprep.subr.bf16.mxu1 %v8798_v62  ;;  %v3104_v35 = vmul.f32 %v6351_v31, %v6349_v4  ;;  %v11805_v33 = vld [vmem:[#allocation72_spill] sm:$0xff]  ;;  %v11811_v62 = vld [vmem:[#allocation78_spill] sm:$0xff]  ;;  %v11842_v31 = vld [vmem:[#allocation47_spill] sm:$0xff] }
 0x4f3   :  { %v11841_v4 = vld [vmem:[#allocation52_spill] sm:$0xff] }
 0x4f4   :  { %v9166_v19 = vpack.c.bf16 %v3104_v35, %v3104_v35  ;;  %v11843_v35 = vld [vmem:[#allocation50_spill] sm:$0xff] }
 0x4f5   :  { %3743 = vmatpush2.bf16.msra.mxu0 %v8804_v22  ;;  %3784 = vmatpush2.bf16.msra.mxu1 %v8811_v40  ;;  %v11806_v40 = vld [vmem:[#allocation73_spill] sm:$0xff]  ;;  %v11809_v22 = vld [vmem:[#allocation75_spill] sm:$0xff] }
 0x4f6   :  { %3819 = vmatprep.subr.bf16.mxu0 %v8064_v57  ;;  %3860 = vmatprep.subr.bf16.mxu1 %v8077_v58 }
 0x4f7   :  { %3744 = vmatprep.mubr.bf16.mxu0 %v9166_v19  ;;  %3785 = vmatprep.mubr.bf16.mxu1 %v9166_v19 }
 0x4f8   :  { %3745 = vmatmul.mubr.bf16.vlgmr.msra.gmra.mxu0 %v9075_v13  ;;  %3786 = vmatmul.mubr.bf16.vlgmr.msra.gmra.mxu1 %v9075_v13  ;;  %v11812_v13 = vld [vmem:[#allocation80_spill] sm:$0xff] }
 0x4f9   :  { %3820 = vmatpush1.bf16.msra.mxu0 %v8068_v37  ;;  %3861 = vmatpush1.bf16.msra.mxu1 %v8083_v44 }
 0x4fa   :  { %3821 = vmatprep.subr.bf16.mxu0 %v8072_v25  ;;  %3862 = vmatprep.subr.bf16.mxu1 %v8087_v21 }
 0x4fd   :  { %3822 = vmatpush1.bf16.msra.mxu0 %v8092_v28  ;;  %3863 = vmatpush1.bf16.msra.mxu1 %v8103_v50 }
 0x4fe   :  { %3823 = vmatprep.subr.bf16.mxu0 %v8098_v11  ;;  %3864 = vmatprep.subr.bf16.mxu1 %v8108_v8 }
 0x501   :  { %3824 = vmatpush1.bf16.msra.mxu0 %v8113_v10  ;;  %3865 = vmatpush1.bf16.msra.mxu1 %v8123_v0 }
 0x502   :  { %3825 = vmatprep.subr.bf16.mxu0 %v8118_v18  ;;  %3866 = vmatprep.subr.bf16.mxu1 %v8128_v47 }
 0x505   :  { %3826 = vmatpush1.bf16.msra.mxu0 %v8133_v6  ;;  %3867 = vmatpush1.bf16.msra.mxu1 %v8143_v63 }
 0x506   :  { %3827 = vmatprep.subr.bf16.mxu0 %v11805_v33  ;;  %3868 = vmatprep.subr.bf16.mxu1 %v11806_v40 }
 0x509   :  { %3828 = vmatpush1.bf16.msra.mxu0 %v11807_v41  ;;  %3869 = vmatpush1.bf16.msra.mxu1 %v11808_v34 }
 0x50a   :  { %3829 = vmatprep.subr.bf16.mxu0 %v11809_v22  ;;  %3870 = vmatprep.subr.bf16.mxu1 %v11810_v49 }
 0x50d   :  { %3830 = vmatpush1.bf16.msra.mxu0 %v11811_v62  ;;  %3871 = vmatpush1.bf16.msra.mxu1 %v11812_v13 }
 0x50e   :  { %3831 = vmatprep.subr.bf16.mxu0 %v11813_v43  ;;  %3872 = vmatprep.subr.bf16.mxu1 %v11814_v36 }
 0x511   :  { %3832 = vmatpush1.bf16.msra.mxu0 %v11815_v9  ;;  %3873 = vmatpush1.bf16.msra.mxu1 %v11816_v24 }
 0x512   :  { %3833 = vmatprep.subr.bf16.mxu0 %v11817_v51  ;;  %3874 = vmatprep.subr.bf16.mxu1 %v11818_v27 }
 0x515   :  { %3834 = vmatpush1.bf16.msra.mxu0 %v11819_v30  ;;  %3875 = vmatpush1.bf16.msra.mxu1 %v11820_v7 }
 0x516   :  { %3835 = vmatprep.subr.bf16.mxu0 %v11821_v23  ;;  %3876 = vmatprep.subr.bf16.mxu1 %v11822_v38 }
 0x519   :  { %3836 = vmatpush2.bf16.msra.mxu0 %v11823_v15  ;;  %3877 = vmatpush2.bf16.msra.mxu1 %v11824_v53 }
 0x51a   :  { %3837 = vmatprep.subr.bf16.mxu0 %v11825_v46  ;;  %3878 = vmatprep.subr.bf16.mxu1 %v11826_v45  ;;  %v11858_v45 = vld [vmem:[#allocation151_spill] sm:$0xff] }
 0x51d   :  { %3838 = vmatpush2.bf16.msra.mxu0 %v11827_v29  ;;  %3879 = vmatpush2.bf16.msra.mxu1 %v11828_v55  ;;  %v11857_v55 = vld [vmem:[#allocation150_spill] sm:$0xff] }
 0x51e   :  { %3839 = vmatprep.subr.bf16.mxu0 %v11829_v14  ;;  %3880 = vmatprep.subr.bf16.mxu1 %v11830_v59 }
 0x521   :  { %3840 = vmatpush2.bf16.msra.mxu0 %v11831_v42  ;;  %3881 = vmatpush2.bf16.msra.mxu1 %v11832_v48 }
 0x522   :  { %3841 = vmatprep.subr.bf16.mxu0 %v11833_v3  ;;  %3882 = vmatprep.subr.bf16.mxu1 %v11834_v5  ;;  %v11844_v3 = vld [vmem:[#allocation45_spill] sm:$0xff]  ;;  %v11845_v5 = vld [vmem:[#allocation48_spill] sm:$0xff] }
 0x525   :  { %3842 = vmatpush2.bf16.msra.mxu0 %v11835_v54  ;;  %3883 = vmatpush2.bf16.msra.mxu1 %v11836_v1  ;;  %v11846_v54 = vld [vmem:[#allocation43_spill] sm:$0xff]  ;;  %v11847_v1 = vld [vmem:[#allocation46_spill] sm:$0xff] }
 0x526   :  { %3843 = vmatprep.subr.bf16.mxu0 %v11837_v60  ;;  %3884 = vmatprep.subr.bf16.mxu1 %v11838_v2  ;;  %v11848_v60 = vld [vmem:[#allocation41_spill] sm:$0xff]  ;;  %v11849_v2 = vld [vmem:[#allocation44_spill] sm:$0xff] }
 0x529   :  { %3844 = vmatpush2.bf16.msra.mxu0 %v11839_v12  ;;  %3885 = vmatpush2.bf16.msra.mxu1 %v11840_v20  ;;  %v11850_v12 = vld [vmem:[#allocation39_spill] sm:$0xff]  ;;  %v11851_v20 = vld [vmem:[#allocation42_spill] sm:$0xff] }
 0x52a   :  { %3845 = vmatprep.subr.bf16.mxu0 %v11841_v4  ;;  %3886 = vmatprep.subr.bf16.mxu1 %v11842_v31  ;;  %v11852_v4 = vld [vmem:[#allocation40_spill] sm:$0xff] }
 0x52d   :  { %3846 = vmatpush2.bf16.msra.mxu0 %v11843_v35  ;;  %3887 = vmatpush2.bf16.msra.mxu1 %v11844_v3  ;;  %v9240_v3 = vld [vmem:[%s10978_s2 + $0xe4] ss:$16 sps:$4 sm:$0xff]  }
 0x52e   :  { %3847 = vmatprep.subr.bf16.mxu0 %v11845_v5  ;;  %3888 = vmatprep.subr.bf16.mxu1 %v11846_v54  ;;  %11853 = vst [vmem:[#allocation38_spill] sm:$0xff] %v9240_v3  ;;  %v11856_v35 = vld [vmem:[#allocation149_spill] sm:$0xff] }
 0x531   :  { %3848 = vmatpush2.bf16.msra.mxu0 %v11847_v1  ;;  %3889 = vmatpush2.bf16.msra.mxu1 %v11848_v60  ;;  %v9246_v1 = vld [vmem:[%s10978_s2 + $0xec] ss:$16 sps:$4 sm:$0xff]  }
 0x532   :  { %3849 = vmatprep.subr.bf16.mxu0 %v11849_v2  ;;  %3890 = vmatprep.subr.bf16.mxu1 %v11850_v12  ;;  %11854 = vst [vmem:[#allocation31_spill] sm:$0xff] %v9246_v1  ;;  %v11855_v60 = vld [vmem:[#allocation148_spill] sm:$0xff] }
 0x535   :  { %3850 = vmatpush2.bf16.msra.mxu0 %v11851_v20  ;;  %3891 = vmatpush2.bf16.msra.mxu1 %v11852_v4 }
 0x536   :  { %3930 = vmatprep.subr.bf16.mxu0 %v9240_v3  ;;  %3971 = vmatprep.subr.bf16.mxu1 %v9246_v1 }
 0x558   :  { %v3524_v2 = vpop.f32.mrf.mxu0  ;;  %v3565_v12 = vpop.f32.mrf.mxu1 }
 0x559   :  { %v3525_v20 = vadd.f32 %v3524_v2, %v11855_v60  ;;  %v3566_v1 = vadd.f32 %v3565_v12, %v11858_v45  ;;  %v11860_v12 = vld [vmem:[#allocation91_spill] sm:$0xff] }
 0x55a   :  { %v3526_v54 = vpop.f32.mrf.mxu0  ;;  %v3567_v4 = vpop.f32.mrf.mxu1 }
 0x55b   :  { %v5766_v5 = vmul.f32 -1.442695, %v3525_v20  ;;  %v3527_v31 = vadd.f32 %v3526_v54, %v11856_v35  ;;  %v3568_v29 = vadd.f32 %v3567_v4, %v11857_v55 }
 0x55c   :  { %v3528_v48 = vpop.f32.mrf.mxu0  ;;  %v3569_v42 = vpop.f32.mrf.mxu1 }
 0x55d   :  { %6352 = vpow2.f32 %v5766_v5  ;;  %v5767_v3 = vmul.f32 -1.442695, %v3527_v31  ;;  %v5768_v46 = vmul.f32 -1.442695, %v3568_v29 }
 0x55e   :  { %v3529_v59 = vpop.f32.mrf.mxu0  ;;  %v3570_v14 = vpop.f32.mrf.mxu1 }
 0x55f   :  { %6354 = vpow2.f32 %v5767_v3  ;;  %v11859_v59 = vld [vmem:[#allocation89_spill] sm:$0xff] }
 0x560   :  { %6356 = vtanh.f32 %v3566_v1 }
 0x561   :  { %6358 = vpow2.f32 %v5768_v46 }
 0x56a   :  { %v6353_v53 = vpop.eup %6352 }
 0x56b   :  { %v3575_v15 = vadd.f32 1.0, %v6353_v53 }
 0x56c   :  { %v6355_v2 = vpop.eup %6354 }
 0x56d   :  { %6360 = vrcp.f32 %v3575_v15  ;;  %v3581_v20 = vadd.f32 1.0, %v6355_v2  ;;  %v6357_v48 = vpop.eup %6356 }
 0x56e   :  { %v6359_v54 = vpop.eup %6358 }
 0x56f   :  { %6362 = vrcp.f32 %v3581_v20  ;;  %v3588_v53 = vadd.f32 1.0, %v6359_v54 }
 0x578   :  { %v3635_v42 = vpop.f32.mrf.mxu0  ;;  %v3676_v5 = vpop.f32.mrf.mxu1 }
 0x579   :  { %v3683_v14 = vadd.f32 %v3635_v42, %v11859_v59  ;;  %v11861_v42 = vld [vmem:[#allocation92_spill] sm:$0xff] }
 0x57a   :  { %v6361_v3 = vpop.eup %6360  ;;  %v3637_v31 = vpop.f32.mrf.mxu0 }
 0x57b   :  { %v3678_v4 = vpop.f32.mrf.mxu1  ;;  %v5769_v55 = vmul.f32 -1.442695, %v3683_v14  ;;  %v3684_v29 = vadd.f32 %v3637_v31, %v11860_v12  ;;  %v3592_v46 = vmul.f32 %v6361_v3, %v6357_v48  ;;  %v11862_v14 = vld [vmem:[#allocation90_spill] sm:$0xff] }
 0x57c   :  { %v6363_v45 = vpop.eup %6362  ;;  %v3639_v1 = vpop.f32.mrf.mxu0  ;;  %v3686_v59 = vadd.f32 %v3678_v4, %v11861_v42  ;;  %v3685_v31 = vadd.f32 %v3676_v5, %v11862_v14  ;;  %v9266_v5 = vld [vmem:[%s10978_s2 + $0xe0] ss:$16 sps:$4 sm:$0xff]   ;;  %v9272_v4 = vld [vmem:[%s10978_s2 + $0xe8] ss:$16 sps:$4 sm:$0xff]   ;;  %v9310_v42 = vld [vmem:[%s10978_s2 + $0xac] ss:$16 sps:$4 sm:$0xff]  }
 0x57d   :  { %v3680_v35 = vpop.f32.mrf.mxu1  ;;  %v3591_v15 = vmul.f32 %v6363_v45, %v9033_v26  ;;  %6364 = vpow2.f32 %v5769_v55  ;;  %v5770_v2 = vmul.f32 -1.442695, %v3684_v29  ;;  %v9278_v29 = vld [vmem:[%s10978_s2 + $0xc4] ss:$16 sps:$4 sm:$0xff]  }
 0x57e   :  { %v3640_v20 = vpop.f32.mrf.mxu0  ;;  %v5771_v54 = vmul.f32 -1.442695, %v3686_v59 }
 0x57f   :  { %v3681_v60 = vpop.f32.mrf.mxu1  ;;  %v9256_v38 = vadd.f32 %v3592_v46, %v3591_v15  ;;  %6366 = vpow2.f32 %v5770_v2  ;;  %v9292_v15 = vld [vmem:[%s10978_s2 + $0xc0] ss:$16 sps:$4 sm:$0xff]   ;;  %v9298_v46 = vld [vmem:[%s10978_s2 + $0xc8] ss:$16 sps:$4 sm:$0xff]   ;;  %v9304_v20 = vld [vmem:[%s10978_s2 + $0xa4] ss:$16 sps:$4 sm:$0xff]  }
 0x580   :  { %6368 = vrcp.f32 %v3588_v53 }
 0x581   :  { %6370 = vtanh.f32 %v9256_v38 }
 0x582   :  { %6372 = vtanh.f32 %v3685_v31 }
 0x583   :  { %6374 = vpow2.f32 %v5771_v54 }
 0x58a   :  { %v6365_v12 = vpop.eup %6364 }
 0x58b   :  { %v3690_v35 = vadd.f32 1.0, %v6365_v12  ;;  %v9317_v12 = vld [vmem:[%s10978_s2 + $0xa0] ss:$16 sps:$4 sm:$0xff]  }
 0x58c   :  { %v6367_v26 = vpop.eup %6366 }
 0x58d   :  { %v6369_v45 = vpop.eup %6368  ;;  %6376 = vrcp.f32 %v3690_v35  ;;  %v3696_v55 = vadd.f32 1.0, %v6367_v26  ;;  %v9323_v35 = vld [vmem:[%s10978_s2 + $0xa8] ss:$16 sps:$4 sm:$0xff]   ;;  %v9329_v26 = vld [vmem:[%s10978_s2 + $0x84] ss:$16 sps:$4 sm:$0xff]  }
 0x58e   :  { %v6371_v60 = vpop.eup %6370 }
 0x58f   :  { %6378 = vrcp.f32 %v3696_v55  ;;  %v3595_v48 = vmul.f32 %v6371_v60, %v6369_v45  ;;  %v6373_v53 = vpop.eup %6372  ;;  %v9344_v55 = vld [vmem:[%s10978_s2 + $0x80] ss:$16 sps:$4 sm:$0xff]   ;;  %v9350_v60 = vld [vmem:[%s10978_s2 + $0x88] ss:$16 sps:$4 sm:$0xff]  }
 0x590   :  { %v6375_v1 = vpop.eup %6374  ;;  %11864 = vst [vmem:[#allocation34_spill] sm:$0xff] %v9344_v55  ;;  %11865 = vst [vmem:[#allocation29_spill] sm:$0xff] %v9350_v60 }
 0x591   :  { %v3818_v3 = vpack.c.bf16 %v3595_v48, %v3595_v48  ;;  %v3703_v14 = vadd.f32 1.0, %v6375_v1  ;;  %v9356_v48 = vld [vmem:[%s10978_s2 + $0x64] ss:$16 sps:$4 sm:$0xff]   ;;  %v9374_v1 = vld [vmem:[%s10978_s2 + $0x68] ss:$16 sps:$4 sm:$0xff]  }
 0x592   :  { %11866 = vst [vmem:[#allocation32_spill] sm:$0xff] %v9356_v48  ;;  %11869 = vst [vmem:[#allocation25_spill] sm:$0xff] %v9374_v1 }
 0x593   :  { %3851 = vmatprep.mubr.bf16.mxu0 %v3818_v3  ;;  %3892 = vmatprep.mubr.bf16.mxu1 %v3818_v3  ;;  %6380 = vrcp.f32 %v3703_v14  ;;  %v9362_v3 = vld [vmem:[%s10978_s2 + $0x6c] ss:$16 sps:$4 sm:$0xff]   ;;  %v9392_v14 = vld [vmem:[%s10978_s2 + $0x40] ss:$16 sps:$4 sm:$0xff]  }
 0x594   :  { %3852 = vmatmul.mubr.bf16.vlgmr.msra.gmra.mxu0 %v9166_v19  ;;  %3893 = vmatmul.mubr.bf16.vlgmr.msra.gmra.mxu1 %v9166_v19  ;;  %v9284_v19 = vld [vmem:[%s10978_s2 + $0xcc] ss:$16 sps:$4 sm:$0xff]   ;;  %11867 = vst [vmem:[#allocation27_spill] sm:$0xff] %v9362_v3  ;;  %11872 = vst [vmem:[#allocation26_spill] sm:$0xff] %v9392_v14 }
 0x595   :  { %3931 = vmatpush1.bf16.msra.mxu0 %v9266_v5  ;;  %3972 = vmatpush1.bf16.msra.mxu1 %v9272_v4 }
 0x596   :  { %3932 = vmatprep.subr.bf16.mxu0 %v9278_v29  ;;  %3973 = vmatprep.subr.bf16.mxu1 %v9284_v19 }
 0x597   :  { %3962 = vmatprep.mubr.bf16.mxu0 %v11535_v56  ;;  %4003 = vmatprep.mubr.bf16.mxu1 %v11535_v56 }
 0x599   :  { %3933 = vmatpush1.bf16.msra.mxu0 %v9292_v15  ;;  %3974 = vmatpush1.bf16.msra.mxu1 %v9298_v46 }
 0x59a   :  { %v6377_v2 = vpop.eup %6376  ;;  %3934 = vmatprep.subr.bf16.mxu0 %v9304_v20  ;;  %3975 = vmatprep.subr.bf16.mxu1 %v9310_v42 }
 0x59b   :  { %v3707_v59 = vmul.f32 %v6377_v2, %v6373_v53  ;;  %v9368_v53 = vld [vmem:[%s10978_s2 + $0x60] ss:$16 sps:$4 sm:$0xff]   ;;  %v9380_v2 = vld [vmem:[%s10978_s2 + $0x44] ss:$16 sps:$4 sm:$0xff]  }
 0x59c   :  { %v6379_v31 = vpop.eup %6378  ;;  %11868 = vst [vmem:[#allocation30_spill] sm:$0xff] %v9368_v53  ;;  %11870 = vst [vmem:[#allocation28_spill] sm:$0xff] %v9380_v2 }
 0x59d   :  { %v3706_v54 = vmul.f32 %v6379_v31, %v9055_v52  ;;  %3935 = vmatpush1.bf16.msra.mxu0 %v9317_v12  ;;  %3976 = vmatpush1.bf16.msra.mxu1 %v9323_v35  ;;  %v9335_v52 = vld [vmem:[%s10978_s2 + $0x8c] ss:$16 sps:$4 sm:$0xff]   ;;  %v9398_v31 = vld [vmem:[%s10978_s2 + $0x48] ss:$16 sps:$4 sm:$0xff]  }
 0x59e   :  { %3936 = vmatprep.subr.bf16.mxu0 %v9329_v26  ;;  %11863 = vst [vmem:[#allocation36_spill] sm:$0xff] %v9335_v52  ;;  %3977 = vmatprep.subr.bf16.mxu1 %v9335_v52  ;;  %11873 = vst [vmem:[#allocation21_spill] sm:$0xff] %v9398_v31  ;;  %v9518_v52 = vld [vmem:[%s10980_s4 + $0xa0] ss:$16 sps:$4 sm:$0xff]  }
 0x59f   :  { %v9338_v45 = vadd.f32 %v3707_v59, %v3706_v54  ;;  %v9386_v59 = vld [vmem:[%s10978_s2 + $0x4c] ss:$16 sps:$4 sm:$0xff]   ;;  %v9404_v54 = vld [vmem:[%s10978_s2 + $0x24] ss:$16 sps:$4 sm:$0xff]  }
 0x5a0   :  { %11871 = vst [vmem:[#allocation23_spill] sm:$0xff] %v9386_v59  ;;  %11874 = vst [vmem:[#allocation24_spill] sm:$0xff] %v9404_v54 }
 0x5a1   :  { %6382 = vtanh.f32 %v9338_v45  ;;  %3937 = vmatpush1.bf16.msra.mxu0 %v9344_v55  ;;  %3978 = vmatpush1.bf16.msra.mxu1 %v9350_v60 }
 0x5a2   :  { %3938 = vmatprep.subr.bf16.mxu0 %v9356_v48  ;;  %3979 = vmatprep.subr.bf16.mxu1 %v9362_v3 }
 0x5a5   :  { %3939 = vmatpush1.bf16.msra.mxu0 %v9368_v53  ;;  %3980 = vmatpush1.bf16.msra.mxu1 %v9374_v1  ;;  %v9434_v1 = vld [vmem:[%s10978_s2 + $0xc] ss:$16 sps:$4 sm:$0xff]   ;;  %v9446_v53 = vld [vmem:[%s10978_s2 + $0x8] ss:$16 sps:$4 sm:$0xff]  }
 0x5a6   :  { %3940 = vmatprep.subr.bf16.mxu0 %v9380_v2  ;;  %3981 = vmatprep.subr.bf16.mxu1 %v9386_v59  ;;  %v9410_v59 = vld [vmem:[%s10978_s2 + $0x2c] ss:$16 sps:$4 sm:$0xff]   ;;  %v9416_v2 = vld [vmem:[%s10978_s2 + $0x20] ss:$16 sps:$4 sm:$0xff]   ;;  %11879 = vst [vmem:[#allocation15_spill] sm:$0xff] %v9434_v1  ;;  %11881 = vst [vmem:[#allocation13_spill] sm:$0xff] %v9446_v53 }
 0x5a7   :  { %11875 = vst [vmem:[#allocation19_spill] sm:$0xff] %v9410_v59  ;;  %11876 = vst [vmem:[#allocation22_spill] sm:$0xff] %v9416_v2 }
 0x5a9   :  { %3941 = vmatpush1.bf16.msra.mxu0 %v9392_v14  ;;  %3982 = vmatpush1.bf16.msra.mxu1 %v9398_v31  ;;  %v6381_v14 = vpop.eup %6380  ;;  %v9422_v31 = vld [vmem:[%s10978_s2 + $0x28] ss:$16 sps:$4 sm:$0xff]  }
 0x5aa   :  { %3942 = vmatprep.subr.bf16.mxu0 %v9404_v54  ;;  %3983 = vmatprep.subr.bf16.mxu1 %v9410_v59  ;;  %11877 = vst [vmem:[#allocation17_spill] sm:$0xff] %v9422_v31  ;;  %v9428_v59 = vld [vmem:[%s10978_s2 + $0x4] ss:$16 sps:$4 sm:$0xff]  }
 0x5ab   :  { %11878 = vst [vmem:[#allocation20_spill] sm:$0xff] %v9428_v59 }
 0x5ad   :  { %3943 = vmatpush1.bf16.msra.mxu0 %v9416_v2  ;;  %3984 = vmatpush1.bf16.msra.mxu1 %v9422_v31  ;;  %v9440_v31 = vld [vmem:[%s10978_s2] ss:$16 sps:$4 sm:$0xff]  }
 0x5ae   :  { %v6383_v54 = vpop.eup %6382  ;;  %3944 = vmatprep.subr.bf16.mxu0 %v9428_v59  ;;  %3985 = vmatprep.subr.bf16.mxu1 %v9434_v1  ;;  %11880 = vst [vmem:[#allocation18_spill] sm:$0xff] %v9440_v31 }
 0x5af   :  { %v3710_v2 = vmul.f32 %v6383_v54, %v6381_v14  ;;  %v9454_v14 = vld [vmem:[%s10980_s4 + $0xe4] ss:$16 sps:$4 sm:$0xff]   ;;  %v9460_v54 = vld [vmem:[%s10980_s4 + $0xec] ss:$16 sps:$4 sm:$0xff]  }
 0x5b0   :  { %11882 = vst [vmem:[#allocation16_spill] sm:$0xff] %v9454_v14  ;;  %11883 = vst [vmem:[#allocation11_spill] sm:$0xff] %v9460_v54 }
 0x5b1   :  { %3945 = vmatpush1.bf16.msra.mxu0 %v9440_v31  ;;  %3986 = vmatpush1.bf16.msra.mxu1 %v9446_v53  ;;  %v9449_v59 = vpack.c.bf16 %v3710_v2, %v3710_v2  ;;  %v9468_v2 = vld [vmem:[%s10980_s4 + $0xe0] ss:$16 sps:$4 sm:$0xff]   ;;  %v9486_v53 = vld [vmem:[%s10980_s4 + $0xcc] ss:$16 sps:$4 sm:$0xff]  }
 0x5b2   :  { %4041 = vmatprep.subr.bf16.mxu0 %v9454_v14  ;;  %4082 = vmatprep.subr.bf16.mxu1 %v9460_v54  ;;  %11884 = vst [vmem:[#allocation14_spill] sm:$0xff] %v9468_v2  ;;  %v9474_v14 = vld [vmem:[%s10980_s4 + $0xe8] ss:$16 sps:$4 sm:$0xff]   ;;  %v9480_v54 = vld [vmem:[%s10980_s4 + $0xc4] ss:$16 sps:$4 sm:$0xff]   ;;  %11887 = vst [vmem:[#allocation10_spill] sm:$0xff] %v9486_v53 }
 0x5b3   :  { %11885 = vst [vmem:[#allocation12_spill] sm:$0xff] %v9474_v14  ;;  %11886 = vst [vmem:[#allocation9_spill] sm:$0xff] %v9480_v54 }
 0x5b4   :  { %3963 = vmatmul.mubr.bf16.vlgmr.msra.gmra.mxu0 %v9449_v59  ;;  %4004 = vmatmul.mubr.bf16.vlgmr.msra.gmra.mxu1 %v9449_v59 }
 0x5b5   :  { %4042 = vmatpush1.bf16.msra.mxu0 %v9468_v2  ;;  %4083 = vmatpush1.bf16.msra.mxu1 %v9474_v14  ;;  %v9493_v14 = vld [vmem:[%s10980_s4 + $0xc0] ss:$16 sps:$4 sm:$0xff]  }
 0x5b6   :  { %4043 = vmatprep.subr.bf16.mxu0 %v9480_v54  ;;  %4084 = vmatprep.subr.bf16.mxu1 %v9486_v53  ;;  %11888 = vst [vmem:[#allocation7_spill] sm:$0xff] %v9493_v14  ;;  %v9499_v54 = vld [vmem:[%s10980_s4 + $0xc8] ss:$16 sps:$4 sm:$0xff]   ;;  %v9505_v53 = vld [vmem:[%s10980_s4 + $0xa4] ss:$16 sps:$4 sm:$0xff]  }
 0x5b7   :  { %11889 = vst [vmem:[#allocation8_spill] sm:$0xff] %v9499_v54  ;;  %11890 = vst [vmem:[#allocation105_spill] sm:$0xff] %v9505_v53 }
 0x5b8   :  { %v3746_v2 = vpop.f32.mrf.mxu0  ;;  %v3787_v31 = vpop.f32.mrf.mxu1 }
 0x5b9   :  { %v3747_v1 = vadd.f32 %v3746_v2, %v9087_v16  ;;  %4044 = vmatpush1.bf16.msra.mxu0 %v9493_v14  ;;  %4085 = vmatpush1.bf16.msra.mxu1 %v9499_v54  ;;  %v9511_v2 = vld [vmem:[%s10980_s4 + $0xac] ss:$16 sps:$4 sm:$0xff]  }
 0x5ba   :  { %v3748_v3 = vpop.f32.mrf.mxu0  ;;  %4045 = vmatprep.subr.bf16.mxu0 %v9505_v53  ;;  %4086 = vmatprep.subr.bf16.mxu1 %v9511_v2  ;;  %v3789_v14 = vpop.f32.mrf.mxu1  ;;  %v9524_v53 = vld [vmem:[%s10980_s4 + $0xa8] ss:$16 sps:$4 sm:$0xff]  }
 0x5bb   :  { %v5772_v16 = vmul.f32 -1.442695, %v3747_v1  ;;  %v3749_v48 = vadd.f32 %v3748_v3, %v9093_v61  ;;  %v9542_v1 = vld [vmem:[%s10980_s4 + $0x80] ss:$16 sps:$4 sm:$0xff]  }
 0x5bc   :  { %v3750_v54 = vpop.f32.mrf.mxu0  ;;  %v3791_v60 = vpop.f32.mrf.mxu1  ;;  %11892 = vst [vmem:[#allocation106_spill] sm:$0xff] %v9542_v1 }
 0x5bd   :  { %6384 = vpow2.f32 %v5772_v16  ;;  %v5773_v55 = vmul.f32 -1.442695, %v3749_v48  ;;  %4046 = vmatpush1.bf16.msra.mxu0 %v9518_v52  ;;  %4087 = vmatpush1.bf16.msra.mxu1 %v9524_v53  ;;  %v9530_v60 = vld [vmem:[%s10980_s4 + $0x84] ss:$16 sps:$4 sm:$0xff]   ;;  %v9536_v16 = vld [vmem:[%s10980_s4 + $0x8c] ss:$16 sps:$4 sm:$0xff]  }
 0x5be   :  { %4047 = vmatprep.subr.bf16.mxu0 %v9530_v60  ;;  %11891 = vst [vmem:[#allocation107_spill] sm:$0xff] %v9536_v16  ;;  %4088 = vmatprep.subr.bf16.mxu1 %v9536_v16  ;;  %v3751_v48 = vpop.f32.mrf.mxu0  ;;  %v3792_v3 = vpop.f32.mrf.mxu1  ;;  %v9548_v54 = vld [vmem:[%s10980_s4 + $0x88] ss:$16 sps:$4 sm:$0xff]   ;;  %v9713_v16 = vld [vmem:[%s10980_s4 + $0x1a0] ss:$16 sps:$4 sm:$0xff]  }
 0x5bf   :  { %6386 = vpow2.f32 %v5773_v55  ;;  %11893 = vst [vmem:[#allocation108_spill] sm:$0xff] %v9548_v54  ;;  %v9554_v48 = vld [vmem:[%s10980_s4 + $0x64] ss:$16 sps:$4 sm:$0xff]   ;;  %v9560_v55 = vld [vmem:[%s10980_s4 + $0x6c] ss:$16 sps:$4 sm:$0xff]   ;;  %v3790_v3 = vadd.f32 %v3789_v14, %v9106_v32 }
 0x5c0   :  { %11894 = vst [vmem:[#allocation109_spill] sm:$0xff] %v9554_v48  ;;  %11895 = vst [vmem:[#allocation111_spill] sm:$0xff] %v9560_v55  ;;  %v9585_v14 = vld [vmem:[%s10980_s4 + $0x4c] ss:$16 sps:$4 sm:$0xff]  }
 0x5c1   :  { %4048 = vmatpush1.bf16.msra.mxu0 %v9542_v1  ;;  %4089 = vmatpush1.bf16.msra.mxu1 %v9548_v54  ;;  %v9567_v54 = vld [vmem:[%s10980_s4 + $0x60] ss:$16 sps:$4 sm:$0xff]   ;;  %11899 = vst [vmem:[#allocation115_spill] sm:$0xff] %v9585_v14  ;;  %v5774_v32 = vmul.f32 -1.442695, %v3790_v3 }
 0x5c2   :  { %4049 = vmatprep.subr.bf16.mxu0 %v9554_v48  ;;  %4090 = vmatprep.subr.bf16.mxu1 %v9560_v55  ;;  %11896 = vst [vmem:[#allocation110_spill] sm:$0xff] %v9567_v54  ;;  %v9573_v48 = vld [vmem:[%s10980_s4 + $0x68] ss:$16 sps:$4 sm:$0xff]   ;;  %v9579_v55 = vld [vmem:[%s10980_s4 + $0x44] ss:$16 sps:$4 sm:$0xff]  }
 0x5c3   :  { %11897 = vst [vmem:[#allocation112_spill] sm:$0xff] %v9573_v48  ;;  %11898 = vst [vmem:[#allocation113_spill] sm:$0xff] %v9579_v55  ;;  %v9610_v3 = vld [vmem:[%s10980_s4 + $0x2c] ss:$16 sps:$4 sm:$0xff]  }
 0x5c4   :  { %11903 = vst [vmem:[#allocation119_spill] sm:$0xff] %v9610_v3 }
 0x5c5   :  { %4050 = vmatpush1.bf16.msra.mxu0 %v9567_v54  ;;  %4091 = vmatpush1.bf16.msra.mxu1 %v9573_v48  ;;  %v3788_v54 = vadd.f32 %v3787_v31, %v9112_v17  ;;  %v9592_v48 = vld [vmem:[%s10980_s4 + $0x40] ss:$16 sps:$4 sm:$0xff]   ;;  %v9604_v31 = vld [vmem:[%s10980_s4 + $0x24] ss:$16 sps:$4 sm:$0xff]  }
 0x5c6   :  { %4051 = vmatprep.subr.bf16.mxu0 %v9579_v55  ;;  %4092 = vmatprep.subr.bf16.mxu1 %v9585_v14  ;;  %11900 = vst [vmem:[#allocation114_spill] sm:$0xff] %v9592_v48  ;;  %v9598_v55 = vld [vmem:[%s10980_s4 + $0x48] ss:$16 sps:$4 sm:$0xff]   ;;  %11902 = vst [vmem:[#allocation117_spill] sm:$0xff] %v9604_v31 }
 0x5c7   :  { %11901 = vst [vmem:[#allocation116_spill] sm:$0xff] %v9598_v55  ;;  %6388 = vtanh.f32 %v3788_v54  ;;  %v9616_v54 = vld [vmem:[%s10980_s4 + $0x20] ss:$16 sps:$4 sm:$0xff]  }
 0x5c8   :  { %6390 = vpow2.f32 %v5774_v32  ;;  %11904 = vst [vmem:[#allocation118_spill] sm:$0xff] %v9616_v54  ;;  %v9628_v32 = vld [vmem:[%s10980_s4 + $0x4] ss:$16 sps:$4 sm:$0xff]  }
 0x5c9   :  { %4052 = vmatpush1.bf16.msra.mxu0 %v9592_v48  ;;  %4093 = vmatpush1.bf16.msra.mxu1 %v9598_v55  ;;  %11906 = vst [vmem:[#allocation121_spill] sm:$0xff] %v9628_v32 }
 0x5ca   :  { %v6385_v1 = vpop.eup %6384  ;;  %4053 = vmatprep.subr.bf16.mxu0 %v9604_v31  ;;  %4094 = vmatprep.subr.bf16.mxu1 %v9610_v3  ;;  %v9622_v31 = vld [vmem:[%s10980_s4 + $0x28] ss:$16 sps:$4 sm:$0xff]  }
 0x5cb   :  { %v3797_v17 = vadd.f32 1.0, %v6385_v1  ;;  %11905 = vst [vmem:[#allocation120_spill] sm:$0xff] %v9622_v31  ;;  %v9640_v1 = vld [vmem:[%s10980_s4] ss:$16 sps:$4 sm:$0xff]  }
 0x5cc   :  { %v6387_v48 = vpop.eup %6386  ;;  %11908 = vst [vmem:[#allocation122_spill] sm:$0xff] %v9640_v1 }
 0x5cd   :  { %6392 = vrcp.f32 %v3797_v17  ;;  %v3803_v55 = vadd.f32 1.0, %v6387_v48  ;;  %4054 = vmatpush1.bf16.msra.mxu0 %v9616_v54  ;;  %4095 = vmatpush1.bf16.msra.mxu1 %v9622_v31  ;;  %v9634_v17 = vld [vmem:[%s10980_s4 + $0xc] ss:$16 sps:$4 sm:$0xff]   ;;  %v9646_v48 = vld [vmem:[%s10980_s4 + $0x8] ss:$16 sps:$4 sm:$0xff]  }
 0x5ce   :  { %4055 = vmatprep.subr.bf16.mxu0 %v9628_v32  ;;  %11907 = vst [vmem:[#allocation123_spill] sm:$0xff] %v9634_v17  ;;  %4096 = vmatprep.subr.bf16.mxu1 %v9634_v17  ;;  %11909 = vst [vmem:[#allocation124_spill] sm:$0xff] %v9646_v48  ;;  %v9652_v32 = vld [vmem:[%s10980_s4 + $0x1e4] ss:$16 sps:$4 sm:$0xff]   ;;  %v9706_v54 = vld [vmem:[%s10980_s4 + $0x1ac] ss:$16 sps:$4 sm:$0xff]  }
 0x5cf   :  { %6394 = vrcp.f32 %v3803_v55  ;;  %11910 = vst [vmem:[#allocation125_spill] sm:$0xff] %v9652_v32  ;;  %v9658_v55 = vld [vmem:[%s10980_s4 + $0x1ec] ss:$16 sps:$4 sm:$0xff]  }
 0x5d0   :  { %11911 = vst [vmem:[#allocation127_spill] sm:$0xff] %v9658_v55 }
 0x5d1   :  { %4056 = vmatpush1.bf16.msra.mxu0 %v9640_v1  ;;  %4097 = vmatpush1.bf16.msra.mxu1 %v9646_v48  ;;  %v9664_v1 = vld [vmem:[%s10980_s4 + $0x1e0] ss:$16 sps:$4 sm:$0xff]   ;;  %v9670_v48 = vld [vmem:[%s10980_s4 + $0x1e8] ss:$16 sps:$4 sm:$0xff]  }
 0x5d2   :  { %4057 = vmatprep.subr.bf16.mxu0 %v9652_v32  ;;  %4098 = vmatprep.subr.bf16.mxu1 %v9658_v55  ;;  %11912 = vst [vmem:[#allocation126_spill] sm:$0xff] %v9664_v1  ;;  %11913 = vst [vmem:[#allocation128_spill] sm:$0xff] %v9670_v48  ;;  %v9676_v32 = vld [vmem:[%s10980_s4 + $0x1c4] ss:$16 sps:$4 sm:$0xff]   ;;  %v9682_v55 = vld [vmem:[%s10980_s4 + $0x1cc] ss:$16 sps:$4 sm:$0xff]  }
 0x5d3   :  { %11914 = vst [vmem:[#allocation129_spill] sm:$0xff] %v9676_v32  ;;  %11915 = vst [vmem:[#allocation131_spill] sm:$0xff] %v9682_v55 }
 0x5d5   :  { %4058 = vmatpush2.bf16.msra.mxu0 %v9664_v1  ;;  %4099 = vmatpush2.bf16.msra.mxu1 %v9670_v48  ;;  %v6389_v1 = vpop.eup %6388  ;;  %v9688_v48 = vld [vmem:[%s10980_s4 + $0x1c0] ss:$16 sps:$4 sm:$0xff]  }
 0x5d6   :  { %4059 = vmatprep.subr.bf16.mxu0 %v9676_v32  ;;  %4100 = vmatprep.subr.bf16.mxu1 %v9682_v55  ;;  %v6391_v17 = vpop.eup %6390  ;;  %11916 = vst [vmem:[#allocation130_spill] sm:$0xff] %v9688_v48  ;;  %v9694_v32 = vld [vmem:[%s10980_s4 + $0x1c8] ss:$16 sps:$4 sm:$0xff]   ;;  %v9700_v55 = vld [vmem:[%s10980_s4 + $0x1a4] ss:$16 sps:$4 sm:$0xff]  }
 0x5d7   :  { %11917 = vst [vmem:[#allocation132_spill] sm:$0xff] %v9694_v32  ;;  %11918 = vst [vmem:[#allocation71_spill] sm:$0xff] %v9700_v55  ;;  %v3810_v3 = vadd.f32 1.0, %v6391_v17  ;;  %v9740_v17 = vld [vmem:[%s10980_s4 + $0x180] ss:$16 sps:$4 sm:$0xff]  }
 0x5d8   :  { %11921 = vst [vmem:[#allocation134_spill] sm:$0xff] %v9740_v17 }
 0x5d9   :  { %4060 = vmatpush2.bf16.msra.mxu0 %v9688_v48  ;;  %4101 = vmatpush2.bf16.msra.mxu1 %v9694_v32  ;;  %6396 = vrcp.f32 %v3810_v3  ;;  %v9752_v3 = vld [vmem:[%s10980_s4 + $0x164] ss:$16 sps:$4 sm:$0xff]  }
 0x5da   :  { %v6393_v31 = vpop.eup %6392  ;;  %4061 = vmatprep.subr.bf16.mxu0 %v9700_v55  ;;  %4102 = vmatprep.subr.bf16.mxu1 %v9706_v54  ;;  %v9719_v55 = vld [vmem:[%s10980_s4 + $0x1a8] ss:$16 sps:$4 sm:$0xff]   ;;  %11923 = vst [vmem:[#allocation137_spill] sm:$0xff] %v9752_v3 }
 0x5db   :  { %v3814_v48 = vmul.f32 %v6393_v31, %v6389_v1  ;;  %v9725_v31 = vld [vmem:[%s10980_s4 + $0x184] ss:$16 sps:$4 sm:$0xff]   ;;  %v9746_v1 = vld [vmem:[%s10980_s4 + $0x188] ss:$16 sps:$4 sm:$0xff]  }
 0x5dc   :  { %v6395_v14 = vpop.eup %6394  ;;  %11919 = vst [vmem:[#allocation133_spill] sm:$0xff] %v9725_v31  ;;  %11922 = vst [vmem:[#allocation136_spill] sm:$0xff] %v9746_v1 }
 0x5dd   :  { %v3813_v32 = vmul.f32 %v6395_v14, %v9146_v39  ;;  %4062 = vmatpush2.bf16.msra.mxu0 %v9713_v16  ;;  %4103 = vmatpush2.bf16.msra.mxu1 %v9719_v55  ;;  %v9731_v39 = vld [vmem:[%s10980_s4 + $0x18c] ss:$16 sps:$4 sm:$0xff]  }
 0x5de   :  { %4063 = vmatprep.subr.bf16.mxu0 %v9725_v31  ;;  %11920 = vst [vmem:[#allocation135_spill] sm:$0xff] %v9731_v39  ;;  %4104 = vmatprep.subr.bf16.mxu1 %v9731_v39  ;;  %v9830_v39 = vld [vmem:[%s10980_s4 + $0x10c] ss:$16 sps:$4 sm:$0xff]   ;;  %v9842_v31 = vld [vmem:[%s10980_s4 + $0x108] ss:$16 sps:$4 sm:$0xff]  }
 0x5df   :  { %v9734_v14 = vadd.f32 %v3814_v48, %v3813_v32  ;;  %v9758_v32 = vld [vmem:[%s10980_s4 + $0x16c] ss:$16 sps:$4 sm:$0xff]   ;;  %v9764_v48 = vld [vmem:[%s10980_s4 + $0x160] ss:$16 sps:$4 sm:$0xff]  }
 0x5e0   :  { %11924 = vst [vmem:[#allocation139_spill] sm:$0xff] %v9758_v32  ;;  %11925 = vst [vmem:[#allocation138_spill] sm:$0xff] %v9764_v48 }
 0x5e1   :  { %6398 = vtanh.f32 %v9734_v14  ;;  %4064 = vmatpush2.bf16.msra.mxu0 %v9740_v17  ;;  %4105 = vmatpush2.bf16.msra.mxu1 %v9746_v1  ;;  %v9770_v1 = vld [vmem:[%s10980_s4 + $0x168] ss:$16 sps:$4 sm:$0xff]   ;;  %v9812_v17 = vld [vmem:[%s10980_s4 + $0x120] ss:$16 sps:$4 sm:$0xff]  }
 0x5e2   :  { %4065 = vmatprep.subr.bf16.mxu0 %v9752_v3  ;;  %4106 = vmatprep.subr.bf16.mxu1 %v9758_v32  ;;  %11926 = vst [vmem:[#allocation140_spill] sm:$0xff] %v9770_v1  ;;  %v9776_v3 = vld [vmem:[%s10980_s4 + $0x144] ss:$16 sps:$4 sm:$0xff]   ;;  %v9782_v32 = vld [vmem:[%s10980_s4 + $0x14c] ss:$16 sps:$4 sm:$0xff]   ;;  %11933 = vst [vmem:[#allocation147_spill] sm:$0xff] %v9812_v17 }
 0x5e3   :  { %11927 = vst [vmem:[#allocation141_spill] sm:$0xff] %v9776_v3  ;;  %11928 = vst [vmem:[#allocation143_spill] sm:$0xff] %v9782_v32 }
 0x5e5   :  { %4066 = vmatpush2.bf16.msra.mxu0 %v9764_v48  ;;  %4107 = vmatpush2.bf16.msra.mxu1 %v9770_v1  ;;  %v9788_v48 = vld [vmem:[%s10980_s4 + $0x140] ss:$16 sps:$4 sm:$0xff]   ;;  %v9794_v1 = vld [vmem:[%s10980_s4 + $0x148] ss:$16 sps:$4 sm:$0xff]  }
 0x5e6   :  { %4067 = vmatprep.subr.bf16.mxu0 %v9776_v3  ;;  %4108 = vmatprep.subr.bf16.mxu1 %v9782_v32  ;;  %11929 = vst [vmem:[#allocation142_spill] sm:$0xff] %v9788_v48  ;;  %11930 = vst [vmem:[#allocation144_spill] sm:$0xff] %v9794_v1  ;;  %v9800_v3 = vld [vmem:[%s10980_s4 + $0x124] ss:$16 sps:$4 sm:$0xff]   ;;  %v9806_v32 = vld [vmem:[%s10980_s4 + $0x12c] ss:$16 sps:$4 sm:$0xff]  }
 0x5e7   :  { %11931 = vst [vmem:[#allocation145_spill] sm:$0xff] %v9800_v3  ;;  %11932 = vst [vmem:[#allocation146_spill] sm:$0xff] %v9806_v32 }
 0x5e9   :  { %4068 = vmatpush2.bf16.msra.mxu0 %v9788_v48  ;;  %4109 = vmatpush2.bf16.msra.mxu1 %v9794_v1  ;;  %v6397_v48 = vpop.eup %6396  ;;  %v9818_v1 = vld [vmem:[%s10980_s4 + $0x128] ss:$16 sps:$4 sm:$0xff]  }
 0x5ea   :  { %4069 = vmatprep.subr.bf16.mxu0 %v9800_v3  ;;  %4110 = vmatprep.subr.bf16.mxu1 %v9806_v32  ;;  %11934 = vst [vmem:[#allocation89_spill] sm:$0xff] %v9818_v1  ;;  %v9824_v32 = vld [vmem:[%s10980_s4 + $0x104] ss:$16 sps:$4 sm:$0xff]  }
 0x5eb   :  { %11935 = vst [vmem:[#allocation91_spill] sm:$0xff] %v9824_v32 }
 0x5ed   :  { %4070 = vmatpush2.bf16.msra.mxu0 %v9812_v17  ;;  %4111 = vmatpush2.bf16.msra.mxu1 %v9818_v1  ;;  %v9836_v1 = vld [vmem:[%s10980_s4 + $0x100] ss:$16 sps:$4 sm:$0xff]  }
 0x5ee   :  { %v6399_v3 = vpop.eup %6398  ;;  %4071 = vmatprep.subr.bf16.mxu0 %v9824_v32  ;;  %4112 = vmatprep.subr.bf16.mxu1 %v9830_v39 }
 0x5ef   :  { %v3817_v17 = vmul.f32 %v6399_v3, %v6397_v48  ;;  %v11938_v3 = vld [vmem:[#allocation65_spill] sm:$0xff]  ;;  %v11939_v48 = vld [vmem:[#allocation68_spill] sm:$0xff] }
 0x5f1   :  { %4072 = vmatpush2.bf16.msra.mxu0 %v9836_v1  ;;  %4113 = vmatpush2.bf16.msra.mxu1 %v9842_v31  ;;  %v9845_v32 = vpack.c.bf16 %v3817_v17, %v3817_v17  ;;  %v11937_v17 = vld [vmem:[#allocation70_spill] sm:$0xff] }
 0x5f2   :  { %4148 = vmatprep.subr.bf16.mxu0 %v8064_v57  ;;  %4189 = vmatprep.subr.bf16.mxu1 %v8077_v58 }
 0x5f3   :  { %4073 = vmatprep.mubr.bf16.mxu0 %v9845_v32  ;;  %4114 = vmatprep.mubr.bf16.mxu1 %v9845_v32 }
 0x5f4   :  { %4074 = vmatmul.mubr.bf16.vlgmr.msra.gmra.mxu0 %v9449_v59  ;;  %4115 = vmatmul.mubr.bf16.vlgmr.msra.gmra.mxu1 %v9449_v59  ;;  %v11936_v59 = vld [vmem:[#allocation67_spill] sm:$0xff] }
 0x5f5   :  { %4149 = vmatpush1.bf16.msra.mxu0 %v8068_v37  ;;  %4190 = vmatpush1.bf16.msra.mxu1 %v8083_v44 }
 0x5f6   :  { %4150 = vmatprep.subr.bf16.mxu0 %v8072_v25  ;;  %4191 = vmatprep.subr.bf16.mxu1 %v8087_v21 }
 0x5f9   :  { %4151 = vmatpush1.bf16.msra.mxu0 %v8092_v28  ;;  %4192 = vmatpush1.bf16.msra.mxu1 %v8103_v50 }
 0x5fa   :  { %4152 = vmatprep.subr.bf16.mxu0 %v8098_v11  ;;  %4193 = vmatprep.subr.bf16.mxu1 %v8108_v8 }
 0x5fd   :  { %4153 = vmatpush1.bf16.msra.mxu0 %v8113_v10  ;;  %4194 = vmatpush1.bf16.msra.mxu1 %v8123_v0 }
 0x5fe   :  { %4154 = vmatprep.subr.bf16.mxu0 %v8118_v18  ;;  %4195 = vmatprep.subr.bf16.mxu1 %v8128_v47 }
 0x601   :  { %4155 = vmatpush1.bf16.msra.mxu0 %v8133_v6  ;;  %4196 = vmatpush1.bf16.msra.mxu1 %v8143_v63 }
 0x602   :  { %4156 = vmatprep.subr.bf16.mxu0 %v11805_v33  ;;  %4197 = vmatprep.subr.bf16.mxu1 %v11806_v40 }
 0x605   :  { %4157 = vmatpush1.bf16.msra.mxu0 %v11807_v41  ;;  %4198 = vmatpush1.bf16.msra.mxu1 %v11808_v34  ;;  %v11972_v41 = vld [vmem:[#allocation151_spill] sm:$0xff] }
 0x606   :  { %4158 = vmatprep.subr.bf16.mxu0 %v11809_v22  ;;  %4199 = vmatprep.subr.bf16.mxu1 %v11810_v49 }
 0x609   :  { %4159 = vmatpush1.bf16.msra.mxu0 %v11811_v62  ;;  %4200 = vmatpush1.bf16.msra.mxu1 %v11812_v13 }
 0x60a   :  { %4160 = vmatprep.subr.bf16.mxu0 %v11813_v43  ;;  %4201 = vmatprep.subr.bf16.mxu1 %v11814_v36  ;;  %v11969_v36 = vld [vmem:[#allocation148_spill] sm:$0xff] }
 0x60d   :  { %4161 = vmatpush1.bf16.msra.mxu0 %v11815_v9  ;;  %4202 = vmatpush1.bf16.msra.mxu1 %v11816_v24  ;;  %v11940_v9 = vld [vmem:[#allocation63_spill] sm:$0xff]  ;;  %v11941_v24 = vld [vmem:[#allocation66_spill] sm:$0xff] }
 0x60e   :  { %4162 = vmatprep.subr.bf16.mxu0 %v11817_v51  ;;  %4203 = vmatprep.subr.bf16.mxu1 %v11818_v27  ;;  %v11942_v51 = vld [vmem:[#allocation61_spill] sm:$0xff]  ;;  %v11943_v27 = vld [vmem:[#allocation64_spill] sm:$0xff] }
 0x611   :  { %4163 = vmatpush1.bf16.msra.mxu0 %v11819_v30  ;;  %4204 = vmatpush1.bf16.msra.mxu1 %v11820_v7  ;;  %v11944_v30 = vld [vmem:[#allocation59_spill] sm:$0xff]  ;;  %v11945_v7 = vld [vmem:[#allocation62_spill] sm:$0xff] }
 0x612   :  { %4164 = vmatprep.subr.bf16.mxu0 %v11821_v23  ;;  %4205 = vmatprep.subr.bf16.mxu1 %v11936_v59  ;;  %v11946_v23 = vld [vmem:[#allocation57_spill] sm:$0xff]  ;;  %v11947_v59 = vld [vmem:[#allocation60_spill] sm:$0xff] }
 0x615   :  { %4165 = vmatpush2.bf16.msra.mxu0 %v11937_v17  ;;  %4206 = vmatpush2.bf16.msra.mxu1 %v11938_v3  ;;  %v11948_v17 = vld [vmem:[#allocation55_spill] sm:$0xff]  ;;  %v11949_v3 = vld [vmem:[#allocation58_spill] sm:$0xff] }
 0x616   :  { %4166 = vmatprep.subr.bf16.mxu0 %v11939_v48  ;;  %4207 = vmatprep.subr.bf16.mxu1 %v11940_v9  ;;  %v11950_v48 = vld [vmem:[#allocation53_spill] sm:$0xff]  ;;  %v11951_v9 = vld [vmem:[#allocation56_spill] sm:$0xff] }
 0x619   :  { %4167 = vmatpush2.bf16.msra.mxu0 %v11941_v24  ;;  %4208 = vmatpush2.bf16.msra.mxu1 %v11942_v51  ;;  %v11952_v24 = vld [vmem:[#allocation51_spill] sm:$0xff]  ;;  %v11953_v51 = vld [vmem:[#allocation54_spill] sm:$0xff] }
 0x61a   :  { %4168 = vmatprep.subr.bf16.mxu0 %v11943_v27  ;;  %4209 = vmatprep.subr.bf16.mxu1 %v11944_v30  ;;  %v11954_v27 = vld [vmem:[#allocation49_spill] sm:$0xff]  ;;  %v11955_v30 = vld [vmem:[#allocation52_spill] sm:$0xff] }
 0x61d   :  { %4169 = vmatpush2.bf16.msra.mxu0 %v11945_v7  ;;  %4210 = vmatpush2.bf16.msra.mxu1 %v11946_v23  ;;  %v11956_v7 = vld [vmem:[#allocation47_spill] sm:$0xff]  ;;  %v11957_v23 = vld [vmem:[#allocation50_spill] sm:$0xff] }
 0x61e   :  { %4170 = vmatprep.subr.bf16.mxu0 %v11947_v59  ;;  %4211 = vmatprep.subr.bf16.mxu1 %v11948_v17  ;;  %v11958_v59 = vld [vmem:[#allocation45_spill] sm:$0xff]  ;;  %v11959_v17 = vld [vmem:[#allocation48_spill] sm:$0xff] }
 0x621   :  { %4171 = vmatpush2.bf16.msra.mxu0 %v11949_v3  ;;  %4212 = vmatpush2.bf16.msra.mxu1 %v11950_v48  ;;  %v11960_v3 = vld [vmem:[#allocation43_spill] sm:$0xff]  ;;  %v11961_v48 = vld [vmem:[#allocation46_spill] sm:$0xff] }
 0x622   :  { %4172 = vmatprep.subr.bf16.mxu0 %v11951_v9  ;;  %4213 = vmatprep.subr.bf16.mxu1 %v11952_v24  ;;  %v11962_v9 = vld [vmem:[#allocation41_spill] sm:$0xff]  ;;  %v11963_v24 = vld [vmem:[#allocation44_spill] sm:$0xff] }
 0x625   :  { %4173 = vmatpush2.bf16.msra.mxu0 %v11953_v51  ;;  %4214 = vmatpush2.bf16.msra.mxu1 %v11954_v27  ;;  %v11964_v51 = vld [vmem:[#allocation39_spill] sm:$0xff]  ;;  %v11965_v27 = vld [vmem:[#allocation42_spill] sm:$0xff] }
 0x626   :  { %4174 = vmatprep.subr.bf16.mxu0 %v11955_v30  ;;  %4215 = vmatprep.subr.bf16.mxu1 %v11956_v7  ;;  %v11966_v30 = vld [vmem:[#allocation40_spill] sm:$0xff]  ;;  %v11967_v7 = vld [vmem:[#allocation38_spill] sm:$0xff] }
 0x629   :  { %4175 = vmatpush2.bf16.msra.mxu0 %v11957_v23  ;;  %4216 = vmatpush2.bf16.msra.mxu1 %v11958_v59  ;;  %v11968_v23 = vld [vmem:[#allocation31_spill] sm:$0xff] }
 0x62a   :  { %4176 = vmatprep.subr.bf16.mxu0 %v11959_v17  ;;  %4217 = vmatprep.subr.bf16.mxu1 %v11960_v3 }
 0x62d   :  { %4177 = vmatpush2.bf16.msra.mxu0 %v11961_v48  ;;  %4218 = vmatpush2.bf16.msra.mxu1 %v11962_v9  ;;  %v11970_v9 = vld [vmem:[#allocation149_spill] sm:$0xff] }
 0x62e   :  { %4178 = vmatprep.subr.bf16.mxu0 %v11963_v24  ;;  %4219 = vmatprep.subr.bf16.mxu1 %v11964_v51 }
 0x631   :  { %4179 = vmatpush2.bf16.msra.mxu0 %v11965_v27  ;;  %4220 = vmatpush2.bf16.msra.mxu1 %v11966_v30  ;;  %v11971_v30 = vld [vmem:[#allocation150_spill] sm:$0xff] }
 0x632   :  { %4259 = vmatprep.subr.bf16.mxu0 %v11967_v7  ;;  %4300 = vmatprep.subr.bf16.mxu1 %v11968_v23 }
 0x654   :  { %v3853_v59 = vpop.f32.mrf.mxu0  ;;  %v3894_v17 = vpop.f32.mrf.mxu1 }
 0x655   :  { %v3854_v3 = vadd.f32 %v3853_v59, %v11969_v36  ;;  %v3895_v40 = vadd.f32 %v3894_v17, %v11972_v41 }
 0x656   :  { %v3855_v43 = vpop.f32.mrf.mxu0  ;;  %v3896_v48 = vpop.f32.mrf.mxu1 }
 0x657   :  { %v5775_v13 = vmul.f32 -1.442695, %v3854_v3  ;;  %v3856_v62 = vadd.f32 %v3855_v43, %v11970_v9  ;;  %v3897_v7 = vadd.f32 %v3896_v48, %v11971_v30  ;;  %v11974_v30 = vld [vmem:[#allocation95_spill] sm:$0xff] }
 0x658   :  { %v3857_v24 = vpop.f32.mrf.mxu0  ;;  %v3898_v49 = vpop.f32.mrf.mxu1 }
 0x659   :  { %6400 = vpow2.f32 %v5775_v13  ;;  %v5776_v51 = vmul.f32 -1.442695, %v3856_v62  ;;  %v5777_v34 = vmul.f32 -1.442695, %v3897_v7  ;;  %v11973_v62 = vld [vmem:[#allocation93_spill] sm:$0xff] }
 0x65a   :  { %v3858_v27 = vpop.f32.mrf.mxu0  ;;  %v3899_v22 = vpop.f32.mrf.mxu1 }
 0x65b   :  { %6402 = vpow2.f32 %v5776_v51 }
 0x65c   :  { %6404 = vpow2.f32 %v5777_v34 }
 0x666   :  { %v6401_v23 = vpop.eup %6400 }
 0x667   :  { %v3904_v33 = vadd.f32 1.0, %v6401_v23 }
 0x668   :  { %v6403_v59 = vpop.eup %6402 }
 0x669   :  { %6406 = vrcp.f32 %v3904_v33  ;;  %v3910_v3 = vadd.f32 1.0, %v6403_v59  ;;  %v6405_v13 = vpop.eup %6404 }
 0x66a   :  { %6408 = vtanh.f32 %v3895_v40  ;;  %v3917_v23 = vadd.f32 1.0, %v6405_v13  ;;  %v11976_v13 = vld [vmem:[#allocation94_spill] sm:$0xff] }
 0x66b   :  { %6410 = vrcp.f32 %v3910_v3 }
 0x674   :  { %v3964_v43 = vpop.f32.mrf.mxu0  ;;  %v4005_v49 = vpop.f32.mrf.mxu1 }
 0x675   :  { %v4012_v24 = vadd.f32 %v3964_v43, %v11973_v62  ;;  %v11975_v62 = vld [vmem:[#allocation96_spill] sm:$0xff] }
 0x676   :  { %v6407_v22 = vpop.eup %6406  ;;  %v3966_v51 = vpop.f32.mrf.mxu0 }
 0x677   :  { %v4007_v27 = vpop.f32.mrf.mxu1  ;;  %v6409_v48 = vpop.eup %6408  ;;  %v5778_v7 = vmul.f32 -1.442695, %v4012_v24  ;;  %v4013_v9 = vadd.f32 %v3966_v51, %v11974_v30 }
 0x678   :  { %v6411_v17 = vpop.eup %6410  ;;  %v3968_v41 = vpop.f32.mrf.mxu0  ;;  %v3921_v33 = vmul.f32 %v6409_v48, %v6407_v22  ;;  %v4015_v24 = vadd.f32 %v4007_v27, %v11975_v62 }
 0x679   :  { %v4009_v34 = vpop.f32.mrf.mxu1  ;;  %v3920_v40 = vmul.f32 %v6411_v17, %v9256_v38  ;;  %6412 = vpow2.f32 %v5778_v7  ;;  %v5779_v59 = vmul.f32 -1.442695, %v4013_v9  ;;  %v4014_v41 = vadd.f32 %v4005_v49, %v11976_v13  ;;  %v11980_v17 = vld [vmem:[#allocation32_spill] sm:$0xff] }
 0x67a   :  { %v3969_v3 = vpop.f32.mrf.mxu0  ;;  %v5780_v30 = vmul.f32 -1.442695, %v4015_v24  ;;  %v11990_v24 = vld [vmem:[#allocation22_spill] sm:$0xff]  ;;  %v11992_v13 = vld [vmem:[#allocation20_spill] sm:$0xff] }
 0x67b   :  { %v4010_v36 = vpop.f32.mrf.mxu1  ;;  %6414 = vpow2.f32 %v5779_v59  ;;  %v9924_v43 = vadd.f32 %v3921_v33, %v3920_v40  ;;  %v11986_v33 = vld [vmem:[#allocation26_spill] sm:$0xff]  ;;  %v11987_v40 = vld [vmem:[#allocation21_spill] sm:$0xff]  ;;  %v11988_v59 = vld [vmem:[#allocation24_spill] sm:$0xff] }
 0x67c   :  { %6416 = vrcp.f32 %v3917_v23  ;;  %v11985_v23 = vld [vmem:[#allocation23_spill] sm:$0xff] }
 0x67d   :  { %6418 = vtanh.f32 %v9924_v43  ;;  %v11989_v3 = vld [vmem:[#allocation19_spill] sm:$0xff] }
 0x67e   :  { %6420 = vpow2.f32 %v5780_v30  ;;  %v11991_v30 = vld [vmem:[#allocation17_spill] sm:$0xff] }
 0x686   :  { %v6413_v51 = vpop.eup %6412 }
 0x687   :  { %v4019_v34 = vadd.f32 1.0, %v6413_v51 }
 0x688   :  { %v6415_v22 = vpop.eup %6414 }
 0x689   :  { %v6417_v38 = vpop.eup %6416  ;;  %6422 = vrcp.f32 %v4019_v34  ;;  %v4025_v9 = vadd.f32 1.0, %v6415_v22  ;;  %v11994_v22 = vld [vmem:[#allocation18_spill] sm:$0xff] }
 0x68a   :  { %v6419_v48 = vpop.eup %6418  ;;  %6424 = vtanh.f32 %v4014_v41  ;;  %v11993_v41 = vld [vmem:[#allocation15_spill] sm:$0xff] }
 0x68b   :  { %6426 = vrcp.f32 %v4025_v9  ;;  %v3924_v36 = vmul.f32 %v6419_v48, %v6417_v38  ;;  %v6421_v49 = vpop.eup %6420  ;;  %v11995_v38 = vld [vmem:[#allocation13_spill] sm:$0xff]  ;;  %v11996_v48 = vld [vmem:[#allocation16_spill] sm:$0xff] }
 0x68d   :  { %v4147_v7 = vpack.c.bf16 %v3924_v36, %v3924_v36  ;;  %v11997_v36 = vld [vmem:[#allocation11_spill] sm:$0xff] }
 0x68f   :  { %4180 = vmatprep.mubr.bf16.mxu0 %v4147_v7  ;;  %4221 = vmatprep.mubr.bf16.mxu1 %v4147_v7  ;;  %v11998_v7 = vld [vmem:[#allocation14_spill] sm:$0xff] }
 0x690   :  { %4181 = vmatmul.mubr.bf16.vlgmr.msra.gmra.mxu0 %v9845_v32  ;;  %4222 = vmatmul.mubr.bf16.vlgmr.msra.gmra.mxu1 %v9845_v32  ;;  %v4032_v32 = vadd.f32 1.0, %v6421_v49  ;;  %v11999_v49 = vld [vmem:[#allocation12_spill] sm:$0xff] }
 0x691   :  { %4260 = vmatpush1.bf16.msra.mxu0 %v9266_v5  ;;  %4301 = vmatpush1.bf16.msra.mxu1 %v9272_v4 }
 0x692   :  { %4261 = vmatprep.subr.bf16.mxu0 %v9278_v29  ;;  %4302 = vmatprep.subr.bf16.mxu1 %v9284_v19  ;;  %6428 = vrcp.f32 %v4032_v32 }
 0x693   :  { %4291 = vmatprep.mubr.bf16.mxu0 %v11535_v56  ;;  %4332 = vmatprep.mubr.bf16.mxu1 %v11535_v56 }
 0x695   :  { %4262 = vmatpush1.bf16.msra.mxu0 %v9292_v15  ;;  %4303 = vmatpush1.bf16.msra.mxu1 %v9298_v46  ;;  %v11977_v15 = vld [vmem:[#allocation36_spill] sm:$0xff] }
 0x696   :  { %v6423_v27 = vpop.eup %6422  ;;  %4263 = vmatprep.subr.bf16.mxu0 %v9304_v20  ;;  %4304 = vmatprep.subr.bf16.mxu1 %v9310_v42  ;;  %v11978_v20 = vld [vmem:[#allocation34_spill] sm:$0xff]  ;;  %v11979_v42 = vld [vmem:[#allocation29_spill] sm:$0xff] }
 0x697   :  { %v6425_v5 = vpop.eup %6424 }
 0x698   :  { %v6427_v4 = vpop.eup %6426  ;;  %v4036_v29 = vmul.f32 %v6425_v5, %v6423_v27  ;;  %v12000_v27 = vld [vmem:[#allocation9_spill] sm:$0xff]  ;;  %v12001_v5 = vld [vmem:[#allocation10_spill] sm:$0xff] }
 0x699   :  { %v4035_v19 = vmul.f32 %v6427_v4, %v9338_v45  ;;  %4264 = vmatpush1.bf16.msra.mxu0 %v9317_v12  ;;  %4305 = vmatpush1.bf16.msra.mxu1 %v9323_v35  ;;  %v11981_v45 = vld [vmem:[#allocation27_spill] sm:$0xff]  ;;  %v11982_v12 = vld [vmem:[#allocation30_spill] sm:$0xff]  ;;  %v11983_v35 = vld [vmem:[#allocation25_spill] sm:$0xff] }
 0x69a   :  { %4265 = vmatprep.subr.bf16.mxu0 %v9329_v26  ;;  %4306 = vmatprep.subr.bf16.mxu1 %v11977_v15  ;;  %v11984_v26 = vld [vmem:[#allocation28_spill] sm:$0xff]  ;;  %v12003_v15 = vld [vmem:[#allocation7_spill] sm:$0xff] }
 0x69b   :  { %v9946_v46 = vadd.f32 %v4036_v29, %v4035_v19  ;;  %v12002_v29 = vld [vmem:[#allocation37_spill] sm:$0xff] }
 0x69d   :  { %4266 = vmatpush1.bf16.msra.mxu0 %v11978_v20  ;;  %4307 = vmatpush1.bf16.msra.mxu1 %v11979_v42  ;;  %6430 = vtanh.f32 %v9946_v46  ;;  %v12004_v20 = vld [vmem:[#allocation8_spill] sm:$0xff] }
 0x69e   :  { %4267 = vmatprep.subr.bf16.mxu0 %v11980_v17  ;;  %4308 = vmatprep.subr.bf16.mxu1 %v11981_v45  ;;  %v12005_v45 = vld [vmem:[#allocation105_spill] sm:$0xff] }
 0x69f   :  { %v6429_v62 = vpop.eup %6428 }
 0x6a1   :  { %4268 = vmatpush1.bf16.msra.mxu0 %v11982_v12  ;;  %4309 = vmatpush1.bf16.msra.mxu1 %v11983_v35 }
 0x6a2   :  { %4269 = vmatprep.subr.bf16.mxu0 %v11984_v26  ;;  %4310 = vmatprep.subr.bf16.mxu1 %v11985_v23 }
 0x6a5   :  { %4270 = vmatpush1.bf16.msra.mxu0 %v11986_v33  ;;  %4311 = vmatpush1.bf16.msra.mxu1 %v11987_v40 }
 0x6a6   :  { %4271 = vmatprep.subr.bf16.mxu0 %v11988_v59  ;;  %4312 = vmatprep.subr.bf16.mxu1 %v11989_v3  ;;  %v12006_v3 = vld [vmem:[#allocation107_spill] sm:$0xff] }
 0x6a9   :  { %4272 = vmatpush1.bf16.msra.mxu0 %v11990_v24  ;;  %4313 = vmatpush1.bf16.msra.mxu1 %v11991_v30  ;;  %v12009_v24 = vld [vmem:[#allocation109_spill] sm:$0xff]  ;;  %v12010_v30 = vld [vmem:[#allocation111_spill] sm:$0xff] }
 0x6aa   :  { %v6431_v51 = vpop.eup %6430  ;;  %4273 = vmatprep.subr.bf16.mxu0 %v11992_v13  ;;  %4314 = vmatprep.subr.bf16.mxu1 %v11993_v41  ;;  %v12014_v41 = vld [vmem:[#allocation113_spill] sm:$0xff] }
 0x6ab   :  { %v4039_v34 = vmul.f32 %v6431_v51, %v6429_v62  ;;  %v12007_v62 = vld [vmem:[#allocation106_spill] sm:$0xff]  ;;  %v12011_v51 = vld [vmem:[#allocation35_spill] sm:$0xff] }
 0x6ad   :  { %4274 = vmatpush1.bf16.msra.mxu0 %v11994_v22  ;;  %4315 = vmatpush1.bf16.msra.mxu1 %v11995_v38  ;;  %v9967_v9 = vpack.c.bf16 %v4039_v34, %v4039_v34  ;;  %v12016_v22 = vld [vmem:[#allocation114_spill] sm:$0xff]  ;;  %v12017_v38 = vld [vmem:[#allocation116_spill] sm:$0xff] }
 0x6ae   :  { %4370 = vmatprep.subr.bf16.mxu0 %v11996_v48  ;;  %4411 = vmatprep.subr.bf16.mxu1 %v11997_v36  ;;  %v12018_v36 = vld [vmem:[#allocation33_spill] sm:$0xff] }
 0x6b0   :  { %4292 = vmatmul.mubr.bf16.vlgmr.msra.gmra.mxu0 %v9967_v9  ;;  %4333 = vmatmul.mubr.bf16.vlgmr.msra.gmra.mxu1 %v9967_v9 }
 0x6b1   :  { %4371 = vmatpush1.bf16.msra.mxu0 %v11998_v7  ;;  %4412 = vmatpush1.bf16.msra.mxu1 %v11999_v49  ;;  %v12019_v49 = vld [vmem:[#allocation117_spill] sm:$0xff] }
 0x6b2   :  { %4372 = vmatprep.subr.bf16.mxu0 %v12000_v27  ;;  %4413 = vmatprep.subr.bf16.mxu1 %v12001_v5  ;;  %v12020_v27 = vld [vmem:[#allocation119_spill] sm:$0xff] }
 0x6b4   :  { %v4075_v4 = vpop.f32.mrf.mxu0  ;;  %v4116_v32 = vpop.f32.mrf.mxu1 }
 0x6b5   :  { %v4076_v19 = vadd.f32 %v4075_v4, %v12002_v29  ;;  %4373 = vmatpush1.bf16.msra.mxu0 %v12003_v15  ;;  %4414 = vmatpush1.bf16.msra.mxu1 %v12004_v20  ;;  %v4117_v7 = vadd.f32 %v4116_v32, %v12018_v36  ;;  %v12021_v15 = vld [vmem:[#allocation118_spill] sm:$0xff]  ;;  %v12022_v20 = vld [vmem:[#allocation120_spill] sm:$0xff] }
 0x6b6   :  { %v4077_v42 = vpop.f32.mrf.mxu0  ;;  %v4118_v17 = vpop.f32.mrf.mxu1  ;;  %4374 = vmatprep.subr.bf16.mxu0 %v12005_v45  ;;  %4415 = vmatprep.subr.bf16.mxu1 %v9511_v2  ;;  %v12008_v2 = vld [vmem:[#allocation108_spill] sm:$0xff]  ;;  %v12025_v32 = vld [vmem:[#allocation122_spill] sm:$0xff] }
 0x6b7   :  { %v5781_v12 = vmul.f32 -1.442695, %v4076_v19  ;;  %v4078_v35 = vadd.f32 %v4077_v42, %v9093_v61  ;;  %v4119_v13 = vadd.f32 %v4118_v17, %v12011_v51  ;;  %v12023_v42 = vld [vmem:[#allocation121_spill] sm:$0xff]  ;;  %v12024_v17 = vld [vmem:[#allocation123_spill] sm:$0xff]  ;;  %v12026_v45 = vld [vmem:[#allocation124_spill] sm:$0xff] }
 0x6b8   :  { %v4079_v26 = vpop.f32.mrf.mxu0  ;;  %v4120_v23 = vpop.f32.mrf.mxu1 }
 0x6b9   :  { %6432 = vpow2.f32 %v5781_v12  ;;  %v5782_v33 = vmul.f32 -1.442695, %v4078_v35  ;;  %4375 = vmatpush1.bf16.msra.mxu0 %v9518_v52  ;;  %4416 = vmatpush1.bf16.msra.mxu1 %v9524_v53  ;;  %v12012_v52 = vld [vmem:[#allocation110_spill] sm:$0xff]  ;;  %v12013_v53 = vld [vmem:[#allocation112_spill] sm:$0xff]  ;;  %v5783_v34 = vmul.f32 -1.442695, %v4119_v13 }
 0x6ba   :  { %v4080_v40 = vpop.f32.mrf.mxu0  ;;  %v4121_v59 = vpop.f32.mrf.mxu1  ;;  %4376 = vmatprep.subr.bf16.mxu0 %v9530_v60  ;;  %4417 = vmatprep.subr.bf16.mxu1 %v12006_v3  ;;  %v12015_v60 = vld [vmem:[#allocation115_spill] sm:$0xff]  ;;  %v12027_v12 = vld [vmem:[#allocation125_spill] sm:$0xff]  ;;  %v12029_v26 = vld [vmem:[#allocation126_spill] sm:$0xff] }
 0x6bb   :  { %6434 = vpow2.f32 %v5782_v33  ;;  %v12028_v35 = vld [vmem:[#allocation127_spill] sm:$0xff]  ;;  %v12030_v23 = vld [vmem:[#allocation128_spill] sm:$0xff]  ;;  %v12031_v33 = vld [vmem:[#allocation129_spill] sm:$0xff] }
 0x6bc   :  { %6436 = vpow2.f32 %v5783_v34  ;;  %v12032_v40 = vld [vmem:[#allocation131_spill] sm:$0xff]  ;;  %v12033_v3 = vld [vmem:[#allocation130_spill] sm:$0xff] }
 0x6bd   :  { %4377 = vmatpush1.bf16.msra.mxu0 %v12007_v62  ;;  %4418 = vmatpush1.bf16.msra.mxu1 %v12008_v2  ;;  %v12034_v62 = vld [vmem:[#allocation132_spill] sm:$0xff]  ;;  %v12037_v34 = vld [vmem:[#allocation135_spill] sm:$0xff] }
 0x6be   :  { %4378 = vmatprep.subr.bf16.mxu0 %v12009_v24  ;;  %4419 = vmatprep.subr.bf16.mxu1 %v12010_v30  ;;  %v12035_v24 = vld [vmem:[#allocation71_spill] sm:$0xff] }
 0x6c1   :  { %4379 = vmatpush1.bf16.msra.mxu0 %v12012_v52  ;;  %4420 = vmatpush1.bf16.msra.mxu1 %v12013_v53 }
 0x6c2   :  { %4380 = vmatprep.subr.bf16.mxu0 %v12014_v41  ;;  %4421 = vmatprep.subr.bf16.mxu1 %v12015_v60  ;;  %v12036_v60 = vld [vmem:[#allocation133_spill] sm:$0xff] }
 0x6c5   :  { %4381 = vmatpush1.bf16.msra.mxu0 %v12016_v22  ;;  %4422 = vmatpush1.bf16.msra.mxu1 %v12017_v38  ;;  %v12038_v38 = vld [vmem:[#allocation134_spill] sm:$0xff] }
 0x6c6   :  { %v6433_v48 = vpop.eup %6432  ;;  %4382 = vmatprep.subr.bf16.mxu0 %v12019_v49  ;;  %4423 = vmatprep.subr.bf16.mxu1 %v12020_v27  ;;  %v12045_v49 = vld [vmem:[#allocation143_spill] sm:$0xff]  ;;  %v12046_v27 = vld [vmem:[#allocation142_spill] sm:$0xff] }
 0x6c7   :  { %v4126_v5 = vadd.f32 1.0, %v6433_v48  ;;  %v12040_v48 = vld [vmem:[#allocation137_spill] sm:$0xff] }
 0x6c8   :  { %v6435_v4 = vpop.eup %6434 }
 0x6c9   :  { %6438 = vrcp.f32 %v4126_v5  ;;  %v4132_v19 = vadd.f32 1.0, %v6435_v4  ;;  %4383 = vmatpush1.bf16.msra.mxu0 %v12021_v15  ;;  %4424 = vmatpush1.bf16.msra.mxu1 %v12022_v20  ;;  %v6437_v59 = vpop.eup %6436  ;;  %v12047_v5 = vld [vmem:[#allocation144_spill] sm:$0xff]  ;;  %v12048_v4 = vld [vmem:[#allocation145_spill] sm:$0xff]  ;;  %v12050_v20 = vld [vmem:[#allocation147_spill] sm:$0xff] }
 0x6ca   :  { %6440 = vtanh.f32 %v4117_v7  ;;  %4384 = vmatprep.subr.bf16.mxu0 %v12023_v42  ;;  %4425 = vmatprep.subr.bf16.mxu1 %v12024_v17  ;;  %v4139_v52 = vadd.f32 1.0, %v6437_v59  ;;  %v12044_v7 = vld [vmem:[#allocation141_spill] sm:$0xff] }
 0x6cb   :  { %6442 = vrcp.f32 %v4132_v19  ;;  %v12049_v19 = vld [vmem:[#allocation146_spill] sm:$0xff]  ;;  %v12051_v42 = vld [vmem:[#allocation89_spill] sm:$0xff] }
 0x6cc   :  { %6444 = vrcp.f32 %v4139_v52  ;;  %v12062_v59 = vld [vmem:[#allocation81_spill] sm:$0xff] }
 0x6cd   :  { %4385 = vmatpush1.bf16.msra.mxu0 %v12025_v32  ;;  %4426 = vmatpush1.bf16.msra.mxu1 %v12026_v45  ;;  %v12052_v32 = vld [vmem:[#allocation91_spill] sm:$0xff]  ;;  %v12069_v52 = vld [vmem:[#allocation69_spill] sm:$0xff] }
 0x6ce   :  { %4386 = vmatprep.subr.bf16.mxu0 %v12027_v12  ;;  %4427 = vmatprep.subr.bf16.mxu1 %v12028_v35  ;;  %v12057_v35 = vld [vmem:[#allocation75_spill] sm:$0xff] }
 0x6d1   :  { %4387 = vmatpush2.bf16.msra.mxu0 %v12029_v26  ;;  %4428 = vmatpush2.bf16.msra.mxu1 %v12030_v23  ;;  %v12058_v26 = vld [vmem:[#allocation77_spill] sm:$0xff]  ;;  %v12059_v23 = vld [vmem:[#allocation78_spill] sm:$0xff] }
 0x6d2   :  { %4388 = vmatprep.subr.bf16.mxu0 %v12031_v33  ;;  %4429 = vmatprep.subr.bf16.mxu1 %v12032_v40  ;;  %v12060_v33 = vld [vmem:[#allocation80_spill] sm:$0xff]  ;;  %v12061_v40 = vld [vmem:[#allocation79_spill] sm:$0xff] }
 0x6d5   :  { %4389 = vmatpush2.bf16.msra.mxu0 %v12033_v3  ;;  %4430 = vmatpush2.bf16.msra.mxu1 %v12034_v62  ;;  %v12063_v3 = vld [vmem:[#allocation82_spill] sm:$0xff]  ;;  %v12064_v62 = vld [vmem:[#allocation84_spill] sm:$0xff] }
 0x6d6   :  { %v6439_v2 = vpop.eup %6438  ;;  %4390 = vmatprep.subr.bf16.mxu0 %v12035_v24  ;;  %4431 = vmatprep.subr.bf16.mxu1 %v9706_v54  ;;  %v12039_v54 = vld [vmem:[#allocation136_spill] sm:$0xff]  ;;  %v12066_v24 = vld [vmem:[#allocation85_spill] sm:$0xff] }
 0x6d7   :  { %v6441_v30 = vpop.eup %6440 }
 0x6d8   :  { %v6443_v13 = vpop.eup %6442  ;;  %v4143_v53 = vmul.f32 %v6441_v30, %v6439_v2  ;;  %v12065_v2 = vld [vmem:[#allocation83_spill] sm:$0xff]  ;;  %v12067_v30 = vld [vmem:[#allocation86_spill] sm:$0xff] }
 0x6d9   :  { %v4142_v41 = vmul.f32 %v6443_v13, %v9734_v14  ;;  %4391 = vmatpush2.bf16.msra.mxu0 %v9713_v16  ;;  %4432 = vmatpush2.bf16.msra.mxu1 %v9719_v55  ;;  %v12041_v14 = vld [vmem:[#allocation139_spill] sm:$0xff]  ;;  %v12042_v16 = vld [vmem:[#allocation138_spill] sm:$0xff]  ;;  %v12043_v55 = vld [vmem:[#allocation140_spill] sm:$0xff]  ;;  %v6445_v15 = vpop.eup %6444 }
 0x6da   :  { %4392 = vmatprep.subr.bf16.mxu0 %v12036_v60  ;;  %4433 = vmatprep.subr.bf16.mxu1 %v12037_v34  ;;  %v12068_v13 = vld [vmem:[#allocation87_spill] sm:$0xff]  ;;  %v12072_v60 = vld [vmem:[#allocation65_spill] sm:$0xff]  ;;  %v12073_v34 = vld [vmem:[#allocation68_spill] sm:$0xff] }
 0x6db   :  { %v10022_v22 = vadd.f32 %v4143_v53, %v4142_v41  ;;  %v12070_v53 = vld [vmem:[#allocation67_spill] sm:$0xff]  ;;  %v12071_v41 = vld [vmem:[#allocation70_spill] sm:$0xff] }
 0x6dd   :  { %4393 = vmatpush2.bf16.msra.mxu0 %v12038_v38  ;;  %4434 = vmatpush2.bf16.msra.mxu1 %v12039_v54  ;;  %6446 = vtanh.f32 %v10022_v22  ;;  %v12074_v38 = vld [vmem:[#allocation63_spill] sm:$0xff]  ;;  %v12075_v54 = vld [vmem:[#allocation66_spill] sm:$0xff] }
 0x6de   :  { %4394 = vmatprep.subr.bf16.mxu0 %v12040_v48  ;;  %4435 = vmatprep.subr.bf16.mxu1 %v12041_v14  ;;  %v12076_v48 = vld [vmem:[#allocation61_spill] sm:$0xff]  ;;  %v12077_v14 = vld [vmem:[#allocation64_spill] sm:$0xff] }
 0x6e1   :  { %4395 = vmatpush2.bf16.msra.mxu0 %v12042_v16  ;;  %4436 = vmatpush2.bf16.msra.mxu1 %v12043_v55  ;;  %v12078_v16 = vld [vmem:[#allocation59_spill] sm:$0xff]  ;;  %v12079_v55 = vld [vmem:[#allocation62_spill] sm:$0xff] }
 0x6e2   :  { %4396 = vmatprep.subr.bf16.mxu0 %v12044_v7  ;;  %4437 = vmatprep.subr.bf16.mxu1 %v12045_v49  ;;  %v12080_v7 = vld [vmem:[#allocation57_spill] sm:$0xff]  ;;  %v12081_v49 = vld [vmem:[#allocation60_spill] sm:$0xff] }
 0x6e5   :  { %4397 = vmatpush2.bf16.msra.mxu0 %v12046_v27  ;;  %4438 = vmatpush2.bf16.msra.mxu1 %v12047_v5  ;;  %v12082_v27 = vld [vmem:[#allocation55_spill] sm:$0xff]  ;;  %v12083_v5 = vld [vmem:[#allocation58_spill] sm:$0xff] }
 0x6e6   :  { %4398 = vmatprep.subr.bf16.mxu0 %v12048_v4  ;;  %4439 = vmatprep.subr.bf16.mxu1 %v12049_v19  ;;  %v12084_v4 = vld [vmem:[#allocation53_spill] sm:$0xff]  ;;  %v12085_v19 = vld [vmem:[#allocation56_spill] sm:$0xff] }
 0x6e9   :  { %4399 = vmatpush2.bf16.msra.mxu0 %v12050_v20  ;;  %4440 = vmatpush2.bf16.msra.mxu1 %v12051_v42  ;;  %v12087_v20 = vld [vmem:[#allocation54_spill] sm:$0xff]  ;;  %v12088_v42 = vld [vmem:[#allocation49_spill] sm:$0xff] }
 0x6ea   :  { %v6447_v17 = vpop.eup %6446  ;;  %4400 = vmatprep.subr.bf16.mxu0 %v12052_v32  ;;  %4441 = vmatprep.subr.bf16.mxu1 %v9830_v39  ;;  %v12054_v39 = vld [vmem:[#allocation73_spill] sm:$0xff]  ;;  %v12090_v32 = vld [vmem:[#allocation47_spill] sm:$0xff] }
 0x6eb   :  { %v4146_v45 = vmul.f32 %v6447_v17, %v6445_v15  ;;  %v12086_v15 = vld [vmem:[#allocation51_spill] sm:$0xff]  ;;  %v12089_v17 = vld [vmem:[#allocation52_spill] sm:$0xff] }
 0x6ed   :  { %4401 = vmatpush2.bf16.msra.mxu0 %v9836_v1  ;;  %4442 = vmatpush2.bf16.msra.mxu1 %v9842_v31  ;;  %v10043_v12 = vpack.c.bf16 %v4146_v45, %v4146_v45  ;;  %v12053_v31 = vld [vmem:[#allocation72_spill] sm:$0xff]  ;;  %v12055_v1 = vld [vmem:[#allocation74_spill] sm:$0xff] }
 0x6ee   :  { %4477 = vmatprep.subr.bf16.mxu0 %v8064_v57  ;;  %4518 = vmatprep.subr.bf16.mxu1 %v8077_v58  ;;  %v12091_v45 = vld [vmem:[#allocation50_spill] sm:$0xff] }
 0x6ef   :  { %4402 = vmatprep.mubr.bf16.mxu0 %v10043_v12  ;;  %4443 = vmatprep.mubr.bf16.mxu1 %v10043_v12 }
 0x6f0   :  { %4403 = vmatmul.mubr.bf16.vlgmr.msra.gmra.mxu0 %v9967_v9  ;;  %4444 = vmatmul.mubr.bf16.vlgmr.msra.gmra.mxu1 %v9967_v9  ;;  %v12056_v9 = vld [vmem:[#allocation76_spill] sm:$0xff] }
 0x6f1   :  { %4478 = vmatpush1.bf16.msra.mxu0 %v8068_v37  ;;  %4519 = vmatpush1.bf16.msra.mxu1 %v8083_v44 }
 0x6f2   :  { %4479 = vmatprep.subr.bf16.mxu0 %v8072_v25  ;;  %4520 = vmatprep.subr.bf16.mxu1 %v8087_v21 }
 0x6f5   :  { %4480 = vmatpush1.bf16.msra.mxu0 %v8092_v28  ;;  %4521 = vmatpush1.bf16.msra.mxu1 %v8103_v50 }
 0x6f6   :  { %4481 = vmatprep.subr.bf16.mxu0 %v8098_v11  ;;  %4522 = vmatprep.subr.bf16.mxu1 %v8108_v8 }
 0x6f9   :  { %4482 = vmatpush1.bf16.msra.mxu0 %v8113_v10  ;;  %4523 = vmatpush1.bf16.msra.mxu1 %v8123_v0 }
 0x6fa   :  { %4483 = vmatprep.subr.bf16.mxu0 %v8118_v18  ;;  %4524 = vmatprep.subr.bf16.mxu1 %v8128_v47 }
 0x6fd   :  { %4484 = vmatpush1.bf16.msra.mxu0 %v8133_v6  ;;  %4525 = vmatpush1.bf16.msra.mxu1 %v8143_v63 }
 0x6fe   :  { %4485 = vmatprep.subr.bf16.mxu0 %v12053_v31  ;;  %4526 = vmatprep.subr.bf16.mxu1 %v12054_v39 }
 0x701   :  { %4486 = vmatpush1.bf16.msra.mxu0 %v12055_v1  ;;  %4527 = vmatpush1.bf16.msra.mxu1 %v12056_v9 }
 0x702   :  { %4487 = vmatprep.subr.bf16.mxu0 %v12057_v35  ;;  %4528 = vmatprep.subr.bf16.mxu1 %v12058_v26 }
 0x705   :  { %4488 = vmatpush1.bf16.msra.mxu0 %v12059_v23  ;;  %4529 = vmatpush1.bf16.msra.mxu1 %v12060_v33 }
 0x706   :  { %4489 = vmatprep.subr.bf16.mxu0 %v12061_v40  ;;  %4530 = vmatprep.subr.bf16.mxu1 %v12062_v59 }
 0x709   :  { %4490 = vmatpush1.bf16.msra.mxu0 %v12063_v3  ;;  %4531 = vmatpush1.bf16.msra.mxu1 %v12064_v62 }
 0x70a   :  { %4491 = vmatprep.subr.bf16.mxu0 %v12065_v2  ;;  %4532 = vmatprep.subr.bf16.mxu1 %v12066_v24 }
 0x70d   :  { %4492 = vmatpush1.bf16.msra.mxu0 %v12067_v30  ;;  %4533 = vmatpush1.bf16.msra.mxu1 %v12068_v13 }
 0x70e   :  { %4493 = vmatprep.subr.bf16.mxu0 %v12069_v52  ;;  %4534 = vmatprep.subr.bf16.mxu1 %v12070_v53 }
 0x711   :  { %4494 = vmatpush2.bf16.msra.mxu0 %v12071_v41  ;;  %4535 = vmatpush2.bf16.msra.mxu1 %v12072_v60 }
 0x712   :  { %4495 = vmatprep.subr.bf16.mxu0 %v12073_v34  ;;  %4536 = vmatprep.subr.bf16.mxu1 %v12074_v38  ;;  %v12104_v34 = vld [vmem:[#allocation151_spill] sm:$0xff] }
 0x715   :  { %4496 = vmatpush2.bf16.msra.mxu0 %v12075_v54  ;;  %4537 = vmatpush2.bf16.msra.mxu1 %v12076_v48  ;;  %v12103_v48 = vld [vmem:[#allocation150_spill] sm:$0xff] }
 0x716   :  { %4497 = vmatprep.subr.bf16.mxu0 %v12077_v14  ;;  %4538 = vmatprep.subr.bf16.mxu1 %v12078_v16 }
 0x719   :  { %4498 = vmatpush2.bf16.msra.mxu0 %v12079_v55  ;;  %4539 = vmatpush2.bf16.msra.mxu1 %v12080_v7 }
 0x71a   :  { %4499 = vmatprep.subr.bf16.mxu0 %v12081_v49  ;;  %4540 = vmatprep.subr.bf16.mxu1 %v12082_v27  ;;  %v12092_v49 = vld [vmem:[#allocation45_spill] sm:$0xff]  ;;  %v12093_v27 = vld [vmem:[#allocation48_spill] sm:$0xff] }
 0x71d   :  { %4500 = vmatpush2.bf16.msra.mxu0 %v12083_v5  ;;  %4541 = vmatpush2.bf16.msra.mxu1 %v12084_v4  ;;  %v12094_v5 = vld [vmem:[#allocation43_spill] sm:$0xff]  ;;  %v12095_v4 = vld [vmem:[#allocation46_spill] sm:$0xff] }
 0x71e   :  { %4501 = vmatprep.subr.bf16.mxu0 %v12085_v19  ;;  %4542 = vmatprep.subr.bf16.mxu1 %v12086_v15  ;;  %v12096_v19 = vld [vmem:[#allocation41_spill] sm:$0xff]  ;;  %v12097_v15 = vld [vmem:[#allocation44_spill] sm:$0xff] }
 0x721   :  { %4502 = vmatpush2.bf16.msra.mxu0 %v12087_v20  ;;  %4543 = vmatpush2.bf16.msra.mxu1 %v12088_v42  ;;  %v12098_v20 = vld [vmem:[#allocation39_spill] sm:$0xff]  ;;  %v12099_v42 = vld [vmem:[#allocation42_spill] sm:$0xff] }
 0x722   :  { %4503 = vmatprep.subr.bf16.mxu0 %v12089_v17  ;;  %4544 = vmatprep.subr.bf16.mxu1 %v12090_v32  ;;  %v12100_v17 = vld [vmem:[#allocation40_spill] sm:$0xff] }
 0x725   :  { %4504 = vmatpush2.bf16.msra.mxu0 %v12091_v45  ;;  %4545 = vmatpush2.bf16.msra.mxu1 %v12092_v49  ;;  %v6704_v49 = vld [vmem:[%s10978_s2 + $0xe4] ss:$16 sps:$4 sm:$0xff]  }
 0x726   :  { %4505 = vmatprep.subr.bf16.mxu0 %v12093_v27  ;;  %4546 = vmatprep.subr.bf16.mxu1 %v12094_v5  ;;  %v6705_v5 = vld [vmem:[%s10978_s2 + $0xec] ss:$16 sps:$4 sm:$0xff]  }
 0x727   :  { %v12101_v27 = vld [vmem:[#allocation148_spill] sm:$0xff] }
 0x729   :  { %4506 = vmatpush2.bf16.msra.mxu0 %v12095_v4  ;;  %4547 = vmatpush2.bf16.msra.mxu1 %v12096_v19 }
 0x72a   :  { %4507 = vmatprep.subr.bf16.mxu0 %v12097_v15  ;;  %4548 = vmatprep.subr.bf16.mxu1 %v12098_v20 }
 0x72d   :  { %4508 = vmatpush2.bf16.msra.mxu0 %v12099_v42  ;;  %4549 = vmatpush2.bf16.msra.mxu1 %v12100_v17  ;;  %v12102_v42 = vld [vmem:[#allocation149_spill] sm:$0xff] }
 0x72e   :  { %4588 = vmatprep.subr.bf16.mxu0 %v6704_v49  ;;  %4629 = vmatprep.subr.bf16.mxu1 %v6705_v5 }
 0x750   :  { %v4182_v4 = vpop.f32.mrf.mxu0  ;;  %v4223_v19 = vpop.f32.mrf.mxu1 }
 0x751   :  { %v4183_v15 = vadd.f32 %v4182_v4, %v12101_v27  ;;  %v4224_v60 = vadd.f32 %v4223_v19, %v12104_v34 }
 0x752   :  { %v4184_v45 = vpop.f32.mrf.mxu0  ;;  %v4225_v20 = vpop.f32.mrf.mxu1 }
 0x753   :  { %v5784_v32 = vmul.f32 -1.442695, %v4183_v15  ;;  %v4185_v7 = vadd.f32 %v4184_v45, %v12102_v42  ;;  %v4226_v54 = vadd.f32 %v4225_v20, %v12103_v48  ;;  %v12106_v48 = vld [vmem:[#allocation98_spill] sm:$0xff] }
 0x754   :  { %v4186_v17 = vpop.f32.mrf.mxu0  ;;  %v4227_v55 = vpop.f32.mrf.mxu1 }
 0x755   :  { %6448 = vpow2.f32 %v5784_v32  ;;  %v5785_v16 = vmul.f32 -1.442695, %v4185_v7  ;;  %v5786_v38 = vmul.f32 -1.442695, %v4226_v54  ;;  %v12105_v7 = vld [vmem:[#allocation97_spill] sm:$0xff] }
 0x756   :  { %v4187_v14 = vpop.f32.mrf.mxu0  ;;  %v4228_v49 = vpop.f32.mrf.mxu1 }
 0x757   :  { %6450 = vpow2.f32 %v5785_v16 }
 0x758   :  { %6452 = vpow2.f32 %v5786_v38 }
 0x762   :  { %v6449_v5 = vpop.eup %6448 }
 0x763   :  { %v4233_v41 = vadd.f32 1.0, %v6449_v5 }
 0x764   :  { %v6451_v4 = vpop.eup %6450 }
 0x765   :  { %6454 = vrcp.f32 %v4233_v41  ;;  %v4239_v15 = vadd.f32 1.0, %v6451_v4  ;;  %v6453_v32 = vpop.eup %6452 }
 0x766   :  { %6456 = vtanh.f32 %v4224_v60  ;;  %v4246_v5 = vadd.f32 1.0, %v6453_v32  ;;  %v12108_v32 = vld [vmem:[#allocation100_spill] sm:$0xff] }
 0x767   :  { %6458 = vrcp.f32 %v4239_v15 }
 0x770   :  { %v4293_v17 = vpop.f32.mrf.mxu0  ;;  %v4334_v55 = vpop.f32.mrf.mxu1 }
 0x771   :  { %v4341_v14 = vadd.f32 %v4293_v17, %v12105_v7  ;;  %v12107_v7 = vld [vmem:[#allocation102_spill] sm:$0xff] }
 0x772   :  { %v6455_v45 = vpop.eup %6454  ;;  %v4295_v16 = vpop.f32.mrf.mxu0 }
 0x773   :  { %v4336_v49 = vpop.f32.mrf.mxu1  ;;  %v6457_v20 = vpop.eup %6456  ;;  %v5787_v54 = vmul.f32 -1.442695, %v4341_v14  ;;  %v4342_v42 = vadd.f32 %v4295_v16, %v12106_v48 }
 0x774   :  { %v6459_v19 = vpop.eup %6458  ;;  %v4297_v34 = vpop.f32.mrf.mxu0  ;;  %v4250_v41 = vmul.f32 %v6457_v20, %v6455_v45  ;;  %v4344_v14 = vadd.f32 %v4336_v49, %v12107_v7  ;;  %v6707_v49 = vld [vmem:[%s10978_s2 + $0xe8] ss:$16 sps:$4 sm:$0xff]  }
 0x775   :  { %v4338_v38 = vpop.f32.mrf.mxu1  ;;  %v4249_v60 = vmul.f32 %v6459_v19, %v9924_v43  ;;  %6460 = vpow2.f32 %v5787_v54  ;;  %v5788_v4 = vmul.f32 -1.442695, %v4342_v42  ;;  %v4343_v34 = vadd.f32 %v4334_v55, %v12108_v32  ;;  %v6706_v55 = vld [vmem:[%s10978_s2 + $0xe0] ss:$16 sps:$4 sm:$0xff]   ;;  %v6708_v19 = vld [vmem:[%s10978_s2 + $0xc4] ss:$16 sps:$4 sm:$0xff]  }
 0x776   :  { %v4298_v15 = vpop.f32.mrf.mxu0  ;;  %v5789_v48 = vmul.f32 -1.442695, %v4344_v14 }
 0x777   :  { %v4339_v27 = vpop.f32.mrf.mxu1  ;;  %6462 = vpow2.f32 %v5788_v4  ;;  %v10126_v17 = vadd.f32 %v4250_v41, %v4249_v60  ;;  %v6710_v41 = vld [vmem:[%s10978_s2 + $0xc0] ss:$16 sps:$4 sm:$0xff]   ;;  %v6711_v60 = vld [vmem:[%s10978_s2 + $0xc8] ss:$16 sps:$4 sm:$0xff]   ;;  %v6712_v15 = vld [vmem:[%s10978_s2 + $0xa4] ss:$16 sps:$4 sm:$0xff]  }
 0x778   :  { %6464 = vrcp.f32 %v4246_v5  ;;  %v6709_v5 = vld [vmem:[%s10978_s2 + $0xcc] ss:$16 sps:$4 sm:$0xff]  }
 0x779   :  { %6466 = vtanh.f32 %v10126_v17 }
 0x77a   :  { %6468 = vpow2.f32 %v5789_v48 }
 0x782   :  { %v6461_v16 = vpop.eup %6460 }
 0x783   :  { %v4348_v38 = vadd.f32 1.0, %v6461_v16 }
 0x784   :  { %v6463_v45 = vpop.eup %6462 }
 0x785   :  { %v6465_v43 = vpop.eup %6464  ;;  %6470 = vrcp.f32 %v4348_v38  ;;  %v4354_v42 = vadd.f32 1.0, %v6463_v45  ;;  %v6715_v38 = vld [vmem:[%s10978_s2 + $0xa8] ss:$16 sps:$4 sm:$0xff]   ;;  %v6716_v45 = vld [vmem:[%s10978_s2 + $0x84] ss:$16 sps:$4 sm:$0xff]  }
 0x786   :  { %v6467_v20 = vpop.eup %6466  ;;  %6472 = vtanh.f32 %v4343_v34  ;;  %v6714_v34 = vld [vmem:[%s10978_s2 + $0xa0] ss:$16 sps:$4 sm:$0xff]  }
 0x787   :  { %6474 = vrcp.f32 %v4354_v42  ;;  %v4253_v27 = vmul.f32 %v6467_v20, %v6465_v43  ;;  %v6717_v43 = vld [vmem:[%s10978_s2 + $0x8c] ss:$16 sps:$4 sm:$0xff]   ;;  %v6718_v42 = vld [vmem:[%s10978_s2 + $0x80] ss:$16 sps:$4 sm:$0xff]   ;;  %v6719_v20 = vld [vmem:[%s10978_s2 + $0x88] ss:$16 sps:$4 sm:$0xff]  }
 0x789   :  { %v4476_v54 = vpack.c.bf16 %v4253_v27, %v4253_v27  ;;  %v6720_v27 = vld [vmem:[%s10978_s2 + $0x64] ss:$16 sps:$4 sm:$0xff]  }
 0x78b   :  { %4509 = vmatprep.mubr.bf16.mxu0 %v4476_v54  ;;  %4550 = vmatprep.mubr.bf16.mxu1 %v4476_v54  ;;  %v6721_v54 = vld [vmem:[%s10978_s2 + $0x6c] ss:$16 sps:$4 sm:$0xff]  }
 0x78c   :  { %4510 = vmatmul.mubr.bf16.vlgmr.msra.gmra.mxu0 %v10043_v12  ;;  %4551 = vmatmul.mubr.bf16.vlgmr.msra.gmra.mxu1 %v10043_v12  ;;  %v6469_v12 = vpop.eup %6468 }
 0x78d   :  { %4589 = vmatpush1.bf16.msra.mxu0 %v6706_v55  ;;  %4630 = vmatpush1.bf16.msra.mxu1 %v6707_v49  ;;  %v4361_v48 = vadd.f32 1.0, %v6469_v12  ;;  %v6722_v55 = vld [vmem:[%s10978_s2 + $0x60] ss:$16 sps:$4 sm:$0xff]   ;;  %v6723_v49 = vld [vmem:[%s10978_s2 + $0x68] ss:$16 sps:$4 sm:$0xff]  }
 0x78e   :  { %4590 = vmatprep.subr.bf16.mxu0 %v6708_v19  ;;  %4631 = vmatprep.subr.bf16.mxu1 %v6709_v5  ;;  %v6724_v19 = vld [vmem:[%s10978_s2 + $0x44] ss:$16 sps:$4 sm:$0xff]   ;;  %v6725_v5 = vld [vmem:[%s10978_s2 + $0x4c] ss:$16 sps:$4 sm:$0xff]   ;;  %v6726_v12 = vld [vmem:[%s10978_s2 + $0x40] ss:$16 sps:$4 sm:$0xff]  }
 0x78f   :  { %4620 = vmatprep.mubr.bf16.mxu0 %v11535_v56  ;;  %4661 = vmatprep.mubr.bf16.mxu1 %v11535_v56  ;;  %v6713_v56 = vld [vmem:[%s10978_s2 + $0xac] ss:$16 sps:$4 sm:$0xff]   ;;  %6476 = vrcp.f32 %v4361_v48  ;;  %v6732_v48 = vld [vmem:[%s10978_s2 + $0x4] ss:$16 sps:$4 sm:$0xff]  }
 0x791   :  { %4591 = vmatpush1.bf16.msra.mxu0 %v6710_v41  ;;  %4632 = vmatpush1.bf16.msra.mxu1 %v6711_v60  ;;  %v6727_v41 = vld [vmem:[%s10978_s2 + $0x48] ss:$16 sps:$4 sm:$0xff]   ;;  %v6728_v60 = vld [vmem:[%s10978_s2 + $0x24] ss:$16 sps:$4 sm:$0xff]  }
 0x792   :  { %v6471_v4 = vpop.eup %6470  ;;  %4592 = vmatprep.subr.bf16.mxu0 %v6712_v15  ;;  %4633 = vmatprep.subr.bf16.mxu1 %v6713_v56  ;;  %v6730_v56 = vld [vmem:[%s10978_s2 + $0x20] ss:$16 sps:$4 sm:$0xff]  }
 0x793   :  { %v6473_v7 = vpop.eup %6472 }
 0x794   :  { %v6475_v14 = vpop.eup %6474  ;;  %v4365_v16 = vmul.f32 %v6473_v7, %v6471_v4  ;;  %v6729_v4 = vld [vmem:[%s10978_s2 + $0x2c] ss:$16 sps:$4 sm:$0xff]   ;;  %v6731_v7 = vld [vmem:[%s10978_s2 + $0x28] ss:$16 sps:$4 sm:$0xff]  }
 0x795   :  { %v4364_v32 = vmul.f32 %v6475_v14, %v9946_v46  ;;  %4593 = vmatpush1.bf16.msra.mxu0 %v6714_v34  ;;  %4634 = vmatpush1.bf16.msra.mxu1 %v6715_v38  ;;  %v6734_v34 = vld [vmem:[%s10978_s2] ss:$16 sps:$4 sm:$0xff]   ;;  %v6735_v38 = vld [vmem:[%s10978_s2 + $0x8] ss:$16 sps:$4 sm:$0xff]  }
 0x796   :  { %4594 = vmatprep.subr.bf16.mxu0 %v6716_v45  ;;  %4635 = vmatprep.subr.bf16.mxu1 %v6717_v43  ;;  %v10234_v43 = vld [vmem:[%s10980_s4 + $0xe4] ss:$16 sps:$4 sm:$0xff]  }
 0x797   :  { %v10172_v46 = vadd.f32 %v4365_v16, %v4364_v32  ;;  %v6733_v16 = vld [vmem:[%s10978_s2 + $0xc] ss:$16 sps:$4 sm:$0xff]  }
 0x799   :  { %4595 = vmatpush1.bf16.msra.mxu0 %v6718_v42  ;;  %4636 = vmatpush1.bf16.msra.mxu1 %v6719_v20  ;;  %6478 = vtanh.f32 %v10172_v46  ;;  %v10240_v42 = vld [vmem:[%s10980_s4 + $0xec] ss:$16 sps:$4 sm:$0xff]   ;;  %v10248_v20 = vld [vmem:[%s10980_s4 + $0xe0] ss:$16 sps:$4 sm:$0xff]  }
 0x79a   :  { %4596 = vmatprep.subr.bf16.mxu0 %v6720_v27  ;;  %4637 = vmatprep.subr.bf16.mxu1 %v6721_v54  ;;  %v10254_v27 = vld [vmem:[%s10980_s4 + $0xe8] ss:$16 sps:$4 sm:$0xff]   ;;  %v10260_v54 = vld [vmem:[%s10980_s4 + $0xc4] ss:$16 sps:$4 sm:$0xff]  }
 0x79c   :  { %v6477_v15 = vpop.eup %6476 }
 0x79d   :  { %4597 = vmatpush1.bf16.msra.mxu0 %v6722_v55  ;;  %4638 = vmatpush1.bf16.msra.mxu1 %v6723_v49  ;;  %v10266_v55 = vld [vmem:[%s10980_s4 + $0xcc] ss:$16 sps:$4 sm:$0xff]  }
 0x79e   :  { %4598 = vmatprep.subr.bf16.mxu0 %v6724_v19  ;;  %4639 = vmatprep.subr.bf16.mxu1 %v6725_v5 }
 0x7a1   :  { %4599 = vmatpush1.bf16.msra.mxu0 %v6726_v12  ;;  %4640 = vmatpush1.bf16.msra.mxu1 %v6727_v41  ;;  %v10273_v12 = vld [vmem:[%s10980_s4 + $0xc0] ss:$16 sps:$4 sm:$0xff]   ;;  %v10279_v41 = vld [vmem:[%s10980_s4 + $0xc8] ss:$16 sps:$4 sm:$0xff]  }
 0x7a2   :  { %4600 = vmatprep.subr.bf16.mxu0 %v6728_v60  ;;  %4641 = vmatprep.subr.bf16.mxu1 %v6729_v4 }
 0x7a5   :  { %4601 = vmatpush1.bf16.msra.mxu0 %v6730_v56  ;;  %4642 = vmatpush1.bf16.msra.mxu1 %v6731_v7  ;;  %v10291_v56 = vld [vmem:[%s10980_s4 + $0xac] ss:$16 sps:$4 sm:$0xff]  }
 0x7a6   :  { %v6479_v14 = vpop.eup %6478  ;;  %4602 = vmatprep.subr.bf16.mxu0 %v6732_v48  ;;  %4643 = vmatprep.subr.bf16.mxu1 %v6733_v16 }
 0x7a7   :  { %v4368_v32 = vmul.f32 %v6479_v14, %v6477_v15  ;;  %v10285_v15 = vld [vmem:[%s10980_s4 + $0xa4] ss:$16 sps:$4 sm:$0xff]  }
 0x7a9   :  { %4603 = vmatpush1.bf16.msra.mxu0 %v6734_v34  ;;  %4644 = vmatpush1.bf16.msra.mxu1 %v6735_v38  ;;  %v10229_v45 = vpack.c.bf16 %v4368_v32, %v4368_v32  ;;  %v10298_v34 = vld [vmem:[%s10980_s4 + $0xa0] ss:$16 sps:$4 sm:$0xff]   ;;  %v10304_v38 = vld [vmem:[%s10980_s4 + $0xa8] ss:$16 sps:$4 sm:$0xff]  }
 0x7aa   :  { %4699 = vmatprep.subr.bf16.mxu0 %v10234_v43  ;;  %4740 = vmatprep.subr.bf16.mxu1 %v10240_v42 }
 0x7ac   :  { %4621 = vmatmul.mubr.bf16.vlgmr.msra.gmra.mxu0 %v10229_v45  ;;  %4662 = vmatmul.mubr.bf16.vlgmr.msra.gmra.mxu1 %v10229_v45 }
 0x7ad   :  { %4700 = vmatpush1.bf16.msra.mxu0 %v10248_v20  ;;  %4741 = vmatpush1.bf16.msra.mxu1 %v10254_v27 }
 0x7ae   :  { %4701 = vmatprep.subr.bf16.mxu0 %v10260_v54  ;;  %4742 = vmatprep.subr.bf16.mxu1 %v10266_v55 }
 0x7b0   :  { %v4404_v49 = vpop.f32.mrf.mxu0  ;;  %v4445_v19 = vpop.f32.mrf.mxu1 }
 0x7b1   :  { %v4405_v5 = vadd.f32 %v4404_v49, %v12002_v29  ;;  %4702 = vmatpush1.bf16.msra.mxu0 %v10273_v12  ;;  %4743 = vmatpush1.bf16.msra.mxu1 %v10279_v41  ;;  %v10359_v29 = vld [vmem:[%s10980_s4 + $0x44] ss:$16 sps:$4 sm:$0xff]  }
 0x7b2   :  { %v4406_v60 = vpop.f32.mrf.mxu0  ;;  %v4447_v4 = vpop.f32.mrf.mxu1  ;;  %4703 = vmatprep.subr.bf16.mxu0 %v10285_v15  ;;  %4744 = vmatprep.subr.bf16.mxu1 %v10291_v56  ;;  %12113 = vst [vmem:[#allocation93_spill] sm:$0xff] %v10359_v29 }
 0x7b3   :  { %v5790_v7 = vmul.f32 -1.442695, %v4405_v5  ;;  %v4407_v14 = vadd.f32 %v4406_v60, %v9093_v61  ;;  %v10310_v60 = vld [vmem:[%s10980_s4 + $0x84] ss:$16 sps:$4 sm:$0xff]   ;;  %v10353_v61 = vld [vmem:[%s10980_s4 + $0x68] ss:$16 sps:$4 sm:$0xff]  }
 0x7b4   :  { %v4408_v48 = vpop.f32.mrf.mxu0  ;;  %v4449_v16 = vpop.f32.mrf.mxu1  ;;  %12112 = vst [vmem:[#allocation31_spill] sm:$0xff] %v10353_v61 }
 0x7b5   :  { %6480 = vpow2.f32 %v5790_v7  ;;  %v5791_v32 = vmul.f32 -1.442695, %v4407_v14  ;;  %4704 = vmatpush1.bf16.msra.mxu0 %v10298_v34  ;;  %4745 = vmatpush1.bf16.msra.mxu1 %v10304_v38  ;;  %v10316_v7 = vld [vmem:[%s10980_s4 + $0x8c] ss:$16 sps:$4 sm:$0xff]   ;;  %v10322_v14 = vld [vmem:[%s10980_s4 + $0x80] ss:$16 sps:$4 sm:$0xff]  }
 0x7b6   :  { %v4409_v49 = vpop.f32.mrf.mxu0  ;;  %v4450_v5 = vpop.f32.mrf.mxu1  ;;  %4705 = vmatprep.subr.bf16.mxu0 %v10310_v60  ;;  %4746 = vmatprep.subr.bf16.mxu1 %v10316_v7  ;;  %v10328_v48 = vld [vmem:[%s10980_s4 + $0x88] ss:$16 sps:$4 sm:$0xff]   ;;  %v10334_v16 = vld [vmem:[%s10980_s4 + $0x64] ss:$16 sps:$4 sm:$0xff]  }
 0x7b7   :  { %6482 = vpow2.f32 %v5791_v32  ;;  %12109 = vst [vmem:[#allocation92_spill] sm:$0xff] %v10334_v16  ;;  %v10340_v32 = vld [vmem:[%s10980_s4 + $0x6c] ss:$16 sps:$4 sm:$0xff]   ;;  %v4448_v49 = vadd.f32 %v4447_v4, %v12011_v51  ;;  %v10347_v5 = vld [vmem:[%s10980_s4 + $0x60] ss:$16 sps:$4 sm:$0xff]  }
 0x7b8   :  { %12110 = vst [vmem:[#allocation90_spill] sm:$0xff] %v10340_v32  ;;  %12111 = vst [vmem:[#allocation38_spill] sm:$0xff] %v10347_v5  ;;  %v10365_v4 = vld [vmem:[%s10980_s4 + $0x4c] ss:$16 sps:$4 sm:$0xff]  }
 0x7b9   :  { %4706 = vmatpush1.bf16.msra.mxu0 %v10322_v14  ;;  %4747 = vmatpush1.bf16.msra.mxu1 %v10328_v48  ;;  %12114 = vst [vmem:[#allocation95_spill] sm:$0xff] %v10365_v4  ;;  %v5792_v51 = vmul.f32 -1.442695, %v4448_v49  ;;  %v10384_v49 = vld [vmem:[%s10980_s4 + $0x24] ss:$16 sps:$4 sm:$0xff]  }
 0x7ba   :  { %4707 = vmatprep.subr.bf16.mxu0 %v10334_v16  ;;  %4748 = vmatprep.subr.bf16.mxu1 %v10340_v32  ;;  %v4446_v32 = vadd.f32 %v4445_v19, %v12018_v36  ;;  %12117 = vst [vmem:[#allocation36_spill] sm:$0xff] %v10384_v49  ;;  %v10396_v19 = vld [vmem:[%s10980_s4 + $0x20] ss:$16 sps:$4 sm:$0xff]   ;;  %v10402_v36 = vld [vmem:[%s10980_s4 + $0x28] ss:$16 sps:$4 sm:$0xff]  }
 0x7bb   :  { %6484 = vpow2.f32 %v5792_v51  ;;  %12119 = vst [vmem:[#allocation29_spill] sm:$0xff] %v10396_v19  ;;  %12120 = vst [vmem:[#allocation32_spill] sm:$0xff] %v10402_v36  ;;  %v10414_v51 = vld [vmem:[%s10980_s4 + $0xc] ss:$16 sps:$4 sm:$0xff]  }
 0x7bc   :  { %12122 = vst [vmem:[#allocation30_spill] sm:$0xff] %v10414_v51 }
 0x7bd   :  { %4708 = vmatpush1.bf16.msra.mxu0 %v10347_v5  ;;  %4749 = vmatpush1.bf16.msra.mxu1 %v10353_v61  ;;  %v10371_v5 = vld [vmem:[%s10980_s4 + $0x40] ss:$16 sps:$4 sm:$0xff]   ;;  %v10377_v61 = vld [vmem:[%s10980_s4 + $0x48] ss:$16 sps:$4 sm:$0xff]  }
 0x7be   :  { %4709 = vmatprep.subr.bf16.mxu0 %v10359_v29  ;;  %4750 = vmatprep.subr.bf16.mxu1 %v10365_v4  ;;  %12115 = vst [vmem:[#allocation96_spill] sm:$0xff] %v10371_v5  ;;  %12116 = vst [vmem:[#allocation94_spill] sm:$0xff] %v10377_v61 }
 0x7c1   :  { %4710 = vmatpush1.bf16.msra.mxu0 %v10371_v5  ;;  %4751 = vmatpush1.bf16.msra.mxu1 %v10377_v61  ;;  %v10390_v5 = vld [vmem:[%s10980_s4 + $0x2c] ss:$16 sps:$4 sm:$0xff]  }
 0x7c2   :  { %v6481_v29 = vpop.eup %6480  ;;  %4711 = vmatprep.subr.bf16.mxu0 %v10384_v49  ;;  %12118 = vst [vmem:[#allocation34_spill] sm:$0xff] %v10390_v5  ;;  %4752 = vmatprep.subr.bf16.mxu1 %v10390_v5  ;;  %v10493_v49 = vld [vmem:[%s10980_s4 + $0x1a0] ss:$16 sps:$4 sm:$0xff]  }
 0x7c3   :  { %v4455_v4 = vadd.f32 1.0, %v6481_v29  ;;  %v10408_v29 = vld [vmem:[%s10980_s4 + $0x4] ss:$16 sps:$4 sm:$0xff]  }
 0x7c4   :  { %v6483_v16 = vpop.eup %6482  ;;  %12121 = vst [vmem:[#allocation27_spill] sm:$0xff] %v10408_v29 }
 0x7c5   :  { %6486 = vrcp.f32 %v4455_v4  ;;  %v4461_v61 = vadd.f32 1.0, %v6483_v16  ;;  %4712 = vmatpush1.bf16.msra.mxu0 %v10396_v19  ;;  %4753 = vmatpush1.bf16.msra.mxu1 %v10402_v36  ;;  %v10420_v16 = vld [vmem:[%s10980_s4] ss:$16 sps:$4 sm:$0xff]   ;;  %v10432_v4 = vld [vmem:[%s10980_s4 + $0x1e4] ss:$16 sps:$4 sm:$0xff]  }
 0x7c6   :  { %6488 = vtanh.f32 %v4446_v32  ;;  %4713 = vmatprep.subr.bf16.mxu0 %v10408_v29  ;;  %4754 = vmatprep.subr.bf16.mxu1 %v10414_v51  ;;  %12123 = vst [vmem:[#allocation25_spill] sm:$0xff] %v10420_v16  ;;  %v10426_v32 = vld [vmem:[%s10980_s4 + $0x8] ss:$16 sps:$4 sm:$0xff]   ;;  %12125 = vst [vmem:[#allocation23_spill] sm:$0xff] %v10432_v4  ;;  %v10468_v51 = vld [vmem:[%s10980_s4 + $0x1c0] ss:$16 sps:$4 sm:$0xff]  }
 0x7c7   :  { %6490 = vrcp.f32 %v4461_v61  ;;  %12124 = vst [vmem:[#allocation28_spill] sm:$0xff] %v10426_v32  ;;  %v10438_v61 = vld [vmem:[%s10980_s4 + $0x1ec] ss:$16 sps:$4 sm:$0xff]   ;;  %12131 = vst [vmem:[#allocation17_spill] sm:$0xff] %v10468_v51 }
 0x7c8   :  { %12126 = vst [vmem:[#allocation26_spill] sm:$0xff] %v10438_v61  ;;  %v10486_v29 = vld [vmem:[%s10980_s4 + $0x1ac] ss:$16 sps:$4 sm:$0xff]  }
 0x7c9   :  { %4714 = vmatpush1.bf16.msra.mxu0 %v10420_v16  ;;  %4755 = vmatpush1.bf16.msra.mxu1 %v10426_v32  ;;  %v10444_v16 = vld [vmem:[%s10980_s4 + $0x1e0] ss:$16 sps:$4 sm:$0xff]   ;;  %v10450_v32 = vld [vmem:[%s10980_s4 + $0x1e8] ss:$16 sps:$4 sm:$0xff]  }
 0x7ca   :  { %4715 = vmatprep.subr.bf16.mxu0 %v10432_v4  ;;  %4756 = vmatprep.subr.bf16.mxu1 %v10438_v61  ;;  %12127 = vst [vmem:[#allocation21_spill] sm:$0xff] %v10444_v16  ;;  %12128 = vst [vmem:[#allocation24_spill] sm:$0xff] %v10450_v32  ;;  %v10456_v4 = vld [vmem:[%s10980_s4 + $0x1c4] ss:$16 sps:$4 sm:$0xff]   ;;  %v10462_v61 = vld [vmem:[%s10980_s4 + $0x1cc] ss:$16 sps:$4 sm:$0xff]  }
 0x7cb   :  { %12129 = vst [vmem:[#allocation19_spill] sm:$0xff] %v10456_v4  ;;  %12130 = vst [vmem:[#allocation22_spill] sm:$0xff] %v10462_v61 }
 0x7cd   :  { %4716 = vmatpush2.bf16.msra.mxu0 %v10444_v16  ;;  %4757 = vmatpush2.bf16.msra.mxu1 %v10450_v32  ;;  %v6485_v16 = vpop.eup %6484  ;;  %v10474_v32 = vld [vmem:[%s10980_s4 + $0x1c8] ss:$16 sps:$4 sm:$0xff]  }
 0x7ce   :  { %4717 = vmatprep.subr.bf16.mxu0 %v10456_v4  ;;  %4758 = vmatprep.subr.bf16.mxu1 %v10462_v61  ;;  %12132 = vst [vmem:[#allocation20_spill] sm:$0xff] %v10474_v32  ;;  %v10480_v61 = vld [vmem:[%s10980_s4 + $0x1a4] ss:$16 sps:$4 sm:$0xff]   ;;  %v4468_v19 = vadd.f32 1.0, %v6485_v16  ;;  %v10519_v16 = vld [vmem:[%s10980_s4 + $0x180] ss:$16 sps:$4 sm:$0xff]  }
 0x7cf   :  { %12133 = vst [vmem:[#allocation15_spill] sm:$0xff] %v10480_v61  ;;  %12136 = vst [vmem:[#allocation16_spill] sm:$0xff] %v10519_v16 }
 0x7d0   :  { %6492 = vrcp.f32 %v4468_v19  ;;  %v10538_v19 = vld [vmem:[%s10980_s4 + $0x16c] ss:$16 sps:$4 sm:$0xff]  }
 0x7d1   :  { %4718 = vmatpush2.bf16.msra.mxu0 %v10468_v51  ;;  %4759 = vmatpush2.bf16.msra.mxu1 %v10474_v32  ;;  %12139 = vst [vmem:[#allocation12_spill] sm:$0xff] %v10538_v19 }
 0x7d2   :  { %v6487_v4 = vpop.eup %6486  ;;  %4719 = vmatprep.subr.bf16.mxu0 %v10480_v61  ;;  %4760 = vmatprep.subr.bf16.mxu1 %v10486_v29  ;;  %v10499_v61 = vld [vmem:[%s10980_s4 + $0x1a8] ss:$16 sps:$4 sm:$0xff]  }
 0x7d3   :  { %v6489_v51 = vpop.eup %6488 }
 0x7d4   :  { %v6491_v36 = vpop.eup %6490  ;;  %v4472_v5 = vmul.f32 %v6489_v51, %v6487_v4  ;;  %v10505_v51 = vld [vmem:[%s10980_s4 + $0x184] ss:$16 sps:$4 sm:$0xff]   ;;  %v10525_v4 = vld [vmem:[%s10980_s4 + $0x188] ss:$16 sps:$4 sm:$0xff]  }
 0x7d5   :  { %v4471_v32 = vmul.f32 %v6491_v36, %v10022_v22  ;;  %4720 = vmatpush2.bf16.msra.mxu0 %v10493_v49  ;;  %4761 = vmatpush2.bf16.msra.mxu1 %v10499_v61  ;;  %v10511_v36 = vld [vmem:[%s10980_s4 + $0x18c] ss:$16 sps:$4 sm:$0xff]   ;;  %12137 = vst [vmem:[#allocation11_spill] sm:$0xff] %v10525_v4 }
 0x7d6   :  { %4721 = vmatprep.subr.bf16.mxu0 %v10505_v51  ;;  %12134 = vst [vmem:[#allocation18_spill] sm:$0xff] %v10511_v36  ;;  %4762 = vmatprep.subr.bf16.mxu1 %v10511_v36  ;;  %v10622_v36 = vld [vmem:[%s10980_s4 + $0x108] ss:$16 sps:$4 sm:$0xff]  }
 0x7d7   :  { %v10514_v22 = vadd.f32 %v4472_v5, %v4471_v32  ;;  %v10532_v5 = vld [vmem:[%s10980_s4 + $0x164] ss:$16 sps:$4 sm:$0xff]   ;;  %v10544_v32 = vld [vmem:[%s10980_s4 + $0x160] ss:$16 sps:$4 sm:$0xff]  }
 0x7d8   :  { %12138 = vst [vmem:[#allocation14_spill] sm:$0xff] %v10532_v5  ;;  %12140 = vst [vmem:[#allocation9_spill] sm:$0xff] %v10544_v32 }
 0x7d9   :  { %12135 = vst [vmem:[#allocation13_spill] sm:$0xff] %v10514_v22  ;;  %4722 = vmatpush2.bf16.msra.mxu0 %v10519_v16  ;;  %4763 = vmatpush2.bf16.msra.mxu1 %v10525_v4  ;;  %6494 = vtanh.f32 %v10514_v22  ;;  %v10550_v22 = vld [vmem:[%s10980_s4 + $0x168] ss:$16 sps:$4 sm:$0xff]   ;;  %v10592_v4 = vld [vmem:[%s10980_s4 + $0x120] ss:$16 sps:$4 sm:$0xff]  }
 0x7da   :  { %4723 = vmatprep.subr.bf16.mxu0 %v10532_v5  ;;  %4764 = vmatprep.subr.bf16.mxu1 %v10538_v19  ;;  %12141 = vst [vmem:[#allocation10_spill] sm:$0xff] %v10550_v22  ;;  %v10556_v5 = vld [vmem:[%s10980_s4 + $0x144] ss:$16 sps:$4 sm:$0xff]   ;;  %v10562_v19 = vld [vmem:[%s10980_s4 + $0x14c] ss:$16 sps:$4 sm:$0xff]   ;;  %12148 = vst [vmem:[#allocation109_spill] sm:$0xff] %v10592_v4 }
 0x7db   :  { %12142 = vst [vmem:[#allocation7_spill] sm:$0xff] %v10556_v5  ;;  %12143 = vst [vmem:[#allocation8_spill] sm:$0xff] %v10562_v19  ;;  %v10610_v16 = vld [vmem:[%s10980_s4 + $0x10c] ss:$16 sps:$4 sm:$0xff]  }
 0x7dd   :  { %4724 = vmatpush2.bf16.msra.mxu0 %v10544_v32  ;;  %4765 = vmatpush2.bf16.msra.mxu1 %v10550_v22  ;;  %v10568_v32 = vld [vmem:[%s10980_s4 + $0x140] ss:$16 sps:$4 sm:$0xff]   ;;  %v10574_v22 = vld [vmem:[%s10980_s4 + $0x148] ss:$16 sps:$4 sm:$0xff]  }
 0x7de   :  { %4725 = vmatprep.subr.bf16.mxu0 %v10556_v5  ;;  %4766 = vmatprep.subr.bf16.mxu1 %v10562_v19  ;;  %12144 = vst [vmem:[#allocation105_spill] sm:$0xff] %v10568_v32  ;;  %12145 = vst [vmem:[#allocation107_spill] sm:$0xff] %v10574_v22  ;;  %v10580_v5 = vld [vmem:[%s10980_s4 + $0x124] ss:$16 sps:$4 sm:$0xff]   ;;  %v10586_v19 = vld [vmem:[%s10980_s4 + $0x12c] ss:$16 sps:$4 sm:$0xff]  }
 0x7df   :  { %12146 = vst [vmem:[#allocation106_spill] sm:$0xff] %v10580_v5  ;;  %12147 = vst [vmem:[#allocation108_spill] sm:$0xff] %v10586_v19 }
 0x7e1   :  { %4726 = vmatpush2.bf16.msra.mxu0 %v10568_v32  ;;  %4767 = vmatpush2.bf16.msra.mxu1 %v10574_v22  ;;  %v6493_v32 = vpop.eup %6492  ;;  %v10598_v22 = vld [vmem:[%s10980_s4 + $0x128] ss:$16 sps:$4 sm:$0xff]  }
 0x7e2   :  { %4727 = vmatprep.subr.bf16.mxu0 %v10580_v5  ;;  %4768 = vmatprep.subr.bf16.mxu1 %v10586_v19  ;;  %12149 = vst [vmem:[#allocation111_spill] sm:$0xff] %v10598_v22  ;;  %v10604_v19 = vld [vmem:[%s10980_s4 + $0x104] ss:$16 sps:$4 sm:$0xff]  }
 0x7e3   :  { %12150 = vst [vmem:[#allocation110_spill] sm:$0xff] %v10604_v19 }
 0x7e5   :  { %4728 = vmatpush2.bf16.msra.mxu0 %v10592_v4  ;;  %4769 = vmatpush2.bf16.msra.mxu1 %v10598_v22  ;;  %v10616_v22 = vld [vmem:[%s10980_s4 + $0x100] ss:$16 sps:$4 sm:$0xff]  }
 0x7e6   :  { %v6495_v5 = vpop.eup %6494  ;;  %4729 = vmatprep.subr.bf16.mxu0 %v10604_v19  ;;  %4770 = vmatprep.subr.bf16.mxu1 %v10610_v16 }
 0x7e7   :  { %v4475_v4 = vmul.f32 %v6495_v5, %v6493_v32  ;;  %v12153_v5 = vld [vmem:[#allocation68_spill] sm:$0xff]  ;;  %v12154_v32 = vld [vmem:[#allocation63_spill] sm:$0xff] }
 0x7e9   :  { %4730 = vmatpush2.bf16.msra.mxu0 %v10616_v22  ;;  %4771 = vmatpush2.bf16.msra.mxu1 %v10622_v36  ;;  %v10625_v19 = vpack.c.bf16 %v4475_v4, %v4475_v4  ;;  %v12152_v4 = vld [vmem:[#allocation65_spill] sm:$0xff] }
 0x7ea   :  { %4806 = vmatprep.subr.bf16.mxu0 %v8064_v57  ;;  %4847 = vmatprep.subr.bf16.mxu1 %v8077_v58 }
 0x7eb   :  { %4731 = vmatprep.mubr.bf16.mxu0 %v10625_v19  ;;  %4772 = vmatprep.mubr.bf16.mxu1 %v10625_v19 }
 0x7ec   :  { %4732 = vmatmul.mubr.bf16.vlgmr.msra.gmra.mxu0 %v10229_v45  ;;  %4773 = vmatmul.mubr.bf16.vlgmr.msra.gmra.mxu1 %v10229_v45  ;;  %v12151_v45 = vld [vmem:[#allocation70_spill] sm:$0xff] }
 0x7ed   :  { %4807 = vmatpush1.bf16.msra.mxu0 %v8068_v37  ;;  %4848 = vmatpush1.bf16.msra.mxu1 %v8083_v44 }
 0x7ee   :  { %4808 = vmatprep.subr.bf16.mxu0 %v8072_v25  ;;  %4849 = vmatprep.subr.bf16.mxu1 %v8087_v21 }
 0x7f1   :  { %4809 = vmatpush1.bf16.msra.mxu0 %v8092_v28  ;;  %4850 = vmatpush1.bf16.msra.mxu1 %v8103_v50 }
 0x7f2   :  { %4810 = vmatprep.subr.bf16.mxu0 %v8098_v11  ;;  %4851 = vmatprep.subr.bf16.mxu1 %v8108_v8 }
 0x7f5   :  { %4811 = vmatpush1.bf16.msra.mxu0 %v8113_v10  ;;  %4852 = vmatpush1.bf16.msra.mxu1 %v8123_v0 }
 0x7f6   :  { %4812 = vmatprep.subr.bf16.mxu0 %v8118_v18  ;;  %4853 = vmatprep.subr.bf16.mxu1 %v8128_v47 }
 0x7f9   :  { %4813 = vmatpush1.bf16.msra.mxu0 %v8133_v6  ;;  %4854 = vmatpush1.bf16.msra.mxu1 %v8143_v63 }
 0x7fa   :  { %4814 = vmatprep.subr.bf16.mxu0 %v12053_v31  ;;  %4855 = vmatprep.subr.bf16.mxu1 %v12054_v39 }
 0x7fd   :  { %4815 = vmatpush1.bf16.msra.mxu0 %v12055_v1  ;;  %4856 = vmatpush1.bf16.msra.mxu1 %v12056_v9 }
 0x7fe   :  { %4816 = vmatprep.subr.bf16.mxu0 %v12057_v35  ;;  %4857 = vmatprep.subr.bf16.mxu1 %v12058_v26  ;;  %v12184_v26 = vld [vmem:[#allocation151_spill] sm:$0xff] }
 0x801   :  { %4817 = vmatpush1.bf16.msra.mxu0 %v12059_v23  ;;  %4858 = vmatpush1.bf16.msra.mxu1 %v12060_v33 }
 0x802   :  { %4818 = vmatprep.subr.bf16.mxu0 %v12061_v40  ;;  %4859 = vmatprep.subr.bf16.mxu1 %v12062_v59 }
 0x805   :  { %4819 = vmatpush1.bf16.msra.mxu0 %v12063_v3  ;;  %4860 = vmatpush1.bf16.msra.mxu1 %v12064_v62  ;;  %v12155_v62 = vld [vmem:[#allocation66_spill] sm:$0xff] }
 0x806   :  { %4820 = vmatprep.subr.bf16.mxu0 %v12065_v2  ;;  %4861 = vmatprep.subr.bf16.mxu1 %v12066_v24  ;;  %v12156_v2 = vld [vmem:[#allocation61_spill] sm:$0xff]  ;;  %v12157_v24 = vld [vmem:[#allocation64_spill] sm:$0xff] }
 0x809   :  { %4821 = vmatpush1.bf16.msra.mxu0 %v12067_v30  ;;  %4862 = vmatpush1.bf16.msra.mxu1 %v12068_v13  ;;  %v12158_v30 = vld [vmem:[#allocation59_spill] sm:$0xff]  ;;  %v12159_v13 = vld [vmem:[#allocation62_spill] sm:$0xff] }
 0x80a   :  { %4822 = vmatprep.subr.bf16.mxu0 %v12069_v52  ;;  %4863 = vmatprep.subr.bf16.mxu1 %v12070_v53  ;;  %v12160_v52 = vld [vmem:[#allocation57_spill] sm:$0xff]  ;;  %v12161_v53 = vld [vmem:[#allocation60_spill] sm:$0xff] }
 0x80d   :  { %4823 = vmatpush2.bf16.msra.mxu0 %v12151_v45  ;;  %4864 = vmatpush2.bf16.msra.mxu1 %v12152_v4  ;;  %v12162_v45 = vld [vmem:[#allocation55_spill] sm:$0xff]  ;;  %v12163_v4 = vld [vmem:[#allocation58_spill] sm:$0xff] }
 0x80e   :  { %4824 = vmatprep.subr.bf16.mxu0 %v12153_v5  ;;  %4865 = vmatprep.subr.bf16.mxu1 %v12154_v32  ;;  %v12164_v5 = vld [vmem:[#allocation53_spill] sm:$0xff]  ;;  %v12165_v32 = vld [vmem:[#allocation56_spill] sm:$0xff] }
 0x811   :  { %4825 = vmatpush2.bf16.msra.mxu0 %v12155_v62  ;;  %4866 = vmatpush2.bf16.msra.mxu1 %v12156_v2  ;;  %v12166_v62 = vld [vmem:[#allocation51_spill] sm:$0xff]  ;;  %v12167_v2 = vld [vmem:[#allocation54_spill] sm:$0xff] }
 0x812   :  { %4826 = vmatprep.subr.bf16.mxu0 %v12157_v24  ;;  %4867 = vmatprep.subr.bf16.mxu1 %v12158_v30  ;;  %v12168_v24 = vld [vmem:[#allocation49_spill] sm:$0xff]  ;;  %v12169_v30 = vld [vmem:[#allocation52_spill] sm:$0xff] }
 0x815   :  { %4827 = vmatpush2.bf16.msra.mxu0 %v12159_v13  ;;  %4868 = vmatpush2.bf16.msra.mxu1 %v12160_v52  ;;  %v12170_v13 = vld [vmem:[#allocation47_spill] sm:$0xff]  ;;  %v12171_v52 = vld [vmem:[#allocation50_spill] sm:$0xff] }
 0x816   :  { %4828 = vmatprep.subr.bf16.mxu0 %v12161_v53  ;;  %4869 = vmatprep.subr.bf16.mxu1 %v12162_v45  ;;  %v12172_v53 = vld [vmem:[#allocation45_spill] sm:$0xff]  ;;  %v12173_v45 = vld [vmem:[#allocation48_spill] sm:$0xff] }
 0x819   :  { %4829 = vmatpush2.bf16.msra.mxu0 %v12163_v4  ;;  %4870 = vmatpush2.bf16.msra.mxu1 %v12164_v5  ;;  %v12174_v4 = vld [vmem:[#allocation43_spill] sm:$0xff]  ;;  %v12175_v5 = vld [vmem:[#allocation46_spill] sm:$0xff] }
 0x81a   :  { %4830 = vmatprep.subr.bf16.mxu0 %v12165_v32  ;;  %4871 = vmatprep.subr.bf16.mxu1 %v12166_v62  ;;  %v12176_v32 = vld [vmem:[#allocation41_spill] sm:$0xff]  ;;  %v12177_v62 = vld [vmem:[#allocation44_spill] sm:$0xff] }
 0x81d   :  { %4831 = vmatpush2.bf16.msra.mxu0 %v12167_v2  ;;  %4872 = vmatpush2.bf16.msra.mxu1 %v12168_v24  ;;  %v12178_v2 = vld [vmem:[#allocation39_spill] sm:$0xff]  ;;  %v12179_v24 = vld [vmem:[#allocation42_spill] sm:$0xff] }
 0x81e   :  { %4832 = vmatprep.subr.bf16.mxu0 %v12169_v30  ;;  %4873 = vmatprep.subr.bf16.mxu1 %v12170_v13  ;;  %v12180_v30 = vld [vmem:[#allocation40_spill] sm:$0xff] }
 0x821   :  { %4833 = vmatpush2.bf16.msra.mxu0 %v12171_v52  ;;  %4874 = vmatpush2.bf16.msra.mxu1 %v12172_v53  ;;  %v12181_v52 = vld [vmem:[#allocation148_spill] sm:$0xff] }
 0x822   :  { %4834 = vmatprep.subr.bf16.mxu0 %v12173_v45  ;;  %4875 = vmatprep.subr.bf16.mxu1 %v12174_v4 }
 0x825   :  { %4835 = vmatpush2.bf16.msra.mxu0 %v12175_v5  ;;  %4876 = vmatpush2.bf16.msra.mxu1 %v12176_v32  ;;  %v12182_v32 = vld [vmem:[#allocation149_spill] sm:$0xff] }
 0x826   :  { %4836 = vmatprep.subr.bf16.mxu0 %v12177_v62  ;;  %4877 = vmatprep.subr.bf16.mxu1 %v12178_v2 }
 0x829   :  { %4837 = vmatpush2.bf16.msra.mxu0 %v12179_v24  ;;  %4878 = vmatpush2.bf16.msra.mxu1 %v12180_v30  ;;  %v12183_v30 = vld [vmem:[#allocation150_spill] sm:$0xff] }
 0x82a   :  { %4914 = vmatprep.subr.bf16.mxu0 %v10234_v43  ;;  %4955 = vmatprep.subr.bf16.mxu1 %v10240_v42 }
 0x84c   :  { %v4511_v53 = vpop.f32.mrf.mxu0  ;;  %v4552_v45 = vpop.f32.mrf.mxu1 }
 0x84d   :  { %v4512_v4 = vadd.f32 %v4511_v53, %v12181_v52  ;;  %v4553_v35 = vadd.f32 %v4552_v45, %v12184_v26 }
 0x84e   :  { %v4513_v13 = vpop.f32.mrf.mxu0  ;;  %v4554_v5 = vpop.f32.mrf.mxu1 }
 0x84f   :  { %v5793_v3 = vmul.f32 -1.442695, %v4512_v4  ;;  %v4514_v59 = vadd.f32 %v4513_v13, %v12182_v32  ;;  %v4555_v43 = vadd.f32 %v4554_v5, %v12183_v30  ;;  %v12186_v30 = vld [vmem:[#allocation101_spill] sm:$0xff] }
 0x850   :  { %v4515_v62 = vpop.f32.mrf.mxu0  ;;  %v4556_v40 = vpop.f32.mrf.mxu1 }
 0x851   :  { %6496 = vpow2.f32 %v5793_v3  ;;  %v5794_v2 = vmul.f32 -1.442695, %v4514_v59  ;;  %v5795_v23 = vmul.f32 -1.442695, %v4555_v43  ;;  %v12185_v59 = vld [vmem:[#allocation99_spill] sm:$0xff] }
 0x852   :  { %v4516_v24 = vpop.f32.mrf.mxu0  ;;  %v4557_v33 = vpop.f32.mrf.mxu1 }
 0x853   :  { %6498 = vpow2.f32 %v5794_v2 }
 0x854   :  { %6500 = vpow2.f32 %v5795_v23 }
 0x85e   :  { %v6497_v42 = vpop.eup %6496 }
 0x85f   :  { %v4562_v9 = vadd.f32 1.0, %v6497_v42 }
 0x860   :  { %v6499_v53 = vpop.eup %6498 }
 0x861   :  { %6502 = vrcp.f32 %v4562_v9  ;;  %v4568_v4 = vadd.f32 1.0, %v6499_v53  ;;  %v6501_v3 = vpop.eup %6500 }
 0x862   :  { %6504 = vtanh.f32 %v4553_v35  ;;  %v4575_v42 = vadd.f32 1.0, %v6501_v3 }
 0x863   :  { %6506 = vrcp.f32 %v4568_v4 }
 0x86c   :  { %v4622_v62 = vpop.f32.mrf.mxu0  ;;  %v4663_v40 = vpop.f32.mrf.mxu1 }
 0x86d   :  { %v4670_v24 = vadd.f32 %v4622_v62, %v12185_v59  ;;  %v12187_v59 = vld [vmem:[#allocation104_spill] sm:$0xff] }
 0x86e   :  { %v6503_v33 = vpop.eup %6502  ;;  %v4624_v2 = vpop.f32.mrf.mxu0 }
 0x86f   :  { %v4665_v13 = vpop.f32.mrf.mxu1  ;;  %v6505_v5 = vpop.eup %6504  ;;  %v5796_v43 = vmul.f32 -1.442695, %v4670_v24  ;;  %v4671_v32 = vadd.f32 %v4624_v2, %v12186_v30  ;;  %v12188_v30 = vld [vmem:[#allocation103_spill] sm:$0xff] }
 0x870   :  { %v6507_v45 = vpop.eup %6506  ;;  %v4626_v26 = vpop.f32.mrf.mxu0  ;;  %v4579_v9 = vmul.f32 %v6505_v5, %v6503_v33  ;;  %v4673_v24 = vadd.f32 %v4665_v13, %v12187_v59  ;;  %v4672_v2 = vadd.f32 %v4663_v40, %v12188_v30  ;;  %v12204_v30 = vld [vmem:[#allocation28_spill] sm:$0xff] }
 0x871   :  { %v4667_v23 = vpop.f32.mrf.mxu1  ;;  %v4578_v35 = vmul.f32 %v6507_v45, %v10126_v17  ;;  %6508 = vpow2.f32 %v5796_v43  ;;  %v5797_v53 = vmul.f32 -1.442695, %v4671_v32 }
 0x872   :  { %v4627_v4 = vpop.f32.mrf.mxu0  ;;  %v5798_v3 = vmul.f32 -1.442695, %v4673_v24  ;;  %v12203_v24 = vld [vmem:[#allocation25_spill] sm:$0xff] }
 0x873   :  { %v4668_v52 = vpop.f32.mrf.mxu1  ;;  %6510 = vpow2.f32 %v5797_v53  ;;  %v10704_v62 = vadd.f32 %v4579_v9, %v4578_v35  ;;  %v12200_v9 = vld [vmem:[#allocation32_spill] sm:$0xff]  ;;  %v12201_v53 = vld [vmem:[#allocation27_spill] sm:$0xff]  ;;  %v12202_v4 = vld [vmem:[#allocation30_spill] sm:$0xff] }
 0x874   :  { %6512 = vrcp.f32 %v4575_v42 }
 0x875   :  { %6514 = vtanh.f32 %v10704_v62 }
 0x876   :  { %6516 = vtanh.f32 %v4672_v2  ;;  %v12205_v2 = vld [vmem:[#allocation23_spill] sm:$0xff] }
 0x877   :  { %6518 = vpow2.f32 %v5798_v3  ;;  %v12206_v3 = vld [vmem:[#allocation26_spill] sm:$0xff] }
 0x87e   :  { %v6509_v26 = vpop.eup %6508 }
 0x87f   :  { %v4677_v23 = vadd.f32 1.0, %v6509_v26  ;;  %v12207_v26 = vld [vmem:[#allocation21_spill] sm:$0xff] }
 0x880   :  { %v6511_v33 = vpop.eup %6510 }
 0x881   :  { %v6513_v17 = vpop.eup %6512  ;;  %6520 = vrcp.f32 %v4677_v23  ;;  %v4683_v32 = vadd.f32 1.0, %v6511_v33  ;;  %v12208_v23 = vld [vmem:[#allocation24_spill] sm:$0xff]  ;;  %v12209_v33 = vld [vmem:[#allocation19_spill] sm:$0xff] }
 0x882   :  { %v6515_v52 = vpop.eup %6514 }
 0x883   :  { %6522 = vrcp.f32 %v4683_v32  ;;  %v4582_v5 = vmul.f32 %v6515_v52, %v6513_v17  ;;  %v6517_v40 = vpop.eup %6516  ;;  %v12210_v17 = vld [vmem:[#allocation22_spill] sm:$0xff] }
 0x884   :  { %v6519_v13 = vpop.eup %6518 }
 0x885   :  { %v4805_v43 = vpack.c.bf16 %v4582_v5, %v4582_v5  ;;  %v12211_v5 = vld [vmem:[#allocation37_spill] sm:$0xff] }
 0x887   :  { %4838 = vmatprep.mubr.bf16.mxu0 %v4805_v43  ;;  %4879 = vmatprep.mubr.bf16.mxu1 %v4805_v43 }
 0x888   :  { %4839 = vmatmul.mubr.bf16.vlgmr.msra.gmra.mxu0 %v10625_v19  ;;  %4880 = vmatmul.mubr.bf16.vlgmr.msra.gmra.mxu1 %v10625_v19 }
 0x889   :  { %4915 = vmatpush1.bf16.msra.mxu0 %v10248_v20  ;;  %4956 = vmatpush1.bf16.msra.mxu1 %v10254_v27  ;;  %v4690_v20 = vadd.f32 1.0, %v6519_v13  ;;  %v12213_v13 = vld [vmem:[#allocation20_spill] sm:$0xff] }
 0x88a   :  { %4916 = vmatprep.subr.bf16.mxu0 %v10260_v54  ;;  %4957 = vmatprep.subr.bf16.mxu1 %v10266_v55  ;;  %v12189_v55 = vld [vmem:[#allocation92_spill] sm:$0xff] }
 0x88b   :  { %6524 = vrcp.f32 %v4690_v20 }
 0x88d   :  { %4917 = vmatpush1.bf16.msra.mxu0 %v10273_v12  ;;  %4958 = vmatpush1.bf16.msra.mxu1 %v10279_v41  ;;  %v12190_v12 = vld [vmem:[#allocation90_spill] sm:$0xff]  ;;  %v12192_v41 = vld [vmem:[#allocation31_spill] sm:$0xff] }
 0x88e   :  { %v6521_v45 = vpop.eup %6520  ;;  %4918 = vmatprep.subr.bf16.mxu0 %v10285_v15  ;;  %4959 = vmatprep.subr.bf16.mxu1 %v10291_v56  ;;  %v12193_v15 = vld [vmem:[#allocation93_spill] sm:$0xff]  ;;  %v12194_v56 = vld [vmem:[#allocation95_spill] sm:$0xff] }
 0x88f   :  { %v4694_v19 = vmul.f32 %v6521_v45, %v6517_v40  ;;  %v12212_v40 = vld [vmem:[#allocation17_spill] sm:$0xff] }
 0x890   :  { %v6523_v42 = vpop.eup %6522 }
 0x891   :  { %v4693_v27 = vmul.f32 %v6523_v42, %v10172_v46  ;;  %4919 = vmatpush1.bf16.msra.mxu0 %v10298_v34  ;;  %4960 = vmatpush1.bf16.msra.mxu1 %v10304_v38  ;;  %v12191_v46 = vld [vmem:[#allocation38_spill] sm:$0xff]  ;;  %v12195_v34 = vld [vmem:[#allocation96_spill] sm:$0xff]  ;;  %v12214_v42 = vld [vmem:[#allocation15_spill] sm:$0xff] }
 0x892   :  { %4920 = vmatprep.subr.bf16.mxu0 %v10310_v60  ;;  %4961 = vmatprep.subr.bf16.mxu1 %v10316_v7  ;;  %v12196_v38 = vld [vmem:[#allocation94_spill] sm:$0xff]  ;;  %v12197_v60 = vld [vmem:[#allocation36_spill] sm:$0xff] }
 0x893   :  { %v4695_v54 = vadd.f32 %v4694_v19, %v4693_v27  ;;  %v12198_v7 = vld [vmem:[#allocation34_spill] sm:$0xff]  ;;  %v12215_v27 = vld [vmem:[#allocation88_spill] sm:$0xff] }
 0x895   :  { %4921 = vmatpush1.bf16.msra.mxu0 %v10322_v14  ;;  %4962 = vmatpush1.bf16.msra.mxu1 %v10328_v48  ;;  %6526 = vtanh.f32 %v4695_v54  ;;  %v12199_v48 = vld [vmem:[#allocation29_spill] sm:$0xff] }
 0x896   :  { %4922 = vmatprep.subr.bf16.mxu0 %v12189_v55  ;;  %4963 = vmatprep.subr.bf16.mxu1 %v12190_v12 }
 0x898   :  { %v6525_v14 = vpop.eup %6524 }
 0x899   :  { %4923 = vmatpush1.bf16.msra.mxu0 %v12191_v46  ;;  %4964 = vmatpush1.bf16.msra.mxu1 %v12192_v41 }
 0x89a   :  { %4924 = vmatprep.subr.bf16.mxu0 %v12193_v15  ;;  %4965 = vmatprep.subr.bf16.mxu1 %v12194_v56  ;;  %v12216_v56 = vld [vmem:[#allocation18_spill] sm:$0xff] }
 0x89d   :  { %4925 = vmatpush1.bf16.msra.mxu0 %v12195_v34  ;;  %4966 = vmatpush1.bf16.msra.mxu1 %v12196_v38  ;;  %v12217_v34 = vld [vmem:[#allocation16_spill] sm:$0xff]  ;;  %v12219_v38 = vld [vmem:[#allocation14_spill] sm:$0xff] }
 0x89e   :  { %4926 = vmatprep.subr.bf16.mxu0 %v12197_v60  ;;  %4967 = vmatprep.subr.bf16.mxu1 %v12198_v7  ;;  %v12220_v60 = vld [vmem:[#allocation12_spill] sm:$0xff]  ;;  %v12221_v7 = vld [vmem:[#allocation35_spill] sm:$0xff] }
 0x8a1   :  { %4927 = vmatpush1.bf16.msra.mxu0 %v12199_v48  ;;  %4968 = vmatpush1.bf16.msra.mxu1 %v12200_v9  ;;  %v12224_v48 = vld [vmem:[#allocation7_spill] sm:$0xff] }
 0x8a2   :  { %v6527_v35 = vpop.eup %6526  ;;  %4928 = vmatprep.subr.bf16.mxu0 %v12201_v53  ;;  %4969 = vmatprep.subr.bf16.mxu1 %v12202_v4  ;;  %v12227_v53 = vld [vmem:[#allocation107_spill] sm:$0xff] }
 0x8a3   :  { %v10740_v59 = vmul.f32 %v6527_v35, %v6525_v14  ;;  %v12226_v35 = vld [vmem:[#allocation105_spill] sm:$0xff] }
 0x8a5   :  { %4929 = vmatpush1.bf16.msra.mxu0 %v12203_v24  ;;  %4970 = vmatpush1.bf16.msra.mxu1 %v12204_v30  ;;  %v12228_v24 = vld [vmem:[#allocation33_spill] sm:$0xff] }
 0x8a6   :  { %4930 = vmatprep.subr.bf16.mxu0 %v12205_v2  ;;  %4971 = vmatprep.subr.bf16.mxu1 %v12206_v3  ;;  %v12229_v2 = vld [vmem:[#allocation106_spill] sm:$0xff]  ;;  %v12230_v3 = vld [vmem:[#allocation108_spill] sm:$0xff] }
 0x8a9   :  { %4931 = vmatpush2.bf16.msra.mxu0 %v12207_v26  ;;  %4972 = vmatpush2.bf16.msra.mxu1 %v12208_v23 }
 0x8aa   :  { %4932 = vmatprep.subr.bf16.mxu0 %v12209_v33  ;;  %4973 = vmatprep.subr.bf16.mxu1 %v12210_v17  ;;  %v12231_v17 = vld [vmem:[#allocation109_spill] sm:$0xff] }
 0x8ac   :  { %v4733_v32 = vpop.f32.mrf.mxu0  ;;  %v4774_v52 = vpop.f32.mrf.mxu1 }
 0x8ad   :  { %v4734_v43 = vadd.f32 %v4733_v32, %v12211_v5  ;;  %4933 = vmatpush2.bf16.msra.mxu0 %v12212_v40  ;;  %4974 = vmatpush2.bf16.msra.mxu1 %v12213_v13  ;;  %v4775_v30 = vadd.f32 %v4774_v52, %v12228_v24  ;;  %v12232_v32 = vld [vmem:[#allocation111_spill] sm:$0xff]  ;;  %v12275_v24 = vld [vmem:[#allocation46_spill] sm:$0xff] }
 0x8ae   :  { %v4735_v45 = vpop.f32.mrf.mxu0  ;;  %v4776_v19 = vpop.f32.mrf.mxu1  ;;  %4934 = vmatprep.subr.bf16.mxu0 %v12214_v42  ;;  %4975 = vmatprep.subr.bf16.mxu1 %v10486_v29  ;;  %v12218_v29 = vld [vmem:[#allocation11_spill] sm:$0xff] }
 0x8af   :  { %v5799_v20 = vmul.f32 -1.442695, %v4734_v43  ;;  %v4736_v54 = vadd.f32 %v4735_v45, %v12215_v27  ;;  %v4777_v14 = vadd.f32 %v4776_v19, %v12221_v7  ;;  %v12233_v43 = vld [vmem:[#allocation110_spill] sm:$0xff]  ;;  %v12276_v7 = vld [vmem:[#allocation41_spill] sm:$0xff] }
 0x8b0   :  { %v4737_v55 = vpop.f32.mrf.mxu0  ;;  %v4778_v12 = vpop.f32.mrf.mxu1 }
 0x8b1   :  { %6528 = vpow2.f32 %v5799_v20  ;;  %v5800_v46 = vmul.f32 -1.442695, %v4736_v54  ;;  %4935 = vmatpush2.bf16.msra.mxu0 %v10493_v49  ;;  %4976 = vmatpush2.bf16.msra.mxu1 %v10499_v61  ;;  %v12222_v49 = vld [vmem:[#allocation9_spill] sm:$0xff]  ;;  %v12223_v61 = vld [vmem:[#allocation10_spill] sm:$0xff]  ;;  %v5801_v9 = vmul.f32 -1.442695, %v4777_v14 }
 0x8b2   :  { %v4738_v41 = vpop.f32.mrf.mxu0  ;;  %v4779_v15 = vpop.f32.mrf.mxu1  ;;  %4936 = vmatprep.subr.bf16.mxu0 %v10505_v51  ;;  %4977 = vmatprep.subr.bf16.mxu1 %v12216_v56  ;;  %v12225_v51 = vld [vmem:[#allocation8_spill] sm:$0xff]  ;;  %v12234_v20 = vld [vmem:[#allocation13_spill] sm:$0xff]  ;;  %v12239_v56 = vld [vmem:[#allocation78_spill] sm:$0xff] }
 0x8b3   :  { %6530 = vpow2.f32 %v5800_v46  ;;  %v4912_v46 = vpack.c.bf16 %v10740_v59, %v10740_v59  ;;  %v12236_v59 = vld [vmem:[#allocation76_spill] sm:$0xff]  ;;  %v12237_v41 = vld [vmem:[#allocation75_spill] sm:$0xff]  ;;  %v12238_v15 = vld [vmem:[#allocation77_spill] sm:$0xff] }
 0x8b4   :  { %6532 = vpow2.f32 %v5801_v9  ;;  %v12244_v14 = vld [vmem:[#allocation84_spill] sm:$0xff]  ;;  %v12249_v9 = vld [vmem:[#allocation69_spill] sm:$0xff] }
 0x8b5   :  { %4937 = vmatpush2.bf16.msra.mxu0 %v12217_v34  ;;  %4978 = vmatpush2.bf16.msra.mxu1 %v12218_v29  ;;  %v12240_v34 = vld [vmem:[#allocation80_spill] sm:$0xff]  ;;  %v12241_v29 = vld [vmem:[#allocation79_spill] sm:$0xff] }
 0x8b6   :  { %4938 = vmatprep.subr.bf16.mxu0 %v12219_v38  ;;  %4979 = vmatprep.subr.bf16.mxu1 %v12220_v60  ;;  %v12242_v38 = vld [vmem:[#allocation81_spill] sm:$0xff]  ;;  %v12243_v60 = vld [vmem:[#allocation82_spill] sm:$0xff] }
 0x8b9   :  { %4939 = vmatpush2.bf16.msra.mxu0 %v12222_v49  ;;  %4980 = vmatpush2.bf16.msra.mxu1 %v12223_v61  ;;  %v12245_v49 = vld [vmem:[#allocation83_spill] sm:$0xff]  ;;  %v12246_v61 = vld [vmem:[#allocation85_spill] sm:$0xff] }
 0x8ba   :  { %4940 = vmatprep.subr.bf16.mxu0 %v12224_v48  ;;  %4981 = vmatprep.subr.bf16.mxu1 %v12225_v51  ;;  %v12247_v48 = vld [vmem:[#allocation86_spill] sm:$0xff]  ;;  %v12248_v51 = vld [vmem:[#allocation87_spill] sm:$0xff] }
 0x8bd   :  { %4941 = vmatpush2.bf16.msra.mxu0 %v12226_v35  ;;  %4982 = vmatpush2.bf16.msra.mxu1 %v12227_v53  ;;  %v12250_v35 = vld [vmem:[#allocation67_spill] sm:$0xff]  ;;  %v12251_v53 = vld [vmem:[#allocation70_spill] sm:$0xff] }
 0x8be   :  { %v6529_v4 = vpop.eup %6528  ;;  %4942 = vmatprep.subr.bf16.mxu0 %v12229_v2  ;;  %4983 = vmatprep.subr.bf16.mxu1 %v12230_v3  ;;  %v12254_v2 = vld [vmem:[#allocation63_spill] sm:$0xff]  ;;  %v12255_v3 = vld [vmem:[#allocation66_spill] sm:$0xff] }
 0x8bf   :  { %v4784_v26 = vadd.f32 1.0, %v6529_v4  ;;  %v12252_v4 = vld [vmem:[#allocation65_spill] sm:$0xff] }
 0x8c0   :  { %v6531_v23 = vpop.eup %6530 }
 0x8c1   :  { %6534 = vrcp.f32 %v4784_v26  ;;  %v4790_v33 = vadd.f32 1.0, %v6531_v23  ;;  %4943 = vmatpush2.bf16.msra.mxu0 %v12231_v17  ;;  %4984 = vmatpush2.bf16.msra.mxu1 %v12232_v32  ;;  %v6533_v52 = vpop.eup %6532  ;;  %v12256_v26 = vld [vmem:[#allocation61_spill] sm:$0xff]  ;;  %v12257_v23 = vld [vmem:[#allocation64_spill] sm:$0xff]  ;;  %v12259_v17 = vld [vmem:[#allocation62_spill] sm:$0xff] }
 0x8c2   :  { %6536 = vtanh.f32 %v4775_v30  ;;  %4944 = vmatprep.subr.bf16.mxu0 %v12233_v43  ;;  %4985 = vmatprep.subr.bf16.mxu1 %v10610_v16  ;;  %v4797_v19 = vadd.f32 1.0, %v6533_v52  ;;  %v12253_v30 = vld [vmem:[#allocation68_spill] sm:$0xff]  ;;  %v12260_v32 = vld [vmem:[#allocation57_spill] sm:$0xff]  ;;  %v12262_v52 = vld [vmem:[#allocation55_spill] sm:$0xff] }
 0x8c3   :  { %6538 = vrcp.f32 %v4790_v33  ;;  %v12258_v33 = vld [vmem:[#allocation59_spill] sm:$0xff]  ;;  %v12261_v43 = vld [vmem:[#allocation60_spill] sm:$0xff] }
 0x8c4   :  { %6540 = vrcp.f32 %v4797_v19  ;;  %v12266_v19 = vld [vmem:[#allocation51_spill] sm:$0xff] }
 0x8c5   :  { %4945 = vmatpush2.bf16.msra.mxu0 %v10616_v22  ;;  %4986 = vmatpush2.bf16.msra.mxu1 %v10622_v36 }
 0x8c6   :  { %5021 = vmatprep.subr.bf16.mxu0 %v8064_v57  ;;  %5062 = vmatprep.subr.bf16.mxu1 %v8077_v58 }
 0x8ce   :  { %v6535_v40 = vpop.eup %6534 }
 0x8cf   :  { %v6537_v13 = vpop.eup %6536 }
 0x8d0   :  { %v6539_v45 = vpop.eup %6538  ;;  %v4801_v42 = vmul.f32 %v6537_v13, %v6535_v40  ;;  %v12263_v40 = vld [vmem:[#allocation58_spill] sm:$0xff]  ;;  %v12264_v13 = vld [vmem:[#allocation53_spill] sm:$0xff] }
 0x8d1   :  { %v4800_v54 = vmul.f32 %v6539_v45, %v12234_v20  ;;  %v6541_v22 = vpop.eup %6540  ;;  %v12265_v45 = vld [vmem:[#allocation56_spill] sm:$0xff]  ;;  %v12268_v20 = vld [vmem:[#allocation49_spill] sm:$0xff] }
 0x8d3   :  { %v10783_v55 = vadd.f32 %v4801_v42, %v4800_v54  ;;  %v12267_v42 = vld [vmem:[#allocation54_spill] sm:$0xff]  ;;  %v12269_v54 = vld [vmem:[#allocation52_spill] sm:$0xff] }
 0x8d5   :  { %12235 = vst [vmem:[#allocation112_spill] sm:$0xff] %v10783_v55  ;;  %6542 = vtanh.f32 %v10783_v55  ;;  %v12274_v55 = vld [vmem:[#allocation43_spill] sm:$0xff] }
 0x8e2   :  { %v6543_v16 = vpop.eup %6542 }
 0x8e3   :  { %v4804_v36 = vmul.f32 %v6543_v16, %v6541_v22  ;;  %v12270_v22 = vld [vmem:[#allocation47_spill] sm:$0xff]  ;;  %v12271_v16 = vld [vmem:[#allocation50_spill] sm:$0xff] }
 0x8e5   :  { %v10786_v12 = vpack.c.bf16 %v4804_v36, %v4804_v36  ;;  %v12272_v36 = vld [vmem:[#allocation45_spill] sm:$0xff] }
 0x8e7   :  { %4946 = vmatprep.mubr.bf16.mxu0 %v10786_v12  ;;  %4987 = vmatprep.mubr.bf16.mxu1 %v10786_v12 }
 0x8e8   :  { %4947 = vmatmul.mubr.bf16.vlgmr.msra.gmra.mxu0 %v4912_v46  ;;  %4988 = vmatmul.mubr.bf16.vlgmr.msra.gmra.mxu1 %v4912_v46  ;;  %v12273_v46 = vld [vmem:[#allocation48_spill] sm:$0xff] }
 0x8e9   :  { %5022 = vmatpush1.bf16.msra.mxu0 %v8068_v37  ;;  %5063 = vmatpush1.bf16.msra.mxu1 %v8083_v44 }
 0x8ea   :  { %5023 = vmatprep.subr.bf16.mxu0 %v8072_v25  ;;  %5064 = vmatprep.subr.bf16.mxu1 %v8087_v21 }
 0x8ed   :  { %5024 = vmatpush1.bf16.msra.mxu0 %v8092_v28  ;;  %5065 = vmatpush1.bf16.msra.mxu1 %v8103_v50 }
 0x8ee   :  { %5025 = vmatprep.subr.bf16.mxu0 %v8098_v11  ;;  %5066 = vmatprep.subr.bf16.mxu1 %v8108_v8 }
 0x8f1   :  { %5026 = vmatpush1.bf16.msra.mxu0 %v8113_v10  ;;  %5067 = vmatpush1.bf16.msra.mxu1 %v8123_v0 }
 0x8f2   :  { %5027 = vmatprep.subr.bf16.mxu0 %v8118_v18  ;;  %5068 = vmatprep.subr.bf16.mxu1 %v8128_v47 }
 0x8f5   :  { %5028 = vmatpush1.bf16.msra.mxu0 %v8133_v6  ;;  %5069 = vmatpush1.bf16.msra.mxu1 %v8143_v63 }
 0x8f6   :  { %5029 = vmatprep.subr.bf16.mxu0 %v12053_v31  ;;  %5070 = vmatprep.subr.bf16.mxu1 %v12054_v39 }
 0x8f9   :  { %5030 = vmatpush1.bf16.msra.mxu0 %v12055_v1  ;;  %5071 = vmatpush1.bf16.msra.mxu1 %v12236_v59 }
 0x8fa   :  { %5031 = vmatprep.subr.bf16.mxu0 %v12237_v41  ;;  %5072 = vmatprep.subr.bf16.mxu1 %v12238_v15 }
 0x8fd   :  { %5032 = vmatpush1.bf16.msra.mxu0 %v12239_v56  ;;  %5073 = vmatpush1.bf16.msra.mxu1 %v12240_v34 }
 0x8fe   :  { %5033 = vmatprep.subr.bf16.mxu0 %v12241_v29  ;;  %5074 = vmatprep.subr.bf16.mxu1 %v12242_v38 }
 0x901   :  { %5034 = vmatpush1.bf16.msra.mxu0 %v12243_v60  ;;  %5075 = vmatpush1.bf16.msra.mxu1 %v12244_v14 }
 0x902   :  { %5035 = vmatprep.subr.bf16.mxu0 %v12245_v49  ;;  %5076 = vmatprep.subr.bf16.mxu1 %v12246_v61 }
 0x905   :  { %5036 = vmatpush1.bf16.msra.mxu0 %v12247_v48  ;;  %5077 = vmatpush1.bf16.msra.mxu1 %v12248_v51 }
 0x906   :  { %5037 = vmatprep.subr.bf16.mxu0 %v12249_v9  ;;  %5078 = vmatprep.subr.bf16.mxu1 %v12250_v35 }
 0x909   :  { %5038 = vmatpush2.bf16.msra.mxu0 %v12251_v53  ;;  %5079 = vmatpush2.bf16.msra.mxu1 %v12252_v4 }
 0x90a   :  { %5039 = vmatprep.subr.bf16.mxu0 %v12253_v30  ;;  %5080 = vmatprep.subr.bf16.mxu1 %v12254_v2 }
 0x90d   :  { %5040 = vmatpush2.bf16.msra.mxu0 %v12255_v3  ;;  %5081 = vmatpush2.bf16.msra.mxu1 %v12256_v26 }
 0x90e   :  { %5041 = vmatprep.subr.bf16.mxu0 %v12257_v23  ;;  %5082 = vmatprep.subr.bf16.mxu1 %v12258_v33 }
 0x911   :  { %5042 = vmatpush2.bf16.msra.mxu0 %v12259_v17  ;;  %5083 = vmatpush2.bf16.msra.mxu1 %v12260_v32  ;;  %v12284_v32 = vld [vmem:[#allocation151_spill] sm:$0xff] }
 0x912   :  { %5043 = vmatprep.subr.bf16.mxu0 %v12261_v43  ;;  %5084 = vmatprep.subr.bf16.mxu1 %v12262_v52 }
 0x915   :  { %5044 = vmatpush2.bf16.msra.mxu0 %v12263_v40  ;;  %5085 = vmatpush2.bf16.msra.mxu1 %v12264_v13 }
 0x916   :  { %5045 = vmatprep.subr.bf16.mxu0 %v12265_v45  ;;  %5086 = vmatprep.subr.bf16.mxu1 %v12266_v19  ;;  %v12277_v19 = vld [vmem:[#allocation44_spill] sm:$0xff] }
 0x919   :  { %5046 = vmatpush2.bf16.msra.mxu0 %v12267_v42  ;;  %5087 = vmatpush2.bf16.msra.mxu1 %v12268_v20  ;;  %v12278_v42 = vld [vmem:[#allocation39_spill] sm:$0xff]  ;;  %v12279_v20 = vld [vmem:[#allocation42_spill] sm:$0xff] }
 0x91a   :  { %5047 = vmatprep.subr.bf16.mxu0 %v12269_v54  ;;  %5088 = vmatprep.subr.bf16.mxu1 %v12270_v22  ;;  %v12280_v54 = vld [vmem:[#allocation40_spill] sm:$0xff] }
 0x91d   :  { %5048 = vmatpush2.bf16.msra.mxu0 %v12271_v16  ;;  %5089 = vmatpush2.bf16.msra.mxu1 %v12272_v36  ;;  %v12281_v16 = vld [vmem:[#allocation148_spill] sm:$0xff] }
 0x91e   :  { %5049 = vmatprep.subr.bf16.mxu0 %v12273_v46  ;;  %5090 = vmatprep.subr.bf16.mxu1 %v12274_v55 }
 0x921   :  { %5050 = vmatpush2.bf16.msra.mxu0 %v12275_v24  ;;  %5091 = vmatpush2.bf16.msra.mxu1 %v12276_v7  ;;  %v12282_v7 = vld [vmem:[#allocation149_spill] sm:$0xff] }
 0x922   :  { %5051 = vmatprep.subr.bf16.mxu0 %v12277_v19  ;;  %5092 = vmatprep.subr.bf16.mxu1 %v12278_v42 }
 0x925   :  { %5052 = vmatpush2.bf16.msra.mxu0 %v12279_v20  ;;  %5093 = vmatpush2.bf16.msra.mxu1 %v12280_v54  ;;  %v12283_v54 = vld [vmem:[#allocation150_spill] sm:$0xff] }
 0x926   :  { %5129 = vmatprep.subr.bf16.mxu0 %v8064_v57  ;;  %5170 = vmatprep.subr.bf16.mxu1 %v8077_v58 }
 0x948   :  { %v4840_v36 = vpop.f32.mrf.mxu0  ;;  %v4881_v46 = vpop.f32.mrf.mxu1 }
 0x949   :  { %v4841_v55 = vadd.f32 %v4840_v36, %v12281_v16  ;;  %v4882_v17 = vadd.f32 %v4881_v46, %v12284_v32 }
 0x94a   :  { %v4842_v22 = vpop.f32.mrf.mxu0  ;;  %v4883_v24 = vpop.f32.mrf.mxu1 }
 0x94b   :  { %v5802_v45 = vmul.f32 -1.442695, %v4841_v55  ;;  %v4843_v13 = vadd.f32 %v4842_v22, %v12282_v7  ;;  %v4884_v57 = vadd.f32 %v4883_v24, %v12283_v54 }
 0x94c   :  { %v4844_v19 = vpop.f32.mrf.mxu0  ;;  %v4885_v40 = vpop.f32.mrf.mxu1 }
 0x94d   :  { %6544 = vpow2.f32 %v5802_v45  ;;  %v5803_v42 = vmul.f32 -1.442695, %v4843_v13  ;;  %v5804_v43 = vmul.f32 -1.442695, %v4884_v57 }
 0x94e   :  { %v4845_v20 = vpop.f32.mrf.mxu0  ;;  %v4886_v52 = vpop.f32.mrf.mxu1 }
 0x94f   :  { %6546 = vpow2.f32 %v5803_v42 }
 0x950   :  { %6548 = vpow2.f32 %v5804_v43 }
 0x95a   :  { %v6545_v58 = vpop.eup %6544 }
 0x95b   :  { %v4891_v27 = vadd.f32 1.0, %v6545_v58 }
 0x95c   :  { %v6547_v36 = vpop.eup %6546 }
 0x95d   :  { %6550 = vrcp.f32 %v4891_v27  ;;  %v4897_v55 = vadd.f32 1.0, %v6547_v36  ;;  %v6549_v19 = vpop.eup %6548 }
 0x95e   :  { %6552 = vtanh.f32 %v4882_v17  ;;  %v4904_v20 = vadd.f32 1.0, %v6549_v19  ;;  %v12309_v17 = vld [vmem:[#allocation40_spill] sm:$0xff] }
 0x95f   :  { %6554 = vrcp.f32 %v4897_v55 }
 0x960   :  { %6556 = vrcp.f32 %v4904_v20 }
 0x96a   :  { %v6551_v40 = vpop.eup %6550 }
 0x96b   :  { %v6553_v45 = vpop.eup %6552 }
 0x96c   :  { %v6555_v13 = vpop.eup %6554  ;;  %v4908_v52 = vmul.f32 %v6553_v45, %v6551_v40  ;;  %v12310_v45 = vld [vmem:[#allocation112_spill] sm:$0xff] }
 0x96d   :  { %v4907_v42 = vmul.f32 %v6555_v13, %v10704_v62  ;;  %v6557_v22 = vpop.eup %6556  ;;  %v12290_v62 = vld [vmem:[#allocation58_spill] sm:$0xff] }
 0x96f   :  { %v10861_v24 = vadd.f32 %v4908_v52, %v4907_v42 }
 0x971   :  { %6558 = vtanh.f32 %v10861_v24 }
 0x97e   :  { %v6559_v46 = vpop.eup %6558 }
 0x97f   :  { %v4911_v43 = vmul.f32 %v6559_v46, %v6557_v22 }
 0x981   :  { %v5020_v27 = vpack.c.bf16 %v4911_v43, %v4911_v43 }
 0x983   :  { %5053 = vmatprep.mubr.bf16.mxu0 %v5020_v27  ;;  %5094 = vmatprep.mubr.bf16.mxu1 %v5020_v27 }
 0x984   :  { %5054 = vmatmul.mubr.bf16.vlgmr.msra.gmra.mxu0 %v10786_v12  ;;  %5095 = vmatmul.mubr.bf16.vlgmr.msra.gmra.mxu1 %v10786_v12  ;;  %v12292_v12 = vld [vmem:[#allocation56_spill] sm:$0xff] }
 0x985   :  { %5130 = vmatpush1.bf16.msra.mxu0 %v8068_v37  ;;  %5171 = vmatpush1.bf16.msra.mxu1 %v8083_v44 }
 0x986   :  { %5131 = vmatprep.subr.bf16.mxu0 %v8072_v25  ;;  %5172 = vmatprep.subr.bf16.mxu1 %v8087_v21 }
 0x989   :  { %5132 = vmatpush1.bf16.msra.mxu0 %v8092_v28  ;;  %5173 = vmatpush1.bf16.msra.mxu1 %v8103_v50  ;;  %v12285_v50 = vld [vmem:[#allocation88_spill] sm:$0xff] }
 0x98a   :  { %5133 = vmatprep.subr.bf16.mxu0 %v8098_v11  ;;  %5174 = vmatprep.subr.bf16.mxu1 %v8108_v8 }
 0x98d   :  { %5134 = vmatpush1.bf16.msra.mxu0 %v8113_v10  ;;  %5175 = vmatpush1.bf16.msra.mxu1 %v8123_v0 }
 0x98e   :  { %5135 = vmatprep.subr.bf16.mxu0 %v8118_v18  ;;  %5176 = vmatprep.subr.bf16.mxu1 %v8128_v47  ;;  %v12286_v47 = vld [vmem:[#allocation62_spill] sm:$0xff] }
 0x991   :  { %5136 = vmatpush1.bf16.msra.mxu0 %v8133_v6  ;;  %5177 = vmatpush1.bf16.msra.mxu1 %v8143_v63  ;;  %v12287_v6 = vld [vmem:[#allocation57_spill] sm:$0xff] }
 0x992   :  { %5137 = vmatprep.subr.bf16.mxu0 %v12053_v31  ;;  %5178 = vmatprep.subr.bf16.mxu1 %v12054_v39  ;;  %v12288_v39 = vld [vmem:[#allocation60_spill] sm:$0xff] }
 0x995   :  { %5138 = vmatpush1.bf16.msra.mxu0 %v12055_v1  ;;  %5179 = vmatpush1.bf16.msra.mxu1 %v12236_v59  ;;  %v12289_v1 = vld [vmem:[#allocation55_spill] sm:$0xff] }
 0x996   :  { %5139 = vmatprep.subr.bf16.mxu0 %v12237_v41  ;;  %5180 = vmatprep.subr.bf16.mxu1 %v12238_v15  ;;  %v12293_v59 = vld [vmem:[#allocation51_spill] sm:$0xff] }
 0x997   :  { %v12294_v41 = vld [vmem:[#allocation35_spill] sm:$0xff] }
 0x999   :  { %5140 = vmatpush1.bf16.msra.mxu0 %v12239_v56  ;;  %5181 = vmatpush1.bf16.msra.mxu1 %v12240_v34  ;;  %v12295_v56 = vld [vmem:[#allocation54_spill] sm:$0xff]  ;;  %v12296_v34 = vld [vmem:[#allocation49_spill] sm:$0xff] }
 0x99a   :  { %5141 = vmatprep.subr.bf16.mxu0 %v12241_v29  ;;  %5182 = vmatprep.subr.bf16.mxu1 %v12242_v38  ;;  %v12297_v29 = vld [vmem:[#allocation52_spill] sm:$0xff]  ;;  %v12298_v38 = vld [vmem:[#allocation47_spill] sm:$0xff] }
 0x99d   :  { %5142 = vmatpush1.bf16.msra.mxu0 %v12243_v60  ;;  %5183 = vmatpush1.bf16.msra.mxu1 %v12244_v14  ;;  %v12299_v60 = vld [vmem:[#allocation33_spill] sm:$0xff] }
 0x99e   :  { %5143 = vmatprep.subr.bf16.mxu0 %v12245_v49  ;;  %5184 = vmatprep.subr.bf16.mxu1 %v12246_v61  ;;  %v12300_v61 = vld [vmem:[#allocation50_spill] sm:$0xff] }
 0x9a1   :  { %5144 = vmatpush1.bf16.msra.mxu0 %v12247_v48  ;;  %5185 = vmatpush1.bf16.msra.mxu1 %v12248_v51  ;;  %v12301_v48 = vld [vmem:[#allocation45_spill] sm:$0xff] }
 0x9a2   :  { %5145 = vmatprep.subr.bf16.mxu0 %v12249_v9  ;;  %5186 = vmatprep.subr.bf16.mxu1 %v12250_v35  ;;  %v12302_v9 = vld [vmem:[#allocation48_spill] sm:$0xff]  ;;  %v12303_v35 = vld [vmem:[#allocation43_spill] sm:$0xff] }
 0x9a5   :  { %5146 = vmatpush2.bf16.msra.mxu0 %v12251_v53  ;;  %5187 = vmatpush2.bf16.msra.mxu1 %v12252_v4 }
 0x9a6   :  { %5147 = vmatprep.subr.bf16.mxu0 %v12253_v30  ;;  %5188 = vmatprep.subr.bf16.mxu1 %v12254_v2  ;;  %v12304_v2 = vld [vmem:[#allocation46_spill] sm:$0xff] }
 0x9a8   :  { %v4948_v37 = vpop.f32.mrf.mxu0  ;;  %v4989_v25 = vpop.f32.mrf.mxu1 }
 0x9a9   :  { %v4949_v44 = vadd.f32 %v4948_v37, %v12211_v5  ;;  %5148 = vmatpush2.bf16.msra.mxu0 %v12255_v3  ;;  %5189 = vmatpush2.bf16.msra.mxu1 %v12256_v26  ;;  %v12291_v5 = vld [vmem:[#allocation53_spill] sm:$0xff]  ;;  %v4990_v14 = vadd.f32 %v4989_v25, %v12299_v60  ;;  %v12306_v26 = vld [vmem:[#allocation44_spill] sm:$0xff] }
 0x9aa   :  { %v4950_v21 = vpop.f32.mrf.mxu0  ;;  %v4991_v28 = vpop.f32.mrf.mxu1  ;;  %5149 = vmatprep.subr.bf16.mxu0 %v12257_v23  ;;  %5190 = vmatprep.subr.bf16.mxu1 %v12258_v33  ;;  %v12305_v3 = vld [vmem:[#allocation41_spill] sm:$0xff]  ;;  %v12307_v23 = vld [vmem:[#allocation39_spill] sm:$0xff]  ;;  %v12308_v33 = vld [vmem:[#allocation42_spill] sm:$0xff] }
 0x9ab   :  { %v5805_v11 = vmul.f32 -1.442695, %v4949_v44  ;;  %v4951_v8 = vadd.f32 %v4950_v21, %v12285_v50  ;;  %v4992_v15 = vadd.f32 %v4991_v28, %v12294_v41 }
 0x9ac   :  { %v4952_v10 = vpop.f32.mrf.mxu0  ;;  %v4993_v18 = vpop.f32.mrf.mxu1 }
 0x9ad   :  { %6560 = vpow2.f32 %v5805_v11  ;;  %v5806_v0 = vmul.f32 -1.442695, %v4951_v8  ;;  %5150 = vmatpush2.bf16.msra.mxu0 %v12286_v47  ;;  %5191 = vmatpush2.bf16.msra.mxu1 %v12287_v6  ;;  %v5807_v49 = vmul.f32 -1.442695, %v4992_v15 }
 0x9ae   :  { %v4953_v63 = vpop.f32.mrf.mxu0  ;;  %v4994_v31 = vpop.f32.mrf.mxu1  ;;  %5151 = vmatprep.subr.bf16.mxu0 %v12288_v39  ;;  %5192 = vmatprep.subr.bf16.mxu1 %v12289_v1 }
 0x9af   :  { %6562 = vpow2.f32 %v5806_v0 }
 0x9b0   :  { %6564 = vtanh.f32 %v4990_v14 }
 0x9b1   :  { %5152 = vmatpush2.bf16.msra.mxu0 %v12290_v62  ;;  %5193 = vmatpush2.bf16.msra.mxu1 %v12291_v5  ;;  %6566 = vpow2.f32 %v5807_v49  ;;  %v6296_v49 = vld [vmem:[%s10984_s8 + $0x38] sm:$0xff]  }
 0x9b2   :  { %5153 = vmatprep.subr.bf16.mxu0 %v12292_v12  ;;  %5194 = vmatprep.subr.bf16.mxu1 %v12293_v59 }
 0x9b5   :  { %5154 = vmatpush2.bf16.msra.mxu0 %v12295_v56  ;;  %5195 = vmatpush2.bf16.msra.mxu1 %v12296_v34 }
 0x9b6   :  { %5155 = vmatprep.subr.bf16.mxu0 %v12297_v29  ;;  %5196 = vmatprep.subr.bf16.mxu1 %v12298_v38 }
 0x9b9   :  { %5156 = vmatpush2.bf16.msra.mxu0 %v12300_v61  ;;  %5197 = vmatpush2.bf16.msra.mxu1 %v12301_v48  ;;  %v6803_v61 = vmov 0.0   ;;  %v6298_v48 = vld [vmem:[%s10984_s8 + $0x28] sm:$0xff]  }
 0x9ba   :  { %v6561_v51 = vpop.eup %6560  ;;  %5157 = vmatprep.subr.bf16.mxu0 %v12302_v9  ;;  %5198 = vmatprep.subr.bf16.mxu1 %v12303_v35  ;;  %v6300_v9 = vld [vmem:[%s10984_s8 + $0x18] sm:$0xff]   ;;  %v6301_v35 = vld [vmem:[%s10984_s8 + $0x10] sm:$0xff]  }
 0x9bb   :  { %v4999_v53 = vadd.f32 1.0, %v6561_v51  ;;  %v6299_v51 = vld [vmem:[%s10984_s8 + $0x20] sm:$0xff]  }
 0x9bc   :  { %v6563_v4 = vpop.eup %6562 }
 0x9bd   :  { %6568 = vrcp.f32 %v4999_v53  ;;  %v5005_v30 = vadd.f32 1.0, %v6563_v4  ;;  %5158 = vmatpush2.bf16.msra.mxu0 %v12304_v2  ;;  %5199 = vmatpush2.bf16.msra.mxu1 %v12305_v3  ;;  %v6565_v57 = vpop.eup %6564  ;;  %v6302_v53 = vld [vmem:[%s10984_s8 + $0x8] sm:$0xff]   ;;  %v6303_v4 = vld [vmem:[%s10984_s8] sm:$0xff]  }
 0x9be   :  { %5159 = vmatprep.subr.bf16.mxu0 %v12306_v26  ;;  %5200 = vmatprep.subr.bf16.mxu1 %v12307_v23  ;;  %v6567_v58 = vpop.eup %6566 }
 0x9bf   :  { %6570 = vrcp.f32 %v5005_v30  ;;  %v5012_v40 = vadd.f32 1.0, %v6567_v58 }
 0x9c1   :  { %5160 = vmatpush2.bf16.msra.mxu0 %v12308_v33  ;;  %5201 = vmatpush2.bf16.msra.mxu1 %v12309_v17  ;;  %6572 = vrcp.f32 %v5012_v40 }
 0x9c2   :  { %5833 = vmatprep.subr.bf16.mxu0 %v6803_v61 }
 0x9ca   :  { %v6569_v36 = vpop.eup %6568 }
 0x9cb   :  { %v5016_v55 = vmul.f32 %v6569_v36, %v6565_v57 }
 0x9cc   :  { %v6571_v19 = vpop.eup %6570 }
 0x9cd   :  { %v5015_v13 = vmul.f32 %v6571_v19, %v12310_v45 }
 0x9ce   :  { %v6573_v52 = vpop.eup %6572 }
 0x9cf   :  { %v5017_v20 = vadd.f32 %v5016_v55, %v5015_v13 }
 0x9d1   :  { %6574 = vtanh.f32 %v5017_v20 }
 0x9de   :  { %v6575_v42 = vpop.eup %6574 }
 0x9df   :  { %v5019_v22 = vmul.f32 %v6575_v42, %v6573_v52 }
 0x9e1   :  { %v5127_v14 = vpack.c.bf16 %v5019_v22, %v5019_v22 }
 0xa44   :  { %v5055_v46 = vpop.f32.mrf.mxu0  ;;  %v5096_v43 = vpop.f32.mrf.mxu1 }
 0xa45   :  { %v5056_v27 = vadd.f32 %v5055_v46, %v12281_v16  ;;  %v5097_v6 = vadd.f32 %v5096_v43, %v12284_v32 }
 0xa46   :  { %v5057_v37 = vpop.f32.mrf.mxu0  ;;  %v5098_v25 = vpop.f32.mrf.mxu1 }
 0xa47   :  { %v5808_v44 = vmul.f32 -1.442695, %v5056_v27  ;;  %v5058_v21 = vadd.f32 %v5057_v37, %v12282_v7  ;;  %v5099_v18 = vadd.f32 %v5098_v25, %v12283_v54 }
 0xa48   :  { %v5059_v28 = vpop.f32.mrf.mxu0  ;;  %v5100_v11 = vpop.f32.mrf.mxu1 }
 0xa49   :  { %6576 = vpow2.f32 %v5808_v44  ;;  %v5809_v50 = vmul.f32 -1.442695, %v5058_v21  ;;  %v5810_v0 = vmul.f32 -1.442695, %v5099_v18  ;;  %v5814_v11 = vld [vmem:[%s10985_s9] ss:$0 sm:$0xff] }
 0xa4a   :  { %v5060_v8 = vpop.f32.mrf.mxu0  ;;  %v5101_v10 = vpop.f32.mrf.mxu1 }
 0xa4b   :  { %6578 = vpow2.f32 %v5809_v50 }
 0xa4c   :  { %6580 = vpow2.f32 %v5810_v0 }
 0xa56   :  { %v6577_v47 = vpop.eup %6576 }
 0xa57   :  { %v5106_v63 = vadd.f32 1.0, %v6577_v47 }
 0xa58   :  { %v6579_v31 = vpop.eup %6578 }
 0xa59   :  { %6582 = vrcp.f32 %v5106_v63  ;;  %v5112_v39 = vadd.f32 1.0, %v6579_v31  ;;  %v6581_v1 = vpop.eup %6580 }
 0xa5a   :  { %6584 = vtanh.f32 %v5097_v6  ;;  %v5119_v59 = vadd.f32 1.0, %v6581_v1 }
 0xa5b   :  { %6586 = vrcp.f32 %v5112_v39 }
 0xa5c   :  { %6588 = vrcp.f32 %v5119_v59 }
 0xa66   :  { %v6583_v62 = vpop.eup %6582 }
 0xa67   :  { %v6585_v5 = vpop.eup %6584 }
 0xa68   :  { %v6587_v12 = vpop.eup %6586  ;;  %v5123_v41 = vmul.f32 %v6585_v5, %v6583_v62 }
 0xa69   :  { %v5122_v15 = vmul.f32 %v6587_v12, %v10861_v24  ;;  %v6589_v34 = vpop.eup %6588  ;;  %v6297_v24 = vld [vmem:[%s10984_s8 + $0x30] sm:$0xff]  }
 0xa6b   :  { %v10938_v56 = vadd.f32 %v5123_v41, %v5122_v15 }
 0xa6d   :  { %6590 = vtanh.f32 %v10938_v56 }
 0xa7a   :  { %v6591_v29 = vpop.eup %6590 }
 0xa7b   :  { %v5126_v38 = vmul.f32 %v6591_v29, %v6589_v34 }
 0xa7d   :  { %v5128_v60 = vpack.c.bf16 %v5126_v38, %v5126_v38 }
 0xa7f   :  { %5161 = vmatprep.mubr.bf16.mxu0 %v5128_v60  ;;  %5202 = vmatprep.mubr.bf16.mxu1 %v5128_v60 }
 0xa80   :  { %5162 = vmatmul.mubr.bf16.vlgmr.msra.gmra.mxu0 %v5127_v14  ;;  %5203 = vmatmul.mubr.bf16.vlgmr.msra.gmra.mxu1 %v5127_v14 }
 0xa81   :  { %5834 = vmatpush3.bf16.msra.mxu0 %v6296_v49  ;;  %5849 = vmatprep.mubr.msk.bf16.mxu0 %vm6804_vm1, %v6803_v61 }
 0xa82   :  { %5835 = vmatprep.subr.bf16.mxu0 %v6803_v61 }
 0xa85   :  { %5836 = vmatpush3.bf16.msra.mxu0 %v6297_v24 }
 0xa86   :  { %5837 = vmatprep.subr.bf16.mxu0 %v6803_v61 }
 0xa89   :  { %5838 = vmatpush3.bf16.msra.mxu0 %v6298_v48 }
 0xa8a   :  { %5839 = vmatprep.subr.bf16.mxu0 %v6803_v61 }
 0xa8d   :  { %5840 = vmatpush3.bf16.msra.mxu0 %v6299_v51 }
 0xa8e   :  { %5841 = vmatprep.subr.bf16.mxu0 %v6803_v61 }
 0xa91   :  { %5842 = vmatpush3.bf16.msra.mxu0 %v6300_v9 }
 0xa92   :  { %5843 = vmatprep.subr.bf16.mxu0 %v6803_v61 }
 0xa95   :  { %5844 = vmatpush3.bf16.msra.mxu0 %v6301_v35 }
 0xa96   :  { %5845 = vmatprep.subr.bf16.mxu0 %v6803_v61 }
 0xa99   :  { %5846 = vmatpush3.bf16.msra.mxu0 %v6302_v53 }
 0xa9a   :  { %5847 = vmatprep.subr.bf16.mxu0 %v6803_v61 }
 0xa9d   :  { %5848 = vmatpush3.bf16.msra.mxu0 %v6303_v4 }
 0xb40   :  { %v5163_v30 = vpop.f32.mrf.mxu0  ;;  %v5204_v2 = vpop.f32.mrf.mxu1 }
 0xb41   :  { %v5164_v3 = vadd.f32 %v5163_v30, %v12281_v16  ;;  %v5205_v20 = vadd.f32 %v5204_v2, %v12284_v32 }
 0xb42   :  { %v5165_v26 = vpop.f32.mrf.mxu0  ;;  %v5206_v23 = vpop.f32.mrf.mxu1 }
 0xb43   :  { %v5811_v33 = vmul.f32 -1.442695, %v5164_v3  ;;  %v5166_v17 = vadd.f32 %v5165_v26, %v12282_v7  ;;  %v5207_v40 = vadd.f32 %v5206_v23, %v12283_v54 }
 0xb44   :  { %v5167_v57 = vpop.f32.mrf.mxu0  ;;  %v5208_v58 = vpop.f32.mrf.mxu1 }
 0xb45   :  { %6592 = vpow2.f32 %v5811_v33  ;;  %v5812_v36 = vmul.f32 -1.442695, %v5166_v17  ;;  %v5813_v45 = vmul.f32 -1.442695, %v5207_v40 }
 0xb46   :  { %v5168_v55 = vpop.f32.mrf.mxu0  ;;  %v5209_v19 = vpop.f32.mrf.mxu1 }
 0xb47   :  { %6594 = vpow2.f32 %v5812_v36 }
 0xb48   :  { %6596 = vpow2.f32 %v5813_v45 }
 0xb52   :  { %v6593_v13 = vpop.eup %6592 }
 0xb53   :  { %v5214_v52 = vadd.f32 1.0, %v6593_v13 }
 0xb54   :  { %v6595_v16 = vpop.eup %6594 }
 0xb55   :  { %6598 = vrcp.f32 %v5214_v52  ;;  %v5220_v42 = vadd.f32 1.0, %v6595_v16  ;;  %v6597_v7 = vpop.eup %6596 }
 0xb56   :  { %6600 = vtanh.f32 %v5205_v20  ;;  %v5227_v27 = vadd.f32 1.0, %v6597_v7 }
 0xb57   :  { %6602 = vrcp.f32 %v5220_v42 }
 0xb58   :  { %6604 = vrcp.f32 %v5227_v27 }
 0xb62   :  { %v6599_v22 = vpop.eup %6598 }
 0xb63   :  { %v6601_v46 = vpop.eup %6600 }
 0xb64   :  { %v6603_v43 = vpop.eup %6602  ;;  %v5231_v37 = vmul.f32 %v6601_v46, %v6599_v22 }
 0xb65   :  { %v5230_v25 = vmul.f32 %v6603_v43, %v10938_v56  ;;  %v6605_v44 = vpop.eup %6604 }
 0xb67   :  { %v5232_v54 = vadd.f32 %v5231_v37, %v5230_v25 }
 0xb69   :  { %6606 = vtanh.f32 %v5232_v54 }
 0xb76   :  { %v6607_v32 = vpop.eup %6606 }
 0xb77   :  { %v5234_v21 = vmul.f32 %v6607_v32, %v6605_v44 }
 0xb79   :  { %v5235_v28 = vpack.c.bf16 %v5234_v21, %v5234_v21 }
 0xb7b   :  { %5850 = vmatmul.mubr.bf16.vlgmr.msra.gmra.mxu0 %v5235_v28 }
 0xc3b   :  { %v5341_v50 = vpop.f32.mrf.mxu0 }
 0xc3c   :  { %v5342_v8 = vadd.f32 %v5814_v11, %v5341_v50 }
 0xc3d   :  { %v5851_v10 = vpop.f32.mrf.mxu0 }
 0xc3e   :  { %5347 = vst [vmem:[%s10986_s10] sm:$0xff] %v5342_v8 }
 0xc3f   :  { %v5344_v18 = vpop.f32.mrf.mxu0 }
 0xc41   :  { %v5852_v0 = vpop.f32.mrf.mxu0 }
 0xc42   :  { %5352 = vsyncmov [#allocation4] }
 0xc45   :  { %s5353_s26 = vpop.sfrf %5352 }
 0xc46   :  { %p5823_p0 = scmp.ne.s32.totalorder %s5353_s26, 0 }
 0xc48   :  { %5357 = shalt.err (%p5823_p0)  }

</bundles_post_ra>
